<compile_context>
chip_gen: v7x
topology: tpu7x:2x2x1
jax: 0.10.0
libtpu: 0.0.40
codegen_flags: <defaults>
</compile_context>

<pallas_src>
import jax
import jax.numpy as jnp
import numpy as np
from jax.experimental import pallas as pl
from jax.experimental.pallas import tpu as pltpu

IMG = 91              # img_size in the reference script (fc1 expects 22*22*4)
C1, C2 = 6, 4         # conv1 / conv2 output channels
H1 = IMG              # 91: conv1 output spatial size
H2 = H1 // 2          # 45: pool1 / conv2 output spatial size
H3 = H2 // 2          # 22: pool2 output spatial size
LANE = 128            # lane width of every per-channel block
XPAD_ROWS = 96        # rows of the zero-padded conv1 input (needs 93)
P1_ROWS = 48          # rows of the zero-padded conv2 input (needs 47)
P2_ROWS = 24          # rows of the lane-packed pool2 output (needs 22)
FLAT = P2_ROWS * LANE  # 3072: packed flatten length fed to fc1


# ---------------------------------------------------------------------------
# Kernel 1: fused conv1 + pool1 + conv2 + pool2, all on the MXU
# ---------------------------------------------------------------------------
def _conv_stack_kernel(w1_ref, w2_ref, b1_ref, b2_ref,          # conv weights (matmul form)
                       pw1_ref, ph1_ref, pw2_ref, ph2_ref,      # pool matrices
                       x_ref,                                   # (NB,1,91,91)
                       act1_ref, act2_ref, p2_ref,              # outputs (lane-dense)
                       xpad_s):                                 # (96,128) scratch
    f32 = jnp.float32
    nb = x_ref.shape[0]

    # Zero the padded-input scratch once per grid step: the interior is fully
    # overwritten per element and the halo rows / junk lanes never are.
    # (Not program_id==0 gated: with the parallel axis split across cores each
    #  core must initialise its own scratch.)
    xpad_s[...] = jnp.zeros(xpad_s.shape, xpad_s.dtype)

    for n in range(nb):
        # In-kernel zero padding: image rows 0..90 land on rows 1..91,
        # columns on lanes 0..90; rows 0/92 and lanes >=91 stay zero.
        xpad_s[1:H1 + 1, 0:IMG] = x_ref[n, 0]

        # ----- conv1 (1->6, 3x3, pad=1): 3 MXU matmuls, kw shift + zero pad
        # and channel stacking baked into the (128, 768) weight matrices. -----
        acc1 = jnp.dot(xpad_s[0:H1, :], w1_ref[0], preferred_element_type=f32)
        acc1 = acc1 + jnp.dot(xpad_s[1:H1 + 1, :], w1_ref[1],
                              preferred_element_type=f32)
        acc1 = acc1 + jnp.dot(xpad_s[2:H1 + 2, :], w1_ref[2],
                              preferred_element_type=f32)
        a1 = jnp.maximum(acc1 + b1_ref[...], 0.0)                 # (91, 768)

        # Lane-dense act1 store: per-channel 128-lane blocks are vreg aligned.
        for co in range(C1):
            act1_ref[n, co] = a1[:, co * LANE:(co + 1) * LANE]

        # ----- pool1: two channel-batched MXU matmuls.  ph1 also inserts the
        # +1 zero halo row, so p1s is directly the padded conv2 input. --------
        rp1 = jnp.dot(a1, pw1_ref[...], preferred_element_type=f32)   # (91, 384)
        p1s = jnp.dot(ph1_ref[...], rp1, preferred_element_type=f32)  # (48, 384)

        # ----- conv2 (6->4, 3x3, pad=1): 3 MXU matmuls; the (384, 512) weight
        # matrices contract the 6 input channels and embed kw shift / pad. ----
        acc2 = jnp.dot(p1s[0:H2, :], w2_ref[0], preferred_element_type=f32)
        acc2 = acc2 + jnp.dot(p1s[1:H2 + 1, :], w2_ref[1],
                              preferred_element_type=f32)
        acc2 = acc2 + jnp.dot(p1s[2:H2 + 2, :], w2_ref[2],
                              preferred_element_type=f32)
        a2 = jnp.maximum(acc2 + b2_ref[...], 0.0)                 # (45, 512)

        for co in range(C2):
            act2_ref[n, co] = a2[:, co * LANE:(co + 1) * LANE]

        # ----- pool2: two channel-batched MXU matmuls producing the
        # lane-packed (24, 128) result (4 channels x 32 lanes). ---------------
        rp2 = jnp.dot(a2, pw2_ref[...], preferred_element_type=f32)   # (45, 128)
        p2_ref[n] = jnp.dot(ph2_ref[...], rp2, preferred_element_type=f32)


def _pick_block_b(batch):
    """Batch elements per grid step: amortize step overhead on single-TC chips
    while keeping the outer parallel axis >= 2 for v7x's two TensorCores."""
    for nb in (8, 4, 2):
        if batch % nb == 0 and batch // nb >= 2:
            return nb
    return 1


def _const_spec(arr):
    zeros = (0,) * arr.ndim
    return pl.BlockSpec(arr.shape, lambda i, zeros=zeros: zeros)   # fetched once


def conv_stack(x, prep, block_b):
    bsz = x.shape[0]
    assert x.shape[1:] == (1, IMG, IMG)
    assert bsz % block_b == 0
    w1m, w2m = prep["w1m"], prep["w2m"]
    b1l, b2l = prep["b1l"], prep["b2l"]
    pw1, ph1, pw2, ph2 = prep["pw1"], prep["ph1"], prep["pw2"], prep["ph2"]

    grid_spec = pltpu.PrefetchScalarGridSpec(
        num_scalar_prefetch=0,
        grid=(bsz // block_b,),
        in_specs=[
            _const_spec(w1m), _const_spec(w2m),
            _const_spec(b1l), _const_spec(b2l),
            _const_spec(pw1), _const_spec(ph1),
            _const_spec(pw2), _const_spec(ph2),
            pl.BlockSpec((block_b, 1, IMG, IMG), lambda i: (i, 0, 0, 0)),
        ],
        out_specs=(
            pl.BlockSpec((block_b, C1, H1, LANE), lambda i: (i, 0, 0, 0)),
            pl.BlockSpec((block_b, C2, H2, LANE), lambda i: (i, 0, 0, 0)),
            pl.BlockSpec((block_b, P2_ROWS, LANE), lambda i: (i, 0, 0)),
        ),
        scratch_shapes=[pltpu.VMEM((XPAD_ROWS, LANE), jnp.float32)],
    )
    return pl.pallas_call(
        _conv_stack_kernel,
        out_shape=(jax.ShapeDtypeStruct((bsz, C1, H1, LANE), jnp.float32),
                   jax.ShapeDtypeStruct((bsz, C2, H2, LANE), jnp.float32),
                   jax.ShapeDtypeStruct((bsz, P2_ROWS, LANE), jnp.float32)),
        grid_spec=grid_spec,
        compiler_params=pltpu.CompilerParams(
            dimension_semantics=("parallel",),          # v7x: split across TCs
            vmem_limit_bytes=32 * 1024 * 1024),         # lift v5e's 16MB default
    )(w1m, w2m, b1l, b2l, pw1, ph1, pw2, ph2, x)


# ---------------------------------------------------------------------------
# Kernel 2: FC head (fc1 + ReLU + fc2), whole batch resident in VMEM
# ---------------------------------------------------------------------------
def _fc_kernel(x_ref, w1_ref, b1_ref, w2_ref, b2_ref, out_ref):
    f32 = jnp.float32
    w1 = w1_ref[...].astype(f32)                         # bf16 weights, f32 math
    h = jnp.dot(x_ref[...], w1, preferred_element_type=f32) + b1_ref[...]
    h = jnp.maximum(h, 0.0)                              # (B, 64)
    out_ref[...] = jnp.dot(h, w2_ref[...],
                           preferred_element_type=f32) + b2_ref[...]   # (B, 128)


def fc_head(flat, prep):
    bsz = flat.shape[0]
    vmem = pl.BlockSpec(memory_space=pltpu.MemorySpace.VMEM)
    return pl.pallas_call(
        _fc_kernel,
        out_shape=jax.ShapeDtypeStruct((bsz, LANE), jnp.float32),
        in_specs=[vmem] * 5,
        out_specs=vmem,
    )(flat, prep["fw1p"], prep["fb1p"], prep["fw2p"], prep["fb2p"])


# ---------------------------------------------------------------------------
# Parameter prep (done ONCE, host-side numpy): build the matmul-form conv
# weights, pool matrices, lane bias vectors and the repacked / bf16 fc weights.
# ---------------------------------------------------------------------------
def prepare_params(params):
    w1, b1, w2, b2, fw1, fb1, fw2, fb2 = [np.asarray(p, np.float32) for p in params]

    # conv1 -> 3 matmuls of (128, 768).  W1[kh][c, co*128+j] = w1[co,0,kh,c-j+1]
    # (only for input columns 0..90: missing entries implement the zero pad;
    #  output lanes j>=91 have no weights -> exact zeros in the junk lanes).
    w1m = np.zeros((3, LANE, C1 * LANE), np.float32)
    for co in range(C1):
        for kh in range(3):
            for kw in range(3):
                for j in range(H1):
                    c = j + kw - 1
                    if 0 <= c < H1:
                        w1m[kh, c, co * LANE + j] = w1[co, 0, kh, kw]

    # conv2 -> 3 matmuls of (384, 512): contracts the 6 channel-stacked 64-lane
    # blocks of the pooled input; same padding/shift convention as above.
    w2m = np.zeros((3, C1 * 64, C2 * LANE), np.float32)
    for co in range(C2):
        for ci in range(C1):
            for kh in range(3):
                for kw in range(3):
                    for j in range(H2):
                        c = j + kw - 1
                        if 0 <= c < H2:
                            w2m[kh, ci * 64 + c, co * LANE + j] = w2[co, ci, kh, kw]

    # Per-lane bias vectors (zero on the padded lanes -> clean ReLU(0)=0 there).
    b1l = np.zeros((1, C1 * LANE), np.float32)
    for co in range(C1):
        b1l[0, co * LANE: co * LANE + H1] = b1[co]
    b2l = np.zeros((1, C2 * LANE), np.float32)
    for co in range(C2):
        b2l[0, co * LANE: co * LANE + H2] = b2[co]

    # pool1: width (768->384, channel-block diagonal) then height (48x91).
    # ph1's +1 row offset inserts the zero halo row of the conv2 input.
    pw1 = np.zeros((C1 * LANE, C1 * 64), np.float32)
    for ci in range(C1):
        for cc in range(H2):
            pw1[ci * LANE + 2 * cc, ci * 64 + cc] = 0.5
            pw1[ci * LANE + 2 * cc + 1, ci * 64 + cc] = 0.5
    ph1 = np.zeros((P1_ROWS, H1), np.float32)
    for rr in range(H2):
        ph1[1 + rr, 2 * rr] = 0.5
        ph1[1 + rr, 2 * rr + 1] = 0.5

    # pool2: width (512->128, packs the 4 channels into 32-lane blocks) then
    # height (24x45) -> the lane-packed p2 output.
    pw2 = np.zeros((C2 * LANE, LANE), np.float32)
    for co in range(C2):
        for cc in range(H3):
            pw2[co * LANE + 2 * cc, co * 32 + cc] = 0.5
            pw2[co * LANE + 2 * cc + 1, co * 32 + cc] = 0.5
    ph2 = np.zeros((P2_ROWS, H2), np.float32)
    for rr in range(H3):
        ph2[rr, 2 * rr] = 0.5
        ph2[rr, 2 * rr + 1] = 0.5

    # fc1 weight repacked to the lane-packed p2 layout (row rr*128+co*32+cc),
    # hidden padded 50->64, cast to bf16 (halves the weight DMA; accumulation
    # stays f32 in the kernel).
    fw1p = np.zeros((P2_ROWS, C2, 32, 64), np.float32)
    fw1r = fw1.reshape(50, C2, H3, H3)                       # (o, co, rr, cc)
    fw1p[:H3, :, :H3, :50] = np.transpose(fw1r, (2, 1, 3, 0))
    fw1p = fw1p.reshape(FLAT, 64)

    fb1p = np.zeros((1, 64), np.float32)
    fb1p[0, :50] = fb1
    fw2p = np.zeros((64, LANE), np.float32)                  # fc2 padded to 128 out
    fw2p[:50, 0] = fw2[0]
    fb2p = np.zeros((1, LANE), np.float32)
    fb2p[0, 0] = fb2[0]

    return dict(
        w1m=jnp.asarray(w1m), w2m=jnp.asarray(w2m),
        b1l=jnp.asarray(b1l), b2l=jnp.asarray(b2l),
        pw1=jnp.asarray(pw1), ph1=jnp.asarray(ph1),
        pw2=jnp.asarray(pw2), ph2=jnp.asarray(ph2),
        fw1p=jnp.asarray(fw1p, jnp.bfloat16),
        fb1p=jnp.asarray(fb1p), fw2p=jnp.asarray(fw2p), fb2p=jnp.asarray(fb2p),
    )


# ---------------------------------------------------------------------------
# Full forward
# ---------------------------------------------------------------------------
@jax.jit
def gausnet_forward(x, prep):
    bsz = x.shape[0]
    block_b = _pick_block_b(bsz)
    act1_p, act2_p, p2_p = conv_stack(x, prep, block_b)
    act1 = act1_p[..., :H1]                     # cheap XLA crops of lane-dense outputs
    act2 = act2_p[..., :H2]
    flat = p2_p.reshape(bsz, FLAT)              # free: lane-packed layout is contiguous
    out = fc_head(flat, prep)[:, 0:1]
    return out, act1, act2


# ---------------------------------------------------------------------------
# Pure-JAX reference (correctness check only)
# ---------------------------------------------------------------------------
def reference_forward(x, params):
    w1, b1, w2, b2, fw1, fb1, fw2, fb2 = params

    def conv(inp, w, b):
        y = jax.lax.conv_general_dilated(
            inp, w, window_strides=(1, 1), padding=((1, 1), (1, 1)),
            dimension_numbers=("NCHW", "OIHW", "NCHW"))
        return y + b[None, :, None, None]

    def avg_pool(v):
        bsz, c, hh, ww = v.shape
        ho, wo = hh // 2, ww // 2
        vv = v[:, :, :ho * 2, :wo * 2].reshape(bsz, c, ho, 2, wo, 2)
        return vv.mean(axis=(3, 5))

    a1 = jax.nn.relu(conv(x, w1, b1))
    p1 = avg_pool(a1)
    a2 = jax.nn.relu(conv(p1, w2, b2))
    p2 = avg_pool(a2)
    flat = p2.reshape(p2.shape[0], -1)
    hid = jax.nn.relu(flat @ fw1.T + fb1)
    out = hid @ fw2.T + fb2
    return out, a1, a2


if __name__ == "__main__":
    key = jax.random.PRNGKey(0)
    kx, kp = jax.random.split(key)

    ks = jax.random.split(kp, 8)
    params = (
        jax.random.normal(ks[0], (6, 1, 3, 3), jnp.float32) / 3.0,            # conv1.weight
        jax.random.normal(ks[1], (6,), jnp.float32) * 0.1,                    # conv1.bias
        jax.random.normal(ks[2], (4, 6, 3, 3), jnp.float32) / jnp.sqrt(54.),  # conv2.weight
        jax.random.normal(ks[3], (4,), jnp.float32) * 0.1,                    # conv2.bias
        jax.random.normal(ks[4], (50, 22 * 22 * 4), jnp.float32) / 44.0,      # fc1.weight
        jax.random.normal(ks[5], (50,), jnp.float32) * 0.1,                   # fc1.bias
        jax.random.normal(ks[6], (1, 50), jnp.float32) / jnp.sqrt(50.0),      # fc2.weight
        jax.random.normal(ks[7], (1,), jnp.float32) * 0.1,                    # fc2.bias
    )

    prep = prepare_params(params)   # one-time: matmul-form weights, pool matrices

    # Batch 2 exercises the one-element-per-step path (grid=2: both v7x TCs busy);
    # batch 8 exercises the batch-blocked path (4 elements per grid step).
    for bsz in (2, 8):
        x = jax.random.normal(jax.random.fold_in(kx, bsz),
                              (bsz, 1, IMG, IMG), dtype=jnp.float32)
        out, c1a, c2a = jax.block_until_ready(gausnet_forward(x, prep))

        assert out.shape == (bsz, 1)
        assert c1a.shape == (bsz, C1, IMG, IMG)
        assert c2a.shape == (bsz, C2, H2, H2)

        ref_out, ref_c1, ref_c2 = jax.block_until_ready(reference_forward(x, params))
        np.testing.assert_allclose(np.asarray(c1a), np.asarray(ref_c1),
                                   rtol=1e-2, atol=1e-2)
        np.testing.assert_allclose(np.asarray(c2a), np.asarray(ref_c2),
                                   rtol=1e-2, atol=1e-2)
        # The final output goes through bf16 fc1 weights (f32 accumulation).
        np.testing.assert_allclose(np.asarray(out), np.asarray(ref_out),
                                   rtol=2e-2, atol=2e-2)

    print("KERNEL_OK")
</pallas_src>

<mosaic_0001>
module attributes {stable_mosaic.version = 11 : i64} {
  func.func @_conv_stack_kernel(%arg0: i32, %arg1: memref<3x128x768xf32, #tpu.memory_space<vmem>>, %arg2: memref<3x384x512xf32, #tpu.memory_space<vmem>>, %arg3: memref<1x768xf32, #tpu.memory_space<vmem>>, %arg4: memref<1x512xf32, #tpu.memory_space<vmem>>, %arg5: memref<768x384xf32, #tpu.memory_space<vmem>>, %arg6: memref<48x91xf32, #tpu.memory_space<vmem>>, %arg7: memref<512x128xf32, #tpu.memory_space<vmem>>, %arg8: memref<24x45xf32, #tpu.memory_space<vmem>>, %arg9: memref<1x1x91x91xf32, #tpu.memory_space<vmem>>, %arg10: memref<1x6x91x128xf32, #tpu.memory_space<vmem>>, %arg11: memref<1x4x45x128xf32, #tpu.memory_space<vmem>>, %arg12: memref<1x24x128xf32, #tpu.memory_space<vmem>>, %arg13: memref<96x128xf32, #tpu.memory_space<vmem>>) attributes {dimension_semantics = [#tpu.dimension_semantics<parallel>], iteration_bounds = array<i64: 2>, scalar_prefetch = 0 : i64, scratch_operands = 1 : i64, tpu.core_type = #tpu.core_type<tc>, window_params = [{pipeline_mode = #tpu.pipeline_mode<synchronous>, transform_indices = @transform_0, window_bounds = array<i64: 3, 128, 768>}, {pipeline_mode = #tpu.pipeline_mode<synchronous>, transform_indices = @transform_1, window_bounds = array<i64: 3, 384, 512>}, {pipeline_mode = #tpu.pipeline_mode<synchronous>, transform_indices = @transform_2, window_bounds = array<i64: 1, 768>}, {pipeline_mode = #tpu.pipeline_mode<synchronous>, transform_indices = @transform_3, window_bounds = array<i64: 1, 512>}, {pipeline_mode = #tpu.pipeline_mode<synchronous>, transform_indices = @transform_4, window_bounds = array<i64: 768, 384>}, {pipeline_mode = #tpu.pipeline_mode<synchronous>, transform_indices = @transform_5, window_bounds = array<i64: 48, 91>}, {pipeline_mode = #tpu.pipeline_mode<synchronous>, transform_indices = @transform_6, window_bounds = array<i64: 512, 128>}, {pipeline_mode = #tpu.pipeline_mode<synchronous>, transform_indices = @transform_7, window_bounds = array<i64: 24, 45>}, {transform_indices = @transform_8, window_bounds = array<i64: 1, 1, 91, 91>}, {transform_indices = @transform_9, window_bounds = array<i64: 1, 6, 91, 128>}, {transform_indices = @transform_10, window_bounds = array<i64: 1, 4, 45, 128>}, {transform_indices = @transform_11, window_bounds = array<i64: 1, 24, 128>}]} {
    %cst = arith.constant 0.000000e+00 : f32
    %0 = vector.broadcast %cst : f32 to vector<96x128xf32>
    %c0 = arith.constant 0 : index
    %c0_0 = arith.constant 0 : index
    %1 = vector.load %arg13[%c0, %c0_0] : memref<96x128xf32, #tpu.memory_space<vmem>>, vector<96x128xf32>
    tpu.vector_store %arg13[%c0, %c0_0], %0 {strides = array<i32>} : memref<96x128xf32, #tpu.memory_space<vmem>>, vector<96x128xf32>,
    %c0_1 = arith.constant 0 : index
    %c0_2 = arith.constant 0 : index
    %c0_3 = arith.constant 0 : index
    %c0_4 = arith.constant 0 : index
    %2 = vector.load %arg9[%c0_1, %c0_2, %c0_3, %c0_4] : memref<1x1x91x91xf32, #tpu.memory_space<vmem>>, vector<1x1x91x91xf32>
    %3 = vector.shape_cast %2 : vector<1x1x91x91xf32> to vector<91x91xf32>
    %c1 = arith.constant 1 : index
    %c0_5 = arith.constant 0 : index
    %4 = vector.load %arg13[%c1, %c0_5] : memref<96x128xf32, #tpu.memory_space<vmem>>, vector<91x91xf32>
    tpu.vector_store %arg13[%c1, %c0_5], %3 {strides = array<i32>} : memref<96x128xf32, #tpu.memory_space<vmem>>, vector<91x91xf32>,
    %c0_6 = arith.constant 0 : index
    %c0_7 = arith.constant 0 : index
    %5 = vector.load %arg13[%c0_6, %c0_7] : memref<96x128xf32, #tpu.memory_space<vmem>>, vector<91x128xf32>
    %c0_8 = arith.constant 0 : index
    %c0_9 = arith.constant 0 : index
    %c0_10 = arith.constant 0 : index
    %6 = vector.load %arg1[%c0_8, %c0_9, %c0_10] : memref<3x128x768xf32, #tpu.memory_space<vmem>>, vector<1x128x768xf32>
    %7 = vector.shape_cast %6 : vector<1x128x768xf32> to vector<128x768xf32>
    %cst_11 = arith.constant dense<0.000000e+00> : vector<91x768xf32>
    %8 = tpu.matmul %5, %7, %cst_11 {dimension_numbers = #tpu.dot_dimension_numbers<[1], [0], [0], [1], [0, 0, 1, 1], [], []>} : vector<91x128xf32>, vector<128x768xf32>, vector<91x768xf32> -> vector<91x768xf32>
    %c1_12 = arith.constant 1 : index
    %c0_13 = arith.constant 0 : index
    %9 = vector.load %arg13[%c1_12, %c0_13] : memref<96x128xf32, #tpu.memory_space<vmem>>, vector<91x128xf32>
    %c1_14 = arith.constant 1 : index
    %c0_15 = arith.constant 0 : index
    %c0_16 = arith.constant 0 : index
    %10 = vector.load %arg1[%c1_14, %c0_15, %c0_16] : memref<3x128x768xf32, #tpu.memory_space<vmem>>, vector<1x128x768xf32>
    %11 = vector.shape_cast %10 : vector<1x128x768xf32> to vector<128x768xf32>
    %cst_17 = arith.constant dense<0.000000e+00> : vector<91x768xf32>
    %12 = tpu.matmul %9, %11, %cst_17 {dimension_numbers = #tpu.dot_dimension_numbers<[1], [0], [0], [1], [0, 0, 1, 1], [], []>} : vector<91x128xf32>, vector<128x768xf32>, vector<91x768xf32> -> vector<91x768xf32>
    %13 = arith.addf %8, %12 : vector<91x768xf32>
    %c2 = arith.constant 2 : index
    %c0_18 = arith.constant 0 : index
    %14 = vector.load %arg13[%c2, %c0_18] : memref<96x128xf32, #tpu.memory_space<vmem>>, vector<91x128xf32>
    %c2_19 = arith.constant 2 : index
    %c0_20 = arith.constant 0 : index
    %c0_21 = arith.constant 0 : index
    %15 = vector.load %arg1[%c2_19, %c0_20, %c0_21] : memref<3x128x768xf32, #tpu.memory_space<vmem>>, vector<1x128x768xf32>
    %16 = vector.shape_cast %15 : vector<1x128x768xf32> to vector<128x768xf32>
    %cst_22 = arith.constant dense<0.000000e+00> : vector<91x768xf32>
    %17 = tpu.matmul %14, %16, %cst_22 {dimension_numbers = #tpu.dot_dimension_numbers<[1], [0], [0], [1], [0, 0, 1, 1], [], []>} : vector<91x128xf32>, vector<128x768xf32>, vector<91x768xf32> -> vector<91x768xf32>
    %18 = arith.addf %13, %17 : vector<91x768xf32>
    %c0_23 = arith.constant 0 : index
    %c0_24 = arith.constant 0 : index
    %19 = vector.load %arg3[%c0_23, %c0_24] : memref<1x768xf32, #tpu.memory_space<vmem>>, vector<1x768xf32>
    %20 = vector.broadcast %19 : vector<1x768xf32> to vector<91x768xf32>
    %21 = arith.addf %18, %20 : vector<91x768xf32>
    %cst_25 = arith.constant 0.000000e+00 : f32
    %22 = vector.broadcast %cst_25 : f32 to vector<91x768xf32>
    %23 = arith.maximumf %21, %22 : vector<91x768xf32>
    %24 = vector.extract_strided_slice %23 {offsets = [0, 0], sizes = [91, 128], strides = [1, 1]} : vector<91x768xf32> to vector<91x128xf32>
    %c0_26 = arith.constant 0 : index
    %c0_27 = arith.constant 0 : index
    %c0_28 = arith.constant 0 : index
    %c0_29 = arith.constant 0 : index
    %25 = vector.load %arg10[%c0_26, %c0_27, %c0_28, %c0_29] : memref<1x6x91x128xf32, #tpu.memory_space<vmem>>, vector<1x1x91x128xf32>
    %26 = vector.shape_cast %25 : vector<1x1x91x128xf32> to vector<91x128xf32>
    %27 = vector.shape_cast %24 : vector<91x128xf32> to vector<1x1x91x128xf32>
    tpu.vector_store %arg10[%c0_26, %c0_27, %c0_28, %c0_29], %27 {strides = array<i32>} : memref<1x6x91x128xf32, #tpu.memory_space<vmem>>, vector<1x1x91x128xf32>,
    %28 = vector.extract_strided_slice %23 {offsets = [0, 128], sizes = [91, 128], strides = [1, 1]} : vector<91x768xf32> to vector<91x128xf32>
    %c0_30 = arith.constant 0 : index
    %c1_31 = arith.constant 1 : index
    %c0_32 = arith.constant 0 : index
    %c0_33 = arith.constant 0 : index
    %29 = vector.load %arg10[%c0_30, %c1_31, %c0_32, %c0_33] : memref<1x6x91x128xf32, #tpu.memory_space<vmem>>, vector<1x1x91x128xf32>
    %30 = vector.shape_cast %29 : vector<1x1x91x128xf32> to vector<91x128xf32>
    %31 = vector.shape_cast %28 : vector<91x128xf32> to vector<1x1x91x128xf32>
    tpu.vector_store %arg10[%c0_30, %c1_31, %c0_32, %c0_33], %31 {strides = array<i32>} : memref<1x6x91x128xf32, #tpu.memory_space<vmem>>, vector<1x1x91x128xf32>,
    %32 = vector.extract_strided_slice %23 {offsets = [0, 256], sizes = [91, 128], strides = [1, 1]} : vector<91x768xf32> to vector<91x128xf32>
    %c0_34 = arith.constant 0 : index
    %c2_35 = arith.constant 2 : index
    %c0_36 = arith.constant 0 : index
    %c0_37 = arith.constant 0 : index
    %33 = vector.load %arg10[%c0_34, %c2_35, %c0_36, %c0_37] : memref<1x6x91x128xf32, #tpu.memory_space<vmem>>, vector<1x1x91x128xf32>
    %34 = vector.shape_cast %33 : vector<1x1x91x128xf32> to vector<91x128xf32>
    %35 = vector.shape_cast %32 : vector<91x128xf32> to vector<1x1x91x128xf32>
    tpu.vector_store %arg10[%c0_34, %c2_35, %c0_36, %c0_37], %35 {strides = array<i32>} : memref<1x6x91x128xf32, #tpu.memory_space<vmem>>, vector<1x1x91x128xf32>,
    %36 = vector.extract_strided_slice %23 {offsets = [0, 384], sizes = [91, 128], strides = [1, 1]} : vector<91x768xf32> to vector<91x128xf32>
    %c0_38 = arith.constant 0 : index
    %c3 = arith.constant 3 : index
    %c0_39 = arith.constant 0 : index
    %c0_40 = arith.constant 0 : index
    %37 = vector.load %arg10[%c0_38, %c3, %c0_39, %c0_40] : memref<1x6x91x128xf32, #tpu.memory_space<vmem>>, vector<1x1x91x128xf32>
    %38 = vector.shape_cast %37 : vector<1x1x91x128xf32> to vector<91x128xf32>
    %39 = vector.shape_cast %36 : vector<91x128xf32> to vector<1x1x91x128xf32>
    tpu.vector_store %arg10[%c0_38, %c3, %c0_39, %c0_40], %39 {strides = array<i32>} : memref<1x6x91x128xf32, #tpu.memory_space<vmem>>, vector<1x1x91x128xf32>,
    %40 = vector.extract_strided_slice %23 {offsets = [0, 512], sizes = [91, 128], strides = [1, 1]} : vector<91x768xf32> to vector<91x128xf32>
    %c0_41 = arith.constant 0 : index
    %c4 = arith.constant 4 : index
    %c0_42 = arith.constant 0 : index
    %c0_43 = arith.constant 0 : index
    %41 = vector.load %arg10[%c0_41, %c4, %c0_42, %c0_43] : memref<1x6x91x128xf32, #tpu.memory_space<vmem>>, vector<1x1x91x128xf32>
    %42 = vector.shape_cast %41 : vector<1x1x91x128xf32> to vector<91x128xf32>
    %43 = vector.shape_cast %40 : vector<91x128xf32> to vector<1x1x91x128xf32>
    tpu.vector_store %arg10[%c0_41, %c4, %c0_42, %c0_43], %43 {strides = array<i32>} : memref<1x6x91x128xf32, #tpu.memory_space<vmem>>, vector<1x1x91x128xf32>,
    %44 = vector.extract_strided_slice %23 {offsets = [0, 640], sizes = [91, 128], strides = [1, 1]} : vector<91x768xf32> to vector<91x128xf32>
    %c0_44 = arith.constant 0 : index
    %c5 = arith.constant 5 : index
    %c0_45 = arith.constant 0 : index
    %c0_46 = arith.constant 0 : index
    %45 = vector.load %arg10[%c0_44, %c5, %c0_45, %c0_46] : memref<1x6x91x128xf32, #tpu.memory_space<vmem>>, vector<1x1x91x128xf32>
    %46 = vector.shape_cast %45 : vector<1x1x91x128xf32> to vector<91x128xf32>
    %47 = vector.shape_cast %44 : vector<91x128xf32> to vector<1x1x91x128xf32>
    tpu.vector_store %arg10[%c0_44, %c5, %c0_45, %c0_46], %47 {strides = array<i32>} : memref<1x6x91x128xf32, #tpu.memory_space<vmem>>, vector<1x1x91x128xf32>,
    %c0_47 = arith.constant 0 : index
    %c0_48 = arith.constant 0 : index
    %48 = vector.load %arg5[%c0_47, %c0_48] : memref<768x384xf32, #tpu.memory_space<vmem>>, vector<768x384xf32>
    %cst_49 = arith.constant dense<0.000000e+00> : vector<91x384xf32>
    %49 = tpu.matmul %23, %48, %cst_49 {dimension_numbers = #tpu.dot_dimension_numbers<[1], [0], [0], [1], [0, 0, 1, 1], [], []>} : vector<91x768xf32>, vector<768x384xf32>, vector<91x384xf32> -> vector<91x384xf32>
    %c0_50 = arith.constant 0 : index
    %c0_51 = arith.constant 0 : index
    %50 = vector.load %arg6[%c0_50, %c0_51] : memref<48x91xf32, #tpu.memory_space<vmem>>, vector<48x91xf32>
    %cst_52 = arith.constant dense<0.000000e+00> : vector<48x384xf32>
    %51 = tpu.matmul %50, %49, %cst_52 {dimension_numbers = #tpu.dot_dimension_numbers<[1], [0], [0], [1], [0, 0, 1, 1], [], []>} : vector<48x91xf32>, vector<91x384xf32>, vector<48x384xf32> -> vector<48x384xf32>
    %52 = vector.extract_strided_slice %51 {offsets = [0, 0], sizes = [45, 384], strides = [1, 1]} : vector<48x384xf32> to vector<45x384xf32>
    %c0_53 = arith.constant 0 : index
    %c0_54 = arith.constant 0 : index
    %c0_55 = arith.constant 0 : index
    %53 = vector.load %arg2[%c0_53, %c0_54, %c0_55] : memref<3x384x512xf32, #tpu.memory_space<vmem>>, vector<1x384x512xf32>
    %54 = vector.shape_cast %53 : vector<1x384x512xf32> to vector<384x512xf32>
    %cst_56 = arith.constant dense<0.000000e+00> : vector<45x512xf32>
    %55 = tpu.matmul %52, %54, %cst_56 {dimension_numbers = #tpu.dot_dimension_numbers<[1], [0], [0], [1], [0, 0, 1, 1], [], []>} : vector<45x384xf32>, vector<384x512xf32>, vector<45x512xf32> -> vector<45x512xf32>
    %56 = vector.extract_strided_slice %51 {offsets = [1, 0], sizes = [45, 384], strides = [1, 1]} : vector<48x384xf32> to vector<45x384xf32>
    %c1_57 = arith.constant 1 : index
    %c0_58 = arith.constant 0 : index
    %c0_59 = arith.constant 0 : index
    %57 = vector.load %arg2[%c1_57, %c0_58, %c0_59] : memref<3x384x512xf32, #tpu.memory_space<vmem>>, vector<1x384x512xf32>
    %58 = vector.shape_cast %57 : vector<1x384x512xf32> to vector<384x512xf32>
    %cst_60 = arith.constant dense<0.000000e+00> : vector<45x512xf32>
    %59 = tpu.matmul %56, %58, %cst_60 {dimension_numbers = #tpu.dot_dimension_numbers<[1], [0], [0], [1], [0, 0, 1, 1], [], []>} : vector<45x384xf32>, vector<384x512xf32>, vector<45x512xf32> -> vector<45x512xf32>
    %60 = arith.addf %55, %59 : vector<45x512xf32>
    %61 = vector.extract_strided_slice %51 {offsets = [2, 0], sizes = [45, 384], strides = [1, 1]} : vector<48x384xf32> to vector<45x384xf32>
    %c2_61 = arith.constant 2 : index
    %c0_62 = arith.constant 0 : index
    %c0_63 = arith.constant 0 : index
    %62 = vector.load %arg2[%c2_61, %c0_62, %c0_63] : memref<3x384x512xf32, #tpu.memory_space<vmem>>, vector<1x384x512xf32>
    %63 = vector.shape_cast %62 : vector<1x384x512xf32> to vector<384x512xf32>
    %cst_64 = arith.constant dense<0.000000e+00> : vector<45x512xf32>
    %64 = tpu.matmul %61, %63, %cst_64 {dimension_numbers = #tpu.dot_dimension_numbers<[1], [0], [0], [1], [0, 0, 1, 1], [], []>} : vector<45x384xf32>, vector<384x512xf32>, vector<45x512xf32> -> vector<45x512xf32>
    %65 = arith.addf %60, %64 : vector<45x512xf32>
    %c0_65 = arith.constant 0 : index
    %c0_66 = arith.constant 0 : index
    %66 = vector.load %arg4[%c0_65, %c0_66] : memref<1x512xf32, #tpu.memory_space<vmem>>, vector<1x512xf32>
    %67 = vector.broadcast %66 : vector<1x512xf32> to vector<45x512xf32>
    %68 = arith.addf %65, %67 : vector<45x512xf32>
    %cst_67 = arith.constant 0.000000e+00 : f32
    %69 = vector.broadcast %cst_67 : f32 to vector<45x512xf32>
    %70 = arith.maximumf %68, %69 : vector<45x512xf32>
    %71 = vector.extract_strided_slice %70 {offsets = [0, 0], sizes = [45, 128], strides = [1, 1]} : vector<45x512xf32> to vector<45x128xf32>
    %c0_68 = arith.constant 0 : index
    %c0_69 = arith.constant 0 : index
    %c0_70 = arith.constant 0 : index
    %c0_71 = arith.constant 0 : index
    %72 = vector.load %arg11[%c0_68, %c0_69, %c0_70, %c0_71] : memref<1x4x45x128xf32, #tpu.memory_space<vmem>>, vector<1x1x45x128xf32>
    %73 = vector.shape_cast %72 : vector<1x1x45x128xf32> to vector<45x128xf32>
    %74 = vector.shape_cast %71 : vector<45x128xf32> to vector<1x1x45x128xf32>
    tpu.vector_store %arg11[%c0_68, %c0_69, %c0_70, %c0_71], %74 {strides = array<i32>} : memref<1x4x45x128xf32, #tpu.memory_space<vmem>>, vector<1x1x45x128xf32>,
    %75 = vector.extract_strided_slice %70 {offsets = [0, 128], sizes = [45, 128], strides = [1, 1]} : vector<45x512xf32> to vector<45x128xf32>
    %c0_72 = arith.constant 0 : index
    %c1_73 = arith.constant 1 : index
    %c0_74 = arith.constant 0 : index
    %c0_75 = arith.constant 0 : index
    %76 = vector.load %arg11[%c0_72, %c1_73, %c0_74, %c0_75] : memref<1x4x45x128xf32, #tpu.memory_space<vmem>>, vector<1x1x45x128xf32>
    %77 = vector.shape_cast %76 : vector<1x1x45x128xf32> to vector<45x128xf32>
    %78 = vector.shape_cast %75 : vector<45x128xf32> to vector<1x1x45x128xf32>
    tpu.vector_store %arg11[%c0_72, %c1_73, %c0_74, %c0_75], %78 {strides = array<i32>} : memref<1x4x45x128xf32, #tpu.memory_space<vmem>>, vector<1x1x45x128xf32>,
    %79 = vector.extract_strided_slice %70 {offsets = [0, 256], sizes = [45, 128], strides = [1, 1]} : vector<45x512xf32> to vector<45x128xf32>
    %c0_76 = arith.constant 0 : index
    %c2_77 = arith.constant 2 : index
    %c0_78 = arith.constant 0 : index
    %c0_79 = arith.constant 0 : index
    %80 = vector.load %arg11[%c0_76, %c2_77, %c0_78, %c0_79] : memref<1x4x45x128xf32, #tpu.memory_space<vmem>>, vector<1x1x45x128xf32>
    %81 = vector.shape_cast %80 : vector<1x1x45x128xf32> to vector<45x128xf32>
    %82 = vector.shape_cast %79 : vector<45x128xf32> to vector<1x1x45x128xf32>
    tpu.vector_store %arg11[%c0_76, %c2_77, %c0_78, %c0_79], %82 {strides = array<i32>} : memref<1x4x45x128xf32, #tpu.memory_space<vmem>>, vector<1x1x45x128xf32>,
    %83 = vector.extract_strided_slice %70 {offsets = [0, 384], sizes = [45, 128], strides = [1, 1]} : vector<45x512xf32> to vector<45x128xf32>
    %c0_80 = arith.constant 0 : index
    %c3_81 = arith.constant 3 : index
    %c0_82 = arith.constant 0 : index
    %c0_83 = arith.constant 0 : index
    %84 = vector.load %arg11[%c0_80, %c3_81, %c0_82, %c0_83] : memref<1x4x45x128xf32, #tpu.memory_space<vmem>>, vector<1x1x45x128xf32>
    %85 = vector.shape_cast %84 : vector<1x1x45x128xf32> to vector<45x128xf32>
    %86 = vector.shape_cast %83 : vector<45x128xf32> to vector<1x1x45x128xf32>
    tpu.vector_store %arg11[%c0_80, %c3_81, %c0_82, %c0_83], %86 {strides = array<i32>} : memref<1x4x45x128xf32, #tpu.memory_space<vmem>>, vector<1x1x45x128xf32>,
    %c0_84 = arith.constant 0 : index
    %c0_85 = arith.constant 0 : index
    %87 = vector.load %arg7[%c0_84, %c0_85] : memref<512x128xf32, #tpu.memory_space<vmem>>, vector<512x128xf32>
    %cst_86 = arith.constant dense<0.000000e+00> : vector<45x128xf32>
    %88 = tpu.matmul %70, %87, %cst_86 {dimension_numbers = #tpu.dot_dimension_numbers<[1], [0], [0], [1], [0, 0, 1, 1], [], []>} : vector<45x512xf32>, vector<512x128xf32>, vector<45x128xf32> -> vector<45x128xf32>
    %c0_87 = arith.constant 0 : index
    %c0_88 = arith.constant 0 : index
    %89 = vector.load %arg8[%c0_87, %c0_88] : memref<24x45xf32, #tpu.memory_space<vmem>>, vector<24x45xf32>
    %cst_89 = arith.constant dense<0.000000e+00> : vector<24x128xf32>
    %90 = tpu.matmul %89, %88, %cst_89 {dimension_numbers = #tpu.dot_dimension_numbers<[1], [0], [0], [1], [0, 0, 1, 1], [], []>} : vector<24x45xf32>, vector<45x128xf32>, vector<24x128xf32> -> vector<24x128xf32>
    %c0_90 = arith.constant 0 : index
    %c0_91 = arith.constant 0 : index
    %c0_92 = arith.constant 0 : index
    %91 = vector.load %arg12[%c0_90, %c0_91, %c0_92] : memref<1x24x128xf32, #tpu.memory_space<vmem>>, vector<1x24x128xf32>
    %92 = vector.shape_cast %91 : vector<1x24x128xf32> to vector<24x128xf32>
    %93 = vector.shape_cast %90 : vector<24x128xf32> to vector<1x24x128xf32>
    tpu.vector_store %arg12[%c0_90, %c0_91, %c0_92], %93 {strides = array<i32>} : memref<1x24x128xf32, #tpu.memory_space<vmem>>, vector<1x24x128xf32>,
    return
  }
  func.func @transform_0(%arg0: i32) -> (i32, i32, i32) {
    %c0_i32 = arith.constant 0 : i32
    %c0_i32_0 = arith.constant 0 : i32
    %c0_i32_1 = arith.constant 0 : i32
    %c0_i32_2 = arith.constant 0 : i32
    return %c0_i32, %c0_i32_0, %c0_i32_1 : i32, i32, i32
  }
  func.func @transform_1(%arg0: i32) -> (i32, i32, i32) {
    %c0_i32 = arith.constant 0 : i32
    %c0_i32_0 = arith.constant 0 : i32
    %c0_i32_1 = arith.constant 0 : i32
    %c0_i32_2 = arith.constant 0 : i32
    return %c0_i32, %c0_i32_0, %c0_i32_1 : i32, i32, i32
  }
  func.func @transform_2(%arg0: i32) -> (i32, i32) {
    %c0_i32 = arith.constant 0 : i32
    %c0_i32_0 = arith.constant 0 : i32
    %c0_i32_1 = arith.constant 0 : i32
    return %c0_i32, %c0_i32_0 : i32, i32
  }
  func.func @transform_3(%arg0: i32) -> (i32, i32) {
    %c0_i32 = arith.constant 0 : i32
    %c0_i32_0 = arith.constant 0 : i32
    %c0_i32_1 = arith.constant 0 : i32
    return %c0_i32, %c0_i32_0 : i32, i32
  }
  func.func @transform_4(%arg0: i32) -> (i32, i32) {
    %c0_i32 = arith.constant 0 : i32
    %c0_i32_0 = arith.constant 0 : i32
    %c0_i32_1 = arith.constant 0 : i32
    return %c0_i32, %c0_i32_0 : i32, i32
  }
  func.func @transform_5(%arg0: i32) -> (i32, i32) {
    %c0_i32 = arith.constant 0 : i32
    %c0_i32_0 = arith.constant 0 : i32
    %c0_i32_1 = arith.constant 0 : i32
    return %c0_i32, %c0_i32_0 : i32, i32
  }
  func.func @transform_6(%arg0: i32) -> (i32, i32) {
    %c0_i32 = arith.constant 0 : i32
    %c0_i32_0 = arith.constant 0 : i32
    %c0_i32_1 = arith.constant 0 : i32
    return %c0_i32, %c0_i32_0 : i32, i32
  }
  func.func @transform_7(%arg0: i32) -> (i32, i32) {
    %c0_i32 = arith.constant 0 : i32
    %c0_i32_0 = arith.constant 0 : i32
    %c0_i32_1 = arith.constant 0 : i32
    return %c0_i32, %c0_i32_0 : i32, i32
  }
  func.func @transform_8(%arg0: i32) -> (i32, i32, i32, i32) {
    %c0_i32 = arith.constant 0 : i32
    %c0_i32_0 = arith.constant 0 : i32
    %c0_i32_1 = arith.constant 0 : i32
    %c0_i32_2 = arith.constant 0 : i32
    return %arg0, %c0_i32, %c0_i32_0, %c0_i32_1 : i32, i32, i32, i32
  }
  func.func @transform_9(%arg0: i32) -> (i32, i32, i32, i32) {
    %c0_i32 = arith.constant 0 : i32
    %c0_i32_0 = arith.constant 0 : i32
    %c0_i32_1 = arith.constant 0 : i32
    %c0_i32_2 = arith.constant 0 : i32
    return %arg0, %c0_i32, %c0_i32_0, %c0_i32_1 : i32, i32, i32, i32
  }
  func.func @transform_10(%arg0: i32) -> (i32, i32, i32, i32) {
    %c0_i32 = arith.constant 0 : i32
    %c0_i32_0 = arith.constant 0 : i32
    %c0_i32_1 = arith.constant 0 : i32
    %c0_i32_2 = arith.constant 0 : i32
    return %arg0, %c0_i32, %c0_i32_0, %c0_i32_1 : i32, i32, i32, i32
  }
  func.func @transform_11(%arg0: i32) -> (i32, i32, i32) {
    %c0_i32 = arith.constant 0 : i32
    %c0_i32_0 = arith.constant 0 : i32
    %c0_i32_1 = arith.constant 0 : i32
    return %arg0, %c0_i32, %c0_i32_0 : i32, i32, i32
  }
}

module attributes {stable_mosaic.version = 11 : i64} {
  func.func @_fc_kernel(%arg0: memref<2x3072xf32, #tpu.memory_space<vmem>>, %arg1: memref<3072x64xbf16, #tpu.memory_space<vmem>>, %arg2: memref<1x64xf32, #tpu.memory_space<vmem>>, %arg3: memref<64x128xf32, #tpu.memory_space<vmem>>, %arg4: memref<1x128xf32, #tpu.memory_space<vmem>>, %arg5: memref<2x128xf32, #tpu.memory_space<vmem>>) attributes {dimension_semantics = [], scalar_prefetch = 0 : i64, scratch_operands = 0 : i64, tpu.core_type = #tpu.core_type<tc>} {
    %c0 = arith.constant 0 : index
    %c0_0 = arith.constant 0 : index
    %0 = vector.load %arg1[%c0, %c0_0] : memref<3072x64xbf16, #tpu.memory_space<vmem>>, vector<3072x64xbf16>
    %1 = arith.extf %0 : vector<3072x64xbf16> to vector<3072x64xf32>
    %c0_1 = arith.constant 0 : index
    %c0_2 = arith.constant 0 : index
    %2 = vector.load %arg0[%c0_1, %c0_2] : memref<2x3072xf32, #tpu.memory_space<vmem>>, vector<2x3072xf32>
    %cst = arith.constant dense<0.000000e+00> : vector<2x64xf32>
    %3 = tpu.matmul %2, %1, %cst {dimension_numbers = #tpu.dot_dimension_numbers<[1], [0], [0], [1], [0, 0, 1, 1], [], []>} : vector<2x3072xf32>, vector<3072x64xf32>, vector<2x64xf32> -> vector<2x64xf32>
    %c0_3 = arith.constant 0 : index
    %c0_4 = arith.constant 0 : index
    %4 = vector.load %arg2[%c0_3, %c0_4] : memref<1x64xf32, #tpu.memory_space<vmem>>, vector<1x64xf32>
    %5 = vector.broadcast %4 : vector<1x64xf32> to vector<2x64xf32>
    %6 = arith.addf %3, %5 : vector<2x64xf32>
    %cst_5 = arith.constant 0.000000e+00 : f32
    %7 = vector.broadcast %cst_5 : f32 to vector<2x64xf32>
    %8 = arith.maximumf %6, %7 : vector<2x64xf32>
    %c0_6 = arith.constant 0 : index
    %c0_7 = arith.constant 0 : index
    %9 = vector.load %arg3[%c0_6, %c0_7] : memref<64x128xf32, #tpu.memory_space<vmem>>, vector<64x128xf32>
    %cst_8 = arith.constant dense<0.000000e+00> : vector<2x128xf32>
    %10 = tpu.matmul %8, %9, %cst_8 {dimension_numbers = #tpu.dot_dimension_numbers<[1], [0], [0], [1], [0, 0, 1, 1], [], []>} : vector<2x64xf32>, vector<64x128xf32>, vector<2x128xf32> -> vector<2x128xf32>
    %c0_9 = arith.constant 0 : index
    %c0_10 = arith.constant 0 : index
    %11 = vector.load %arg4[%c0_9, %c0_10] : memref<1x128xf32, #tpu.memory_space<vmem>>, vector<1x128xf32>
    %12 = vector.broadcast %11 : vector<1x128xf32> to vector<2x128xf32>
    %13 = arith.addf %10, %12 : vector<2x128xf32>
    %c0_11 = arith.constant 0 : index
    %c0_12 = arith.constant 0 : index
    %14 = vector.load %arg5[%c0_11, %c0_12] : memref<2x128xf32, #tpu.memory_space<vmem>>, vector<2x128xf32>
    tpu.vector_store %arg5[%c0_11, %c0_12], %13 {strides = array<i32>} : memref<2x128xf32, #tpu.memory_space<vmem>>, vector<2x128xf32>,
    return
  }
}

</mosaic_0001>

<bundles_post_ra>
// kernel: gausnet_forward.3
= control target key start
LH: loop header
LB: loop body
LE: loop exit
PB: predicated region body
PF: predicated region fallthrough
CT: control target
= control target key end

     0   :  { %v811_v0 = vlaneseq  ;;  %v3684_v4 = vmov 1983009808   ;;  %vm3686_vm0 = vmmov 0   ;;  %vm1789_vm1 = vcmask 523264   ;;  %s4409_s1 = inlined_call_operand.vmem [shape: bf16[3072,64], index: 1, kind: input, shape index: {}]   ;;  %s4410_s0 = inlined_call_operand.vmem [shape: f32[2,3072], index: 0, kind: input, shape index: {}]   ;;  %s4411_s2 = inlined_call_operand.vmem [shape: f32[1,64], index: 2, kind: input, shape index: {}]   ;;  %s4412_s3 = inlined_call_operand.vmem [shape: f32[64,128], index: 3, kind: input, shape index: {}]   ;;  %s4413_s4 = inlined_call_operand.vmem [shape: f32[1,128], index: 4, kind: input, shape index: {}]   ;;  %s4414_s5 = inlined_call_operand.vmem [shape: f32[2,128], index: 5, kind: output, shape index: {}]  }
   0x1   :  { %v2646_v1 = vld [vmem:[%s4409_s1 + $0x40] sm:$0xff]   ;;  %v809_v5 = vunpack.c.l.s4 %v3684_v4  ;;  %v2647_v7 = vld [vmem:[%s4409_s1 + $0x48] sm:$0xff]   ;;  %v2648_v13 = vld [vmem:[%s4409_s1 + $0x50] sm:$0xff]  }
   0x2   :  { %v1872_v2 = vld [vmem:[%s4409_s1] sm:$0xff]   ;;  %3279 = vmatprep.subr.bf16.mxu0 %v2646_v1  ;;  %v2663_v8 = vld [vmem:[%s4409_s1 + $0xc8] sm:$0xff]   ;;  %v812_v12 = vshrl.u32 %v811_v0, 7  ;;  %v2664_v14 = vld [vmem:[%s4409_s1 + $0xd0] sm:$0xff]  }
   0x3   :  { %v2662_v3 = vld [vmem:[%s4409_s1 + $0xc0] sm:$0xff]   ;;  %3281 = vmatpush3.bf16.msra.mxu0 %v1872_v2  ;;  %v2639_v9 = vld [vmem:[%s4409_s1 + $0x8] sm:$0xff]   ;;  %v810_v11 = vunpack.c.0.s8 %v809_v5  ;;  %v2640_v15 = vld [vmem:[%s4409_s1 + $0x10] sm:$0xff]  }
   0x4   :  { %3311 = vmatprep.subr.bf16.mxu1 %v2662_v3  ;;  %v2654_v6 = vld [vmem:[%s4409_s1 + $0x80] sm:$0xff]   ;;  %3283 = vmatprep.subr.bf16.mxu0 %v2647_v7  ;;  %v2655_v10 = vld [vmem:[%s4409_s1 + $0x88] sm:$0xff]   ;;  %v2656_v16 = vld [vmem:[%s4409_s1 + $0x90] sm:$0xff]  }
   0x5   :  { %3313 = vmatpush3.bf16.msra.mxu1 %v2654_v6  ;;  %v3754_v17 = vsub.s32 %v810_v11, %v812_v12  ;;  %v2649_v18 = vld [vmem:[%s4409_s1 + $0x58] sm:$0xff]   ;;  %v788_v20 = vld [vmem:[%s4410_s0] sm:$0xff]  ;;  %v2651_v32 = vld [vmem:[%s4409_s1 + $0x68] sm:$0xff]  }
   0x6   :  { %3315 = vmatprep.subr.bf16.mxu1 %v2663_v8  ;;  %v2665_v19 = vld [vmem:[%s4409_s1 + $0xd8] sm:$0xff]   ;;  %v807_v24 = vcombine.high %v788_v20, %v788_v20  ;;  %v2650_v25 = vld [vmem:[%s4409_s1 + $0x60] sm:$0xff]   ;;  %v2667_v33 = vld [vmem:[%s4409_s1 + $0xe8] sm:$0xff]  }
   0x7   :  { %3285 = vmatpush3.bf16.msra.mxu0 %v2639_v9  ;;  %v2641_v21 = vld [vmem:[%s4409_s1 + $0x18] sm:$0xff]   ;;  %v814_v23 = vrot.slane %v788_v20, %v3754_v17  ;;  %v2666_v26 = vld [vmem:[%s4409_s1 + $0xe0] sm:$0xff]   ;;  %v2643_v34 = vld [vmem:[%s4409_s1 + $0x28] sm:$0xff]  }
   0x8   :  { %3287 = vmatprep.subr.bf16.mxu0 %v2648_v13  ;;  %v2657_v22 = vld [vmem:[%s4409_s1 + $0x98] sm:$0xff]   ;;  %v821_v28 = vrot.slane %v807_v24, %v3754_v17  ;;  %v2642_v29 = vld [vmem:[%s4409_s1 + $0x20] sm:$0xff]   ;;  %v2659_v35 = vld [vmem:[%s4409_s1 + $0xa8] sm:$0xff]  }
   0x9   :  { %3317 = vmatpush3.bf16.msra.mxu1 %v2655_v10  ;;  %v822_v27 = vcombine.high %v814_v23, %v814_v23  ;;  %v2658_v30 = vld [vmem:[%s4409_s1 + $0xa0] sm:$0xff]   ;;  %v2652_v36 = vld [vmem:[%s4409_s1 + $0x70] sm:$0xff]   ;;  %v789_v38 = vld [vmem:[%s4410_s0 + $0x8] sm:$0xff] }
   0xa   :  { %3319 = vmatprep.subr.bf16.mxu1 %v2664_v14  ;;  %v823_v31 = vcombine.high %v821_v28, %v821_v28  ;;  %v2668_v37 = vld [vmem:[%s4409_s1 + $0xf0] sm:$0xff]   ;;  %v2653_v41 = vld [vmem:[%s4409_s1 + $0x78] sm:$0xff]   ;;  %v824_v43 = vcombine.high %v789_v38, %v789_v38  ;;  %v2678_v46 = vld [vmem:[%s4409_s1 + $0x140] sm:$0xff]   ;;  %v3831_v48 = vrot.slane %v789_v38, %v3754_v17 }
   0xb   :  { %3289 = vmatpush3.bf16.msra.mxu0 %v2640_v15  ;;  %997 = vmatprep.mubr.f32.mxu0 %v822_v27  ;;  %v2644_v39 = vld [vmem:[%s4409_s1 + $0x30] sm:$0xff]   ;;  %v2669_v42 = vld [vmem:[%s4409_s1 + $0xf8] sm:$0xff]   ;;  %v2694_v47 = vld [vmem:[%s4409_s1 + $0x1c0] sm:$0xff]  }
   0xc   :  { %3291 = vmatprep.subr.bf16.mxu0 %v2649_v18  ;;  %1067 = vmatprep.mubr.f32.mxu1 %v823_v31  ;;  %v2660_v40 = vld [vmem:[%s4409_s1 + $0xb0] sm:$0xff]   ;;  %v2645_v44 = vld [vmem:[%s4409_s1 + $0x38] sm:$0xff]   ;;  %v3834_v49 = vrot.slane %v824_v43, %v3754_v17  ;;  %v2670_v50 = vld [vmem:[%s4409_s1 + $0x100] sm:$0xff]   ;;  %v839_v54 = vcombine.high %v3831_v48, %v3831_v48 }
   0xd   :  { %3321 = vmatpush3.bf16.msra.mxu1 %v2656_v16  ;;  %v2661_v45 = vld [vmem:[%s4409_s1 + $0xb8] sm:$0xff]   ;;  %v2686_v51 = vld [vmem:[%s4409_s1 + $0x180] sm:$0xff]   ;;  %v2679_v52 = vld [vmem:[%s4409_s1 + $0x148] sm:$0xff]  }
   0xe   :  { %3323 = vmatprep.subr.bf16.mxu1 %v2665_v19  ;;  %v2695_v53 = vld [vmem:[%s4409_s1 + $0x1c8] sm:$0xff]   ;;  %v840_v55 = vcombine.high %v3834_v49, %v3834_v49  ;;  %v2680_v58 = vld [vmem:[%s4409_s1 + $0x150] sm:$0xff]   ;;  %v2681_v62 = vld [vmem:[%s4409_s1 + $0x158] sm:$0xff]  }
   0xf   :  { %3293 = vmatpush3.bf16.msra.mxu0 %v2641_v21  ;;  %v2671_v56 = vld [vmem:[%s4409_s1 + $0x108] sm:$0xff]   ;;  %v2696_v59 = vld [vmem:[%s4409_s1 + $0x1d0] sm:$0xff]   ;;  %v2697_v63 = vld [vmem:[%s4409_s1 + $0x1d8] sm:$0xff]  }
  0x10   :  { %3295 = vmatprep.subr.bf16.mxu0 %v2650_v25  ;;  %v2687_v57 = vld [vmem:[%s4409_s1 + $0x188] sm:$0xff]   ;;  %v2672_v60 = vld [vmem:[%s4409_s1 + $0x110] sm:$0xff]   ;;  %v2673_v0 = vld [vmem:[%s4409_s1 + $0x118] sm:$0xff]  }
  0x11   :  { %3325 = vmatpush3.bf16.msra.mxu1 %v2657_v22  ;;  %v2688_v61 = vld [vmem:[%s4409_s1 + $0x190] sm:$0xff]   ;;  %v2689_v1 = vld [vmem:[%s4409_s1 + $0x198] sm:$0xff]   ;;  %v2682_v3 = vld [vmem:[%s4409_s1 + $0x160] sm:$0xff]  }
  0x12   :  { %3327 = vmatprep.subr.bf16.mxu1 %v2666_v26  ;;  %v791_v2 = vld [vmem:[%s4410_s0 + $0x18] sm:$0xff]  ;;  %v2698_v4 = vld [vmem:[%s4409_s1 + $0x1e0] sm:$0xff]   ;;  %v2683_v10 = vld [vmem:[%s4409_s1 + $0x168] sm:$0xff]  }
  0x13   :  { %3297 = vmatpush3.bf16.msra.mxu0 %v2642_v29  ;;  %v3892_v5 = vrot.slane %v791_v2, %v3754_v17  ;;  %v858_v6 = vcombine.high %v791_v2, %v791_v2  ;;  %v2674_v8 = vld [vmem:[%s4409_s1 + $0x120] sm:$0xff]   ;;  %v2699_v11 = vld [vmem:[%s4409_s1 + $0x1e8] sm:$0xff]   ;;  %v2684_v14 = vld [vmem:[%s4409_s1 + $0x170] sm:$0xff]  }
  0x14   :  { %3299 = vmatprep.subr.bf16.mxu0 %v2651_v32  ;;  %v2690_v9 = vld [vmem:[%s4409_s1 + $0x1a0] sm:$0xff]   ;;  %v2675_v12 = vld [vmem:[%s4409_s1 + $0x128] sm:$0xff]   ;;  %v2700_v15 = vld [vmem:[%s4409_s1 + $0x1f0] sm:$0xff]  }
  0x15   :  { %3329 = vmatpush3.bf16.msra.mxu1 %v2658_v30  ;;  %v3895_v7 = vrot.slane %v858_v6, %v3754_v17  ;;  %v2691_v13 = vld [vmem:[%s4409_s1 + $0x1a8] sm:$0xff]   ;;  %v790_v16 = vld [vmem:[%s4410_s0 + $0x10] sm:$0xff]  ;;  %v792_v18 = vld [vmem:[%s4410_s0 + $0x20] sm:$0xff] }
  0x16   :  { %3331 = vmatprep.subr.bf16.mxu1 %v2667_v33  ;;  %v2676_v19 = vld [vmem:[%s4409_s1 + $0x130] sm:$0xff]   ;;  %v3934_v21 = vrot.slane %v792_v18, %v3754_v17  ;;  %v875_v22 = vcombine.high %v792_v18, %v792_v18  ;;  %v2701_v24 = vld [vmem:[%s4409_s1 + $0x1f8] sm:$0xff]   ;;  %v841_v25 = vcombine.high %v790_v16, %v790_v16  ;;  %v2710_v29 = vld [vmem:[%s4409_s1 + $0x240] sm:$0xff]   ;;  %v3958_v31 = vrot.slane %v790_v16, %v3754_v17 }
  0x17   :  { %3301 = vmatpush3.bf16.msra.mxu0 %v2643_v34  ;;  %v2692_v20 = vld [vmem:[%s4409_s1 + $0x1b0] sm:$0xff]   ;;  %v2677_v27 = vld [vmem:[%s4409_s1 + $0x138] sm:$0xff]   ;;  %v2726_v30 = vld [vmem:[%s4409_s1 + $0x2c0] sm:$0xff]  }
  0x18   :  { %3303 = vmatprep.subr.bf16.mxu0 %v2652_v36  ;;  %v3943_v26 = vrot.slane %v875_v22, %v3754_v17  ;;  %v3961_v32 = vrot.slane %v841_v25, %v3754_v17  ;;  %v2702_v33 = vld [vmem:[%s4409_s1 + $0x200] sm:$0xff]   ;;  %v2727_v36 = vld [vmem:[%s4409_s1 + $0x2c8] sm:$0xff]   ;;  %v2709_v2 = vld [vmem:[%s4409_s1 + $0x238] sm:$0xff]  }
  0x19   :  { %3333 = vmatpush3.bf16.msra.mxu1 %v2659_v35  ;;  %v2718_v34 = vld [vmem:[%s4409_s1 + $0x280] sm:$0xff]   ;;  %v2711_v35 = vld [vmem:[%s4409_s1 + $0x248] sm:$0xff]   ;;  %v2744_v16 = vld [vmem:[%s4409_s1 + $0x350] sm:$0xff]  }
  0x1a   :  { %3335 = vmatprep.subr.bf16.mxu1 %v2668_v37  ;;  %v856_v37 = vcombine.high %v3958_v31, %v3958_v31  ;;  %v857_v38 = vcombine.high %v3961_v32, %v3961_v32  ;;  %v2719_v43 = vld [vmem:[%s4409_s1 + $0x288] sm:$0xff]   ;;  %v2758_v6 = vld [vmem:[%s4409_s1 + $0x3c0] sm:$0xff]   ;;  %v2760_v18 = vld [vmem:[%s4409_s1 + $0x3d0] sm:$0xff]  }
  0x1b   :  { %3305 = vmatpush3.bf16.msra.mxu0 %v2644_v39  ;;  %v793_v39 = vld [vmem:[%s4410_s0 + $0x28] sm:$0xff]  ;;  %v2745_v22 = vld [vmem:[%s4409_s1 + $0x358] sm:$0xff]  }
  0x1c   :  { %3307 = vmatprep.subr.bf16.mxu0 %v2653_v41  ;;  %v892_v41 = vcombine.high %v793_v39, %v793_v39  ;;  %v2753_v25 = vld [vmem:[%s4409_s1 + $0x398] sm:$0xff]  }
  0x1d   :  { %3337 = vmatpush3.bf16.msra.mxu1 %v2660_v40  ;;  %v3985_v40 = vrot.slane %v793_v39, %v3754_v17  ;;  %v2749_v39 = vld [vmem:[%s4409_s1 + $0x378] sm:$0xff]  }
  0x1e   :  { %3339 = vmatprep.subr.bf16.mxu1 %v2669_v42  ;;  %v2703_v42 = vld [vmem:[%s4409_s1 + $0x208] sm:$0xff]  }
  0x1f   :  { %3309 = vmatpush3.bf16.msra.mxu0 %v2645_v44  ;;  %v2712_v44 = vld [vmem:[%s4409_s1 + $0x250] sm:$0xff]  }
  0x20   :  { %3343 = vmatprep.subr.bf16.mxu0 %v2678_v46  ;;  %v4000_v46 = vrot.slane %v892_v41, %v3754_v17  ;;  %v2729_v17 = vld [vmem:[%s4409_s1 + $0x2d8] sm:$0xff]  }
  0x21   :  { %3341 = vmatpush3.bf16.msra.mxu1 %v2661_v45  ;;  %v2728_v45 = vld [vmem:[%s4409_s1 + $0x2d0] sm:$0xff]   ;;  %v2765_v41 = vld [vmem:[%s4409_s1 + $0x3f8] sm:$0xff]  }
  0x22   :  { %3375 = vmatprep.subr.bf16.mxu1 %v2694_v47  ;;  %998 = vmatmul.mubr.f32.vlgmr.msra.gmra.mrb[0].mxu0 %v814_v23  ;;  %v2685_v23 = vld [vmem:[%s4409_s1 + $0x178] sm:$0xff]   ;;  %v2704_v47 = vld [vmem:[%s4409_s1 + $0x210] sm:$0xff]  }
  0x23   :  { %3345 = vmatpush3.bf16.msra.mxu0 %v2670_v50  ;;  %1137 = vmatprep.mubr.f32.mxu0 %v839_v54  ;;  %v2705_v50 = vld [vmem:[%s4409_s1 + $0x218] sm:$0xff]   ;;  %v2706_v54 = vld [vmem:[%s4409_s1 + $0x220] sm:$0xff]  }
  0x24   :  { %1068 = vmatmul.mubr.f32.vlgmr.msra.gmra.mrb[0].mxu1 %v821_v28  ;;  %3347 = vmatprep.subr.bf16.mxu0 %v2679_v52  ;;  %v2693_v28 = vld [vmem:[%s4409_s1 + $0x1b8] sm:$0xff]   ;;  %v2714_v52 = vld [vmem:[%s4409_s1 + $0x260] sm:$0xff]  }
  0x25   :  { %3377 = vmatpush3.bf16.msra.mxu1 %v2686_v51  ;;  %1207 = vmatprep.mubr.f32.mxu1 %v840_v55  ;;  %v2721_v51 = vld [vmem:[%s4409_s1 + $0x298] sm:$0xff]   ;;  %v2722_v55 = vld [vmem:[%s4409_s1 + $0x2a0] sm:$0xff]  }
  0x26   :  { %3379 = vmatprep.subr.bf16.mxu1 %v2695_v53  ;;  %v2730_v53 = vld [vmem:[%s4409_s1 + $0x2e0] sm:$0xff]  }
  0x27   :  { %3349 = vmatpush3.bf16.msra.mxu0 %v2671_v56  ;;  %v2715_v56 = vld [vmem:[%s4409_s1 + $0x268] sm:$0xff]  }
  0x28   :  { %3351 = vmatprep.subr.bf16.mxu0 %v2680_v58  ;;  %v2707_v58 = vld [vmem:[%s4409_s1 + $0x228] sm:$0xff]  }
  0x29   :  { %3381 = vmatpush3.bf16.msra.mxu1 %v2687_v57  ;;  %v2731_v57 = vld [vmem:[%s4409_s1 + $0x2e8] sm:$0xff]  }
  0x2a   :  { %3383 = vmatprep.subr.bf16.mxu1 %v2696_v59  ;;  %v2723_v59 = vld [vmem:[%s4409_s1 + $0x2a8] sm:$0xff]  }
  0x2b   :  { %3353 = vmatpush3.bf16.msra.mxu0 %v2672_v60  ;;  %v2716_v60 = vld [vmem:[%s4409_s1 + $0x270] sm:$0xff]  }
  0x2c   :  { %3355 = vmatprep.subr.bf16.mxu0 %v2681_v62  ;;  %v2708_v62 = vld [vmem:[%s4409_s1 + $0x230] sm:$0xff]  }
  0x2d   :  { %3385 = vmatpush3.bf16.msra.mxu1 %v2688_v61  ;;  %v2732_v61 = vld [vmem:[%s4409_s1 + $0x2f0] sm:$0xff]  }
  0x2e   :  { %3387 = vmatprep.subr.bf16.mxu1 %v2697_v63  ;;  %v2724_v63 = vld [vmem:[%s4409_s1 + $0x2b0] sm:$0xff]  }
  0x2f   :  { %3357 = vmatpush3.bf16.msra.mxu0 %v2673_v0  ;;  %v2717_v0 = vld [vmem:[%s4409_s1 + $0x278] sm:$0xff]  }
  0x30   :  { %3359 = vmatprep.subr.bf16.mxu0 %v2682_v3  ;;  %v2725_v3 = vld [vmem:[%s4409_s1 + $0x2b8] sm:$0xff]  }
  0x31   :  { %3389 = vmatpush3.bf16.msra.mxu1 %v2689_v1  ;;  %v2733_v1 = vld [vmem:[%s4409_s1 + $0x2f8] sm:$0xff]  }
  0x32   :  { %3391 = vmatprep.subr.bf16.mxu1 %v2698_v4  ;;  %v2742_v4 = vld [vmem:[%s4409_s1 + $0x340] sm:$0xff]  }
  0x33   :  { %3361 = vmatpush3.bf16.msra.mxu0 %v2674_v8  ;;  %v2734_v8 = vld [vmem:[%s4409_s1 + $0x300] sm:$0xff]  }
  0x34   :  { %3363 = vmatprep.subr.bf16.mxu0 %v2683_v10  ;;  %v2743_v10 = vld [vmem:[%s4409_s1 + $0x348] sm:$0xff]  }
  0x35   :  { %3393 = vmatpush3.bf16.msra.mxu1 %v2690_v9  ;;  %v2750_v9 = vld [vmem:[%s4409_s1 + $0x380] sm:$0xff]  }
  0x36   :  { %3395 = vmatprep.subr.bf16.mxu1 %v2699_v11  ;;  %v2759_v11 = vld [vmem:[%s4409_s1 + $0x3c8] sm:$0xff]  }
  0x37   :  { %3365 = vmatpush3.bf16.msra.mxu0 %v2675_v12  ;;  %v873_v12 = vcombine.high %v3892_v5, %v3892_v5 }
  0x38   :  { %3367 = vmatprep.subr.bf16.mxu0 %v2684_v14  ;;  %v2735_v14 = vld [vmem:[%s4409_s1 + $0x308] sm:$0xff]  }
  0x39   :  { %3397 = vmatpush3.bf16.msra.mxu1 %v2691_v13  ;;  %v874_v13 = vcombine.high %v3895_v7, %v3895_v7 }
  0x3a   :  { %3399 = vmatprep.subr.bf16.mxu1 %v2700_v15  ;;  %v2751_v15 = vld [vmem:[%s4409_s1 + $0x388] sm:$0xff]  }
  0x3b   :  { %3369 = vmatpush3.bf16.msra.mxu0 %v2676_v19  ;;  %v2736_v19 = vld [vmem:[%s4409_s1 + $0x310] sm:$0xff]  }
  0x3c   :  { %3371 = vmatprep.subr.bf16.mxu0 %v2685_v23  ;;  %v2761_v23 = vld [vmem:[%s4409_s1 + $0x3d8] sm:$0xff]  }
  0x3d   :  { %3401 = vmatpush3.bf16.msra.mxu1 %v2692_v20  ;;  %v2752_v20 = vld [vmem:[%s4409_s1 + $0x390] sm:$0xff]  }
  0x3e   :  { %3403 = vmatprep.subr.bf16.mxu1 %v2701_v24  ;;  %v2737_v24 = vld [vmem:[%s4409_s1 + $0x318] sm:$0xff]  }
  0x3f   :  { %3373 = vmatpush3.bf16.msra.mxu0 %v2677_v27  ;;  %v2746_v27 = vld [vmem:[%s4409_s1 + $0x360] sm:$0xff]  }
  0x40   :  { %3407 = vmatprep.subr.bf16.mxu0 %v2710_v29  ;;  %v2738_v29 = vld [vmem:[%s4409_s1 + $0x320] sm:$0xff]  }
  0x41   :  { %3405 = vmatpush3.bf16.msra.mxu1 %v2693_v28  ;;  %v2762_v28 = vld [vmem:[%s4409_s1 + $0x3e0] sm:$0xff]  }
  0x42   :  { %3439 = vmatprep.subr.bf16.mxu1 %v2726_v30  ;;  %1138 = vmatmul.mubr.f32.vlgmr.msra.gmra.mrb[2].mxu0 %v3831_v48  ;;  %v2720_v48 = vld [vmem:[%s4409_s1 + $0x290] sm:$0xff]   ;;  %v2754_v30 = vld [vmem:[%s4409_s1 + $0x3a0] sm:$0xff]  }
  0x43   :  { %3409 = vmatpush3.bf16.msra.mxu0 %v2702_v33  ;;  %1277 = vmatprep.mubr.f32.mxu0 %v856_v37  ;;  %v2739_v33 = vld [vmem:[%s4409_s1 + $0x328] sm:$0xff]   ;;  %v2740_v37 = vld [vmem:[%s4409_s1 + $0x330] sm:$0xff]  }
  0x44   :  { %1208 = vmatmul.mubr.f32.vlgmr.msra.gmra.mrb[2].mxu1 %v3834_v49  ;;  %3411 = vmatprep.subr.bf16.mxu0 %v2711_v35  ;;  %v2713_v49 = vld [vmem:[%s4409_s1 + $0x258] sm:$0xff]   ;;  %v2748_v35 = vld [vmem:[%s4409_s1 + $0x370] sm:$0xff]  }
  0x45   :  { %3441 = vmatpush3.bf16.msra.mxu1 %v2718_v34  ;;  %1347 = vmatprep.mubr.f32.mxu1 %v857_v38  ;;  %v2755_v34 = vld [vmem:[%s4409_s1 + $0x3a8] sm:$0xff]   ;;  %v2756_v38 = vld [vmem:[%s4409_s1 + $0x3b0] sm:$0xff]  }
  0x46   :  { %3443 = vmatprep.subr.bf16.mxu1 %v2727_v36  ;;  %v2764_v36 = vld [vmem:[%s4409_s1 + $0x3f0] sm:$0xff]  }
  0x47   :  { %3413 = vmatpush3.bf16.msra.mxu0 %v2703_v42  ;;  %v2741_v42 = vld [vmem:[%s4409_s1 + $0x338] sm:$0xff]  }
  0x48   :  { %3415 = vmatprep.subr.bf16.mxu0 %v2712_v44  ;;  %v2774_v44 = vld [vmem:[%s4409_s1 + $0x440] sm:$0xff]  }
  0x49   :  { %3445 = vmatpush3.bf16.msra.mxu1 %v2719_v43  ;;  %v2757_v43 = vld [vmem:[%s4409_s1 + $0x3b8] sm:$0xff]  }
  0x4a   :  { %3447 = vmatprep.subr.bf16.mxu1 %v2728_v45  ;;  %v2790_v45 = vld [vmem:[%s4409_s1 + $0x4c0] sm:$0xff]  }
  0x4b   :  { %3417 = vmatpush3.bf16.msra.mxu0 %v2704_v47  ;;  %v2766_v47 = vld [vmem:[%s4409_s1 + $0x400] sm:$0xff]  }
  0x4c   :  { %3419 = vmatprep.subr.bf16.mxu0 %v2713_v49  ;;  %v2775_v49 = vld [vmem:[%s4409_s1 + $0x448] sm:$0xff]  }
  0x4d   :  { %3449 = vmatpush3.bf16.msra.mxu1 %v2720_v48  ;;  %v2782_v48 = vld [vmem:[%s4409_s1 + $0x480] sm:$0xff]  }
  0x4e   :  { %3451 = vmatprep.subr.bf16.mxu1 %v2729_v17  ;;  %v2791_v17 = vld [vmem:[%s4409_s1 + $0x4c8] sm:$0xff]  }
  0x4f   :  { %3421 = vmatpush3.bf16.msra.mxu0 %v2705_v50  ;;  %v890_v50 = vcombine.high %v3934_v21, %v3934_v21 }
  0x50   :  { %3423 = vmatprep.subr.bf16.mxu0 %v2714_v52  ;;  %v2767_v52 = vld [vmem:[%s4409_s1 + $0x408] sm:$0xff]  }
  0x51   :  { %3453 = vmatpush3.bf16.msra.mxu1 %v2721_v51  ;;  %v891_v51 = vcombine.high %v3943_v26, %v3943_v26 }
  0x52   :  { %3455 = vmatprep.subr.bf16.mxu1 %v2730_v53  ;;  %v2783_v53 = vld [vmem:[%s4409_s1 + $0x488] sm:$0xff]  }
  0x53   :  { %3425 = vmatpush3.bf16.msra.mxu0 %v2706_v54  ;;  %v2776_v54 = vld [vmem:[%s4409_s1 + $0x450] sm:$0xff]  }
  0x54   :  { %3427 = vmatprep.subr.bf16.mxu0 %v2715_v56  ;;  %v2777_v56 = vld [vmem:[%s4409_s1 + $0x458] sm:$0xff]  }
  0x55   :  { %3457 = vmatpush3.bf16.msra.mxu1 %v2722_v55  ;;  %v2784_v55 = vld [vmem:[%s4409_s1 + $0x490] sm:$0xff]  }
  0x56   :  { %3459 = vmatprep.subr.bf16.mxu1 %v2731_v57  ;;  %v2793_v57 = vld [vmem:[%s4409_s1 + $0x4d8] sm:$0xff]  }
  0x57   :  { %3429 = vmatpush3.bf16.msra.mxu0 %v2707_v58  ;;  %v2769_v58 = vld [vmem:[%s4409_s1 + $0x418] sm:$0xff]  }
  0x58   :  { %3431 = vmatprep.subr.bf16.mxu0 %v2716_v60  ;;  %v2778_v60 = vld [vmem:[%s4409_s1 + $0x460] sm:$0xff]  }
  0x59   :  { %3461 = vmatpush3.bf16.msra.mxu1 %v2723_v59  ;;  %v2785_v59 = vld [vmem:[%s4409_s1 + $0x498] sm:$0xff]  }
  0x5a   :  { %3463 = vmatprep.subr.bf16.mxu1 %v2732_v61  ;;  %v2794_v61 = vld [vmem:[%s4409_s1 + $0x4e0] sm:$0xff]  }
  0x5b   :  { %3433 = vmatpush3.bf16.msra.mxu0 %v2708_v62  ;;  %v2770_v62 = vld [vmem:[%s4409_s1 + $0x420] sm:$0xff]  }
  0x5c   :  { %3435 = vmatprep.subr.bf16.mxu0 %v2717_v0  ;;  %v2779_v0 = vld [vmem:[%s4409_s1 + $0x468] sm:$0xff]  }
  0x5d   :  { %3465 = vmatpush3.bf16.msra.mxu1 %v2724_v63  ;;  %v2786_v63 = vld [vmem:[%s4409_s1 + $0x4a0] sm:$0xff]  }
  0x5e   :  { %3467 = vmatprep.subr.bf16.mxu1 %v2733_v1  ;;  %v2795_v1 = vld [vmem:[%s4409_s1 + $0x4e8] sm:$0xff]  }
  0x5f   :  { %3437 = vmatpush3.bf16.msra.mxu0 %v2709_v2  ;;  %v2771_v2 = vld [vmem:[%s4409_s1 + $0x428] sm:$0xff]  }
  0x60   :  { %3471 = vmatprep.subr.bf16.mxu0 %v2742_v4  ;;  %v2780_v4 = vld [vmem:[%s4409_s1 + $0x470] sm:$0xff]  }
  0x61   :  { %3469 = vmatpush3.bf16.msra.mxu1 %v2725_v3  ;;  %v2787_v3 = vld [vmem:[%s4409_s1 + $0x4a8] sm:$0xff]  }
  0x62   :  { %3503 = vmatprep.subr.bf16.mxu1 %v2758_v6  ;;  %1278 = vmatmul.mubr.f32.vlgmr.msra.gmra.mrb[4].mxu0 %v3958_v31  ;;  %v2747_v31 = vld [vmem:[%s4409_s1 + $0x368] sm:$0xff]   ;;  %v2796_v6 = vld [vmem:[%s4409_s1 + $0x4f0] sm:$0xff]  }
  0x63   :  { %3473 = vmatpush3.bf16.msra.mxu0 %v2734_v8  ;;  %1417 = vmatprep.mubr.f32.mxu0 %v873_v12  ;;  %v2772_v8 = vld [vmem:[%s4409_s1 + $0x430] sm:$0xff]   ;;  %v2773_v12 = vld [vmem:[%s4409_s1 + $0x438] sm:$0xff]  }
  0x64   :  { %1348 = vmatmul.mubr.f32.vlgmr.msra.gmra.mrb[4].mxu1 %v3961_v32  ;;  %3475 = vmatprep.subr.bf16.mxu0 %v2743_v10  ;;  %v2763_v32 = vld [vmem:[%s4409_s1 + $0x3e8] sm:$0xff]   ;;  %v2781_v10 = vld [vmem:[%s4409_s1 + $0x478] sm:$0xff]  }
  0x65   :  { %3505 = vmatpush3.bf16.msra.mxu1 %v2750_v9  ;;  %1487 = vmatprep.mubr.f32.mxu1 %v874_v13  ;;  %v2788_v9 = vld [vmem:[%s4409_s1 + $0x4b0] sm:$0xff]   ;;  %v2789_v13 = vld [vmem:[%s4409_s1 + $0x4b8] sm:$0xff]  }
  0x66   :  { %3507 = vmatprep.subr.bf16.mxu1 %v2759_v11  ;;  %v2797_v11 = vld [vmem:[%s4409_s1 + $0x4f8] sm:$0xff]  }
  0x67   :  { %3477 = vmatpush3.bf16.msra.mxu0 %v2735_v14  ;;  %v2806_v14 = vld [vmem:[%s4409_s1 + $0x540] sm:$0xff]  }
  0x68   :  { %3479 = vmatprep.subr.bf16.mxu0 %v2744_v16  ;;  %v2798_v16 = vld [vmem:[%s4409_s1 + $0x500] sm:$0xff]  }
  0x69   :  { %3509 = vmatpush3.bf16.msra.mxu1 %v2751_v15  ;;  %v2822_v15 = vld [vmem:[%s4409_s1 + $0x5c0] sm:$0xff]  }
  0x6a   :  { %3511 = vmatprep.subr.bf16.mxu1 %v2760_v18  ;;  %v2814_v18 = vld [vmem:[%s4409_s1 + $0x580] sm:$0xff]  }
  0x6b   :  { %3481 = vmatpush3.bf16.msra.mxu0 %v2736_v19  ;;  %v2807_v19 = vld [vmem:[%s4409_s1 + $0x548] sm:$0xff]  }
  0x6c   :  { %3483 = vmatprep.subr.bf16.mxu0 %v2745_v22  ;;  %v907_v22 = vcombine.high %v3985_v40, %v3985_v40 }
  0x6d   :  { %3513 = vmatpush3.bf16.msra.mxu1 %v2752_v20  ;;  %v2823_v20 = vld [vmem:[%s4409_s1 + $0x5c8] sm:$0xff]  }
  0x6e   :  { %3515 = vmatprep.subr.bf16.mxu1 %v2761_v23  ;;  %v908_v23 = vcombine.high %v4000_v46, %v4000_v46 }
  0x6f   :  { %3485 = vmatpush3.bf16.msra.mxu0 %v2737_v24  ;;  %v2799_v24 = vld [vmem:[%s4409_s1 + $0x508] sm:$0xff]  }
  0x70   :  { %3487 = vmatprep.subr.bf16.mxu0 %v2746_v27  ;;  %v2808_v27 = vld [vmem:[%s4409_s1 + $0x550] sm:$0xff]  }
  0x71   :  { %3517 = vmatpush3.bf16.msra.mxu1 %v2753_v25  ;;  %v2815_v25 = vld [vmem:[%s4409_s1 + $0x588] sm:$0xff]  }
  0x72   :  { %3519 = vmatprep.subr.bf16.mxu1 %v2762_v28  ;;  %v2816_v28 = vld [vmem:[%s4409_s1 + $0x590] sm:$0xff]  }
  0x73   :  { %3489 = vmatpush3.bf16.msra.mxu0 %v2738_v29  ;;  %v2809_v29 = vld [vmem:[%s4409_s1 + $0x558] sm:$0xff]  }
  0x74   :  { %3491 = vmatprep.subr.bf16.mxu0 %v2747_v31  ;;  %v2801_v31 = vld [vmem:[%s4409_s1 + $0x518] sm:$0xff]  }
  0x75   :  { %3521 = vmatpush3.bf16.msra.mxu1 %v2754_v30  ;;  %v2825_v30 = vld [vmem:[%s4409_s1 + $0x5d8] sm:$0xff]  }
  0x76   :  { %3523 = vmatprep.subr.bf16.mxu1 %v2763_v32  ;;  %v2817_v32 = vld [vmem:[%s4409_s1 + $0x598] sm:$0xff]  }
  0x77   :  { %3493 = vmatpush3.bf16.msra.mxu0 %v2739_v33  ;;  %v2810_v33 = vld [vmem:[%s4409_s1 + $0x560] sm:$0xff]  }
  0x78   :  { %3495 = vmatprep.subr.bf16.mxu0 %v2748_v35  ;;  %v2802_v35 = vld [vmem:[%s4409_s1 + $0x520] sm:$0xff]  }
  0x79   :  { %3525 = vmatpush3.bf16.msra.mxu1 %v2755_v34  ;;  %v2826_v34 = vld [vmem:[%s4409_s1 + $0x5e0] sm:$0xff]  }
  0x7a   :  { %3527 = vmatprep.subr.bf16.mxu1 %v2764_v36  ;;  %v2818_v36 = vld [vmem:[%s4409_s1 + $0x5a0] sm:$0xff]  }
  0x7b   :  { %3497 = vmatpush3.bf16.msra.mxu0 %v2740_v37  ;;  %v2811_v37 = vld [vmem:[%s4409_s1 + $0x568] sm:$0xff]  }
  0x7c   :  { %3499 = vmatprep.subr.bf16.mxu0 %v2749_v39  ;;  %v2803_v39 = vld [vmem:[%s4409_s1 + $0x528] sm:$0xff]  }
  0x7d   :  { %3529 = vmatpush3.bf16.msra.mxu1 %v2756_v38  ;;  %v2827_v38 = vld [vmem:[%s4409_s1 + $0x5e8] sm:$0xff]  }
  0x7e   :  { %3531 = vmatprep.subr.bf16.mxu1 %v2765_v41  ;;  %v2819_v41 = vld [vmem:[%s4409_s1 + $0x5a8] sm:$0xff]  }
  0x7f   :  { %3501 = vmatpush3.bf16.msra.mxu0 %v2741_v42  ;;  %v2812_v42 = vld [vmem:[%s4409_s1 + $0x570] sm:$0xff]  }
  0x80   :  { %3535 = vmatprep.subr.bf16.mxu0 %v2774_v44  ;;  %v2804_v44 = vld [vmem:[%s4409_s1 + $0x530] sm:$0xff]  }
  0x81   :  { %3533 = vmatpush3.bf16.msra.mxu1 %v2757_v43  ;;  %v2828_v43 = vld [vmem:[%s4409_s1 + $0x5f0] sm:$0xff]  }
  0x82   :  { %3567 = vmatprep.subr.bf16.mxu1 %v2790_v45  ;;  %1418 = vmatmul.mubr.f32.vlgmr.msra.gmra.mrb[6].mxu0 %v3892_v5  ;;  %v2792_v5 = vld [vmem:[%s4409_s1 + $0x4d0] sm:$0xff]  }
  0x83   :  { %3537 = vmatpush3.bf16.msra.mxu0 %v2766_v47  ;;  %1557 = vmatprep.mubr.f32.mxu0 %v890_v50  ;;  %v2820_v45 = vld [vmem:[%s4409_s1 + $0x5b0] sm:$0xff]   ;;  %v2813_v47 = vld [vmem:[%s4409_s1 + $0x578] sm:$0xff]  }
  0x84   :  { %1488 = vmatmul.mubr.f32.vlgmr.msra.gmra.mrb[6].mxu1 %v3895_v7  ;;  %3539 = vmatprep.subr.bf16.mxu0 %v2775_v49  ;;  %v2768_v7 = vld [vmem:[%s4409_s1 + $0x410] sm:$0xff]   ;;  %v2805_v49 = vld [vmem:[%s4409_s1 + $0x538] sm:$0xff]  }
  0x85   :  { %3569 = vmatpush3.bf16.msra.mxu1 %v2782_v48  ;;  %1627 = vmatprep.mubr.f32.mxu1 %v891_v51  ;;  %v2829_v48 = vld [vmem:[%s4409_s1 + $0x5f8] sm:$0xff]  }
  0x86   :  { %3571 = vmatprep.subr.bf16.mxu1 %v2791_v17  ;;  %v2821_v17 = vld [vmem:[%s4409_s1 + $0x5b8] sm:$0xff]  }
  0x87   :  { %3541 = vmatpush3.bf16.msra.mxu0 %v2767_v52  ;;  %v1868_v52 = vld [vmem:[%s4411_s2] ss:$0 sm:$0xff] }
  0x88   :  { %3543 = vmatprep.subr.bf16.mxu0 %v2776_v54 }
  0x89   :  { %3573 = vmatpush3.bf16.msra.mxu1 %v2783_v53 }
  0x8a   :  { %3575 = vmatprep.subr.bf16.mxu1 %v2792_v5 }
  0x8b   :  { %3545 = vmatpush3.bf16.msra.mxu0 %v2768_v7 }
  0x8c   :  { %3547 = vmatprep.subr.bf16.mxu0 %v2777_v56 }
  0x8d   :  { %3577 = vmatpush3.bf16.msra.mxu1 %v2784_v55 }
  0x8e   :  { %3579 = vmatprep.subr.bf16.mxu1 %v2793_v57  ;;  %v3685_v57 = vmov 0.0|0.0  }
  0x8f   :  { %3549 = vmatpush3.bf16.msra.mxu0 %v2769_v58  ;;  %v1776_v58 = vld [vmem:[%s4412_s3 + $0x10] sm:$0xff] }
  0x90   :  { %3551 = vmatprep.subr.bf16.mxu0 %v2778_v60  ;;  %v1777_v60 = vld [vmem:[%s4412_s3 + $0x18] sm:$0xff] }
  0x91   :  { %3581 = vmatpush3.bf16.msra.mxu1 %v2785_v59 }
  0x92   :  { %3583 = vmatprep.subr.bf16.mxu1 %v2794_v61  ;;  %v3666_v61 = vpack.c.bf16 %v1777_v60, %v1776_v58 }
  0x93   :  { %3553 = vmatpush3.bf16.msra.mxu0 %v2770_v62 }
  0x94   :  { %3555 = vmatprep.subr.bf16.mxu0 %v2779_v0  ;;  %v1778_v0 = vld [vmem:[%s4412_s3 + $0x20] sm:$0xff] }
  0x95   :  { %3585 = vmatpush3.bf16.msra.mxu1 %v2786_v63 }
  0x96   :  { %3587 = vmatprep.subr.bf16.mxu1 %v2795_v1  ;;  %v1779_v1 = vld [vmem:[%s4412_s3 + $0x28] sm:$0xff] }
  0x97   :  { %3557 = vmatpush3.bf16.msra.mxu0 %v2771_v2 }
  0x98   :  { %3559 = vmatprep.subr.bf16.mxu0 %v2780_v4  ;;  %v3669_v4 = vpack.c.bf16 %v1779_v1, %v1778_v0 }
  0x99   :  { %3589 = vmatpush3.bf16.msra.mxu1 %v2787_v3 }
  0x9a   :  { %3591 = vmatprep.subr.bf16.mxu1 %v2796_v6 }
  0x9b   :  { %3561 = vmatpush3.bf16.msra.mxu0 %v2772_v8 }
  0x9c   :  { %3563 = vmatprep.subr.bf16.mxu0 %v2781_v10  ;;  %v1780_v10 = vld [vmem:[%s4412_s3 + $0x30] sm:$0xff] }
  0x9d   :  { %3593 = vmatpush3.bf16.msra.mxu1 %v2788_v9 }
  0x9e   :  { %3595 = vmatprep.subr.bf16.mxu1 %v2797_v11  ;;  %v1781_v11 = vld [vmem:[%s4412_s3 + $0x38] sm:$0xff] }
  0x9f   :  { %3565 = vmatpush3.bf16.msra.mxu0 %v2773_v12  ;;  %v3672_v12 = vpack.c.bf16 %v1781_v11, %v1780_v10 }
  0xa0   :  { %3599 = vmatprep.subr.bf16.mxu0 %v2806_v14  ;;  %v3687_v14 = vmov 0.0  }
  0xa1   :  { %3597 = vmatpush3.bf16.msra.mxu1 %v2789_v13 }
  0xa2   :  { %3631 = vmatprep.subr.bf16.mxu1 %v2822_v15  ;;  %1558 = vmatmul.mubr.f32.vlgmr.msra.gmra.mrb[8].mxu0 %v3934_v21  ;;  %v2824_v21 = vld [vmem:[%s4409_s1 + $0x5d0] sm:$0xff]  }
  0xa3   :  { %3601 = vmatpush3.bf16.msra.mxu0 %v2798_v16  ;;  %1697 = vmatprep.mubr.f32.mxu0 %v907_v22 }
  0xa4   :  { %1628 = vmatmul.mubr.f32.vlgmr.msra.gmra.mrb[8].mxu1 %v3943_v26  ;;  %3603 = vmatprep.subr.bf16.mxu0 %v2807_v19  ;;  %v2800_v26 = vld [vmem:[%s4409_s1 + $0x510] sm:$0xff]  }
  0xa5   :  { %3633 = vmatpush3.bf16.msra.mxu1 %v2814_v18  ;;  %1767 = vmatprep.mubr.f32.mxu1 %v908_v23 }
  0xa6   :  { %3635 = vmatprep.subr.bf16.mxu1 %v2823_v20 }
  0xa7   :  { %3605 = vmatpush3.bf16.msra.mxu0 %v2799_v24 }
  0xa8   :  { %3607 = vmatprep.subr.bf16.mxu0 %v2808_v27 }
  0xa9   :  { %3637 = vmatpush3.bf16.msra.mxu1 %v2815_v25 }
  0xaa   :  { %3639 = vmatprep.subr.bf16.mxu1 %v2824_v21 }
  0xab   :  { %3609 = vmatpush3.bf16.msra.mxu0 %v2800_v26 }
  0xac   :  { %3611 = vmatprep.subr.bf16.mxu0 %v2809_v29 }
  0xad   :  { %3641 = vmatpush3.bf16.msra.mxu1 %v2816_v28 }
  0xae   :  { %3643 = vmatprep.subr.bf16.mxu1 %v2825_v30 }
  0xaf   :  { %3613 = vmatpush3.bf16.msra.mxu0 %v2801_v31 }
  0xb0   :  { %3615 = vmatprep.subr.bf16.mxu0 %v2810_v33 }
  0xb1   :  { %3645 = vmatpush3.bf16.msra.mxu1 %v2817_v32 }
  0xb2   :  { %3647 = vmatprep.subr.bf16.mxu1 %v2826_v34 }
  0xb3   :  { %3617 = vmatpush3.bf16.msra.mxu0 %v2802_v35 }
  0xb4   :  { %3619 = vmatprep.subr.bf16.mxu0 %v2811_v37 }
  0xb5   :  { %3649 = vmatpush3.bf16.msra.mxu1 %v2818_v36 }
  0xb6   :  { %3651 = vmatprep.subr.bf16.mxu1 %v2827_v38 }
  0xb7   :  { %3621 = vmatpush3.bf16.msra.mxu0 %v2803_v39 }
  0xb8   :  { %3623 = vmatprep.subr.bf16.mxu0 %v2812_v42 }
  0xb9   :  { %3653 = vmatpush3.bf16.msra.mxu1 %v2819_v41 }
  0xba   :  { %3655 = vmatprep.subr.bf16.mxu1 %v2828_v43 }
  0xbb   :  { %3625 = vmatpush3.bf16.msra.mxu0 %v2804_v44 }
  0xbc   :  { %3627 = vmatprep.subr.bf16.mxu0 %v2813_v47 }
  0xbd   :  { %3657 = vmatpush3.bf16.msra.mxu1 %v2820_v45 }
  0xbe   :  { %3659 = vmatprep.subr.bf16.mxu1 %v2829_v48 }
  0xbf   :  { %3629 = vmatpush3.bf16.msra.mxu0 %v2805_v49 }
  0xc0   :  { %3662 = vmatprep.subr.bf16.mxu0 %v3685_v57 }
  0xc1   :  { %3661 = vmatpush3.bf16.msra.mxu1 %v2821_v17 }
  0xc2   :  { %1698 = vmatmul.mubr.f32.vlgmr.msra.gmra.mrb[10].mxu0 %v3985_v40  ;;  %v1774_v40 = vld [vmem:[%s4412_s3] sm:$0xff] }
  0xc3   :  { %3275 = vmatprep.mubr.msk.f32.mxu0 %vm3686_vm0, %v3687_v14 }
  0xc4   :  { %1768 = vmatmul.mubr.f32.vlgmr.msra.gmra.mrb[10].mxu1 %v4000_v46  ;;  %v1775_v46 = vld [vmem:[%s4412_s3 + $0x8] sm:$0xff] }
  0xc5   :  { %v3663_v59 = vpack.c.bf16 %v1775_v46, %v1774_v40 }
  0xc7   :  { %3664 = vmatpush3.bf16.msra.mxu0 %v3663_v59 }
  0xc8   :  { %3665 = vmatprep.subr.bf16.mxu0 %v3685_v57 }
  0xcb   :  { %3667 = vmatpush3.bf16.msra.mxu0 %v3666_v61 }
  0xcc   :  { %3668 = vmatprep.subr.bf16.mxu0 %v3685_v57 }
  0xcf   :  { %3670 = vmatpush3.bf16.msra.mxu0 %v3669_v4 }
  0xd0   :  { %3671 = vmatprep.subr.bf16.mxu0 %v3685_v57 }
  0xd3   :  { %3673 = vmatpush3.bf16.msra.mxu0 %v3672_v12 }
  0xf5   :  { %v2862_v50 = vpop.f32.mrb[0].mxu0 }
  0xf6   :  { %v2863_v53 = vpop.f32.mrb[1].mxu0 }
  0xf7   :  { %v2897_v51 = vpop.f32.mrb[0].mxu1  ;;  %v2864_v5 = vadd.f32 %v2863_v53, %v2862_v50  ;;  %v1869_v50 = vld [vmem:[%s4413_s4] ss:$0 sm:$0xff] }
  0xf8   :  { %v2898_v54 = vpop.f32.mrb[1].mxu1 }
  0xf9   :  { %v2899_v7 = vadd.f32 %v2898_v54, %v2897_v51  ;;  %v1000_v55 = vadd.f32 %v2864_v5, %v1868_v52 }
  0xfb   :  { %v1070_v56 = vadd.f32 %v2899_v7, %v1000_v55 }
 0x115   :  { %v2932_v62 = vpop.f32.mrb[2].mxu0 }
 0x116   :  { %v2933_v2 = vpop.f32.mrb[3].mxu0 }
 0x117   :  { %v2967_v63 = vpop.f32.mrb[2].mxu1  ;;  %v2934_v6 = vadd.f32 %v2933_v2, %v2932_v62 }
 0x118   :  { %v2968_v3 = vpop.f32.mrb[3].mxu1 }
 0x119   :  { %v2969_v8 = vadd.f32 %v2968_v3, %v2967_v63  ;;  %v1140_v9 = vadd.f32 %v2934_v6, %v1070_v56 }
 0x11b   :  { %v1210_v13 = vadd.f32 %v2969_v8, %v1140_v9 }
 0x135   :  { %v3002_v15 = vpop.f32.mrb[4].mxu0 }
 0x136   :  { %v3003_v18 = vpop.f32.mrb[5].mxu0 }
 0x137   :  { %v3037_v16 = vpop.f32.mrb[4].mxu1  ;;  %v3004_v20 = vadd.f32 %v3003_v18, %v3002_v15 }
 0x138   :  { %v3038_v19 = vpop.f32.mrb[5].mxu1 }
 0x139   :  { %v3039_v22 = vadd.f32 %v3038_v19, %v3037_v16  ;;  %v1280_v23 = vadd.f32 %v3004_v20, %v1210_v13 }
 0x13b   :  { %v1350_v24 = vadd.f32 %v3039_v22, %v1280_v23 }
 0x155   :  { %v3072_v25 = vpop.f32.mrb[6].mxu0 }
 0x156   :  { %v3073_v21 = vpop.f32.mrb[7].mxu0 }
 0x157   :  { %v3107_v27 = vpop.f32.mrb[6].mxu1  ;;  %v3074_v28 = vadd.f32 %v3073_v21, %v3072_v25 }
 0x158   :  { %v3108_v26 = vpop.f32.mrb[7].mxu1 }
 0x159   :  { %v3109_v29 = vadd.f32 %v3108_v26, %v3107_v27  ;;  %v1420_v30 = vadd.f32 %v3074_v28, %v1350_v24 }
 0x15b   :  { %v1490_v31 = vadd.f32 %v3109_v29, %v1420_v30 }
 0x175   :  { %v3142_v32 = vpop.f32.mrb[8].mxu0 }
 0x176   :  { %v3143_v34 = vpop.f32.mrb[9].mxu0 }
 0x177   :  { %v3177_v33 = vpop.f32.mrb[8].mxu1  ;;  %v3144_v36 = vadd.f32 %v3143_v34, %v3142_v32 }
 0x178   :  { %v3178_v35 = vpop.f32.mrb[9].mxu1 }
 0x179   :  { %v3179_v37 = vadd.f32 %v3178_v35, %v3177_v33  ;;  %v1560_v38 = vadd.f32 %v3144_v36, %v1490_v31 }
 0x17b   :  { %v1630_v39 = vadd.f32 %v3179_v37, %v1560_v38 }
 0x195   :  { %v3212_v41 = vpop.f32.mrb[10].mxu0 }
 0x196   :  { %v3213_v43 = vpop.f32.mrb[11].mxu0 }
 0x197   :  { %v3247_v42 = vpop.f32.mrb[10].mxu1  ;;  %v3214_v45 = vadd.f32 %v3213_v43, %v3212_v41 }
 0x198   :  { %v3248_v44 = vpop.f32.mrb[11].mxu1 }
 0x199   :  { %v3249_v47 = vadd.f32 %v3248_v44, %v3247_v42  ;;  %v1700_v48 = vadd.f32 %v3214_v45, %v1630_v39 }
 0x19b   :  { %v1770_v49 = vadd.f32 %v3249_v47, %v1700_v48 }
 0x19d   :  { %v1773_v17 = vmax.f32 %v1770_v49, 0.0 }
 0x19f   :  { %3276 = vmatmul.mubr.msk.f32.vlgmr.msra.gmra.mrb[12].mxu0 %vm1789_vm1, %v1773_v17 }
 0x272   :  { %v1859_v51 = vpop.f32.mrb[12].mxu0 }
 0x273   :  { %v1860_v52 = vadd.f32 %v1869_v50, %v1859_v51  ;;  %v3277_v53 = vpop.f32.mrb[13].mxu0 }
 0x275   :  { %1863 = vst [vmem:[%s4414_s5] sm:$0x3] %v1860_v52 }

// kernel: gausnet_forward.2
= control target key start
LH: loop header
LB: loop body
LE: loop exit
PB: predicated region body
PF: predicated region fallthrough
CT: control target
= control target key end

     0   :  { %s10344_s0 = inlined_call_operand.hbm [shape: f32[3,128,768], index: 0, kind: input, shape index: {}]   ;;  %s10345_s1 = inlined_call_operand.hbm [shape: f32[3,384,512], index: 1, kind: input, shape index: {}]   ;;  %s10346_s2 = inlined_call_operand.hbm [shape: f32[1,768], index: 2, kind: input, shape index: {}]   ;;  %s10347_s3 = inlined_call_operand.hbm [shape: f32[1,512], index: 3, kind: input, shape index: {}]   ;;  %s10348_s4 = inlined_call_operand.hbm [shape: f32[768,384], index: 4, kind: input, shape index: {}]   ;;  %s10349_s5 = inlined_call_operand.hbm [shape: f32[48,91], index: 5, kind: input, shape index: {}]   ;;  %s10350_s6 = inlined_call_operand.hbm [shape: f32[512,128], index: 6, kind: input, shape index: {}]   ;;  %s10351_s7 = inlined_call_operand.hbm [shape: f32[24,45], index: 7, kind: input, shape index: {}]   ;;  %s10352_s8 = inlined_call_operand.vmem [shape: f32[2,1,91,91], index: 8, kind: input, shape index: {}]   ;;  %s10353_s9 = inlined_call_operand.vmem [shape: f32[2,6,91,128], index: 9, kind: output, shape index: {0}]   ;;  %s10354_s10 = inlined_call_operand.vmem [shape: f32[2,4,45,128], index: 10, kind: output, shape index: {1}]   ;;  %s10355_s11 = inlined_call_operand.vmem [shape: f32[2,24,128], index: 11, kind: output, shape index: {2}]  }
   0x1   :  { %10369 = sst [smem:[#allocation21_spill]] %s10345_s1 }
   0x2   :  { %10370 = sst [smem:[#allocation22_spill]] %s10347_s3 }
   0x3   :  { %17 = vsyncpa [#allocation4], 0 }
   0x4   :  { %18 = vsyncpa [#allocation6], 0 }
   0x5   :  { %19 = vsyncpa [#allocation9], 0 }
   0x6   :  { %20 = vsyncpa [#allocation12], 0 }
   0x7   :  { %21 = vsyncpa [#allocation15], 0  ;;  %s8896_s17 = smov 0  }
   0x8 LB: > { %s8816_s18 = smov [#allocation5]   ;;  %s8902_s20 = sadd.s32 4294967295, %s8814_s17   ;;  %s8814_s17 = sphi %s8896_s17, %s27_s17  }
   0x9   : > { %s329_s19 = sshll.u32 %s8816_s18, 4  ;;  %p6340_p0 = scmp.ge.s32.totalorder %s8814_s17, 1  ;;  %s8907_s19 = int_to_ptr.vmem [resolvable:$true] %s329_s19 }
   0xa   : > { %p304_p1 = scmp.lt.s32.totalorder %s8814_s17, 3  ;;  %p10356_p2 = scmp.eq.s32.totalorder %s8902_s20, 0 }
   0xb   : > { %s8817_s22 = smov [#allocation8]   ;;  %s8818_s25 = smov [#allocation11]  }
   0xc   : > { %p8909_p3 = pnand %p6340_p0, %p304_p1  ;;  %s354_s23 = sshll.u32 %s8817_s22, 4  ;;  %s8915_s23 = int_to_ptr.vmem [resolvable:$true] %s354_s23 }
   0xd   : > { %s377_s26 = sshll.u32 %s8818_s25, 4  ;;  %s10373_s1 = sld [smem:[#allocation21_spill]]  ;;  %s8923_s26 = int_to_ptr.vmem [resolvable:$true] %s377_s26 }
   0xe   : > { %s10371_s21 = scalar_select %p8909_p3, 1, 0 }
   0xf   : > { %p8479_p4 = pneg %p8909_p3 }
  0x11   : > { %p8919_p5 = pnand %p10356_p2, %p8479_p4 }
  0x13   : > { %s8564_s29 = scalar_lea.hbm %s10373_s1, 73728  ;;  %p8933_p7 = pneg %p8919_p5 }
  0x14   : > { %p8565_p6 = scmp.ne.s32.totalorder %s10373_s1, %s8564_s29  ;;  %p8571_p10 = scmp.lt.u32.totalorder %s8564_s29, %s10373_s1 }
  0x16   : > { %p8567_p8 = pnand %p8933_p7, %p8565_p6 }
  0x18   : > { %p8568_p9 = pneg %p8567_p8 }
  0x1a   : > { %p8573_p11 = pnand %p8571_p10, %p8568_p9 }
  0x1c   : > { %8576 = shalt.err (!%p8573_p11)
}
  0x1d   : > { %s8577_s16 = scalar_lea.vmem %s8907_s19, 73728  ;;  %p8585_p1 = scmp.lt.s32.totalorder %s8907_s19, %s8907_s19 }
  0x1e   : > { %p8578_p12 = scmp.ne.s32.totalorder %s8907_s19, %s8577_s16  ;;  %p8586_p4 = scmp.lt.s32.totalorder %s8577_s16, %s8577_s16 }
  0x20   : > { %p8580_p13 = pnand %p8578_p12, %p8933_p7  ;;  %p8587_p6 = por %p8586_p4, %p8585_p1 }
  0x22   : > { %p8581_p0 = pneg %p8580_p13 }
  0x24   : > { %p8588_p8 = pnand %p8587_p6, %p8581_p0 }
  0x26   : > { %8591 = shalt.err (!%p8588_p8)
}
  0x27   : > { %s8819_s18 = smov 512   ;;  %s8820_s22 = smov 32  }
  0x28   : > { %8485 = dma.hbm_to_vmem [thread:$0]  (!%p8919_p5), %s10373_s1, 73728, %s8907_s19, [#allocation6], %s8819_s18, %s8819_s18, %s8820_s22  }
  0x29   : > { %s10375_s3 = sld [smem:[#allocation22_spill]] }
  0x2f   : > { %s8592_s30 = scalar_lea.hbm %s10375_s3, 64 }
  0x30   : > { %p8593_p9 = scmp.ne.s32.totalorder %s10375_s3, %s8592_s30  ;;  %p8599_p12 = scmp.lt.u32.totalorder %s8592_s30, %s10375_s3 }
  0x32   : > { %p8595_p10 = pnand %p8593_p9, %p8933_p7 }
  0x34   : > { %p8596_p11 = pneg %p8595_p10 }
  0x36   : > { %p8601_p13 = pnand %p8599_p12, %p8596_p11 }
  0x38   : > { %8604 = shalt.err (!%p8601_p13)
}
  0x39   : > { %s8605_s19 = scalar_lea.vmem %s8915_s23, 64  ;;  %p8613_p6 = scmp.lt.s32.totalorder %s8915_s23, %s8915_s23 }
  0x3a   : > { %p8606_p0 = scmp.ne.s32.totalorder %s8915_s23, %s8605_s19  ;;  %p8614_p8 = scmp.lt.s32.totalorder %s8605_s19, %s8605_s19 }
  0x3c   : > { %p8608_p1 = pnand %p8606_p0, %p8933_p7  ;;  %p8615_p9 = por %p8614_p8, %p8613_p6 }
  0x3e   : > { %p8609_p4 = pneg %p8608_p1 }
  0x40   : > { %p8616_p10 = pnand %p8615_p9, %p8609_p4 }
  0x42   : > { %8619 = shalt.err (!%p8616_p10)
}
  0x43   : > { %8491 = dma.hbm_to_vmem [thread:$0]  (!%p8919_p5), %s10375_s3, 64, %s8915_s23, [#allocation9]  }
  0x44   : > { %s8620_s28 = scalar_lea.hbm %s10349_s5, 768 }
  0x45   : > { %p8621_p11 = scmp.ne.s32.totalorder %s10349_s5, %s8620_s28  ;;  %p8627_p0 = scmp.lt.u32.totalorder %s8620_s28, %s10349_s5 }
  0x47   : > { %p8623_p12 = pnand %p8621_p11, %p8933_p7 }
  0x49   : > { %p8624_p13 = pneg %p8623_p12 }
  0x4b   : > { %p8629_p1 = pnand %p8627_p0, %p8624_p13 }
  0x4d   : > { %8632 = shalt.err (!%p8629_p1)
}
  0x4e   : > { %s8633_s23 = scalar_lea.vmem %s8923_s26, 768  ;;  %p8641_p9 = scmp.lt.s32.totalorder %s8923_s26, %s8923_s26 }
  0x4f   : > { %p8634_p4 = scmp.ne.s32.totalorder %s8923_s26, %s8633_s23  ;;  %p8642_p10 = scmp.lt.s32.totalorder %s8633_s23, %s8633_s23 }
  0x51   : > { %p8636_p6 = pnand %p8634_p4, %p8933_p7  ;;  %p8643_p11 = por %p8642_p10, %p8641_p9 }
  0x53   : > { %p8637_p8 = pneg %p8636_p6 }
  0x55   : > { %p8644_p12 = pnand %p8643_p11, %p8637_p8 }
  0x57   : > { %8647 = shalt.err (!%p8644_p12)
}
  0x58   : > { %s10358_s15 = smov 128   ;;  %s10360_s16 = smov 8  }
  0x59   : > { %8497 = dma.hbm_to_vmem [thread:$0]  (!%p8919_p5), %s10349_s5, 768, %s8923_s26, [#allocation12], %s10358_s15, %s10358_s15, %s10360_s16  }
  0x5a   : > { %s8823_s22 = smov [#allocation3]   ;;  %s8648_s29 = scalar_lea.hbm %s10344_s0, 36864 }
  0x5b   : > { %s316_s25 = sshll.u32 %s8823_s22, 4  ;;  %p8649_p13 = scmp.ne.s32.totalorder %s10344_s0, %s8648_s29  ;;  %s317_s25 = int_to_ptr.vmem [resolvable:$true] %s316_s25 }
  0x5c   : > { %p8655_p4 = scmp.lt.u32.totalorder %s8648_s29, %s10344_s0 }
  0x5d   : > { %p8651_p0 = pnand %p8649_p13, %p8933_p7 }
  0x5f   : > { %p8652_p1 = pneg %p8651_p0 }
  0x61   : > { %p8657_p6 = pnand %p8655_p4, %p8652_p1 }
  0x63   : > { %8660 = shalt.err (!%p8657_p6)
}
  0x64   : > { %s8661_s26 = scalar_lea.vmem %s317_s25, 36864  ;;  %p8669_p11 = scmp.lt.s32.totalorder %s317_s25, %s317_s25 }
  0x65   : > { %p8662_p8 = scmp.ne.s32.totalorder %s317_s25, %s8661_s26  ;;  %p8670_p12 = scmp.lt.s32.totalorder %s8661_s26, %s8661_s26 }
  0x67   : > { %p8664_p9 = pnand %p8662_p8, %p8933_p7  ;;  %p8671_p2 = por %p8670_p12, %p8669_p11 }
  0x69   : > { %p8665_p10 = pneg %p8664_p9 }
  0x6b   : > { %p8672_p3 = pnand %p8671_p2, %p8665_p10 }
  0x6d   : > { %8675 = shalt.err (!%p8672_p3)
}
  0x6e   : > { %s8824_s19 = smov 768   ;;  %s8825_s18 = smov 48  }
  0x6f   : > { %8482 = dma.hbm_to_vmem [thread:$0]  (!%p8919_p5), %s10344_s0, 36864, %s317_s25, [#allocation4], %s8824_s19, %s8824_s19, %s8825_s18  }
  0x70   : > { %s8826_s28 = smov [#allocation7]   ;;  %s8827_s30 = smov [#allocation10]  }
  0x71   : > { %s343_s29 = sshll.u32 %s8826_s28, 4  ;;  %s364_s12 = sshll.u32 %s8827_s30, 4  ;;  %s344_s29 = int_to_ptr.vmem [resolvable:$true] %s343_s29  ;;  %s365_s12 = int_to_ptr.vmem [resolvable:$true] %s364_s12 }
  0x72   : > { %s8676_s26 = scalar_lea.hbm %s10346_s2, 96 }
  0x73   : > { %p8677_p2 = scmp.ne.s32.totalorder %s10346_s2, %s8676_s26  ;;  %p8683_p0 = scmp.lt.u32.totalorder %s8676_s26, %s10346_s2 }
  0x75   : > { %p8679_p3 = pnand %p8677_p2, %p8933_p7 }
  0x77   : > { %p8680_p13 = pneg %p8679_p3 }
  0x79   : > { %p8685_p1 = pnand %p8683_p0, %p8680_p13 }
  0x7b   : > { %8688 = shalt.err (!%p8685_p1)
}
  0x7c   : > { %s8689_s25 = scalar_lea.vmem %s344_s29, 96  ;;  %p8697_p9 = scmp.lt.s32.totalorder %s344_s29, %s344_s29 }
  0x7d   : > { %p8690_p4 = scmp.ne.s32.totalorder %s344_s29, %s8689_s25  ;;  %p8698_p10 = scmp.lt.s32.totalorder %s8689_s25, %s8689_s25 }
  0x7f   : > { %p8692_p6 = pnand %p8690_p4, %p8933_p7  ;;  %p8699_p11 = por %p8698_p10, %p8697_p9 }
  0x81   : > { %p8693_p8 = pneg %p8692_p6 }
  0x83   : > { %p8700_p12 = pnand %p8699_p11, %p8693_p8 }
  0x85   : > { %8703 = shalt.err (!%p8700_p12)
}
  0x86   : > { %8488 = dma.hbm_to_vmem [thread:$0]  (!%p8919_p5), %s10346_s2, 96, %s344_s29, [#allocation6]  }
  0x87   : > { %s8704_s19 = scalar_lea.hbm %s10348_s4, 36864 }
  0x88   : > { %p8705_p2 = scmp.ne.s32.totalorder %s10348_s4, %s8704_s19  ;;  %p8711_p0 = scmp.lt.u32.totalorder %s8704_s19, %s10348_s4 }
  0x8a   : > { %p8707_p3 = pnand %p8705_p2, %p8933_p7 }
  0x8c   : > { %p8708_p13 = pneg %p8707_p3 }
  0x8e   : > { %p8713_p1 = pnand %p8711_p0, %p8708_p13 }
  0x90   : > { %8716 = shalt.err (!%p8713_p1)
}
  0x91   : > { %s8717_s30 = scalar_lea.vmem %s365_s12, 36864  ;;  %p8725_p9 = scmp.lt.s32.totalorder %s365_s12, %s365_s12 }
  0x92   : > { %p8718_p4 = scmp.ne.s32.totalorder %s365_s12, %s8717_s30  ;;  %p8726_p10 = scmp.lt.s32.totalorder %s8717_s30, %s8717_s30 }
  0x94   : > { %p8720_p6 = pnand %p8718_p4, %p8933_p7  ;;  %p8727_p11 = por %p8726_p10, %p8725_p9 }
  0x96   : > { %p8721_p8 = pneg %p8720_p6 }
  0x98   : > { %p8728_p12 = pnand %p8727_p11, %p8721_p8 }
  0x9a   : > { %8731 = shalt.err (!%p8728_p12)
}
  0x9b   : > { %s8828_s29 = smov 384   ;;  %s8829_s14 = smov 24  }
  0x9c   : > { %8494 = dma.hbm_to_vmem [thread:$0]  (!%p8919_p5), %s10348_s4, 36864, %s365_s12, [#allocation9], %s8828_s29, %s8828_s29, %s8829_s14  }
  0x9d   : > { %s8830_s25 = smov [#allocation13]   ;;  %s8831_s16 = smov [#allocation14]  }
  0x9e   : > { %s390_s15 = sshll.u32 %s8830_s25, 4  ;;  %s403_s1 = sshll.u32 %s8831_s16, 4  ;;  %s391_s15 = int_to_ptr.vmem [resolvable:$true] %s390_s15  ;;  %s404_s1 = int_to_ptr.vmem [resolvable:$true] %s403_s1 }
  0x9f   : > { %s8732_s18 = scalar_lea.hbm %s10350_s6, 8192 }
  0xa0   : > { %p8733_p2 = scmp.ne.s32.totalorder %s10350_s6, %s8732_s18  ;;  %p8739_p0 = scmp.lt.u32.totalorder %s8732_s18, %s10350_s6 }
  0xa2   : > { %p8735_p3 = pnand %p8733_p2, %p8933_p7 }
  0xa4   : > { %p8736_p13 = pneg %p8735_p3 }
  0xa6   : > { %p8741_p1 = pnand %p8739_p0, %p8736_p13 }
  0xa8   : > { %8744 = shalt.err (!%p8741_p1)
}
  0xa9   : > { %s8745_s12 = scalar_lea.vmem %s391_s15, 8192  ;;  %p8753_p9 = scmp.lt.s32.totalorder %s391_s15, %s391_s15 }
  0xaa   : > { %p8746_p4 = scmp.ne.s32.totalorder %s391_s15, %s8745_s12  ;;  %p8754_p10 = scmp.lt.s32.totalorder %s8745_s12, %s8745_s12 }
  0xac   : > { %p8748_p6 = pnand %p8746_p4, %p8933_p7  ;;  %p8755_p11 = por %p8754_p10, %p8753_p9 }
  0xae   : > { %p8749_p8 = pneg %p8748_p6 }
  0xb0   : > { %p8756_p12 = pnand %p8755_p11, %p8749_p8 }
  0xb2   : > { %8759 = shalt.err (!%p8756_p12)
}
  0xb3   : > { %s10376_s29 = smov 8   ;;  %s10377_s14 = smov 128  }
  0xb4   : > { %8500 = dma.hbm_to_vmem [thread:$0]  (!%p8919_p5), %s10350_s6, 8192, %s391_s15, [#allocation12], %s10377_s14, %s10377_s14, %s10376_s29  }
  0xb5   : > { %s8760_s3 = scalar_lea.hbm %s10351_s7, 384 }
  0xb6   : > { %p8761_p2 = scmp.ne.s32.totalorder %s10351_s7, %s8760_s3  ;;  %p8767_p0 = scmp.lt.u32.totalorder %s8760_s3, %s10351_s7 }
  0xb8   : > { %p8763_p3 = pnand %p8761_p2, %p8933_p7 }
  0xba   : > { %p8764_p13 = pneg %p8763_p3 }
  0xbc   : > { %p8769_p1 = pnand %p8767_p0, %p8764_p13 }
  0xbe   : > { %8772 = shalt.err (!%p8769_p1)
}
  0xbf   : > { %s8773_s28 = scalar_lea.vmem %s404_s1, 384  ;;  %p8781_p9 = scmp.lt.s32.totalorder %s404_s1, %s404_s1 }
  0xc0   : > { %p8774_p4 = scmp.ne.s32.totalorder %s404_s1, %s8773_s28  ;;  %p8782_p10 = scmp.lt.s32.totalorder %s8773_s28, %s8773_s28 }
  0xc2   : > { %p8776_p6 = pnand %p8774_p4, %p8933_p7  ;;  %p8783_p11 = por %p8782_p10, %p8781_p9 }
  0xc4   : > { %p8777_p8 = pneg %p8776_p6 }
  0xc6   : > { %p8784_p12 = pnand %p8783_p11, %p8777_p8 }
  0xc8   : > { %8787 = shalt.err (!%p8784_p12)
}
  0xc9   : > { %8503 = dma.hbm_to_vmem [thread:$0]  (!%p8919_p5), %s10351_s7, 384, %s404_s1, [#allocation15], %s10377_s14, %s10377_s14, %s10376_s29  }
  0xca   : > { %p10378_p2 = scmp.ne.s32.totalorder %s10371_s21, 0 }
  0xcb   : > { %p10379_p7 = scmp.eq.s32.totalorder (!%p10378_p2), %s8902_s20, 0 }
  0xcc   : > { %427 = sbr.rel (%p10378_p2) target bundleno = 2200 (0x898), region = 56 }
  0xd3   : > { %8793 = dma.done.wait (%p10379_p7), [#allocation4], 36864   ;;  %p10380_p3 = pmov %p10379_p7 }
  0xd5   : > { %8795 = vsyncadd (%p10380_p3), [#allocation4], 4294930432  ;;  %p10381_p13 = pmov %p10380_p3 }
  0xd6   : > { %p10382_p0 = pmov %p10380_p3 }
  0xd7   : > { %8797 = dma.done.wait (%p10381_p13), [#allocation6], 73824  }
  0xd8   : > { %8799 = vsyncadd (%p10382_p0), [#allocation6], 4294893472  ;;  %p10383_p1 = pmov %p10382_p0 }
  0xd9   : > { %p10384_p5 = pmov %p10382_p0 }
  0xda   : > { %8801 = dma.done.wait (%p10383_p1), [#allocation9], 36928  }
  0xdb   : > { %8803 = vsyncadd (%p10384_p5), [#allocation9], 4294930368  ;;  %p10385_p4 = pmov %p10382_p0 }
  0xdc   : > { %p10386_p6 = pmov %p10382_p0 }
  0xdd   : > { %8805 = dma.done.wait (%p10385_p4), [#allocation12], 8960  }
  0xde   : > { %8807 = vsyncadd (%p10386_p6), [#allocation12], 4294958336  ;;  %p10387_p8 = pmov %p10382_p0 }
  0xdf   : > { %p10388_p9 = pmov %p10382_p0 }
  0xe0   : > { %8809 = dma.done.wait (%p10387_p8), [#allocation15], 384  }
  0xe1   : > { %8811 = vsyncadd (%p10388_p9), [#allocation15], 4294966912  ;;  %v10366_v0 = vmov 0.0   ;;  %p505_p10 = scmp.lt.s32.totalorder %s8902_s20, 1  ;;  %v685_v1 = vld [vmem:[#allocation3 + $0x308] sm:$0xff]  ;;  %v691_v2 = vld [vmem:[#allocation3 + $0x338] sm:$0xff] }
  0xe2   : > { %844 = vmatprep.mubr.f32.mxu0 %v10366_v0  ;;  %525 = vst [vmem:[#allocation2] sm:$0xff] %v10366_v0  ;;  %526 = vst [vmem:[#allocation2 + $0x8] sm:$0xff] %v10366_v0  ;;  %981 = vmatprep.mubr.f32.mxu1 %v10366_v0  ;;  %v684_v3 = vld [vmem:[#allocation3 + $0x300] sm:$0xff]  ;;  %v6847_v4 = vpack.c.bf16 %v691_v2, %v685_v1  ;;  %v690_v5 = vld [vmem:[#allocation3 + $0x330] sm:$0xff]  ;;  %vm549_vm0 = vcmask 744448   ;;  %vm561_vm1 = vcmask 739328  }
  0xe3   : > { %527 = vst [vmem:[#allocation2 + $0x10] sm:$0xff] %v10366_v0  ;;  %528 = vst [vmem:[#allocation2 + $0x18] sm:$0xff] %v10366_v0  ;;  %s10398_s20 = smov (!%p505_p10, %s8902_s20), 1  ;;  %v697_v6 = vld [vmem:[#allocation3 + $0x368] sm:$0xff]  ;;  %v703_v7 = vld [vmem:[#allocation3 + $0x398] sm:$0xff]  ;;  %v6849_v8 = vpack.c.bf16 %v690_v5, %v684_v3  ;;  %vm3545_vm2 = vcmask 1042432  }
  0xe4   : > { %529 = vst [vmem:[#allocation2 + $0x20] sm:$0xff] %v10366_v0  ;;  %530 = vst [vmem:[#allocation2 + $0x28] sm:$0xff] %v10366_v0  ;;  %v6851_v9 = vpack.c.bf16 %v703_v7, %v697_v6  ;;  %v696_v10 = vld [vmem:[#allocation3 + $0x360] sm:$0xff]  ;;  %v702_v11 = vld [vmem:[#allocation3 + $0x390] sm:$0xff]  ;;  %6848 = vmatprep.subr.bf16.mxu0 %v6847_v4  ;;  %s8443_s21 = smul.u32 96, %s10398_s20  ;;  %vm8833_vm3 = vmmov 1  }
  0xe5   : > { %531 = vst [vmem:[#allocation2 + $0x30] sm:$0xff] %v10366_v0  ;;  %532 = vst [vmem:[#allocation2 + $0x38] sm:$0xff] %v10366_v0  ;;  %v709_v12 = vld [vmem:[#allocation3 + $0x3c8] sm:$0xff]  ;;  %v715_v13 = vld [vmem:[#allocation3 + $0x3f8] sm:$0xff]  ;;  %6850 = vmatpush1.bf16.msra.mxu0 %v6849_v8  ;;  %v6853_v14 = vpack.c.bf16 %v702_v11, %v696_v10  ;;  %s8444_s12 = smul.u32 576, %s10398_s20  ;;  %vm4154_vm5 = vcmask 1046528  }
  0xe6   : > { %533 = vst [vmem:[#allocation2 + $0x40] sm:$0xff] %v10366_v0  ;;  %534 = vst [vmem:[#allocation2 + $0x48] sm:$0xff] %v10366_v0  ;;  %6852 = vmatprep.subr.bf16.mxu0 %v6851_v9  ;;  %v6855_v15 = vpack.c.bf16 %v715_v13, %v709_v12  ;;  %v708_v16 = vld [vmem:[#allocation3 + $0x3c0] sm:$0xff]  ;;  %v714_v17 = vld [vmem:[#allocation3 + $0x3f0] sm:$0xff]  ;;  %s9143_s1 = scalar_lea.vmem %s10352_s8, %s8443_s21  ;;  %vm5207_vm6 = vcmask 1045504   ;;  %s8445_s26 = smul.u32 192, %s10398_s20 }
  0xe7   : > { %535 = vst [vmem:[#allocation2 + $0x50] sm:$0xff] %v10366_v0  ;;  %536 = vst [vmem:[#allocation2 + $0x58] sm:$0xff] %v10366_v0  ;;  %v721_v18 = vld [vmem:[#allocation3 + $0x428] sm:$0xff]  ;;  %v727_v19 = vld [vmem:[#allocation3 + $0x458] sm:$0xff]  ;;  %v6857_v20 = vpack.c.bf16 %v714_v17, %v708_v16  ;;  %s9475_s23 = scalar_lea.vmem %s10353_s9, %s8444_s12  ;;  %vm8835_vm7 = vmmov 0   ;;  %vm6051_vm8 = vcmask 1044480  }
  0xe8   : > { %v6859_v21 = vpack.c.bf16 %v727_v19, %v721_v18  ;;  %v720_v22 = vld [vmem:[#allocation3 + $0x420] sm:$0xff]  ;;  %v726_v23 = vld [vmem:[#allocation3 + $0x450] sm:$0xff]  ;;  %v733_v24 = vld [vmem:[#allocation3 + $0x488] sm:$0xff]  ;;  %s10281_s3 = scalar_lea.vmem %s10354_s10, %s8445_s26  ;;  %vm6041_vm10 = vcmask 367616   ;;  %s8446_s19 = smul.u32 24, %s10398_s20 }
  0xe9   : > { %6854 = vmatpush1.bf16.msra.mxu0 %v6853_v14  ;;  %v739_v25 = vld [vmem:[#allocation3 + $0x4b8] sm:$0xff]  ;;  %v537_v26 = vld [vmem:[%s9143_s1] sm:$0xff]  ;;  %v538_v27 = vld [vmem:[%s9143_s1 + $0x8] sm:$0xff]  ;;  %v6861_v28 = vpack.c.bf16 %v726_v23, %v720_v22 }
  0xea   : > { %6856 = vmatprep.subr.bf16.mxu0 %v6855_v15  ;;  %550 = vst.msk [vmem:[#allocation2 + $0x1] sm:$0xff] %vm549_vm0, %v537_v26  ;;  %551 = vst.msk [vmem:[#allocation2 + $0x9] sm:$0xff] %vm549_vm0, %v538_v27  ;;  %v539_v29 = vld [vmem:[%s9143_s1 + $0x10] sm:$0xff]  ;;  %v6863_v30 = vpack.c.bf16 %v739_v25, %v733_v24  ;;  %v732_v31 = vld [vmem:[#allocation3 + $0x480] sm:$0xff]  ;;  %s524_s27 = scalar_lea.vmem %s10355_s11, %s8446_s19 }
  0xeb   : > { %v738_v32 = vld [vmem:[#allocation3 + $0x4b0] sm:$0xff]  ;;  %v745_v33 = vld [vmem:[#allocation3 + $0x4e8] sm:$0xff]  ;;  %552 = vst.msk [vmem:[#allocation2 + $0x11] sm:$0xff] %vm549_vm0, %v539_v29  ;;  %v751_v34 = vld [vmem:[#allocation3 + $0x518] sm:$0xff] }
  0xec   : > { %v540_v35 = vld [vmem:[%s9143_s1 + $0x18] sm:$0xff]  ;;  %v541_v36 = vld [vmem:[%s9143_s1 + $0x20] sm:$0xff]  ;;  %v6865_v37 = vpack.c.bf16 %v738_v32, %v732_v31  ;;  %v542_v38 = vld [vmem:[%s9143_s1 + $0x28] sm:$0xff]  ;;  %v6867_v39 = vpack.c.bf16 %v751_v34, %v745_v33 }
  0xed   : > { %6858 = vmatpush1.bf16.msra.mxu0 %v6857_v20  ;;  %553 = vst.msk [vmem:[#allocation2 + $0x19] sm:$0xff] %vm549_vm0, %v540_v35  ;;  %554 = vst.msk [vmem:[#allocation2 + $0x21] sm:$0xff] %vm549_vm0, %v541_v36  ;;  %v744_v40 = vld [vmem:[#allocation3 + $0x4e0] sm:$0xff]  ;;  %v750_v41 = vld [vmem:[#allocation3 + $0x510] sm:$0xff] }
  0xee   : > { %6860 = vmatprep.subr.bf16.mxu0 %v6859_v21  ;;  %v757_v42 = vld [vmem:[#allocation3 + $0x548] sm:$0xff]  ;;  %555 = vst.msk [vmem:[#allocation2 + $0x29] sm:$0xff] %vm549_vm0, %v542_v38  ;;  %v763_v43 = vld [vmem:[#allocation3 + $0x578] sm:$0xff]  ;;  %v543_v44 = vld [vmem:[%s9143_s1 + $0x30] sm:$0xff]  ;;  %v6869_v46 = vpack.c.bf16 %v750_v41, %v744_v40 }
  0xef   : > { %v544_v45 = vld [vmem:[%s9143_s1 + $0x38] sm:$0xff]  ;;  %556 = vst.msk [vmem:[#allocation2 + $0x31] sm:$0xff] %vm549_vm0, %v543_v44  ;;  %v756_v47 = vld [vmem:[#allocation3 + $0x540] sm:$0xff]  ;;  %v762_v48 = vld [vmem:[#allocation3 + $0x570] sm:$0xff]  ;;  %v6871_v49 = vpack.c.bf16 %v763_v43, %v757_v42 }
  0xf0   : > { %557 = vst.msk [vmem:[#allocation2 + $0x39] sm:$0xff] %vm549_vm0, %v544_v45  ;;  %v687_v50 = vld [vmem:[#allocation3 + $0x318] sm:$0xff]  ;;  %v693_v51 = vld [vmem:[#allocation3 + $0x348] sm:$0xff]  ;;  %v545_v52 = vld [vmem:[%s9143_s1 + $0x40] sm:$0xff]  ;;  %v6873_v58 = vpack.c.bf16 %v762_v48, %v756_v47 }
  0xf1   : > { %6862 = vmatpush1.bf16.msra.mxu0 %v6861_v28  ;;  %v769_v53 = vld [vmem:[#allocation3 + $0x5a8] sm:$0xff]  ;;  %v775_v54 = vld [vmem:[#allocation3 + $0x5d8] sm:$0xff]  ;;  %v6879_v55 = vpack.c.bf16 %v693_v51, %v687_v50  ;;  %558 = vst.msk [vmem:[#allocation2 + $0x41] sm:$0xff] %vm549_vm0, %v545_v52  ;;  %v686_v56 = vld [vmem:[#allocation3 + $0x310] sm:$0xff] }
  0xf2   : > { %6864 = vmatprep.subr.bf16.mxu0 %v6863_v30  ;;  %v692_v57 = vld [vmem:[#allocation3 + $0x340] sm:$0xff]  ;;  %v699_v60 = vld [vmem:[#allocation3 + $0x378] sm:$0xff]  ;;  %v705_v61 = vld [vmem:[#allocation3 + $0x3a8] sm:$0xff]  ;;  %v6875_v62 = vpack.c.bf16 %v775_v54, %v769_v53 }
  0xf3   : > { %6880 = vmatprep.subr.bf16.mxu1 %v6879_v55  ;;  %v6881_v59 = vpack.c.bf16 %v692_v57, %v686_v56  ;;  %v768_v63 = vld [vmem:[#allocation3 + $0x5a0] sm:$0xff]  ;;  %v774_v1 = vld [vmem:[#allocation3 + $0x5d0] sm:$0xff]  ;;  %v6883_v2 = vpack.c.bf16 %v705_v61, %v699_v60  ;;  %v546_v3 = vld [vmem:[%s9143_s1 + $0x48] sm:$0xff] }
  0xf4   : > { %v689_v4 = vld [vmem:[#allocation3 + $0x328] sm:$0xff]  ;;  %v695_v5 = vld [vmem:[#allocation3 + $0x358] sm:$0xff]  ;;  %559 = vst.msk [vmem:[#allocation2 + $0x49] sm:$0xff] %vm549_vm0, %v546_v3  ;;  %v698_v6 = vld [vmem:[#allocation3 + $0x370] sm:$0xff]  ;;  %v6877_v10 = vpack.c.bf16 %v774_v1, %v768_v63 }
  0xf5   : > { %6866 = vmatpush1.bf16.msra.mxu0 %v6865_v37  ;;  %6882 = vmatpush1.bf16.msra.mxu1 %v6881_v59  ;;  %v704_v7 = vld [vmem:[#allocation3 + $0x3a0] sm:$0xff]  ;;  %v711_v8 = vld [vmem:[#allocation3 + $0x3d8] sm:$0xff]  ;;  %v717_v9 = vld [vmem:[#allocation3 + $0x408] sm:$0xff]  ;;  %v6911_v16 = vpack.c.bf16 %v695_v5, %v689_v4 }
  0xf6   : > { %6868 = vmatprep.subr.bf16.mxu0 %v6867_v39  ;;  %6884 = vmatprep.subr.bf16.mxu1 %v6883_v2  ;;  %v6885_v11 = vpack.c.bf16 %v704_v7, %v698_v6  ;;  %v6887_v12 = vpack.c.bf16 %v717_v9, %v711_v8  ;;  %v547_v13 = vld [vmem:[%s9143_s1 + $0x50] sm:$0xff]  ;;  %v716_v15 = vld [vmem:[#allocation3 + $0x400] sm:$0xff]  ;;  %v701_v19 = vld [vmem:[#allocation3 + $0x388] sm:$0xff] }
  0xf7   : > { %v710_v14 = vld [vmem:[#allocation3 + $0x3d0] sm:$0xff]  ;;  %v688_v17 = vld [vmem:[#allocation3 + $0x320] sm:$0xff]  ;;  %560 = vst.msk [vmem:[#allocation2 + $0x51] sm:$0xff] %vm549_vm0, %v547_v13  ;;  %v707_v20 = vld [vmem:[#allocation3 + $0x3b8] sm:$0xff] }
  0xf8   : > { %v694_v18 = vld [vmem:[#allocation3 + $0x350] sm:$0xff]  ;;  %v6889_v21 = vpack.c.bf16 %v716_v15, %v710_v14  ;;  %v723_v22 = vld [vmem:[#allocation3 + $0x438] sm:$0xff]  ;;  %v729_v23 = vld [vmem:[#allocation3 + $0x468] sm:$0xff]  ;;  %v6915_v30 = vpack.c.bf16 %v707_v20, %v701_v19 }
  0xf9   : > { %6870 = vmatpush1.bf16.msra.mxu0 %v6869_v46  ;;  %6886 = vmatpush1.bf16.msra.mxu1 %v6885_v11  ;;  %v548_v24 = vld [vmem:[%s9143_s1 + $0x58] sm:$0x7]  ;;  %v722_v25 = vld [vmem:[#allocation3 + $0x430] sm:$0xff]  ;;  %v9168_v26 = vld [vmem:[#allocation2 + $0x1] sm:$0xff]  ;;  %v6913_v27 = vpack.c.bf16 %v694_v18, %v688_v17  ;;  %v6891_v28 = vpack.c.bf16 %v729_v23, %v723_v22 }
  0xfa   : > { %6872 = vmatprep.subr.bf16.mxu0 %v6871_v49  ;;  %6888 = vmatprep.subr.bf16.mxu1 %v6887_v12  ;;  %562 = vst.msk [vmem:[#allocation2 + $0x59] sm:$0x7] %vm561_vm1, %v548_v24  ;;  %v728_v29 = vld [vmem:[#allocation3 + $0x460] sm:$0xff]  ;;  %v706_v32 = vld [vmem:[#allocation3 + $0x3b0] sm:$0xff]  ;;  %v713_v33 = vld [vmem:[#allocation3 + $0x3e8] sm:$0xff] }
  0xfb   : > { %v700_v31 = vld [vmem:[#allocation3 + $0x380] sm:$0xff]  ;;  %v719_v34 = vld [vmem:[#allocation3 + $0x418] sm:$0xff]  ;;  %v6893_v35 = vpack.c.bf16 %v728_v29, %v722_v25  ;;  %v741_v37 = vld [vmem:[#allocation3 + $0x4c8] sm:$0xff] }
  0xfc   : > { %v735_v36 = vld [vmem:[#allocation3 + $0x498] sm:$0xff]  ;;  %v734_v39 = vld [vmem:[#allocation3 + $0x490] sm:$0xff]  ;;  %v740_v40 = vld [vmem:[#allocation3 + $0x4c0] sm:$0xff]  ;;  %v6917_v42 = vpack.c.bf16 %v706_v32, %v700_v31  ;;  %v6919_v45 = vpack.c.bf16 %v719_v34, %v713_v33 }
  0xfd   : > { %6874 = vmatpush1.bf16.msra.mxu0 %v6873_v58  ;;  %6890 = vmatpush1.bf16.msra.mxu1 %v6889_v21  ;;  %v6895_v38 = vpack.c.bf16 %v741_v37, %v735_v36  ;;  %v9172_v41 = vld [vmem:[#allocation2 + $0x9] sm:$0xff]  ;;  %v747_v43 = vld [vmem:[#allocation3 + $0x4f8] sm:$0xff]  ;;  %v712_v46 = vld [vmem:[#allocation3 + $0x3e0] sm:$0xff]  ;;  %v6897_v50 = vpack.c.bf16 %v740_v40, %v734_v39 }
  0xfe   : > { %6876 = vmatprep.subr.bf16.mxu0 %v6875_v62  ;;  %6892 = vmatprep.subr.bf16.mxu1 %v6891_v28  ;;  %v753_v44 = vld [vmem:[#allocation3 + $0x528] sm:$0xff]  ;;  %v718_v47 = vld [vmem:[#allocation3 + $0x410] sm:$0xff]  ;;  %v731_v49 = vld [vmem:[#allocation3 + $0x478] sm:$0xff] }
  0xff   : > { %v725_v48 = vld [vmem:[#allocation3 + $0x448] sm:$0xff]  ;;  %v6899_v51 = vpack.c.bf16 %v753_v44, %v747_v43  ;;  %v746_v52 = vld [vmem:[#allocation3 + $0x4f0] sm:$0xff]  ;;  %v752_v53 = vld [vmem:[#allocation3 + $0x520] sm:$0xff]  ;;  %v6921_v55 = vpack.c.bf16 %v718_v47, %v712_v46 }
 0x100   : > { %v9176_v54 = vld [vmem:[#allocation2 + $0x11] sm:$0xff]  ;;  %v765_v57 = vld [vmem:[#allocation3 + $0x588] sm:$0xff]  ;;  %v6923_v58 = vpack.c.bf16 %v731_v49, %v725_v48  ;;  %v724_v59 = vld [vmem:[#allocation3 + $0x440] sm:$0xff]  ;;  %v6901_v63 = vpack.c.bf16 %v752_v53, %v746_v52 }
 0x101   : > { %6878 = vmatpush1.bf16.msra.mxu0 %v6877_v10  ;;  %6894 = vmatpush1.bf16.msra.mxu1 %v6893_v35  ;;  %v759_v56 = vld [vmem:[#allocation3 + $0x558] sm:$0xff]  ;;  %v730_v60 = vld [vmem:[#allocation3 + $0x470] sm:$0xff]  ;;  %v737_v61 = vld [vmem:[#allocation3 + $0x4a8] sm:$0xff] }
 0x102   : > { %6912 = vmatprep.subr.bf16.mxu0 %v6911_v16  ;;  %6896 = vmatprep.subr.bf16.mxu1 %v6895_v38  ;;  %v743_v62 = vld [vmem:[#allocation3 + $0x4d8] sm:$0xff]  ;;  %v6903_v1 = vpack.c.bf16 %v765_v57, %v759_v56  ;;  %v758_v2 = vld [vmem:[#allocation3 + $0x550] sm:$0xff]  ;;  %v764_v3 = vld [vmem:[#allocation3 + $0x580] sm:$0xff]  ;;  %v6925_v5 = vpack.c.bf16 %v730_v60, %v724_v59 }
 0x103   : > { %v9180_v4 = vld [vmem:[#allocation2 + $0x19] sm:$0xff]  ;;  %v777_v7 = vld [vmem:[#allocation3 + $0x5e8] sm:$0xff]  ;;  %v6927_v8 = vpack.c.bf16 %v743_v62, %v737_v61  ;;  %v742_v10 = vld [vmem:[#allocation3 + $0x4d0] sm:$0xff]  ;;  %v6905_v13 = vpack.c.bf16 %v764_v3, %v758_v2 }
 0x104   : > { %845 = vmatmul.mubr.f32.vlgmr.msra.gmra.mrb[0].mxu0 %v9168_v26  ;;  %v771_v6 = vld [vmem:[#allocation3 + $0x5b8] sm:$0xff]  ;;  %v736_v9 = vld [vmem:[#allocation3 + $0x4a0] sm:$0xff]  ;;  %v749_v11 = vld [vmem:[#allocation3 + $0x508] sm:$0xff] }
 0x105   : > { %850 = vmatprep.mubr.f32.mxu0 %v10366_v0  ;;  %6914 = vmatpush1.bf16.msra.mxu0 %v6913_v27  ;;  %v755_v12 = vld [vmem:[#allocation3 + $0x538] sm:$0xff]  ;;  %v6907_v14 = vpack.c.bf16 %v777_v7, %v771_v6  ;;  %v770_v15 = vld [vmem:[#allocation3 + $0x5b0] sm:$0xff]  ;;  %v776_v16 = vld [vmem:[#allocation3 + $0x5e0] sm:$0xff]  ;;  %v6929_v18 = vpack.c.bf16 %v742_v10, %v736_v9 }
 0x106   : > { %6916 = vmatprep.subr.bf16.mxu0 %v6915_v30  ;;  %6898 = vmatpush1.bf16.msra.mxu1 %v6897_v50  ;;  %v9184_v17 = vld [vmem:[#allocation2 + $0x21] sm:$0xff]  ;;  %v578_v19 = vld [vmem:[#allocation3 + $0x18] sm:$0xff]  ;;  %v6931_v21 = vpack.c.bf16 %v755_v12, %v749_v11  ;;  %v754_v23 = vld [vmem:[#allocation3 + $0x530] sm:$0xff]  ;;  %v6909_v27 = vpack.c.bf16 %v776_v16, %v770_v15 }
 0x107   : > { %6900 = vmatprep.subr.bf16.mxu1 %v6899_v51  ;;  %v584_v20 = vld [vmem:[#allocation3 + $0x48] sm:$0xff]  ;;  %v748_v22 = vld [vmem:[#allocation3 + $0x500] sm:$0xff]  ;;  %v767_v25 = vld [vmem:[#allocation3 + $0x598] sm:$0xff] }
 0x108   : > { %851 = vmatmul.mubr.f32.gmra.mrb[2].mxu0 %v9172_v41  ;;  %v761_v24 = vld [vmem:[#allocation3 + $0x568] sm:$0xff]  ;;  %v6975_v28 = vpack.c.bf16 %v584_v20, %v578_v19  ;;  %v577_v29 = vld [vmem:[#allocation3 + $0x10] sm:$0xff]  ;;  %v583_v30 = vld [vmem:[#allocation3 + $0x40] sm:$0xff]  ;;  %v6933_v32 = vpack.c.bf16 %v754_v23, %v748_v22 }
 0x109   : > { %856 = vmatprep.mubr.f32.mxu0 %v10366_v0  ;;  %6918 = vmatpush1.bf16.msra.mxu0 %v6917_v42  ;;  %v9188_v31 = vld [vmem:[#allocation2 + $0x29] sm:$0xff]  ;;  %v590_v33 = vld [vmem:[#allocation3 + $0x78] sm:$0xff]  ;;  %v6935_v35 = vpack.c.bf16 %v767_v25, %v761_v24  ;;  %v760_v36 = vld [vmem:[#allocation3 + $0x560] sm:$0xff]  ;;  %v6977_v40 = vpack.c.bf16 %v583_v30, %v577_v29 }
 0x10a   : > { %6920 = vmatprep.subr.bf16.mxu0 %v6919_v45  ;;  %6902 = vmatpush1.bf16.msra.mxu1 %v6901_v63  ;;  %v596_v34 = vld [vmem:[#allocation3 + $0xa8] sm:$0xff]  ;;  %v766_v37 = vld [vmem:[#allocation3 + $0x590] sm:$0xff]  ;;  %v779_v39 = vld [vmem:[#allocation3 + $0x5f8] sm:$0xff] }
 0x10b   : > { %6904 = vmatprep.subr.bf16.mxu1 %v6903_v1  ;;  %v773_v38 = vld [vmem:[#allocation3 + $0x5c8] sm:$0xff]  ;;  %v6979_v42 = vpack.c.bf16 %v596_v34, %v590_v33  ;;  %v589_v43 = vld [vmem:[#allocation3 + $0x70] sm:$0xff]  ;;  %v595_v44 = vld [vmem:[#allocation3 + $0xa0] sm:$0xff]  ;;  %v6937_v46 = vpack.c.bf16 %v766_v37, %v760_v36 }
 0x10c   : > { %857 = vmatmul.mubr.f32.gmra.mrb[4].mxu0 %v9176_v54  ;;  %v9192_v45 = vld [vmem:[#allocation2 + $0x31] sm:$0xff]  ;;  %v608_v48 = vld [vmem:[#allocation3 + $0x108] sm:$0xff]  ;;  %v6939_v49 = vpack.c.bf16 %v779_v39, %v773_v38  ;;  %v772_v50 = vld [vmem:[#allocation3 + $0x5c0] sm:$0xff] }
 0x10d   : > { %862 = vmatprep.mubr.f32.mxu0 %v10366_v0  ;;  %6922 = vmatpush1.bf16.msra.mxu0 %v6921_v55  ;;  %v602_v47 = vld [vmem:[#allocation3 + $0xd8] sm:$0xff]  ;;  %v778_v51 = vld [vmem:[#allocation3 + $0x5f0] sm:$0xff]  ;;  %v576_v52 = vld [vmem:[#allocation3 + $0x8] sm:$0xff]  ;;  %v6981_v55 = vpack.c.bf16 %v595_v44, %v589_v43 }
 0x10e   : > { %6924 = vmatprep.subr.bf16.mxu0 %v6923_v58  ;;  %6906 = vmatpush1.bf16.msra.mxu1 %v6905_v13  ;;  %v582_v53 = vld [vmem:[#allocation3 + $0x38] sm:$0xff]  ;;  %v6983_v56 = vpack.c.bf16 %v608_v48, %v602_v47  ;;  %v601_v57 = vld [vmem:[#allocation3 + $0xd0] sm:$0xff]  ;;  %v607_v58 = vld [vmem:[#allocation3 + $0x100] sm:$0xff]  ;;  %v6941_v60 = vpack.c.bf16 %v778_v51, %v772_v50 }
 0x10f   : > { %6908 = vmatprep.subr.bf16.mxu1 %v6907_v14  ;;  %v9198_v59 = vld [vmem:[#allocation2 + $0x39] sm:$0xff]  ;;  %v620_v62 = vld [vmem:[#allocation3 + $0x168] sm:$0xff]  ;;  %v6943_v63 = vpack.c.bf16 %v582_v53, %v576_v52  ;;  %v6985_v1 = vpack.c.bf16 %v607_v58, %v601_v57  ;;  %v613_v3 = vld [vmem:[#allocation3 + $0x130] sm:$0xff] }
 0x110   : > { %863 = vmatmul.mubr.f32.gmra.mrb[6].mxu0 %v9180_v4  ;;  %v614_v61 = vld [vmem:[#allocation3 + $0x138] sm:$0xff]  ;;  %v9204_v6 = vld [vmem:[#allocation2 + $0x41] sm:$0xff]  ;;  %v625_v11 = vld [vmem:[#allocation3 + $0x190] sm:$0xff] }
 0x111   : > { %868 = vmatprep.mubr.f32.mxu0 %v10366_v0  ;;  %6926 = vmatpush1.bf16.msra.mxu0 %v6925_v5  ;;  %v6987_v2 = vpack.c.bf16 %v620_v62, %v614_v61  ;;  %v619_v5 = vld [vmem:[#allocation3 + $0x160] sm:$0xff]  ;;  %v626_v7 = vld [vmem:[#allocation3 + $0x198] sm:$0xff]  ;;  %v9210_v13 = vld [vmem:[#allocation2 + $0x49] sm:$0xff] }
 0x112   : > { %6928 = vmatprep.subr.bf16.mxu0 %v6927_v8  ;;  %6910 = vmatpush1.bf16.msra.mxu1 %v6909_v27  ;;  %v632_v8 = vld [vmem:[#allocation3 + $0x1c8] sm:$0xff]  ;;  %v6989_v9 = vpack.c.bf16 %v619_v5, %v613_v3  ;;  %v631_v12 = vld [vmem:[#allocation3 + $0x1c0] sm:$0xff]  ;;  %v638_v14 = vld [vmem:[#allocation3 + $0x1f8] sm:$0xff] }
 0x113   : > { %6976 = vmatprep.subr.bf16.mxu1 %v6975_v28  ;;  %v6991_v10 = vpack.c.bf16 %v632_v8, %v626_v7  ;;  %v644_v15 = vld [vmem:[#allocation3 + $0x228] sm:$0xff]  ;;  %v6993_v16 = vpack.c.bf16 %v631_v12, %v625_v11  ;;  %v637_v19 = vld [vmem:[#allocation3 + $0x1f0] sm:$0xff]  ;;  %v643_v20 = vld [vmem:[#allocation3 + $0x220] sm:$0xff] }
 0x114   : > { %869 = vmatmul.mubr.f32.gmra.mrb[8].mxu0 %v9184_v17  ;;  %v650_v22 = vld [vmem:[#allocation3 + $0x258] sm:$0xff]  ;;  %v656_v23 = vld [vmem:[#allocation3 + $0x288] sm:$0xff]  ;;  %v6997_v24 = vpack.c.bf16 %v643_v20, %v637_v19  ;;  %v649_v27 = vld [vmem:[#allocation3 + $0x250] sm:$0xff] }
 0x115   : > { %874 = vmatprep.mubr.f32.mxu0 %v10366_v0  ;;  %6930 = vmatpush1.bf16.msra.mxu0 %v6929_v18  ;;  %v6995_v18 = vpack.c.bf16 %v644_v15, %v638_v14  ;;  %v6999_v25 = vpack.c.bf16 %v656_v23, %v650_v22  ;;  %v655_v28 = vld [vmem:[#allocation3 + $0x280] sm:$0xff]  ;;  %v9222_v29 = vld [vmem:[#allocation2 + $0x59] sm:$0x7]  ;;  %v581_v34 = vld [vmem:[#allocation3 + $0x30] sm:$0xff] }
 0x116   : > { %6932 = vmatprep.subr.bf16.mxu0 %v6931_v21  ;;  %982 = vmatmul.mubr.f32.vlgmr.msra.gmra.mrb[0].mxu1 %v9168_v26  ;;  %v9216_v21 = vld [vmem:[#allocation2 + $0x51] sm:$0xff]  ;;  %v575_v33 = vld [vmem:[#allocation3] sm:$0xff]  ;;  %v7001_v37 = vpack.c.bf16 %v655_v28, %v649_v27  ;;  %v1624_v44 = vld [vmem:[#allocation3 + $0x648] sm:$0xff] }
 0x117   : > { %987 = vmatprep.mubr.f32.mxu1 %v10366_v0  ;;  %6978 = vmatpush1.bf16.msra.mxu1 %v6977_v40  ;;  %v662_v30 = vld [vmem:[#allocation3 + $0x2b8] sm:$0xff]  ;;  %v661_v39 = vld [vmem:[#allocation3 + $0x2b0] sm:$0xff]  ;;  %v667_v40 = vld [vmem:[#allocation3 + $0x2e0] sm:$0xff] }
 0x118   : > { %875 = vmatmul.mubr.f32.gmra.mrb[10].mxu0 %v9188_v31  ;;  %6980 = vmatprep.subr.bf16.mxu1 %v6979_v42  ;;  %v594_v36 = vld [vmem:[#allocation3 + $0x98] sm:$0xff]  ;;  %v6945_v42 = vpack.c.bf16 %v581_v34, %v575_v33  ;;  %v587_v47 = vld [vmem:[#allocation3 + $0x60] sm:$0xff]  ;;  %v593_v48 = vld [vmem:[#allocation3 + $0x90] sm:$0xff]  ;;  %v7005_v51 = vpack.c.bf16 %v667_v40, %v661_v39 }
 0x119   : > { %880 = vmatprep.mubr.f32.mxu0 %v10366_v0  ;;  %6934 = vmatpush1.bf16.msra.mxu0 %v6933_v32  ;;  %v668_v32 = vld [vmem:[#allocation3 + $0x2e8] sm:$0xff]  ;;  %v1618_v43 = vld [vmem:[#allocation3 + $0x618] sm:$0xff]  ;;  %v6949_v53 = vpack.c.bf16 %v593_v48, %v587_v47  ;;  %v605_v57 = vld [vmem:[#allocation3 + $0xf0] sm:$0xff] }
 0x11a   : > { %6936 = vmatprep.subr.bf16.mxu0 %v6935_v35  ;;  %988 = vmatmul.mubr.f32.gmra.mrb[2].mxu1 %v9172_v41  ;;  %v588_v35 = vld [vmem:[#allocation3 + $0x68] sm:$0xff]  ;;  %v7003_v38 = vpack.c.bf16 %v668_v32, %v662_v30  ;;  %v606_v50 = vld [vmem:[#allocation3 + $0xf8] sm:$0xff]  ;;  %v7071_v52 = vpack.c.bf16 %v1624_v44, %v1618_v43  ;;  %v611_v62 = vld [vmem:[#allocation3 + $0x120] sm:$0xff] }
 0x11b   : > { %993 = vmatprep.mubr.f32.mxu1 %v10366_v0  ;;  %6982 = vmatpush1.bf16.msra.mxu1 %v6981_v55  ;;  %v612_v58 = vld [vmem:[#allocation3 + $0x128] sm:$0xff]  ;;  %v623_v5 = vld [vmem:[#allocation3 + $0x180] sm:$0xff]  ;;  %v629_v7 = vld [vmem:[#allocation3 + $0x1b0] sm:$0xff] }
 0x11c   : > { %881 = vmatmul.mubr.f32.gmra.mrb[12].mxu0 %v9192_v45  ;;  %6984 = vmatprep.subr.bf16.mxu1 %v6983_v56  ;;  %v599_v56 = vld [vmem:[#allocation3 + $0xc0] sm:$0xff]  ;;  %v636_v8 = vld [vmem:[#allocation3 + $0x1e8] sm:$0xff]  ;;  %v641_v12 = vld [vmem:[#allocation3 + $0x210] sm:$0xff] }
 0x11d   : > { %886 = vmatprep.mubr.f32.mxu0 %v10366_v0  ;;  %6938 = vmatpush1.bf16.msra.mxu0 %v6937_v46  ;;  %v6947_v46 = vpack.c.bf16 %v594_v36, %v588_v35  ;;  %v635_v11 = vld [vmem:[#allocation3 + $0x1e0] sm:$0xff]  ;;  %v648_v14 = vld [vmem:[#allocation3 + $0x248] sm:$0xff]  ;;  %v654_v15 = vld [vmem:[#allocation3 + $0x278] sm:$0xff] }
 0x11e   : > { %6940 = vmatprep.subr.bf16.mxu0 %v6939_v49  ;;  %994 = vmatmul.mubr.f32.gmra.mrb[4].mxu1 %v9176_v54  ;;  %v600_v49 = vld [vmem:[#allocation3 + $0xc8] sm:$0xff]  ;;  %v1630_v19 = vld [vmem:[#allocation3 + $0x678] sm:$0xff]  ;;  %v6967_v22 = vpack.c.bf16 %v654_v15, %v648_v14  ;;  %v647_v23 = vld [vmem:[#allocation3 + $0x240] sm:$0xff] }
 0x11f   : > { %999 = vmatprep.mubr.f32.mxu1 %v10366_v0  ;;  %6986 = vmatpush1.bf16.msra.mxu1 %v6985_v1  ;;  %v6951_v55 = vpack.c.bf16 %v606_v50, %v600_v49  ;;  %v624_v1 = vld [vmem:[#allocation3 + $0x188] sm:$0xff]  ;;  %v666_v27 = vld [vmem:[#allocation3 + $0x2d8] sm:$0xff]  ;;  %v1629_v30 = vld [vmem:[#allocation3 + $0x670] sm:$0xff] }
 0x120   : > { %887 = vmatmul.mubr.f32.gmra.mrb[14].mxu0 %v9198_v59  ;;  %6988 = vmatprep.subr.bf16.mxu1 %v6987_v2  ;;  %v630_v2 = vld [vmem:[#allocation3 + $0x1b8] sm:$0xff]  ;;  %v1636_v20 = vld [vmem:[#allocation3 + $0x6a8] sm:$0xff]  ;;  %v1635_v32 = vld [vmem:[#allocation3 + $0x6a0] sm:$0xff] }
 0x121   : > { %892 = vmatprep.mubr.f32.mxu0 %v10366_v0  ;;  %6942 = vmatpush1.bf16.msra.mxu0 %v6941_v60  ;;  %v618_v60 = vld [vmem:[#allocation3 + $0x158] sm:$0xff]  ;;  %v6959_v3 = vpack.c.bf16 %v630_v2, %v624_v1  ;;  %v9252_v34 = vld [vmem:[#allocation2] sm:$0xff]  ;;  %v1648_v36 = vld [vmem:[#allocation3 + $0x708] sm:$0xff] }
 0x122   : > { %6944 = vmatprep.subr.bf16.mxu0 %v6943_v63  ;;  %1000 = vmatmul.mubr.f32.gmra.mrb[6].mxu1 %v9180_v4  ;;  %v6955_v61 = vpack.c.bf16 %v618_v60, %v612_v58  ;;  %v617_v63 = vld [vmem:[#allocation3 + $0x150] sm:$0xff]  ;;  %v1642_v35 = vld [vmem:[#allocation3 + $0x6d8] sm:$0xff]  ;;  %v580_v40 = vld [vmem:[#allocation3 + $0x28] sm:$0xff] }
 0x123   : > { %1005 = vmatprep.mubr.f32.mxu1 %v10366_v0  ;;  %6990 = vmatpush1.bf16.msra.mxu1 %v6989_v9  ;;  %v642_v9 = vld [vmem:[#allocation3 + $0x218] sm:$0xff]  ;;  %v665_v39 = vld [vmem:[#allocation3 + $0x2d0] sm:$0xff]  ;;  %v7079_v43 = vpack.c.bf16 %v1648_v36, %v1642_v35  ;;  %v9258_v48 = vld [vmem:[#allocation2 + $0x8] sm:$0xff] }
 0x124   : > { %893 = vmatmul.mubr.f32.gmra.mrb[16].mxu0 %v9204_v6  ;;  %6992 = vmatprep.subr.bf16.mxu1 %v6991_v10  ;;  %v6963_v10 = vpack.c.bf16 %v642_v9, %v636_v8  ;;  %v1641_v44 = vld [vmem:[#allocation3 + $0x6d0] sm:$0xff]  ;;  %v1654_v49 = vld [vmem:[#allocation3 + $0x738] sm:$0xff]  ;;  %v1660_v50 = vld [vmem:[#allocation3 + $0x768] sm:$0xff] }
 0x125   : > { %898 = vmatprep.mubr.f32.mxu0 %v10366_v0  ;;  %v1672_v58 = vld [vmem:[#allocation3 + $0x7c8] sm:$0xff]  ;;  %v579_v15 = vld [vmem:[#allocation3 + $0x20] sm:$0xff]  ;;  %vm9941_vm4 = vmpackc.low %vm3545_vm2, %vm8833_vm3 }
 0x126   : > { %1006 = vmatmul.mubr.f32.gmra.mrb[8].mxu1 %v9184_v17  ;;  %v1684_v1 = vld [vmem:[#allocation3 + $0x828] sm:$0xff]  ;;  %v603_v36 = vld [vmem:[#allocation3 + $0xe0] sm:$0xff]  ;;  %vm8123_vm9 = vmpackc.low %vm6051_vm8, %vm8833_vm3 }
 0x127   : > { %1011 = vmatprep.mubr.f32.mxu1 %v10366_v0  ;;  %6994 = vmatpush1.bf16.msra.mxu1 %v6993_v16  ;;  %v1617_v16 = vld [vmem:[#allocation3 + $0x610] sm:$0xff]  ;;  %v1696_v8 = vld [vmem:[#allocation3 + $0x888] sm:$0xff] }
 0x128   : > { %899 = vmatmul.mubr.f32.gmra.mrb[18].mxu0 %v9210_v13  ;;  %6996 = vmatprep.subr.bf16.mxu1 %v6995_v18  ;;  %v1623_v18 = vld [vmem:[#allocation3 + $0x640] sm:$0xff]  ;;  %v1708_v14 = vld [vmem:[#allocation3 + $0x8e8] sm:$0xff] }
 0x129   : > { %904 = vmatprep.mubr.f32.mxu0 %v10366_v0  ;;  %v7073_v28 = vpack.c.bf16 %v1623_v18, %v1617_v16  ;;  %v585_v16 = vld [vmem:[#allocation3 + $0x50] sm:$0xff]  ;;  %v592_v18 = vld [vmem:[#allocation3 + $0x88] sm:$0xff] }
 0x12a   : > { %1012 = vmatmul.mubr.f32.gmra.mrb[10].mxu1 %v9188_v31 }
 0x12b   : > { %1017 = vmatprep.mubr.f32.mxu1 %v10366_v0  ;;  %6998 = vmatpush1.bf16.msra.mxu1 %v6997_v24  ;;  %v653_v24 = vld [vmem:[#allocation3 + $0x270] sm:$0xff] }
 0x12c   : > { %905 = vmatmul.mubr.f32.gmra.mrb[20].mxu0 %v9216_v21  ;;  %7000 = vmatprep.subr.bf16.mxu1 %v6999_v25  ;;  %v660_v25 = vld [vmem:[#allocation3 + $0x2a8] sm:$0xff]  ;;  %v6969_v33 = vpack.c.bf16 %v653_v24, %v647_v23  ;;  %v7009_v23 = vpack.c.bf16 %v585_v16, %v579_v15  ;;  %v9288_v24 = vld [vmem:[#allocation2 + $0x30] sm:$0xff]  ;;  %v1622_v15 = vld [vmem:[#allocation3 + $0x638] sm:$0xff] }
 0x12d   : > { %910 = vmatprep.mubr.f32.mxu0 %v10366_v0  ;;  %v9328_v16 = vld [vmem:[#allocation2 + $0xa] sm:$0xff] }
 0x12e   : > { %1018 = vmatmul.mubr.f32.gmra.mrb[12].mxu1 %v9192_v45 }
 0x12f   : > { %1023 = vmatprep.mubr.f32.mxu1 %v10366_v0  ;;  %7002 = vmatpush1.bf16.msra.mxu1 %v7001_v37  ;;  %v6971_v37 = vpack.c.bf16 %v666_v27, %v660_v25  ;;  %v591_v27 = vld [vmem:[#allocation3 + $0x80] sm:$0xff] }
 0x130   : > { %911 = vmatmul.mubr.f32.gmra.mrb[22].mxu0 %v9222_v29  ;;  %7004 = vmatprep.subr.bf16.mxu1 %v7003_v38  ;;  %v659_v38 = vld [vmem:[#allocation3 + $0x2a0] sm:$0xff] }
 0x131   : > { %1118 = vmatprep.mubr.f32.mxu0 %v10366_v0  ;;  %v6973_v47 = vpack.c.bf16 %v665_v39, %v659_v38  ;;  %v616_v38 = vld [vmem:[#allocation3 + $0x148] sm:$0xff]  ;;  %v622_v39 = vld [vmem:[#allocation3 + $0x178] sm:$0xff] }
 0x132   : > { %1024 = vmatmul.mubr.f32.gmra.mrb[14].mxu1 %v9198_v59 }
 0x133   : > { %1029 = vmatprep.mubr.f32.mxu1 %v10366_v0  ;;  %7006 = vmatpush1.bf16.msra.mxu1 %v7005_v51 }
 0x134   : > { %1119 = vmatmul.mubr.f32.vlgmr.msra.gmra.mrb[24].mxu0 %v9168_v26  ;;  %7072 = vmatprep.subr.bf16.mxu1 %v7071_v52  ;;  %v6953_v26 = vpack.c.bf16 %v605_v57, %v599_v56  ;;  %v7083_v52 = vpack.c.bf16 %v1660_v50, %v1654_v49  ;;  %v9264_v56 = vld [vmem:[#allocation2 + $0x10] sm:$0xff]  ;;  %v1666_v57 = vld [vmem:[#allocation3 + $0x798] sm:$0xff]  ;;  %v9306_v50 = vld [vmem:[#allocation2 + $0x48] sm:$0xff] }
 0x135   : > { %1124 = vmatprep.mubr.f32.mxu0 %v10366_v0  ;;  %6946 = vmatpush1.bf16.msra.mxu0 %v6945_v42  ;;  %v586_v42 = vld [vmem:[#allocation3 + $0x58] sm:$0xff] }
 0x136   : > { %6948 = vmatprep.subr.bf16.mxu0 %v6947_v46  ;;  %1030 = vmatmul.mubr.f32.gmra.mrb[16].mxu1 %v9204_v6  ;;  %v1647_v46 = vld [vmem:[#allocation3 + $0x700] sm:$0xff]  ;;  %v7007_v51 = vpack.c.bf16 %v586_v42, %v580_v40 }
 0x137   : > { %1035 = vmatprep.mubr.f32.mxu1 %v10366_v0  ;;  %v9300_v42 = vld [vmem:[#allocation2 + $0x40] sm:$0xff] }
 0x138   : > { %1125 = vmatmul.mubr.f32.gmra.mrb[26].mxu0 %v9172_v41  ;;  %v6957_v41 = vpack.c.bf16 %v617_v63, %v611_v62  ;;  %v9270_v62 = vld [vmem:[#allocation2 + $0x18] sm:$0xff] }
 0x139   : > { %1130 = vmatprep.mubr.f32.mxu0 %v10366_v0  ;;  %6950 = vmatpush1.bf16.msra.mxu0 %v6949_v53  ;;  %v1653_v53 = vld [vmem:[#allocation3 + $0x730] sm:$0xff]  ;;  %v1678_v63 = vld [vmem:[#allocation3 + $0x7f8] sm:$0xff] }
 0x13a   : > { %6952 = vmatprep.subr.bf16.mxu0 %v6951_v55  ;;  %1036 = vmatmul.mubr.f32.gmra.mrb[18].mxu1 %v9210_v13  ;;  %v1659_v55 = vld [vmem:[#allocation3 + $0x760] sm:$0xff] }
 0x13b   : > { %1041 = vmatprep.mubr.f32.mxu1 %v10366_v0  ;;  %v7085_v60 = vpack.c.bf16 %v1659_v55, %v1653_v53  ;;  %v640_v53 = vld [vmem:[#allocation3 + $0x208] sm:$0xff]  ;;  %v646_v55 = vld [vmem:[#allocation3 + $0x238] sm:$0xff] }
 0x13c   : > { %1131 = vmatmul.mubr.f32.gmra.mrb[28].mxu0 %v9176_v54  ;;  %v6961_v54 = vpack.c.bf16 %v629_v7, %v623_v5  ;;  %v9276_v5 = vld [vmem:[#allocation2 + $0x20] sm:$0xff]  ;;  %v1690_v7 = vld [vmem:[#allocation3 + $0x858] sm:$0xff] }
 0x13d   : > { %1136 = vmatprep.mubr.f32.mxu0 %v10366_v0  ;;  %6954 = vmatpush1.bf16.msra.mxu0 %v6953_v26  ;;  %v1665_v26 = vld [vmem:[#allocation3 + $0x790] sm:$0xff] }
 0x13e   : > { %6956 = vmatprep.subr.bf16.mxu0 %v6955_v61  ;;  %1042 = vmatmul.mubr.f32.gmra.mrb[20].mxu1 %v9216_v21  ;;  %v1671_v61 = vld [vmem:[#allocation3 + $0x7c0] sm:$0xff] }
 0x13f   : > { %1047 = vmatprep.mubr.f32.mxu1 %v10366_v0  ;;  %v7089_v2 = vpack.c.bf16 %v1671_v61, %v1665_v26  ;;  %v645_v26 = vld [vmem:[#allocation3 + $0x230] sm:$0xff]  ;;  %v652_v61 = vld [vmem:[#allocation3 + $0x268] sm:$0xff] }
 0x140   : > { %1137 = vmatmul.mubr.f32.gmra.mrb[30].mxu0 %v9180_v4  ;;  %v6965_v4 = vpack.c.bf16 %v641_v12, %v635_v11  ;;  %v9282_v11 = vld [vmem:[#allocation2 + $0x28] sm:$0xff]  ;;  %v1702_v12 = vld [vmem:[#allocation3 + $0x8b8] sm:$0xff] }
 0x141   : > { %1142 = vmatprep.mubr.f32.mxu0 %v10366_v0  ;;  %6958 = vmatpush1.bf16.msra.mxu0 %v6957_v41  ;;  %v1677_v41 = vld [vmem:[#allocation3 + $0x7f0] sm:$0xff] }
 0x142   : > { %6960 = vmatprep.subr.bf16.mxu0 %v6959_v3  ;;  %1048 = vmatmul.mubr.f32.gmra.mrb[22].mxu1 %v9222_v29  ;;  %v1683_v3 = vld [vmem:[#allocation3 + $0x820] sm:$0xff] }
 0x143   : > { %1392 = vmatprep.mubr.f32.mxu1 %v10366_v0  ;;  %v7093_v9 = vpack.c.bf16 %v1683_v3, %v1677_v41  ;;  %v651_v41 = vld [vmem:[#allocation3 + $0x260] sm:$0xff]  ;;  %v657_v3 = vld [vmem:[#allocation3 + $0x290] sm:$0xff] }
 0x144   : > { %1143 = vmatmul.mubr.f32.gmra.mrb[32].mxu0 %v9184_v17  ;;  %v7075_v17 = vpack.c.bf16 %v1636_v20, %v1630_v19  ;;  %v7099_v19 = vpack.c.bf16 %v1708_v14, %v1702_v12  ;;  %v1701_v20 = vld [vmem:[#allocation3 + $0x8b0] sm:$0xff]  ;;  %v1616_v14 = vld [vmem:[#allocation3 + $0x608] sm:$0xff] }
 0x145   : > { %1148 = vmatprep.mubr.f32.mxu0 %v10366_v0  ;;  %6962 = vmatpush1.bf16.msra.mxu0 %v6961_v54  ;;  %v1689_v54 = vld [vmem:[#allocation3 + $0x850] sm:$0xff] }
 0x146   : > { %6964 = vmatprep.subr.bf16.mxu0 %v6963_v10  ;;  %1393 = vmatmul.mubr.f32.vlgmr.msra.gmra.mrb[0].mxu1 %v9252_v34  ;;  %v1695_v10 = vld [vmem:[#allocation3 + $0x880] sm:$0xff]  ;;  %v669_v12 = vld [vmem:[#allocation3 + $0x2f0] sm:$0xff] }
 0x147   : > { %1398 = vmatprep.mubr.f32.mxu1 %v10366_v0  ;;  %7074 = vmatpush1.bf16.msra.mxu1 %v7073_v28  ;;  %v597_v28 = vld [vmem:[#allocation3 + $0xb0] sm:$0xff] }
 0x148   : > { %1149 = vmatmul.mubr.f32.gmra.mrb[34].mxu0 %v9188_v31  ;;  %v7077_v31 = vpack.c.bf16 %v1635_v32, %v1629_v30  ;;  %7076 = vmatprep.subr.bf16.mxu1 %v7075_v17  ;;  %v604_v17 = vld [vmem:[#allocation3 + $0xe8] sm:$0xff]  ;;  %v610_v30 = vld [vmem:[#allocation3 + $0x118] sm:$0xff]  ;;  %v7013_v32 = vpack.c.bf16 %v597_v28, %v591_v27 }
 0x149   : > { %1154 = vmatprep.mubr.f32.mxu0 %v10366_v0  ;;  %6966 = vmatpush1.bf16.msra.mxu0 %v6965_v4  ;;  %v598_v4 = vld [vmem:[#allocation3 + $0xb8] sm:$0xff]  ;;  %v7015_v35 = vpack.c.bf16 %v610_v30, %v604_v17  ;;  %v1628_v27 = vld [vmem:[#allocation3 + $0x668] sm:$0xff] }
 0x14a   : > { %6968 = vmatprep.subr.bf16.mxu0 %v6967_v22  ;;  %1399 = vmatmul.mubr.f32.gmra.mrb[2].mxu1 %v9258_v48  ;;  %v1707_v22 = vld [vmem:[#allocation3 + $0x8e0] sm:$0xff]  ;;  %v7011_v25 = vpack.c.bf16 %v598_v4, %v592_v18  ;;  %v7039_v4 = vpack.c.bf16 %v1622_v15, %v1616_v14  ;;  %v1634_v28 = vld [vmem:[#allocation3 + $0x698] sm:$0xff] }
 0x14b   : > { %1404 = vmatprep.mubr.f32.mxu1 %v10366_v0  ;;  %7078 = vmatpush1.bf16.msra.mxu1 %v7077_v31  ;;  %v7019_v31 = vpack.c.bf16 %v622_v39, %v616_v38  ;;  %v9358_v17 = vld [vmem:[#allocation2 + $0x32] sm:$0xff]  ;;  %v9364_v38 = vld [vmem:[#allocation2 + $0x3a] sm:$0xff] }
 0x14c   : > { %1155 = vmatmul.mubr.f32.gmra.mrb[36].mxu0 %v9192_v45  ;;  %v7081_v45 = vpack.c.bf16 %v1647_v46, %v1641_v44  ;;  %7080 = vmatprep.subr.bf16.mxu1 %v7079_v43  ;;  %v615_v43 = vld [vmem:[#allocation3 + $0x140] sm:$0xff]  ;;  %v621_v44 = vld [vmem:[#allocation3 + $0x170] sm:$0xff]  ;;  %v628_v46 = vld [vmem:[#allocation3 + $0x1a8] sm:$0xff] }
 0x14d   : > { %1160 = vmatprep.mubr.f32.mxu0 %v10366_v0  ;;  %6970 = vmatpush1.bf16.msra.mxu0 %v6969_v33  ;;  %v9294_v33 = vld [vmem:[#allocation2 + $0x38] sm:$0xff]  ;;  %v7021_v49 = vpack.c.bf16 %v621_v44, %v615_v43  ;;  %v1645_v43 = vld [vmem:[#allocation3 + $0x6f0] sm:$0xff]  ;;  %v1652_v44 = vld [vmem:[#allocation3 + $0x728] sm:$0xff] }
 0x14e   : > { %6972 = vmatprep.subr.bf16.mxu0 %v6971_v37  ;;  %1405 = vmatmul.mubr.f32.gmra.mrb[4].mxu1 %v9264_v56  ;;  %v609_v37 = vld [vmem:[#allocation3 + $0x110] sm:$0xff]  ;;  %v1694_v15 = vld [vmem:[#allocation3 + $0x878] sm:$0xff] }
 0x14f   : > { %1410 = vmatprep.mubr.f32.mxu1 %v10366_v0  ;;  %7082 = vmatpush1.bf16.msra.mxu1 %v7081_v45  ;;  %v7017_v40 = vpack.c.bf16 %v609_v37, %v603_v36  ;;  %v627_v45 = vld [vmem:[#allocation3 + $0x1a0] sm:$0xff]  ;;  %v1640_v36 = vld [vmem:[#allocation3 + $0x6c8] sm:$0xff]  ;;  %v1646_v37 = vld [vmem:[#allocation3 + $0x6f8] sm:$0xff] }
 0x150   : > { %1161 = vmatmul.mubr.f32.gmra.mrb[38].mxu0 %v9198_v59  ;;  %7084 = vmatprep.subr.bf16.mxu1 %v7083_v52  ;;  %v7087_v59 = vpack.c.bf16 %v1672_v58, %v1666_v57  ;;  %v633_v52 = vld [vmem:[#allocation3 + $0x1d0] sm:$0xff] }
 0x151   : > { %1166 = vmatprep.mubr.f32.mxu0 %v10366_v0  ;;  %6974 = vmatpush1.bf16.msra.mxu0 %v6973_v47  ;;  %v634_v47 = vld [vmem:[#allocation3 + $0x1d8] sm:$0xff]  ;;  %v7025_v57 = vpack.c.bf16 %v633_v52, %v627_v45  ;;  %v9312_v58 = vld [vmem:[#allocation2 + $0x50] sm:$0xff]  ;;  %v1664_v52 = vld [vmem:[#allocation3 + $0x788] sm:$0xff] }
 0x152   : > { %7008 = vmatprep.subr.bf16.mxu0 %v7007_v51  ;;  %1411 = vmatmul.mubr.f32.gmra.mrb[6].mxu1 %v9270_v62  ;;  %v7023_v51 = vpack.c.bf16 %v634_v47, %v628_v46  ;;  %v1658_v46 = vld [vmem:[#allocation3 + $0x758] sm:$0xff]  ;;  %v9370_v47 = vld [vmem:[#allocation2 + $0x42] sm:$0xff]  ;;  %v1657_v45 = vld [vmem:[#allocation3 + $0x750] sm:$0xff] }
 0x153   : > { %1416 = vmatprep.mubr.f32.mxu1 %v10366_v0  ;;  %7086 = vmatpush1.bf16.msra.mxu1 %v7085_v60  ;;  %v7027_v60 = vpack.c.bf16 %v646_v55, %v640_v53  ;;  %v1670_v53 = vld [vmem:[#allocation3 + $0x7b8] sm:$0xff]  ;;  %v9376_v55 = vld [vmem:[#allocation2 + $0x4a] sm:$0xff] }
 0x154   : > { %1167 = vmatmul.mubr.f32.gmra.mrb[40].mxu0 %v9204_v6  ;;  %7088 = vmatprep.subr.bf16.mxu1 %v7087_v59  ;;  %v7091_v6 = vpack.c.bf16 %v1684_v1, %v1678_v63  ;;  %v639_v59 = vld [vmem:[#allocation3 + $0x200] sm:$0xff]  ;;  %v658_v63 = vld [vmem:[#allocation3 + $0x298] sm:$0xff] }
 0x155   : > { %1172 = vmatprep.mubr.f32.mxu0 %v10366_v0  ;;  %v7029_v1 = vpack.c.bf16 %v645_v26, %v639_v59  ;;  %v1669_v59 = vld [vmem:[#allocation3 + $0x7b0] sm:$0xff]  ;;  %v1676_v26 = vld [vmem:[#allocation3 + $0x7e8] sm:$0xff] }
 0x156   : > { %1417 = vmatmul.mubr.f32.gmra.mrb[8].mxu1 %v9276_v5 }
 0x157   : > { %1422 = vmatprep.mubr.f32.mxu1 %v10366_v0  ;;  %7090 = vmatpush1.bf16.msra.mxu1 %v7089_v2  ;;  %v9318_v2 = vld [vmem:[#allocation2 + $0x58] sm:$0x7] }
 0x158   : > { %1173 = vmatmul.mubr.f32.gmra.mrb[42].mxu0 %v9210_v13  ;;  %7092 = vmatprep.subr.bf16.mxu1 %v7091_v6  ;;  %v7095_v13 = vpack.c.bf16 %v1696_v8, %v1690_v7  ;;  %v7031_v6 = vpack.c.bf16 %v658_v63, %v652_v61  ;;  %v664_v7 = vld [vmem:[#allocation3 + $0x2c8] sm:$0xff]  ;;  %v670_v8 = vld [vmem:[#allocation3 + $0x2f8] sm:$0xff] }
 0x159   : > { %1178 = vmatprep.mubr.f32.mxu0 %v10366_v0  ;;  %v1682_v61 = vld [vmem:[#allocation3 + $0x818] sm:$0xff] }
 0x15a   : > { %1423 = vmatmul.mubr.f32.gmra.mrb[10].mxu1 %v9282_v11  ;;  %v9382_v63 = vld [vmem:[#allocation2 + $0x52] sm:$0xff]  ;;  %v7059_v14 = vpack.c.bf16 %v1682_v61, %v1676_v26  ;;  %v2475_v26 = vld [vmem:[#allocation10 + $0xe0] sm:$0xff] }
 0x15b   : > { %1428 = vmatprep.mubr.f32.mxu1 %v10366_v0  ;;  %7094 = vmatpush1.bf16.msra.mxu1 %v7093_v9  ;;  %v9322_v9 = vld [vmem:[#allocation2 + $0x2] sm:$0xff] }
 0x15c   : > { %1179 = vmatmul.mubr.f32.gmra.mrb[44].mxu0 %v9216_v21  ;;  %v7097_v21 = vpack.c.bf16 %v1695_v10, %v1689_v54  ;;  %7096 = vmatprep.subr.bf16.mxu1 %v7095_v13  ;;  %v7033_v13 = vpack.c.bf16 %v657_v3, %v651_v41  ;;  %v7035_v54 = vpack.c.bf16 %v670_v8, %v664_v7  ;;  %v663_v10 = vld [vmem:[#allocation3 + $0x2c0] sm:$0xff]  ;;  %v2451_v41 = vld [vmem:[#allocation10 + $0x20] sm:$0xff] }
 0x15d   : > { %1184 = vmatprep.mubr.f32.mxu0 %v10366_v0  ;;  %v7037_v18 = vpack.c.bf16 %v669_v12, %v663_v10  ;;  %v2447_v3 = vld [vmem:[#allocation10] sm:$0xff]  ;;  %v2454_v10 = vld [vmem:[#allocation10 + $0x38] sm:$0xff]  ;;  %v2457_v12 = vld [vmem:[#allocation10 + $0x50] sm:$0xff] }
 0x15e   : > { %1429 = vmatmul.mubr.f32.gmra.mrb[12].mxu1 %v9288_v24  ;;  %v1688_v8 = vld [vmem:[#allocation3 + $0x848] sm:$0xff] }
 0x15f   : > { %1434 = vmatprep.mubr.f32.mxu1 %v10366_v0  ;;  %7098 = vmatpush1.bf16.msra.mxu1 %v7097_v21  ;;  %v9334_v21 = vld [vmem:[#allocation2 + $0x12] sm:$0xff] }
 0x160   : > { %1185 = vmatmul.mubr.f32.gmra.mrb[46].mxu0 %v9222_v29  ;;  %v7101_v29 = vpack.c.bf16 %v1707_v22, %v1701_v20  ;;  %7100 = vmatprep.subr.bf16.mxu1 %v7099_v19  ;;  %v9340_v19 = vld [vmem:[#allocation2 + $0x1a] sm:$0xff]  ;;  %v9346_v20 = vld [vmem:[#allocation2 + $0x22] sm:$0xff]  ;;  %v9352_v22 = vld [vmem:[#allocation2 + $0x2a] sm:$0xff] }
 0x161   : > { %1255 = vmatprep.mubr.f32.mxu0 %v10366_v0 }
 0x162   : > { %1435 = vmatmul.mubr.f32.gmra.mrb[14].mxu1 %v9294_v33 }
 0x163   : > { %1440 = vmatprep.mubr.f32.mxu1 %v10366_v0  ;;  %7102 = vmatpush1.bf16.msra.mxu1 %v7101_v29  ;;  %v7043_v29 = vpack.c.bf16 %v1634_v28, %v1628_v27  ;;  %v2460_v27 = vld [vmem:[#allocation10 + $0x68] sm:$0xff]  ;;  %v2463_v28 = vld [vmem:[#allocation10 + $0x80] sm:$0xff] }
 0x164   : > { %1256 = vmatmul.mubr.f32.vlgmr.msra.gmra.mrb[0].mxu0 %v9252_v34 }
 0x165   : > { %1261 = vmatprep.mubr.f32.mxu0 %v10366_v0  ;;  %7010 = vmatpush1.bf16.msra.mxu0 %v7009_v23  ;;  %v1615_v23 = vld [vmem:[#allocation3 + $0x600] sm:$0xff] }
 0x166   : > { %7012 = vmatprep.subr.bf16.mxu0 %v7011_v25  ;;  %1441 = vmatmul.mubr.f32.gmra.mrb[16].mxu1 %v9300_v42  ;;  %v1621_v25 = vld [vmem:[#allocation3 + $0x630] sm:$0xff] }
 0x167   : > { %1446 = vmatprep.mubr.f32.mxu1 %v10366_v0  ;;  %v7041_v30 = vpack.c.bf16 %v1621_v25, %v1615_v23  ;;  %v9388_v23 = vld [vmem:[#allocation2 + $0x5a] sm:$0x7]  ;;  %v7139_v25 = vpack.c.bf16 %v2457_v12, %v2454_v10  ;;  %v2484_v10 = vld [vmem:[#allocation10 + $0x128] sm:$0xff]  ;;  %v2487_v12 = vld [vmem:[#allocation10 + $0x140] sm:$0xff] }
 0x168   : > { %1262 = vmatmul.mubr.f32.gmra.mrb[2].mxu0 %v9258_v48 }
 0x169   : > { %1267 = vmatprep.mubr.f32.mxu0 %v10366_v0  ;;  %7014 = vmatpush1.bf16.msra.mxu0 %v7013_v32  ;;  %v1627_v32 = vld [vmem:[#allocation3 + $0x660] sm:$0xff] }
 0x16a   : > { %7016 = vmatprep.subr.bf16.mxu0 %v7015_v35  ;;  %1447 = vmatmul.mubr.f32.gmra.mrb[18].mxu1 %v9306_v50  ;;  %v1633_v35 = vld [vmem:[#allocation3 + $0x690] sm:$0xff] }
 0x16b   : > { %1452 = vmatprep.mubr.f32.mxu1 %v10366_v0  ;;  %v7045_v39 = vpack.c.bf16 %v1633_v35, %v1627_v32  ;;  %v2459_v32 = vld [vmem:[#allocation10 + $0x60] sm:$0xff]  ;;  %v2462_v35 = vld [vmem:[#allocation10 + $0x78] sm:$0xff] }
 0x16c   : > { %1268 = vmatmul.mubr.f32.gmra.mrb[4].mxu0 %v9264_v56 }
 0x16d   : > { %1273 = vmatprep.mubr.f32.mxu0 %v10366_v0  ;;  %7018 = vmatpush1.bf16.msra.mxu0 %v7017_v40  ;;  %v7047_v40 = vpack.c.bf16 %v1646_v37, %v1640_v36  ;;  %v7063_v36 = vpack.c.bf16 %v1694_v15, %v1688_v8  ;;  %v1687_v37 = vld [vmem:[#allocation3 + $0x840] sm:$0xff] }
 0x16e   : > { %7020 = vmatprep.subr.bf16.mxu0 %v7019_v31  ;;  %1453 = vmatmul.mubr.f32.gmra.mrb[20].mxu1 %v9312_v58  ;;  %v1639_v31 = vld [vmem:[#allocation3 + $0x6c0] sm:$0xff] }
 0x16f   : > { %1458 = vmatprep.mubr.f32.mxu1 %v10366_v0  ;;  %v1619_v15 = vld [vmem:[#allocation3 + $0x620] sm:$0xff] }
 0x170   : > { %1274 = vmatmul.mubr.f32.gmra.mrb[6].mxu0 %v9270_v62 }
 0x171   : > { %1279 = vmatprep.mubr.f32.mxu0 %v10366_v0  ;;  %7022 = vmatpush1.bf16.msra.mxu0 %v7021_v49  ;;  %v7051_v49 = vpack.c.bf16 %v1658_v46, %v1652_v44  ;;  %v2466_v44 = vld [vmem:[#allocation10 + $0x98] sm:$0xff]  ;;  %v7145_v46 = vpack.c.bf16 %v2462_v35, %v2459_v32  ;;  %v1649_v35 = vld [vmem:[#allocation3 + $0x710] sm:$0xff] }
 0x172   : > { %7024 = vmatprep.subr.bf16.mxu0 %v7023_v51  ;;  %1459 = vmatmul.mubr.f32.gmra.mrb[22].mxu1 %v9318_v2  ;;  %v1651_v51 = vld [vmem:[#allocation3 + $0x720] sm:$0xff] }
 0x173   : > { %1912 = vmatprep.mubr.f32.mxu1 %v10366_v0  ;;  %v1643_v32 = vld [vmem:[#allocation3 + $0x6e0] sm:$0xff] }
 0x174   : > { %1280 = vmatmul.mubr.f32.gmra.mrb[8].mxu0 %v9276_v5 }
 0x175   : > { %1285 = vmatprep.mubr.f32.mxu0 %v10366_v0  ;;  %7026 = vmatpush1.bf16.msra.mxu0 %v7025_v57  ;;  %v7055_v57 = vpack.c.bf16 %v1670_v53, %v1664_v52  ;;  %v1699_v52 = vld [vmem:[#allocation3 + $0x8a0] sm:$0xff]  ;;  %v1705_v53 = vld [vmem:[#allocation3 + $0x8d0] sm:$0xff] }
 0x176   : > { %7028 = vmatprep.subr.bf16.mxu0 %v7027_v60  ;;  %1913 = vmatmul.mubr.f32.vlgmr.msra.gmra.mrb[0].mxu1 %v9322_v9  ;;  %v1663_v60 = vld [vmem:[#allocation3 + $0x780] sm:$0xff]  ;;  %v7069_v61 = vpack.c.bf16 %v1705_v53, %v1699_v52 }
 0x177   : > { %1918 = vmatprep.mubr.f32.mxu1 %v10366_v0  ;;  %v7057_v7 = vpack.c.bf16 %v1669_v59, %v1663_v60  ;;  %v1626_v60 = vld [vmem:[#allocation3 + $0x658] sm:$0xff]  ;;  %v1679_v53 = vld [vmem:[#allocation3 + $0x800] sm:$0xff] }
 0x178   : > { %1286 = vmatmul.mubr.f32.gmra.mrb[10].mxu0 %v9282_v11  ;;  %v2472_v59 = vld [vmem:[#allocation10 + $0xc8] sm:$0xff] }
 0x179   : > { %1291 = vmatprep.mubr.f32.mxu0 %v10366_v0  ;;  %7030 = vmatpush1.bf16.msra.mxu0 %v7029_v1  ;;  %v1675_v1 = vld [vmem:[#allocation3 + $0x7e0] sm:$0xff] }
 0x17a   : > { %7032 = vmatprep.subr.bf16.mxu0 %v7031_v6  ;;  %1919 = vmatmul.mubr.f32.gmra.mrb[2].mxu1 %v9328_v16  ;;  %v2448_v6 = vld [vmem:[#allocation10 + $0x8] sm:$0xff] }
 0x17b   : > { %1924 = vmatprep.mubr.f32.mxu1 %v10366_v0 }
 0x17c   : > { %1292 = vmatmul.mubr.f32.gmra.mrb[12].mxu0 %v9288_v24 }
 0x17d   : > { %1297 = vmatprep.mubr.f32.mxu0 %v10366_v0  ;;  %7034 = vmatpush1.bf16.msra.mxu0 %v7033_v13  ;;  %v7135_v13 = vpack.c.bf16 %v2451_v41, %v2448_v6  ;;  %v7151_v41 = vpack.c.bf16 %v2475_v26, %v2472_v59  ;;  %v2483_v59 = vld [vmem:[#allocation10 + $0x120] sm:$0xff]  ;;  %v2486_v26 = vld [vmem:[#allocation10 + $0x138] sm:$0xff] }
 0x17e   : > { %7036 = vmatprep.subr.bf16.mxu0 %v7035_v54  ;;  %1925 = vmatmul.mubr.f32.gmra.mrb[4].mxu1 %v9334_v21  ;;  %v2450_v54 = vld [vmem:[#allocation10 + $0x18] sm:$0xff] }
 0x17f   : > { %1930 = vmatprep.mubr.f32.mxu1 %v10366_v0  ;;  %7136 = vmatprep.subr.bf16.mxu1 %v7135_v13  ;;  %v2477_v13 = vld [vmem:[#allocation10 + $0xf0] sm:$0xff] }
 0x180   : > { %1298 = vmatmul.mubr.f32.gmra.mrb[14].mxu0 %v9294_v33 }
 0x181   : > { %1303 = vmatprep.mubr.f32.mxu0 %v10366_v0  ;;  %7038 = vmatpush1.bf16.msra.mxu0 %v7037_v18  ;;  %v2453_v18 = vld [vmem:[#allocation10 + $0x30] sm:$0xff] }
 0x182   : > { %7040 = vmatprep.subr.bf16.mxu0 %v7039_v4  ;;  %1931 = vmatmul.mubr.f32.gmra.mrb[6].mxu1 %v9340_v19  ;;  %v2456_v4 = vld [vmem:[#allocation10 + $0x48] sm:$0xff] }
 0x183   : > { %1936 = vmatprep.mubr.f32.mxu1 %v10366_v0 }
 0x184   : > { %1304 = vmatmul.mubr.f32.gmra.mrb[16].mxu0 %v9300_v42 }
 0x185   : > { %1309 = vmatprep.mubr.f32.mxu0 %v10366_v0 }
 0x186   : > { %1937 = vmatmul.mubr.f32.gmra.mrb[8].mxu1 %v9346_v20 }
 0x187   : > { %1942 = vmatprep.mubr.f32.mxu1 %v10366_v0 }
 0x188   : > { %1310 = vmatmul.mubr.f32.gmra.mrb[18].mxu0 %v9306_v50 }
 0x189   : > { %1315 = vmatprep.mubr.f32.mxu0 %v10366_v0 }
 0x18a   : > { %1943 = vmatmul.mubr.f32.gmra.mrb[10].mxu1 %v9352_v22 }
 0x18b   : > { %1948 = vmatprep.mubr.f32.mxu1 %v10366_v0 }
 0x18c   : > { %1316 = vmatmul.mubr.f32.gmra.mrb[20].mxu0 %v9312_v58 }
 0x18d   : > { %1321 = vmatprep.mubr.f32.mxu0 %v10366_v0 }
 0x18e   : > { %1949 = vmatmul.mubr.f32.gmra.mrb[12].mxu1 %v9358_v17 }
 0x18f   : > { %1954 = vmatprep.mubr.f32.mxu1 %v10366_v0 }
 0x190   : > { %1322 = vmatmul.mubr.f32.gmra.mrb[22].mxu0 %v9318_v2 }
 0x191   : > { %1529 = vmatprep.mubr.f32.mxu0 %v10366_v0 }
 0x192   : > { %1955 = vmatmul.mubr.f32.gmra.mrb[14].mxu1 %v9364_v38 }
 0x193   : > { %1960 = vmatprep.mubr.f32.mxu1 %v10366_v0 }
 0x194   : > { %1530 = vmatmul.mubr.f32.vlgmr.msra.gmra.mrb[24].mxu0 %v9252_v34  ;;  %v7049_v34 = vpack.c.bf16 %v1645_v43, %v1639_v31  ;;  %v7143_v31 = vpack.c.bf16 %v2463_v28, %v2460_v27  ;;  %v1706_v43 = vld [vmem:[#allocation3 + $0x8d8] sm:$0xff]  ;;  %v1631_v27 = vld [vmem:[#allocation3 + $0x680] sm:$0xff]  ;;  %v1644_v28 = vld [vmem:[#allocation3 + $0x6e8] sm:$0xff] }
 0x195   : > { %1535 = vmatprep.mubr.f32.mxu0 %v10366_v0  ;;  %7042 = vmatpush1.bf16.msra.mxu0 %v7041_v30  ;;  %v7141_v30 = vpack.c.bf16 %v2456_v4, %v2453_v18  ;;  %v1632_v18 = vld [vmem:[#allocation3 + $0x688] sm:$0xff] }
 0x196   : > { %7044 = vmatprep.subr.bf16.mxu0 %v7043_v29  ;;  %1961 = vmatmul.mubr.f32.gmra.mrb[16].mxu1 %v9370_v47 }
 0x197   : > { %1966 = vmatprep.mubr.f32.mxu1 %v10366_v0 }
 0x198   : > { %1536 = vmatmul.mubr.f32.gmra.mrb[26].mxu0 %v9258_v48  ;;  %v7053_v48 = vpack.c.bf16 %v1657_v45, %v1651_v51  ;;  %v2468_v51 = vld [vmem:[#allocation10 + $0xa8] sm:$0xff] }
 0x199   : > { %1541 = vmatprep.mubr.f32.mxu0 %v10366_v0  ;;  %7046 = vmatpush1.bf16.msra.mxu0 %v7045_v39  ;;  %v1693_v39 = vld [vmem:[#allocation3 + $0x870] sm:$0xff] }
 0x19a   : > { %7048 = vmatprep.subr.bf16.mxu0 %v7047_v40  ;;  %1967 = vmatmul.mubr.f32.gmra.mrb[18].mxu1 %v9376_v55  ;;  %v1700_v40 = vld [vmem:[#allocation3 + $0x8a8] sm:$0xff] }
 0x19b   : > { %1972 = vmatprep.mubr.f32.mxu1 %v10366_v0  ;;  %v7067_v45 = vpack.c.bf16 %v1706_v43, %v1700_v40  ;;  %v1655_v40 = vld [vmem:[#allocation3 + $0x740] sm:$0xff]  ;;  %v1668_v43 = vld [vmem:[#allocation3 + $0x7a8] sm:$0xff] }
 0x19c   : > { %1542 = vmatmul.mubr.f32.gmra.mrb[28].mxu0 %v9264_v56  ;;  %v1681_v56 = vld [vmem:[#allocation3 + $0x810] sm:$0xff] }
 0x19d   : > { %1547 = vmatprep.mubr.f32.mxu0 %v10366_v0  ;;  %7050 = vmatpush1.bf16.msra.mxu0 %v7049_v34  ;;  %v7061_v29 = vpack.c.bf16 %v1681_v56, %v1675_v1  ;;  %v7065_v34 = vpack.c.bf16 %v1693_v39, %v1687_v37  ;;  %v2471_v1 = vld [vmem:[#allocation10 + $0xc0] sm:$0xff]  ;;  %v2474_v56 = vld [vmem:[#allocation10 + $0xd8] sm:$0xff]  ;;  %v7113_v37 = vpack.c.bf16 %v1649_v35, %v1643_v32 }
 0x19e   : > { %7052 = vmatprep.subr.bf16.mxu0 %v7051_v49  ;;  %1973 = vmatmul.mubr.f32.gmra.mrb[20].mxu1 %v9382_v63  ;;  %v2465_v49 = vld [vmem:[#allocation10 + $0x90] sm:$0xff]  ;;  %v7153_v8 = vpack.c.bf16 %v2474_v56, %v2471_v1  ;;  %v2490_v1 = vld [vmem:[#allocation10 + $0x158] sm:$0xff] }
 0x19f   : > { %1978 = vmatprep.mubr.f32.mxu1 %v10366_v0  ;;  %v2493_v56 = vld [vmem:[#allocation10 + $0x170] sm:$0xff] }
 0x1a0   : > { %1548 = vmatmul.mubr.f32.gmra.mrb[30].mxu0 %v9270_v62  ;;  %v7137_v62 = vpack.c.bf16 %v2450_v54, %v2447_v3  ;;  %v2478_v3 = vld [vmem:[#allocation10 + $0xf8] sm:$0xff]  ;;  %v2480_v54 = vld [vmem:[#allocation10 + $0x108] sm:$0xff] }
 0x1a1   : > { %1553 = vmatprep.mubr.f32.mxu0 %v10366_v0  ;;  %7054 = vmatpush1.bf16.msra.mxu0 %v7053_v48  ;;  %v1620_v48 = vld [vmem:[#allocation3 + $0x628] sm:$0xff] }
 0x1a2   : > { %7056 = vmatprep.subr.bf16.mxu0 %v7055_v57  ;;  %7138 = vmatpush1.bf16.msra.mxu1 %v7137_v62  ;;  %v7103_v6 = vpack.c.bf16 %v1626_v60, %v1620_v48  ;;  %v1625_v62 = vld [vmem:[#allocation3 + $0x650] sm:$0xff]  ;;  %v1692_v60 = vld [vmem:[#allocation3 + $0x868] sm:$0xff] }
 0x1a3   : > { %1979 = vmatmul.mubr.f32.gmra.mrb[22].mxu1 %v9388_v23  ;;  %7140 = vmatprep.subr.bf16.mxu1 %v7139_v25  ;;  %v7105_v4 = vpack.c.bf16 %v1625_v62, %v1619_v15  ;;  %v1685_v48 = vld [vmem:[#allocation3 + $0x830] sm:$0xff] }
 0x1a4   : > { %1554 = vmatmul.mubr.f32.gmra.mrb[32].mxu0 %v9276_v5  ;;  %v2469_v5 = vld [vmem:[#allocation10 + $0xb0] sm:$0xff] }
 0x1a5   : > { %1559 = vmatprep.mubr.f32.mxu0 %v10366_v0  ;;  %7058 = vmatpush1.bf16.msra.mxu0 %v7057_v7  ;;  %v7147_v57 = vpack.c.bf16 %v2469_v5, %v2466_v44  ;;  %v2481_v7 = vld [vmem:[#allocation10 + $0x110] sm:$0xff] }
 0x1a6   : > { %7060 = vmatprep.subr.bf16.mxu0 %v7059_v14  ;;  %7142 = vmatpush1.bf16.msra.mxu1 %v7141_v30  ;;  %v7157_v14 = vpack.c.bf16 %v2480_v54, %v2477_v13  ;;  %v1650_v30 = vld [vmem:[#allocation3 + $0x718] sm:$0xff] }
 0x1a7   : > { %7144 = vmatprep.subr.bf16.mxu1 %v7143_v31  ;;  %v1661_v31 = vld [vmem:[#allocation3 + $0x770] sm:$0xff]  ;;  %v1674_v44 = vld [vmem:[#allocation3 + $0x7d8] sm:$0xff] }
 0x1a8   : > { %1560 = vmatmul.mubr.f32.gmra.mrb[34].mxu0 %v9282_v11  ;;  %v7149_v11 = vpack.c.bf16 %v2468_v51, %v2465_v49  ;;  %v7117_v5 = vpack.c.bf16 %v1661_v31, %v1655_v40  ;;  %v1673_v49 = vld [vmem:[#allocation3 + $0x7d0] sm:$0xff]  ;;  %v1680_v51 = vld [vmem:[#allocation3 + $0x808] sm:$0xff]  ;;  %v2489_v13 = vld [vmem:[#allocation10 + $0x150] sm:$0xff] }
 0x1a9   : > { %1565 = vmatprep.mubr.f32.mxu0 %v10366_v0  ;;  %7062 = vmatpush1.bf16.msra.mxu0 %v7061_v29  ;;  %v7111_v29 = vpack.c.bf16 %v1650_v30, %v1644_v28  ;;  %v2492_v54 = vld [vmem:[#allocation10 + $0x168] sm:$0xff]  ;;  %v2497_v28 = vld [vmem:[#allocation10 + $0x190] sm:$0xff]  ;;  %v2511_v31 = vld [vmem:[#allocation10 + $0x200] sm:$0xff] }
 0x1aa   : > { %7064 = vmatprep.subr.bf16.mxu0 %v7063_v36  ;;  %7146 = vmatpush1.bf16.msra.mxu1 %v7145_v46  ;;  %v1656_v36 = vld [vmem:[#allocation3 + $0x748] sm:$0xff]  ;;  %v7119_v46 = vpack.c.bf16 %v1674_v44, %v1668_v43  ;;  %v2500_v30 = vld [vmem:[#allocation10 + $0x1a8] sm:$0xff] }
 0x1ab   : > { %7148 = vmatprep.subr.bf16.mxu1 %v7147_v57  ;;  %v2508_v40 = vld [vmem:[#allocation10 + $0x1e8] sm:$0xff]  ;;  %v2507_v44 = vld [vmem:[#allocation10 + $0x1e0] sm:$0xff] }
 0x1ac   : > { %1566 = vmatmul.mubr.f32.gmra.mrb[36].mxu0 %v9288_v24  ;;  %v7155_v24 = vpack.c.bf16 %v2481_v7, %v2478_v3  ;;  %v1691_v3 = vld [vmem:[#allocation3 + $0x860] sm:$0xff]  ;;  %v1697_v7 = vld [vmem:[#allocation3 + $0x890] sm:$0xff]  ;;  %v7175_v43 = vpack.c.bf16 %v2511_v31, %v2508_v40 }
 0x1ad   : > { %1571 = vmatprep.mubr.f32.mxu0 %v10366_v0  ;;  %7066 = vmatpush1.bf16.msra.mxu0 %v7065_v34  ;;  %v1667_v34 = vld [vmem:[#allocation3 + $0x7a0] sm:$0xff]  ;;  %v7129_v62 = vpack.c.bf16 %v1697_v7, %v1691_v3  ;;  %v2528_v7 = vld [vmem:[#allocation10 + $0x288] sm:$0xff] }
 0x1ae   : > { %7068 = vmatprep.subr.bf16.mxu0 %v7067_v45  ;;  %7150 = vmatpush1.bf16.msra.mxu1 %v7149_v11  ;;  %v1686_v45 = vld [vmem:[#allocation3 + $0x838] sm:$0xff]  ;;  %v7121_v52 = vpack.c.bf16 %v1673_v49, %v1667_v34  ;;  %v2514_v34 = vld [vmem:[#allocation10 + $0x218] sm:$0xff] }
 0x1af   : > { %7152 = vmatprep.subr.bf16.mxu1 %v7151_v41  ;;  %v7123_v57 = vpack.c.bf16 %v1686_v45, %v1680_v51  ;;  %v1698_v11 = vld [vmem:[#allocation3 + $0x898] sm:$0xff]  ;;  %v7125_v41 = vpack.c.bf16 %v1685_v48, %v1679_v53 }
 0x1b0   : > { %1572 = vmatmul.mubr.f32.gmra.mrb[38].mxu0 %v9294_v33  ;;  %v7159_v33 = vpack.c.bf16 %v2487_v12, %v2484_v10  ;;  %v1710_v10 = vld [vmem:[#allocation3 + $0x8f8] sm:$0xff]  ;;  %v7165_v12 = vpack.c.bf16 %v2492_v54, %v2489_v13 }
 0x1b1   : > { %1577 = vmatprep.mubr.f32.mxu0 %v10366_v0  ;;  %7070 = vmatpush1.bf16.msra.mxu0 %v7069_v61  ;;  %v7161_v61 = vpack.c.bf16 %v2486_v26, %v2483_v59  ;;  %v2517_v49 = vld [vmem:[#allocation10 + $0x230] sm:$0xff]  ;;  %v2520_v48 = vld [vmem:[#allocation10 + $0x248] sm:$0xff]  ;;  %v2519_v59 = vld [vmem:[#allocation10 + $0x240] sm:$0xff] }
 0x1b2   : > { %7104 = vmatprep.subr.bf16.mxu0 %v7103_v6  ;;  %7154 = vmatpush1.bf16.msra.mxu1 %v7153_v8  ;;  %v7163_v6 = vpack.c.bf16 %v2493_v56, %v2490_v1  ;;  %v7127_v8 = vpack.c.bf16 %v1698_v11, %v1692_v60  ;;  %v7179_v51 = vpack.c.bf16 %v2517_v49, %v2514_v34  ;;  %v2513_v45 = vld [vmem:[#allocation10 + $0x210] sm:$0xff]  ;;  %v2522_v26 = vld [vmem:[#allocation10 + $0x258] sm:$0xff]  ;;  %v2532_v54 = vld [vmem:[#allocation10 + $0x2a8] sm:$0xff] }
 0x1b3   : > { %7156 = vmatprep.subr.bf16.mxu1 %v7155_v24  ;;  %v1704_v24 = vld [vmem:[#allocation3 + $0x8c8] sm:$0xff]  ;;  %v7185_v11 = vpack.c.bf16 %v2522_v26, %v2519_v59  ;;  %v2529_v1 = vld [vmem:[#allocation10 + $0x290] sm:$0xff]  ;;  %v2540_v26 = vld [vmem:[#allocation10 + $0x2e8] sm:$0xff] }
 0x1b4   : > { %1578 = vmatmul.mubr.f32.gmra.mrb[40].mxu0 %v9300_v42  ;;  %v1638_v42 = vld [vmem:[#allocation3 + $0x6b8] sm:$0xff]  ;;  %v2479_v49 = vld [vmem:[#allocation10 + $0x100] sm:$0xff] }
 0x1b5   : > { %1583 = vmatprep.mubr.f32.mxu0 %v10366_v0  ;;  %v7107_v25 = vpack.c.bf16 %v1638_v42, %v1632_v18  ;;  %v1703_v18 = vld [vmem:[#allocation3 + $0x8c0] sm:$0xff]  ;;  %v7131_v42 = vpack.c.bf16 %v1710_v10, %v1704_v24  ;;  %v2535_v10 = vld [vmem:[#allocation10 + $0x2c0] sm:$0xff] }
 0x1b6   : > { %7158 = vmatpush1.bf16.msra.mxu1 %v7157_v14  ;;  %v2496_v14 = vld [vmem:[#allocation10 + $0x188] sm:$0xff]  ;;  %v2449_v56 = vld [vmem:[#allocation10 + $0x10] sm:$0xff]  ;;  %v2506_v24 = vld [vmem:[#allocation10 + $0x1d8] sm:$0xff] }
 0x1b7   : > { %7160 = vmatprep.subr.bf16.mxu1 %v7159_v33  ;;  %v2499_v33 = vld [vmem:[#allocation10 + $0x1a0] sm:$0xff]  ;;  %v2525_v3 = vld [vmem:[#allocation10 + $0x270] sm:$0xff] }
 0x1b8   : > { %1584 = vmatmul.mubr.f32.gmra.mrb[42].mxu0 %v9306_v50  ;;  %v1637_v50 = vld [vmem:[#allocation3 + $0x6b0] sm:$0xff]  ;;  %v7167_v15 = vpack.c.bf16 %v2499_v33, %v2496_v14  ;;  %v7189_v13 = vpack.c.bf16 %v2528_v7, %v2525_v3  ;;  %v7191_v33 = vpack.c.bf16 %v2535_v10, %v2532_v54  ;;  %v2537_v59 = vld [vmem:[#allocation10 + $0x2d0] sm:$0xff] }
 0x1b9   : > { %1589 = vmatprep.mubr.f32.mxu0 %v10366_v0  ;;  %v2455_v14 = vld [vmem:[#allocation10 + $0x40] sm:$0xff]  ;;  %v2596_v7 = vld [vmem:[#allocation10 + $0x4a8] sm:$0xff]  ;;  %v9457_v10 = vld [vmem:[#allocation7] sm:$0x3f] }
 0x1ba   : > { %7162 = vmatpush1.bf16.msra.mxu1 %v7161_v61  ;;  %v2526_v61 = vld [vmem:[#allocation10 + $0x278] sm:$0xff] }
 0x1bb   : > { %7164 = vmatprep.subr.bf16.mxu1 %v7163_v6  ;;  %v7187_v6 = vpack.c.bf16 %v2529_v1, %v2526_v61  ;;  %v2491_v61 = vld [vmem:[#allocation10 + $0x160] sm:$0xff]  ;;  %v2494_v1 = vld [vmem:[#allocation10 + $0x178] sm:$0xff] }
 0x1bc   : > { %1590 = vmatmul.mubr.f32.gmra.mrb[44].mxu0 %v9312_v58  ;;  %v7109_v58 = vpack.c.bf16 %v1637_v50, %v1631_v27  ;;  %v2498_v27 = vld [vmem:[#allocation10 + $0x198] sm:$0xff] }
 0x1bd   : > { %1595 = vmatprep.mubr.f32.mxu0 %v10366_v0 }
 0x1be   : > { %7166 = vmatpush1.bf16.msra.mxu1 %v7165_v12 }
 0x1bf   : > { %7168 = vmatprep.subr.bf16.mxu1 %v7167_v15 }
 0x1c0   : > { %1596 = vmatmul.mubr.f32.gmra.mrb[46].mxu0 %v9318_v2  ;;  %v1662_v2 = vld [vmem:[#allocation3 + $0x778] sm:$0xff] }
 0x1c1   : > { %1775 = vmatprep.mubr.f32.mxu0 %v10366_v0  ;;  %v7115_v39 = vpack.c.bf16 %v1662_v2, %v1656_v36  ;;  %v7327_v36 = vpack.c.bf16 %v2500_v30, %v2497_v28  ;;  %v2501_v2 = vld [vmem:[#allocation10 + $0x1b0] sm:$0xff] }
 0x1c2   : > { %v2461_v30 = vld [vmem:[#allocation10 + $0x70] sm:$0xff] }
 0x1c4   : > { %1776 = vmatmul.mubr.f32.vlgmr.msra.gmra.mrb[0].mxu0 %v9322_v9 }
 0x1c5   : > { %1781 = vmatprep.mubr.f32.mxu0 %v10366_v0  ;;  %7106 = vmatpush1.bf16.msra.mxu0 %v7105_v4  ;;  %v1709_v4 = vld [vmem:[#allocation3 + $0x8f0] sm:$0xff] }
 0x1c6   : > { %7108 = vmatprep.subr.bf16.mxu0 %v7107_v25  ;;  %v2495_v25 = vld [vmem:[#allocation10 + $0x180] sm:$0xff]  ;;  %v7133_v32 = vpack.c.bf16 %v1709_v4, %v1703_v18  ;;  %v2509_v4 = vld [vmem:[#allocation10 + $0x1f0] sm:$0xff] }
 0x1c7   : > { %v7169_v50 = vpack.c.bf16 %v2498_v27, %v2495_v25  ;;  %v2531_v18 = vld [vmem:[#allocation10 + $0x2a0] sm:$0xff]  ;;  %v2512_v25 = vld [vmem:[#allocation10 + $0x208] sm:$0xff] }
 0x1c8   : > { %1782 = vmatmul.mubr.f32.gmra.mrb[2].mxu0 %v9328_v16  ;;  %v7335_v28 = vpack.c.bf16 %v2512_v25, %v2509_v4 }
 0x1c9   : > { %1787 = vmatprep.mubr.f32.mxu0 %v10366_v0  ;;  %7110 = vmatpush1.bf16.msra.mxu0 %v7109_v58  ;;  %v2502_v58 = vld [vmem:[#allocation10 + $0x1b8] sm:$0xff] }
 0x1ca   : > { %7112 = vmatprep.subr.bf16.mxu0 %v7111_v29  ;;  %v2505_v29 = vld [vmem:[#allocation10 + $0x1d0] sm:$0xff]  ;;  %7170 = vmatpush1.bf16.msra.mxu1 %v7169_v50 }
 0x1cb   : > { %v7171_v35 = vpack.c.bf16 %v2505_v29, %v2502_v58  ;;  %v2464_v58 = vld [vmem:[#allocation10 + $0x88] sm:$0xff]  ;;  %v2515_v29 = vld [vmem:[#allocation10 + $0x220] sm:$0xff] }
 0x1cc   : > { %1788 = vmatmul.mubr.f32.gmra.mrb[4].mxu0 %v9334_v21 }
 0x1cd   : > { %1793 = vmatprep.mubr.f32.mxu0 %v10366_v0  ;;  %7114 = vmatpush1.bf16.msra.mxu0 %v7113_v37  ;;  %v2504_v37 = vld [vmem:[#allocation10 + $0x1c8] sm:$0xff] }
 0x1ce   : > { %7116 = vmatprep.subr.bf16.mxu0 %v7115_v39  ;;  %7172 = vmatprep.subr.bf16.mxu1 %v7171_v35  ;;  %v7173_v39 = vpack.c.bf16 %v2504_v37, %v2501_v2  ;;  %v7337_v35 = vpack.c.bf16 %v2464_v58, %v2461_v30  ;;  %v2470_v2 = vld [vmem:[#allocation10 + $0xb8] sm:$0xff]  ;;  %v2521_v37 = vld [vmem:[#allocation10 + $0x250] sm:$0xff] }
 0x1d0   : > { %1794 = vmatmul.mubr.f32.gmra.mrb[6].mxu0 %v9340_v19  ;;  %7174 = vmatpush1.bf16.msra.mxu1 %v7173_v39  ;;  %v2524_v39 = vld [vmem:[#allocation10 + $0x268] sm:$0xff] }
 0x1d1   : > { %1799 = vmatprep.mubr.f32.mxu0 %v10366_v0  ;;  %7118 = vmatpush1.bf16.msra.mxu0 %v7117_v5  ;;  %v2510_v5 = vld [vmem:[#allocation10 + $0x1f8] sm:$0xff]  ;;  %v7343_v31 = vpack.c.bf16 %v2524_v39, %v2521_v37 }
 0x1d2   : > { %7120 = vmatprep.subr.bf16.mxu0 %v7119_v46  ;;  %7176 = vmatprep.subr.bf16.mxu1 %v7175_v43  ;;  %v7177_v46 = vpack.c.bf16 %v2510_v5, %v2507_v44  ;;  %v2473_v43 = vld [vmem:[#allocation10 + $0xd0] sm:$0xff]  ;;  %v2527_v44 = vld [vmem:[#allocation10 + $0x280] sm:$0xff]  ;;  %v2530_v5 = vld [vmem:[#allocation10 + $0x298] sm:$0xff] }
 0x1d3   : > { %v7347_v34 = vpack.c.bf16 %v2530_v5, %v2527_v44 }
 0x1d4   : > { %1800 = vmatmul.mubr.f32.gmra.mrb[8].mxu0 %v9346_v20  ;;  %7178 = vmatpush1.bf16.msra.mxu1 %v7177_v46 }
 0x1d5   : > { %1805 = vmatprep.mubr.f32.mxu0 %v10366_v0  ;;  %7122 = vmatpush1.bf16.msra.mxu0 %v7121_v52  ;;  %v2516_v52 = vld [vmem:[#allocation10 + $0x228] sm:$0xff] }
 0x1d6   : > { %7124 = vmatprep.subr.bf16.mxu0 %v7123_v57  ;;  %7180 = vmatprep.subr.bf16.mxu1 %v7179_v51  ;;  %v7181_v53 = vpack.c.bf16 %v2516_v52, %v2513_v45  ;;  %v2523_v57 = vld [vmem:[#allocation10 + $0x260] sm:$0xff]  ;;  %v2533_v51 = vld [vmem:[#allocation10 + $0x2b0] sm:$0xff]  ;;  %v2536_v45 = vld [vmem:[#allocation10 + $0x2c8] sm:$0xff] }
 0x1d7   : > { %v7183_v60 = vpack.c.bf16 %v2523_v57, %v2520_v48  ;;  %v2541_v57 = vld [vmem:[#allocation10 + $0x2f0] sm:$0xff] }
 0x1d8   : > { %1806 = vmatmul.mubr.f32.gmra.mrb[10].mxu0 %v9352_v22  ;;  %7182 = vmatpush1.bf16.msra.mxu1 %v7181_v53  ;;  %v7351_v53 = vpack.c.bf16 %v2536_v45, %v2533_v51 }
 0x1d9   : > { %1811 = vmatprep.mubr.f32.mxu0 %v10366_v0  ;;  %7126 = vmatpush1.bf16.msra.mxu0 %v7125_v41  ;;  %v2452_v41 = vld [vmem:[#allocation10 + $0x28] sm:$0xff] }
 0x1da   : > { %7128 = vmatprep.subr.bf16.mxu0 %v7127_v8  ;;  %7184 = vmatprep.subr.bf16.mxu1 %v7183_v60  ;;  %v2503_v8 = vld [vmem:[#allocation10 + $0x1c0] sm:$0xff]  ;;  %v7329_v12 = vpack.c.bf16 %v2452_v41, %v2449_v56  ;;  %v7357_v56 = vpack.c.bf16 %v2494_v1, %v2491_v61 }
 0x1db   : > { %v7331_v15 = vpack.c.bf16 %v2506_v24, %v2503_v8  ;;  %v2547_v41 = vld [vmem:[#allocation10 + $0x320] sm:$0xff]  ;;  %v2196_v24 = vlaneseq }
 0x1dc   : > { %1812 = vmatmul.mubr.f32.gmra.mrb[12].mxu0 %v9358_v17  ;;  %7186 = vmatpush1.bf16.msra.mxu1 %v7185_v11  ;;  %v7197_v11 = vpack.c.bf16 %v2540_v26, %v2537_v59 }
 0x1dd   : > { %1817 = vmatprep.mubr.f32.mxu0 %v10366_v0  ;;  %7130 = vmatpush1.bf16.msra.mxu0 %v7129_v62  ;;  %v2458_v62 = vld [vmem:[#allocation10 + $0x58] sm:$0xff] }
 0x1de   : > { %7132 = vmatprep.subr.bf16.mxu0 %v7131_v42  ;;  %7188 = vmatprep.subr.bf16.mxu1 %v7187_v6  ;;  %v2534_v42 = vld [vmem:[#allocation10 + $0x2b8] sm:$0xff]  ;;  %v7333_v50 = vpack.c.bf16 %v2458_v62, %v2455_v14  ;;  %v2544_v6 = vld [vmem:[#allocation10 + $0x308] sm:$0xff] }
 0x1df   : > { %v7193_v27 = vpack.c.bf16 %v2534_v42, %v2531_v18  ;;  %v7199_v3 = vpack.c.bf16 %v2547_v41, %v2544_v6 }
 0x1e0   : > { %1818 = vmatmul.mubr.f32.gmra.mrb[14].mxu0 %v9364_v38  ;;  %7190 = vmatpush1.bf16.msra.mxu1 %v7189_v13  ;;  %v9454_v13 = vshrl.u32 %v2196_v24, 7 }
 0x1e1   : > { %1823 = vmatprep.mubr.f32.mxu0 %v10366_v0  ;;  %7134 = vmatpush1.bf16.msra.mxu0 %v7133_v32  ;;  %v2518_v32 = vld [vmem:[#allocation10 + $0x238] sm:$0xff] }
 0x1e2   : > { %7328 = vmatprep.subr.bf16.mxu0 %v7327_v36  ;;  %7192 = vmatprep.subr.bf16.mxu1 %v7191_v33  ;;  %v7339_v36 = vpack.c.bf16 %v2518_v32, %v2515_v29  ;;  %v10364_v54 = vsub.s32 2, %v9454_v13 }
 0x1e4   : > { %1824 = vmatmul.mubr.f32.gmra.mrb[16].mxu0 %v9370_v47  ;;  %7194 = vmatpush1.bf16.msra.mxu1 %v7193_v27 }
 0x1e5   : > { %1829 = vmatprep.mubr.f32.mxu0 %v10366_v0 }
 0x1e8   : > { %1830 = vmatmul.mubr.f32.gmra.mrb[18].mxu0 %v9376_v55 }
 0x1e9   : > { %1835 = vmatprep.mubr.f32.mxu0 %v10366_v0 }
 0x1ec   : > { %1836 = vmatmul.mubr.f32.gmra.mrb[20].mxu0 %v9382_v63 }
 0x1ed   : > { %1841 = vmatprep.mubr.f32.mxu0 %v10366_v0 }
 0x1f0   : > { %1842 = vmatmul.mubr.f32.gmra.mrb[22].mxu0 %v9388_v23 }
 0x1f1   : > { %2049 = vmatprep.mubr.f32.mxu0 %v10366_v0 }
 0x1f4   : > { %2050 = vmatmul.mubr.f32.vlgmr.msra.gmra.mrb[24].mxu0 %v9322_v9  ;;  %v2467_v9 = vld [vmem:[#allocation10 + $0xa0] sm:$0xff] }
 0x1f5   : > { %2055 = vmatprep.mubr.f32.mxu0 %v10366_v0  ;;  %7330 = vmatpush3.bf16.msra.mxu0 %v7329_v12  ;;  %v7341_v40 = vpack.c.bf16 %v2470_v2, %v2467_v9  ;;  %v10362_v12 = vsub.s32 3, %v9454_v13 }
 0x1f6   : > { %7332 = vmatprep.subr.bf16.mxu0 %v7331_v15 }
 0x1f8   : > { %2056 = vmatmul.mubr.f32.gmra.mrb[26].mxu0 %v9328_v16  ;;  %v2476_v16 = vld [vmem:[#allocation10 + $0xe8] sm:$0xff] }
 0x1f9   : > { %2061 = vmatprep.mubr.f32.mxu0 %v10366_v0  ;;  %7334 = vmatpush3.bf16.msra.mxu0 %v7333_v50  ;;  %v7345_v46 = vpack.c.bf16 %v2476_v16, %v2473_v43 }
 0x1fa   : > { %7336 = vmatprep.subr.bf16.mxu0 %v7335_v28 }
 0x1fc   : > { %2062 = vmatmul.mubr.f32.gmra.mrb[28].mxu0 %v9334_v21  ;;  %v2482_v21 = vld [vmem:[#allocation10 + $0x118] sm:$0xff] }
 0x1fd   : > { %2067 = vmatprep.mubr.f32.mxu0 %v10366_v0  ;;  %7338 = vmatpush3.bf16.msra.mxu0 %v7337_v35  ;;  %v7349_v52 = vpack.c.bf16 %v2482_v21, %v2479_v49 }
 0x1fe   : > { %7340 = vmatprep.subr.bf16.mxu0 %v7339_v36 }
 0x200   : > { %2068 = vmatmul.mubr.f32.gmra.mrb[30].mxu0 %v9340_v19  ;;  %v2485_v19 = vld [vmem:[#allocation10 + $0x130] sm:$0xff] }
 0x201   : > { %2073 = vmatprep.mubr.f32.mxu0 %v10366_v0  ;;  %7342 = vmatpush3.bf16.msra.mxu0 %v7341_v40 }
 0x202   : > { %7344 = vmatprep.subr.bf16.mxu0 %v7343_v31 }
 0x204   : > { %2074 = vmatmul.mubr.f32.gmra.mrb[32].mxu0 %v9346_v20  ;;  %v2488_v20 = vld [vmem:[#allocation10 + $0x148] sm:$0xff] }
 0x205   : > { %2079 = vmatprep.mubr.f32.mxu0 %v10366_v0  ;;  %7346 = vmatpush3.bf16.msra.mxu0 %v7345_v46  ;;  %v7353_v48 = vpack.c.bf16 %v2488_v20, %v2485_v19 }
 0x206   : > { %7348 = vmatprep.subr.bf16.mxu0 %v7347_v34 }
 0x208   : > { %2080 = vmatmul.mubr.f32.gmra.mrb[34].mxu0 %v9352_v22  ;;  %v2538_v22 = vld [vmem:[#allocation10 + $0x2d8] sm:$0xff] }
 0x209   : > { %2085 = vmatprep.mubr.f32.mxu0 %v10366_v0  ;;  %7350 = vmatpush3.bf16.msra.mxu0 %v7349_v52  ;;  %v7195_v60 = vpack.c.bf16 %v2541_v57, %v2538_v22 }
 0x20a   : > { %7352 = vmatprep.subr.bf16.mxu0 %v7351_v53 }
 0x20b   : > { %7196 = vmatprep.subr.bf16.mxu1 %v7195_v60 }
 0x20c   : > { %2086 = vmatmul.mubr.f32.gmra.mrb[36].mxu0 %v9358_v17  ;;  %v2539_v17 = vld [vmem:[#allocation10 + $0x2e0] sm:$0xff]  ;;  %7198 = vmatpush1.bf16.msra.mxu1 %v7197_v11 }
 0x20d   : > { %2091 = vmatprep.mubr.f32.mxu0 %v10366_v0  ;;  %7354 = vmatpush3.bf16.msra.mxu0 %v7353_v48 }
 0x20e   : > { %7200 = vmatprep.subr.bf16.mxu1 %v7199_v3 }
 0x210   : > { %2092 = vmatmul.mubr.f32.gmra.mrb[38].mxu0 %v9364_v38  ;;  %v2542_v38 = vld [vmem:[#allocation10 + $0x2f8] sm:$0xff] }
 0x211   : > { %2097 = vmatprep.mubr.f32.mxu0 %v10366_v0 }
 0x214   : > { %2098 = vmatmul.mubr.f32.gmra.mrb[40].mxu0 %v9370_v47  ;;  %v7355_v47 = vpack.c.bf16 %v2542_v38, %v2539_v17 }
 0x215   : > { %2103 = vmatprep.mubr.f32.mxu0 %v10366_v0 }
 0x216   : > { %7356 = vmatprep.subr.bf16.mxu0 %v7355_v47 }
 0x217   : > { %7358 = vmatpush3.bf16.msra.mxu0 %v7357_v56 }
 0x218   : > { %2104 = vmatmul.mubr.f32.gmra.mrb[42].mxu0 %v9376_v55  ;;  %v2593_v55 = vld [vmem:[#allocation10 + $0x490] sm:$0xff] }
 0x219   : > { %2109 = vmatprep.mubr.f32.mxu0 %v10366_v0  ;;  %v7359_v8 = vpack.c.bf16 %v2596_v7, %v2593_v55 }
 0x21b   : > { %7360 = vmatprep.subr.bf16.mxu0 %v7359_v8 }
 0x21c   : > { %2110 = vmatmul.mubr.f32.gmra.mrb[44].mxu0 %v9382_v63  ;;  %v9463_v63 = vrot.slane %v9457_v10, %v10364_v54  ;;  %v2551_v54 = vld [vmem:[#allocation10 + $0x340] sm:$0xff] }
 0x21d   : > { %2115 = vmatprep.mubr.f32.mxu0 %v10366_v0  ;;  %v2562_v0 = vld [vmem:[#allocation10 + $0x398] sm:$0xff] }
 0x220   : > { %2116 = vmatmul.mubr.f32.gmra.mrb[46].mxu0 %v9388_v23  ;;  %v9469_v23 = vrot.slane %v9457_v10, %v10362_v12  ;;  %v2556_v12 = vld [vmem:[#allocation10 + $0x368] sm:$0xff] }
 0x249   : > { %v1914_v14 = vpop.f32.mrb[0].mxu1 }
 0x24a   : > { %v2228_v33 = vadd.f32 %v9463_v63, %v1914_v14  ;;  %v1916_v15 = vpop.f32.mrb[1].mxu1 }
 0x24b   : > { %v2229_v62 = vadd.f32 %v9469_v23, %v1916_v15 }
 0x24c   : > { %v9478_v18 = vmax.f32 %v2228_v33, 0.0 }
 0x24d   : > { %v9480_v42 = vmax.f32 %v2229_v62, 0.0  ;;  %v1920_v4 = vpop.f32.mrb[2].mxu1 }
 0x24e   : > { %6375 = vst [vmem:[%s9475_s23 + $0xc0] sm:$0xff] %v9478_v18  ;;  %v2234_v25 = vadd.f32 %v9463_v63, %v1920_v4  ;;  %v1922_v27 = vpop.f32.mrb[3].mxu1 }
 0x24f   : > { %6387 = vst [vmem:[%s9475_s23 + $0x120] sm:$0xff] %v9480_v42  ;;  %v2235_v50 = vadd.f32 %v9469_v23, %v1922_v27 }
 0x250   : > { %v9488_v28 = vmax.f32 %v2234_v25, 0.0 }
 0x251   : > { %v9490_v30 = vmax.f32 %v2235_v50, 0.0  ;;  %v1926_v58 = vpop.f32.mrb[4].mxu1 }
 0x252   : > { %6376 = vst [vmem:[%s9475_s23 + $0xc8] sm:$0xff] %v9488_v28  ;;  %v9495_v29 = vadd.f32 %v9463_v63, %v1926_v58  ;;  %v1928_v32 = vpop.f32.mrb[5].mxu1 }
 0x253   : > { %6388 = vst [vmem:[%s9475_s23 + $0x128] sm:$0xff] %v9490_v30  ;;  %v2241_v35 = vadd.f32 %v9469_v23, %v1928_v32 }
 0x254   : > { %v2312_v36 = vmax.f32 %v9495_v29, 0.0 }
 0x255   : > { %v9501_v9 = vmax.f32 %v2241_v35, 0.0  ;;  %v1932_v2 = vpop.f32.mrb[6].mxu1 }
 0x256   : > { %6377 = vst [vmem:[%s9475_s23 + $0xd0] sm:$0xff] %v2312_v36  ;;  %v9507_v37 = vadd.f32 %v9463_v63, %v1932_v2  ;;  %v1934_v39 = vpop.f32.mrb[7].mxu1 }
 0x257   : > { %6389 = vst [vmem:[%s9475_s23 + $0x130] sm:$0xff] %v9501_v9  ;;  %v2247_v40 = vadd.f32 %v9469_v23, %v1934_v39 }
 0x258   : > { %v2318_v31 = vmax.f32 %v9507_v37, 0.0 }
 0x259   : > { %v9513_v43 = vmax.f32 %v2247_v40, 0.0  ;;  %v1938_v16 = vpop.f32.mrb[8].mxu1 }
 0x25a   : > { %6378 = vst [vmem:[%s9475_s23 + $0xd8] sm:$0xff] %v2318_v31  ;;  %v9519_v44 = vadd.f32 %v9463_v63, %v1938_v16  ;;  %v1940_v5 = vpop.f32.mrb[9].mxu1 }
 0x25b   : > { %6390 = vst [vmem:[%s9475_s23 + $0x138] sm:$0xff] %v9513_v43  ;;  %v9524_v46 = vadd.f32 %v9469_v23, %v1940_v5  ;;  %v10365_v5 = vsub.s32 0, %v9454_v13 }
 0x25c   : > { %v2324_v34 = vmax.f32 %v9519_v44, 0.0  ;;  %v2651_v44 = vld [vmem:[#allocation10 + $0x660] sm:$0xff] }
 0x25d   : > { %v2325_v49 = vmax.f32 %v9524_v46, 0.0  ;;  %v1944_v21 = vpop.f32.mrb[10].mxu1 }
 0x25e   : > { %6379 = vst [vmem:[%s9475_s23 + $0xe0] sm:$0xff] %v2324_v34  ;;  %v9532_v51 = vadd.f32 %v9463_v63, %v1944_v21  ;;  %v1946_v45 = vpop.f32.mrb[11].mxu1  ;;  %v10363_v21 = vsub.s32 1, %v9454_v13 }
 0x25f   : > { %6391 = vst [vmem:[%s9475_s23 + $0x140] sm:$0xff] %v2325_v49  ;;  %v9538_v52 = vadd.f32 %v9469_v23, %v1946_v45 }
 0x260   : > { %v2330_v53 = vmax.f32 %v9532_v51, 0.0  ;;  %v2657_v51 = vld [vmem:[#allocation10 + $0x690] sm:$0xff] }
 0x261   : > { %v2331_v19 = vmax.f32 %v9538_v52, 0.0  ;;  %v1950_v20 = vpop.f32.mrb[12].mxu1 }
 0x262   : > { %6380 = vst [vmem:[%s9475_s23 + $0xe8] sm:$0xff] %v2330_v53  ;;  %v9546_v48 = vadd.f32 %v9463_v63, %v1950_v20  ;;  %v1952_v22 = vpop.f32.mrb[13].mxu1  ;;  %v2543_v20 = vld [vmem:[#allocation10 + $0x300] sm:$0xff] }
 0x263   : > { %6392 = vst [vmem:[%s9475_s23 + $0x148] sm:$0xff] %v2331_v19  ;;  %v9552_v57 = vadd.f32 %v9469_v23, %v1952_v22  ;;  %v2546_v22 = vld [vmem:[#allocation10 + $0x318] sm:$0xff] }
 0x264   : > { %v2336_v60 = vmax.f32 %v9546_v48, 0.0 }
 0x265   : > { %v2337_v59 = vmax.f32 %v9552_v57, 0.0  ;;  %v1956_v26 = vpop.f32.mrb[14].mxu1 }
 0x266   : > { %6381 = vst [vmem:[%s9475_s23 + $0xf0] sm:$0xff] %v2336_v60  ;;  %v9560_v17 = vadd.f32 %v9463_v63, %v1956_v26  ;;  %v1958_v11 = vpop.f32.mrb[15].mxu1 }
 0x267   : > { %6393 = vst [vmem:[%s9475_s23 + $0x150] sm:$0xff] %v2337_v59  ;;  %v9566_v38 = vadd.f32 %v9469_v23, %v1958_v11 }
 0x268   : > { %v2342_v61 = vmax.f32 %v9560_v17, 0.0 }
 0x269   : > { %v2343_v1 = vmax.f32 %v9566_v38, 0.0  ;;  %v1962_v47 = vpop.f32.mrb[16].mxu1 }
 0x26a   : > { %6382 = vst [vmem:[%s9475_s23 + $0xf8] sm:$0xff] %v2342_v61  ;;  %v9574_v56 = vadd.f32 %v9463_v63, %v1962_v47  ;;  %v1964_v6 = vpop.f32.mrb[17].mxu1  ;;  %v2550_v47 = vld [vmem:[#allocation10 + $0x338] sm:$0xff] }
 0x26b   : > { %6394 = vst [vmem:[%s9475_s23 + $0x158] sm:$0xff] %v2343_v1  ;;  %v9580_v41 = vadd.f32 %v9469_v23, %v1964_v6  ;;  %v2545_v6 = vld [vmem:[#allocation10 + $0x310] sm:$0xff] }
 0x26c   : > { %v2348_v3 = vmax.f32 %v9574_v56, 0.0 }
 0x26d   : > { %v2349_v55 = vmax.f32 %v9580_v41, 0.0  ;;  %v1968_v7 = vpop.f32.mrb[18].mxu1 }
 0x26e   : > { %6383 = vst [vmem:[%s9475_s23 + $0x100] sm:$0xff] %v2348_v3  ;;  %v2282_v8 = vadd.f32 %v9463_v63, %v1968_v7  ;;  %v1970_v24 = vpop.f32.mrb[19].mxu1  ;;  %v2548_v7 = vld [vmem:[#allocation10 + $0x328] sm:$0xff] }
 0x26f   : > { %6395 = vst [vmem:[%s9475_s23 + $0x160] sm:$0xff] %v2349_v55  ;;  %v9592_v14 = vadd.f32 %v9469_v23, %v1970_v24  ;;  %v2553_v24 = vld [vmem:[#allocation10 + $0x350] sm:$0xff] }
 0x270   : > { %v2354_v33 = vmax.f32 %v2282_v8, 0.0 }
 0x271   : > { %v10368_v15 = vmax.f32 %v9592_v14, 0.0  ;;  %v1974_v62 = vpop.f32.mrb[20].mxu1 }
 0x272   : > { %6384 = vst [vmem:[%s9475_s23 + $0x108] sm:$0xff] %v2354_v33  ;;  %v2288_v4 = vadd.f32 %v9463_v63, %v1974_v62  ;;  %v1976_v25 = vpop.f32.mrb[21].mxu1  ;;  %v2599_v33 = vld [vmem:[#allocation10 + $0x4c0] sm:$0xff]  ;;  %v2602_v62 = vld [vmem:[#allocation10 + $0x4d8] sm:$0xff] }
 0x273   : > { %6396 = vst [vmem:[%s9475_s23 + $0x168] sm:$0xff] %v10368_v15  ;;  %v2289_v27 = vadd.f32 %v9469_v23, %v1976_v25  ;;  %v2557_v15 = vld [vmem:[#allocation10 + $0x370] sm:$0xff] }
 0x274   : > { %v2360_v50 = vmax.f32 %v2288_v4, 0.0 }
 0x275   : > { %v2361_v58 = vmax.f32 %v2289_v27, 0.0 }
 0x276   : > { %v1980_v32 = vpop.f32.mrb[22].mxu1  ;;  %6385 = vst [vmem:[%s9475_s23 + $0x110] sm:$0xff] %v2360_v50  ;;  %v7201_v50 = vpack.c.bf16 %v2546_v22, %v2543_v20  ;;  %v2605_v20 = vld [vmem:[#allocation10 + $0x4f0] sm:$0xff]  ;;  %v2608_v22 = vld [vmem:[#allocation10 + $0x508] sm:$0xff] }
 0x277   : > { %v2294_v35 = vadd.f32 %v9463_v63, %v1980_v32  ;;  %v1982_v2 = vpop.f32.mrb[23].mxu1  ;;  %6397 = vst [vmem:[%s9475_s23 + $0x170] sm:$0xff] %v2361_v58  ;;  %v9618_v63 = vrot.slane %v9457_v10, %v10365_v5  ;;  %v2549_v58 = vld [vmem:[#allocation10 + $0x330] sm:$0xff]  ;;  %v2552_v32 = vld [vmem:[#allocation10 + $0x348] sm:$0xff] }
 0x278   : > { %v2295_v39 = vadd.f32 %v9469_v23, %v1982_v2  ;;  %v9623_v23 = vrot.slane %v9457_v10, %v10363_v21  ;;  %v7363_v21 = vpack.c.bf16 %v2602_v62, %v2599_v33  ;;  %v2558_v33 = vld [vmem:[#allocation10 + $0x378] sm:$0xff] }
 0x279   : > { %v9605_v40 = vmax.f32 %v2294_v35, 0.0  ;;  %v7361_v35 = vpack.c.bf16 %v2548_v7, %v2545_v6 }
 0x27a   : > { %v9607_v16 = vmax.f32 %v2295_v39, 0.0 }
 0x27b   : > { %6386 = vst [vmem:[%s9475_s23 + $0x118] sm:$0x7] %v9605_v40 }
 0x27c   : > { %6398 = vst [vmem:[%s9475_s23 + $0x178] sm:$0x7] %v9607_v16 }
 0x297   : > { %v1777_v45 = vpop.f32.mrb[0].mxu0 }
 0x298   : > { %v2226_v26 = vadd.f32 %v9618_v63, %v1777_v45  ;;  %v1779_v11 = vpop.f32.mrb[1].mxu0  ;;  %v7203_v45 = vpack.c.bf16 %v2553_v24, %v2550_v47  ;;  %v7205_v47 = vpack.c.bf16 %v2552_v32, %v2549_v58  ;;  %v2555_v24 = vld [vmem:[#allocation10 + $0x360] sm:$0xff] }
 0x299   : > { %v2227_v8 = vadd.f32 %v9623_v23, %v1779_v11  ;;  %v2554_v11 = vld [vmem:[#allocation10 + $0x358] sm:$0xff]  ;;  %v2611_v58 = vld [vmem:[#allocation10 + $0x520] sm:$0xff] }
 0x29a   : > { %v2298_v4 = vmax.f32 %v2226_v26, 0.0  ;;  %v2559_v26 = vld [vmem:[#allocation10 + $0x380] sm:$0xff]  ;;  %v7365_v62 = vpack.c.bf16 %v2554_v11, %v2551_v54  ;;  %v2614_v54 = vld [vmem:[#allocation10 + $0x538] sm:$0xff]  ;;  %v2564_v11 = vld [vmem:[#allocation10 + $0x3a8] sm:$0xff] }
 0x29b   : > { %v2299_v25 = vmax.f32 %v2227_v8, 0.0  ;;  %v1783_v27 = vpop.f32.mrb[2].mxu0 }
 0x29c   : > { %2370 = vst [vmem:[%s9475_s23] sm:$0xff] %v2298_v4  ;;  %v2232_v2 = vadd.f32 %v9618_v63, %v1783_v27  ;;  %v1785_v39 = vpop.f32.mrb[3].mxu0 }
 0x29d   : > { %6363 = vst [vmem:[%s9475_s23 + $0x60] sm:$0xff] %v2299_v25  ;;  %v2233_v5 = vadd.f32 %v9623_v23, %v1785_v39  ;;  %2799 = vmatprep.mubr.f32.mxu1 %v2299_v25  ;;  %3210 = vmatprep.mubr.f32.mxu0 %v2299_v25  ;;  %v7207_v25 = vpack.c.bf16 %v2559_v26, %v2556_v12 }
 0x29e   : > { %v2304_v8 = vmax.f32 %v2232_v2, 0.0  ;;  %2800 = vmatmul.mubr.f32.vlgmr.msra.gmra.mrb[24].mxu1 %v2298_v4  ;;  %3211 = vmatmul.mubr.f32.vlgmr.msra.gmra.mrb[48].mxu0 %v2298_v4  ;;  %v7367_v2 = vpack.c.bf16 %v2608_v22, %v2605_v20  ;;  %v2560_v4 = vld [vmem:[#allocation10 + $0x388] sm:$0xff] }
 0x29f   : > { %v2305_v6 = vmax.f32 %v2233_v5, 0.0  ;;  %7202 = vmatpush1.bf16.msra.mxu1 %v7201_v50  ;;  %v1789_v7 = vpop.f32.mrb[4].mxu0  ;;  %7362 = vmatpush3.bf16.msra.mxu0 %v7361_v35  ;;  %v2565_v50 = vld [vmem:[#allocation10 + $0x3b0] sm:$0xff]  ;;  %v7369_v26 = vpack.c.bf16 %v2560_v4, %v2557_v15  ;;  %v2620_v15 = vld [vmem:[#allocation10 + $0x568] sm:$0xff] }
 0x2a0   : > { %2371 = vst [vmem:[%s9475_s23 + $0x8] sm:$0xff] %v2304_v8  ;;  %v2238_v27 = vadd.f32 %v9618_v63, %v1789_v7  ;;  %v1791_v39 = vpop.f32.mrb[5].mxu0  ;;  %7204 = vmatprep.subr.bf16.mxu1 %v7203_v45  ;;  %7364 = vmatprep.subr.bf16.mxu0 %v7363_v21  ;;  %v7209_v21 = vpack.c.bf16 %v2558_v33, %v2555_v24  ;;  %v2561_v45 = vld [vmem:[#allocation10 + $0x390] sm:$0xff]  ;;  %v2568_v7 = vld [vmem:[#allocation10 + $0x3c8] sm:$0xff]  ;;  %v2571_v24 = vld [vmem:[#allocation10 + $0x3e0] sm:$0xff] }
 0x2a1   : > { %6364 = vst [vmem:[%s9475_s23 + $0x68] sm:$0xff] %v2305_v6  ;;  %v2239_v5 = vadd.f32 %v9623_v23, %v1791_v39  ;;  %2805 = vmatprep.mubr.f32.mxu1 %v2305_v6  ;;  %3215 = vmatprep.mubr.f32.mxu0 %v2305_v6  ;;  %v7211_v6 = vpack.c.bf16 %v2565_v50, %v2562_v0  ;;  %v2563_v39 = vld [vmem:[#allocation10 + $0x3a0] sm:$0xff]  ;;  %v2617_v33 = vld [vmem:[#allocation10 + $0x550] sm:$0xff] }
 0x2a2   : > { %v2310_v32 = vmax.f32 %v2238_v27, 0.0  ;;  %2806 = vmatmul.mubr.f32.gmra.mrb[26].mxu1 %v2304_v8  ;;  %3216 = vmatmul.mubr.f32.gmra.mrb[50].mxu0 %v2304_v8  ;;  %v7371_v27 = vpack.c.bf16 %v2614_v54, %v2611_v58  ;;  %v2566_v8 = vld [vmem:[#allocation10 + $0x3b8] sm:$0xff] }
 0x2a3   : > { %v2311_v35 = vmax.f32 %v2239_v5, 0.0  ;;  %7206 = vmatpush1.bf16.msra.mxu1 %v7205_v47  ;;  %v1795_v12 = vpop.f32.mrb[6].mxu0  ;;  %7366 = vmatpush3.bf16.msra.mxu0 %v7365_v62  ;;  %v2570_v5 = vld [vmem:[#allocation10 + $0x3d8] sm:$0xff]  ;;  %v7373_v50 = vpack.c.bf16 %v2566_v8, %v2563_v39 }
 0x2a4   : > { %2372 = vst [vmem:[%s9475_s23 + $0x10] sm:$0xff] %v2310_v32  ;;  %v2244_v20 = vadd.f32 %v9618_v63, %v1795_v12  ;;  %v1797_v22 = vpop.f32.mrb[7].mxu0  ;;  %7208 = vmatprep.subr.bf16.mxu1 %v7207_v25  ;;  %7368 = vmatprep.subr.bf16.mxu0 %v7367_v2  ;;  %v7213_v25 = vpack.c.bf16 %v2564_v11, %v2561_v45  ;;  %v2567_v2 = vld [vmem:[#allocation10 + $0x3c0] sm:$0xff]  ;;  %v2574_v12 = vld [vmem:[#allocation10 + $0x3f8] sm:$0xff]  ;;  %v2577_v45 = vld [vmem:[#allocation10 + $0x410] sm:$0xff] }
 0x2a5   : > { %6365 = vst [vmem:[%s9475_s23 + $0x70] sm:$0xff] %v2311_v35  ;;  %v2245_v47 = vadd.f32 %v9623_v23, %v1797_v22  ;;  %2811 = vmatprep.mubr.f32.mxu1 %v2311_v35  ;;  %3220 = vmatprep.mubr.f32.mxu0 %v2311_v35  ;;  %v7215_v35 = vpack.c.bf16 %v2571_v24, %v2568_v7  ;;  %v2569_v22 = vld [vmem:[#allocation10 + $0x3d0] sm:$0xff]  ;;  %v2623_v11 = vld [vmem:[#allocation10 + $0x580] sm:$0xff] }
 0x2a6   : > { %v2316_v62 = vmax.f32 %v2244_v20, 0.0  ;;  %2812 = vmatmul.mubr.f32.gmra.mrb[28].mxu1 %v2310_v32  ;;  %3221 = vmatmul.mubr.f32.gmra.mrb[52].mxu0 %v2310_v32  ;;  %v7375_v20 = vpack.c.bf16 %v2620_v15, %v2617_v33  ;;  %v2572_v32 = vld [vmem:[#allocation10 + $0x3e8] sm:$0xff]  ;;  %v7217_v7 = vpack.c.bf16 %v2570_v5, %v2567_v2  ;;  %v2583_v2 = vld [vmem:[#allocation10 + $0x440] sm:$0xff]  ;;  %v2629_v5 = vld [vmem:[#allocation10 + $0x5b0] sm:$0xff] }
 0x2a7   : > { %v2317_v4 = vmax.f32 %v2245_v47, 0.0  ;;  %7210 = vmatpush1.bf16.msra.mxu1 %v7209_v21  ;;  %v1801_v0 = vpop.f32.mrb[8].mxu0  ;;  %7370 = vmatpush3.bf16.msra.mxu0 %v7369_v26  ;;  %v2626_v26 = vld [vmem:[#allocation10 + $0x598] sm:$0xff]  ;;  %v2576_v47 = vld [vmem:[#allocation10 + $0x408] sm:$0xff]  ;;  %v7377_v24 = vpack.c.bf16 %v2572_v32, %v2569_v22 }
 0x2a8   : > { %2373 = vst [vmem:[%s9475_s23 + $0x18] sm:$0xff] %v2316_v62  ;;  %v2250_v58 = vadd.f32 %v9618_v63, %v1801_v0  ;;  %v1803_v54 = vpop.f32.mrb[9].mxu0  ;;  %7212 = vmatprep.subr.bf16.mxu1 %v7211_v6  ;;  %7372 = vmatprep.subr.bf16.mxu0 %v7371_v27  ;;  %v2573_v27 = vld [vmem:[#allocation10 + $0x3f0] sm:$0xff]  ;;  %v2580_v0 = vld [vmem:[#allocation10 + $0x428] sm:$0xff] }
 0x2a9   : > { %6366 = vst [vmem:[%s9475_s23 + $0x78] sm:$0xff] %v2317_v4  ;;  %v2251_v21 = vadd.f32 %v9623_v23, %v1803_v54  ;;  %2817 = vmatprep.mubr.f32.mxu1 %v2317_v4  ;;  %3225 = vmatprep.mubr.f32.mxu0 %v2317_v4  ;;  %v7219_v4 = vpack.c.bf16 %v2577_v45, %v2574_v12  ;;  %v2575_v54 = vld [vmem:[#allocation10 + $0x400] sm:$0xff] }
 0x2aa   : > { %v2322_v39 = vmax.f32 %v2250_v58, 0.0  ;;  %2818 = vmatmul.mubr.f32.gmra.mrb[30].mxu1 %v2316_v62  ;;  %3226 = vmatmul.mubr.f32.gmra.mrb[54].mxu0 %v2316_v62  ;;  %v7379_v58 = vpack.c.bf16 %v2626_v26, %v2623_v11  ;;  %v2578_v62 = vld [vmem:[#allocation10 + $0x418] sm:$0xff]  ;;  %v7221_v12 = vpack.c.bf16 %v2576_v47, %v2573_v27  ;;  %v2589_v27 = vld [vmem:[#allocation10 + $0x470] sm:$0xff]  ;;  %v2635_v47 = vld [vmem:[#allocation10 + $0x5e0] sm:$0xff] }
 0x2ab   : > { %v2323_v8 = vmax.f32 %v2251_v21, 0.0  ;;  %7214 = vmatpush1.bf16.msra.mxu1 %v7213_v25  ;;  %v1807_v6 = vpop.f32.mrb[10].mxu0  ;;  %7374 = vmatpush3.bf16.msra.mxu0 %v7373_v50  ;;  %v2632_v50 = vld [vmem:[#allocation10 + $0x5c8] sm:$0xff]  ;;  %v2582_v21 = vld [vmem:[#allocation10 + $0x438] sm:$0xff]  ;;  %v7381_v45 = vpack.c.bf16 %v2578_v62, %v2575_v54 }
 0x2ac   : > { %2374 = vst [vmem:[%s9475_s23 + $0x20] sm:$0xff] %v2322_v39  ;;  %v2256_v33 = vadd.f32 %v9618_v63, %v1807_v6  ;;  %v1809_v15 = vpop.f32.mrb[11].mxu0  ;;  %7216 = vmatprep.subr.bf16.mxu1 %v7215_v35  ;;  %7376 = vmatprep.subr.bf16.mxu0 %v7375_v20  ;;  %v2579_v20 = vld [vmem:[#allocation10 + $0x420] sm:$0xff]  ;;  %v2586_v6 = vld [vmem:[#allocation10 + $0x458] sm:$0xff] }
 0x2ad   : > { %6367 = vst [vmem:[%s9475_s23 + $0x80] sm:$0xff] %v2323_v8  ;;  %v2257_v25 = vadd.f32 %v9623_v23, %v1809_v15  ;;  %2823 = vmatprep.mubr.f32.mxu1 %v2323_v8  ;;  %3230 = vmatprep.mubr.f32.mxu0 %v2323_v8  ;;  %v7223_v8 = vpack.c.bf16 %v2583_v2, %v2580_v0  ;;  %v2581_v15 = vld [vmem:[#allocation10 + $0x430] sm:$0xff] }
 0x2ae   : > { %v2328_v22 = vmax.f32 %v2256_v33, 0.0  ;;  %2824 = vmatmul.mubr.f32.gmra.mrb[32].mxu1 %v2322_v39  ;;  %3231 = vmatmul.mubr.f32.gmra.mrb[56].mxu0 %v2322_v39  ;;  %v7383_v33 = vpack.c.bf16 %v2632_v50, %v2629_v5  ;;  %v2584_v39 = vld [vmem:[#allocation10 + $0x448] sm:$0xff]  ;;  %v7225_v0 = vpack.c.bf16 %v2582_v21, %v2579_v20  ;;  %v7227_v50 = vpack.c.bf16 %v2589_v27, %v2586_v6  ;;  %v2595_v20 = vld [vmem:[#allocation10 + $0x4a0] sm:$0xff] }
 0x2af   : > { %v2329_v32 = vmax.f32 %v2257_v25, 0.0  ;;  %7218 = vmatpush1.bf16.msra.mxu1 %v7217_v7  ;;  %v1813_v35 = vpop.f32.mrb[12].mxu0  ;;  %7378 = vmatpush3.bf16.msra.mxu0 %v7377_v24  ;;  %v2638_v24 = vld [vmem:[#allocation10 + $0x5f8] sm:$0xff]  ;;  %v7385_v25 = vpack.c.bf16 %v2584_v39, %v2581_v15  ;;  %v2591_v27 = vld [vmem:[#allocation10 + $0x480] sm:$0xff] }
 0x2b0   : > { %2375 = vst [vmem:[%s9475_s23 + $0x28] sm:$0xff] %v2328_v22  ;;  %v2262_v11 = vadd.f32 %v9618_v63, %v1813_v35  ;;  %v1815_v26 = vpop.f32.mrb[13].mxu0  ;;  %7220 = vmatprep.subr.bf16.mxu1 %v7219_v4  ;;  %7380 = vmatprep.subr.bf16.mxu0 %v7379_v58  ;;  %v2585_v58 = vld [vmem:[#allocation10 + $0x450] sm:$0xff]  ;;  %v7387_v35 = vpack.c.bf16 %v2638_v24, %v2635_v47  ;;  %v2594_v47 = vld [vmem:[#allocation10 + $0x498] sm:$0xff] }
 0x2b1   : > { %6368 = vst [vmem:[%s9475_s23 + $0x88] sm:$0xff] %v2329_v32  ;;  %v2263_v7 = vadd.f32 %v9623_v23, %v1815_v26  ;;  %2829 = vmatprep.mubr.f32.mxu1 %v2329_v32  ;;  %3235 = vmatprep.mubr.f32.mxu0 %v2329_v32  ;;  %v2588_v32 = vld [vmem:[#allocation10 + $0x468] sm:$0xff]  ;;  %v2590_v26 = vld [vmem:[#allocation10 + $0x478] sm:$0xff] }
 0x2b2   : > { %v2334_v54 = vmax.f32 %v2262_v11, 0.0  ;;  %2830 = vmatmul.mubr.f32.gmra.mrb[34].mxu1 %v2328_v22  ;;  %3236 = vmatmul.mubr.f32.gmra.mrb[58].mxu0 %v2328_v22  ;;  %v2587_v11 = vld [vmem:[#allocation10 + $0x460] sm:$0xff]  ;;  %v7229_v6 = vpack.c.bf16 %v2588_v32, %v2585_v58  ;;  %v2597_v32 = vld [vmem:[#allocation10 + $0x4b0] sm:$0xff] }
 0x2b3   : > { %v2335_v62 = vmax.f32 %v2263_v7, 0.0  ;;  %7222 = vmatpush1.bf16.msra.mxu1 %v7221_v12  ;;  %v1819_v4 = vpop.f32.mrb[14].mxu0  ;;  %7382 = vmatpush3.bf16.msra.mxu0 %v7381_v45  ;;  %v2592_v12 = vld [vmem:[#allocation10 + $0x488] sm:$0xff] }
 0x2b4   : > { %2376 = vst [vmem:[%s9475_s23 + $0x30] sm:$0xff] %v2334_v54  ;;  %v2268_v2 = vadd.f32 %v9618_v63, %v1819_v4  ;;  %v1821_v5 = vpop.f32.mrb[15].mxu0  ;;  %7224 = vmatprep.subr.bf16.mxu1 %v7223_v8  ;;  %7384 = vmatprep.subr.bf16.mxu0 %v7383_v33  ;;  %v7389_v33 = vpack.c.bf16 %v2590_v26, %v2587_v11  ;;  %v2604_v26 = vld [vmem:[#allocation10 + $0x4e8] sm:$0xff] }
 0x2b5   : > { %6369 = vst [vmem:[%s9475_s23 + $0x90] sm:$0xff] %v2335_v62  ;;  %v2269_v22 = vadd.f32 %v9623_v23, %v1821_v5  ;;  %2835 = vmatprep.mubr.f32.mxu1 %v2335_v62  ;;  %3240 = vmatprep.mubr.f32.mxu0 %v2335_v62  ;;  %v7231_v7 = vpack.c.bf16 %v2595_v20, %v2592_v12  ;;  %v2601_v62 = vld [vmem:[#allocation10 + $0x4d0] sm:$0xff] }
 0x2b6   : > { %v2340_v21 = vmax.f32 %v2268_v2, 0.0  ;;  %2836 = vmatmul.mubr.f32.gmra.mrb[36].mxu1 %v2334_v54  ;;  %3241 = vmatmul.mubr.f32.gmra.mrb[60].mxu0 %v2334_v54  ;;  %v2598_v54 = vld [vmem:[#allocation10 + $0x4b8] sm:$0xff] }
 0x2b7   : > { %v2341_v45 = vmax.f32 %v2269_v22, 0.0  ;;  %7226 = vmatpush1.bf16.msra.mxu1 %v7225_v0  ;;  %v1825_v8 = vpop.f32.mrb[16].mxu0  ;;  %7386 = vmatpush3.bf16.msra.mxu0 %v7385_v25  ;;  %v7233_v25 = vpack.c.bf16 %v2594_v47, %v2591_v27  ;;  %v2607_v22 = vld [vmem:[#allocation10 + $0x500] sm:$0xff]  ;;  %v2218_v47 = vsub.s32 5, %v9454_v13 }
 0x2b8   : > { %2377 = vst [vmem:[%s9475_s23 + $0x38] sm:$0xff] %v2340_v21  ;;  %v2274_v15 = vadd.f32 %v9618_v63, %v1825_v8  ;;  %v1827_v39 = vpop.f32.mrb[17].mxu0  ;;  %7228 = vmatprep.subr.bf16.mxu1 %v7227_v50  ;;  %7388 = vmatprep.subr.bf16.mxu0 %v7387_v35  ;;  %v7235_v50 = vpack.c.bf16 %v2601_v62, %v2598_v54  ;;  %v2600_v35 = vld [vmem:[#allocation10 + $0x4c8] sm:$0xff]  ;;  %v2613_v54 = vld [vmem:[#allocation10 + $0x530] sm:$0xff] }
 0x2b9   : > { %6370 = vst [vmem:[%s9475_s23 + $0x98] sm:$0xff] %v2341_v45  ;;  %v2275_v24 = vadd.f32 %v9623_v23, %v1827_v39  ;;  %2841 = vmatprep.mubr.f32.mxu1 %v2341_v45  ;;  %3245 = vmatprep.mubr.f32.mxu0 %v2341_v45  ;;  %v7237_v45 = vpack.c.bf16 %v2600_v35, %v2597_v32  ;;  %v2606_v39 = vld [vmem:[#allocation10 + $0x4f8] sm:$0xff]  ;;  %v2609_v32 = vld [vmem:[#allocation10 + $0x510] sm:$0xff]  ;;  %v2612_v35 = vld [vmem:[#allocation10 + $0x528] sm:$0xff] }
 0x2ba   : > { %v2346_v4 = vmax.f32 %v2274_v15, 0.0  ;;  %2842 = vmatmul.mubr.f32.gmra.mrb[38].mxu1 %v2340_v21  ;;  %3246 = vmatmul.mubr.f32.gmra.mrb[62].mxu0 %v2340_v21  ;;  %v2603_v15 = vld [vmem:[#allocation10 + $0x4e0] sm:$0xff] }
 0x2bb   : > { %v2347_v0 = vmax.f32 %v2275_v24, 0.0  ;;  %7230 = vmatpush1.bf16.msra.mxu1 %v7229_v6  ;;  %v1831_v58 = vpop.f32.mrb[18].mxu0  ;;  %7390 = vmatpush3.bf16.msra.mxu0 %v7389_v33  ;;  %v7239_v33 = vpack.c.bf16 %v2607_v22, %v2604_v26  ;;  %v2610_v24 = vld [vmem:[#allocation10 + $0x518] sm:$0xff]  ;;  %v9677_v26 = vrot.slane %v9457_v10, %v2218_v47  ;;  %v2616_v22 = vld [vmem:[#allocation10 + $0x548] sm:$0xff] }
 0x2bc   : > { %2378 = vst [vmem:[%s9475_s23 + $0x40] sm:$0xff] %v2346_v4  ;;  %v2280_v2 = vadd.f32 %v9618_v63, %v1831_v58  ;;  %v1833_v5 = vpop.f32.mrb[19].mxu0  ;;  %7232 = vmatprep.subr.bf16.mxu1 %v7231_v7  ;;  %v2214_v7 = vsub.s32 4, %v9454_v13  ;;  %v7241_v58 = vpack.c.bf16 %v2606_v39, %v2603_v15  ;;  %v2622_v39 = vld [vmem:[#allocation10 + $0x578] sm:$0xff] }
 0x2bd   : > { %6371 = vst [vmem:[%s9475_s23 + $0xa0] sm:$0xff] %v2347_v0  ;;  %v2281_v11 = vadd.f32 %v9623_v23, %v1833_v5  ;;  %2847 = vmatprep.mubr.f32.mxu1 %v2347_v0  ;;  %3250 = vmatprep.mubr.f32.mxu0 %v2347_v0 }
 0x2be   : > { %v2352_v12 = vmax.f32 %v2280_v2, 0.0  ;;  %2848 = vmatmul.mubr.f32.gmra.mrb[40].mxu1 %v2346_v4  ;;  %3251 = vmatmul.mubr.f32.gmra.mrb[64].mxu0 %v2346_v4  ;;  %v9672_v5 = vrot.slane %v9457_v10, %v2214_v7  ;;  %v2618_v10 = vld [vmem:[#allocation10 + $0x558] sm:$0xff]  ;;  %v2625_v7 = vld [vmem:[#allocation10 + $0x590] sm:$0xff] }
 0x2bf   : > { %v2353_v20 = vmax.f32 %v2281_v11, 0.0  ;;  %7234 = vmatpush1.bf16.msra.mxu1 %v7233_v25  ;;  %v1837_v21 = vpop.f32.mrb[20].mxu0 }
 0x2c0   : > { %2379 = vst [vmem:[%s9475_s23 + $0x48] sm:$0xff] %v2352_v12  ;;  %v2286_v8 = vadd.f32 %v9618_v63, %v1837_v21  ;;  %v1839_v6 = vpop.f32.mrb[21].mxu0  ;;  %7236 = vmatprep.subr.bf16.mxu1 %v7235_v50  ;;  %v7243_v50 = vpack.c.bf16 %v2613_v54, %v2610_v24 }
 0x2c1   : > { %6372 = vst [vmem:[%s9475_s23 + $0xa8] sm:$0xff] %v2353_v20  ;;  %v2287_v27 = vadd.f32 %v9623_v23, %v1839_v6  ;;  %2853 = vmatprep.mubr.f32.mxu1 %v2353_v20  ;;  %3255 = vmatprep.mubr.f32.mxu0 %v2353_v20 }
 0x2c2   : > { %v2358_v62 = vmax.f32 %v2286_v8, 0.0  ;;  %2854 = vmatmul.mubr.f32.gmra.mrb[42].mxu1 %v2352_v12  ;;  %3256 = vmatmul.mubr.f32.gmra.mrb[66].mxu0 %v2352_v12 }
 0x2c3   : > { %v2359_v4 = vmax.f32 %v2287_v27, 0.0  ;;  %7238 = vmatpush1.bf16.msra.mxu1 %v7237_v45  ;;  %v1843_v0 = vpop.f32.mrb[22].mxu0  ;;  %v7245_v45 = vpack.c.bf16 %v2612_v35, %v2609_v32  ;;  %v2631_v32 = vld [vmem:[#allocation10 + $0x5c0] sm:$0xff] }
 0x2c4   : > { %2380 = vst [vmem:[%s9475_s23 + $0x50] sm:$0xff] %v2358_v62  ;;  %v2292_v25 = vadd.f32 %v9618_v63, %v1843_v0  ;;  %v1845_v2 = vpop.f32.mrb[23].mxu0  ;;  %7240 = vmatprep.subr.bf16.mxu1 %v7239_v33  ;;  %v2619_v63 = vld [vmem:[#allocation10 + $0x560] sm:$0xff]  ;;  %v7251_v0 = vpack.c.bf16 %v2625_v7, %v2622_v39 }
 0x2c5   : > { %6373 = vst [vmem:[%s9475_s23 + $0xb0] sm:$0xff] %v2359_v4  ;;  %v2293_v11 = vadd.f32 %v9623_v23, %v1845_v2  ;;  %2859 = vmatprep.mubr.f32.mxu1 %v2359_v4  ;;  %3260 = vmatprep.mubr.f32.mxu0 %v2359_v4  ;;  %v7247_v23 = vpack.c.bf16 %v2619_v63, %v2616_v22  ;;  %v2615_v33 = vld [vmem:[#allocation10 + $0x540] sm:$0xff] }
 0x2c6   : > { %v2364_v12 = vmax.f32 %v2292_v25, 0.0  ;;  %2860 = vmatmul.mubr.f32.gmra.mrb[44].mxu1 %v2358_v62  ;;  %3261 = vmatmul.mubr.f32.gmra.mrb[68].mxu0 %v2358_v62  ;;  %v7249_v54 = vpack.c.bf16 %v2618_v10, %v2615_v33  ;;  %v2624_v25 = vld [vmem:[#allocation10 + $0x588] sm:$0xff] }
 0x2c7   : > { %v2365_v20 = vmax.f32 %v2293_v11, 0.0  ;;  %7242 = vmatpush1.bf16.msra.mxu1 %v7241_v58  ;;  %v2051_v21 = vpop.f32.mrb[24].mxu0  ;;  %v2621_v58 = vld [vmem:[#allocation10 + $0x570] sm:$0xff] }
 0x2c8   : > { %2381 = vst [vmem:[%s9475_s23 + $0x58] sm:$0x7] %v2364_v12  ;;  %v2230_v8 = vadd.f32 %v9672_v5, %v2051_v21  ;;  %v2053_v6 = vpop.f32.mrb[25].mxu0  ;;  %7244 = vmatprep.subr.bf16.mxu1 %v7243_v50  ;;  %v2628_v50 = vld [vmem:[#allocation10 + $0x5a8] sm:$0xff]  ;;  %v7253_v22 = vpack.c.bf16 %v2624_v25, %v2621_v58  ;;  %v2627_v21 = vld [vmem:[#allocation10 + $0x5a0] sm:$0xff] }
 0x2c9   : > { %6374 = vst [vmem:[%s9475_s23 + $0xb8] sm:$0x7] %v2365_v20  ;;  %v2231_v15 = vadd.f32 %v9677_v26, %v2053_v6  ;;  %2865 = vmatprep.mubr.f32.mxu1 %v2365_v20  ;;  %3265 = vmatprep.mubr.f32.mxu0 %v2365_v20  ;;  %v7255_v20 = vpack.c.bf16 %v2631_v32, %v2628_v50  ;;  %v2634_v6 = vld [vmem:[#allocation10 + $0x5d8] sm:$0xff]  ;;  %v2640_v58 = vld [vmem:[#allocation10 + $0x608] sm:$0xff]  ;;  %v2643_v25 = vld [vmem:[#allocation10 + $0x620] sm:$0xff] }
 0x2ca   : > { %v9683_v27 = vmax.f32 %v2230_v8, 0.0  ;;  %2866 = vmatmul.mubr.f32.gmra.mrb[46].mxu1 %v2364_v12  ;;  %3266 = vmatmul.mubr.f32.gmra.mrb[70].mxu0 %v2364_v12 }
 0x2cb   : > { %v9685_v47 = vmax.f32 %v2231_v15, 0.0  ;;  %7246 = vmatpush1.bf16.msra.mxu1 %v7245_v45  ;;  %v2057_v24 = vpop.f32.mrb[26].mxu0  ;;  %2936 = vmatprep.mubr.f32.mxu1 %v9480_v42  ;;  %v2630_v45 = vld [vmem:[#allocation10 + $0x5b8] sm:$0xff] }
 0x2cc   : > { %6399 = vst [vmem:[%s9475_s23 + $0x180] sm:$0xff] %v9683_v27  ;;  %v2236_v62 = vadd.f32 %v9672_v5, %v2057_v24  ;;  %3335 = vmatprep.mubr.f32.mxu0 %v9480_v42  ;;  %v2059_v4 = vpop.f32.mrb[27].mxu0  ;;  %7248 = vmatprep.subr.bf16.mxu1 %v7247_v23  ;;  %v2637_v23 = vld [vmem:[#allocation10 + $0x5f0] sm:$0xff]  ;;  %v7257_v39 = vpack.c.bf16 %v2630_v45, %v2627_v21  ;;  %v2642_v21 = vld [vmem:[#allocation10 + $0x618] sm:$0xff] }
 0x2cd   : > { %6411 = vst [vmem:[%s9475_s23 + $0x1e0] sm:$0xff] %v9685_v47  ;;  %v2237_v2 = vadd.f32 %v9677_v26, %v2059_v4  ;;  %v2636_v4 = vld [vmem:[#allocation10 + $0x5e8] sm:$0xff]  ;;  %v2649_v45 = vld [vmem:[#allocation10 + $0x650] sm:$0xff] }
 0x2ce   : > { %v9695_v35 = vmax.f32 %v2236_v62, 0.0  ;;  %3336 = vmatmul.mubr.f32.vlgmr.msra.gmra.mrb[72].mxu0 %v9478_v18  ;;  %v2633_v62 = vld [vmem:[#allocation10 + $0x5d0] sm:$0xff] }
 0x2cf   : > { %v9698_v11 = vmax.f32 %v2237_v2, 0.0  ;;  %7250 = vmatpush1.bf16.msra.mxu1 %v7249_v54  ;;  %v2063_v42 = vpop.f32.mrb[28].mxu0  ;;  %3340 = vmatprep.mubr.f32.mxu0 %v9490_v30  ;;  %v7259_v54 = vpack.c.bf16 %v2637_v23, %v2634_v6 }
 0x2d0   : > { %6400 = vst [vmem:[%s9475_s23 + $0x188] sm:$0xff] %v9695_v35  ;;  %v2242_v63 = vadd.f32 %v9672_v5, %v2063_v42  ;;  %v2065_v12 = vpop.f32.mrb[29].mxu0  ;;  %7252 = vmatprep.subr.bf16.mxu1 %v7251_v0  ;;  %v7261_v42 = vpack.c.bf16 %v2636_v4, %v2633_v62  ;;  %v2648_v62 = vld [vmem:[#allocation10 + $0x648] sm:$0xff]  ;;  %v2655_v4 = vld [vmem:[#allocation10 + $0x680] sm:$0xff] }
 0x2d1   : > { %6412 = vst [vmem:[%s9475_s23 + $0x1e8] sm:$0xff] %v9698_v11  ;;  %v2243_v8 = vadd.f32 %v9677_v26, %v2065_v12  ;;  %v7263_v12 = vpack.c.bf16 %v2643_v25, %v2640_v58 }
 0x2d2   : > { %v9707_v33 = vmax.f32 %v2242_v63, 0.0  ;;  %3341 = vmatmul.mubr.f32.gmra.mrb[74].mxu0 %v9488_v28 }
 0x2d3   : > { %v9710_v10 = vmax.f32 %v2243_v8, 0.0  ;;  %7254 = vmatpush1.bf16.msra.mxu1 %v7253_v22  ;;  %v2069_v15 = vpop.f32.mrb[30].mxu0  ;;  %3345 = vmatprep.mubr.f32.mxu0 %v9501_v9 }
 0x2d4   : > { %6401 = vst [vmem:[%s9475_s23 + $0x190] sm:$0xff] %v9707_v33  ;;  %v2248_v7 = vadd.f32 %v9672_v5, %v2069_v15  ;;  %v2071_v24 = vpop.f32.mrb[31].mxu0  ;;  %7256 = vmatprep.subr.bf16.mxu1 %v7255_v20  ;;  %v2639_v20 = vld [vmem:[#allocation10 + $0x600] sm:$0xff] }
 0x2d5   : > { %6413 = vst [vmem:[%s9475_s23 + $0x1f0] sm:$0xff] %v9710_v10  ;;  %v2249_v0 = vadd.f32 %v9677_v26, %v2071_v24  ;;  %v7265_v15 = vpack.c.bf16 %v2642_v21, %v2639_v20 }
 0x2d6   : > { %v9719_v2 = vmax.f32 %v2248_v7, 0.0  ;;  %3346 = vmatmul.mubr.f32.gmra.mrb[76].mxu0 %v2312_v36  ;;  %v2646_v36 = vld [vmem:[#allocation10 + $0x638] sm:$0xff] }
 0x2d7   : > { %v9723_v50 = vmax.f32 %v2249_v0, 0.0  ;;  %7258 = vmatpush1.bf16.msra.mxu1 %v7257_v39  ;;  %v2075_v32 = vpop.f32.mrb[32].mxu0  ;;  %3350 = vmatprep.mubr.f32.mxu0 %v9513_v43  ;;  %v7267_v24 = vpack.c.bf16 %v2649_v45, %v2646_v36  ;;  %v2667_v36 = vld [vmem:[#allocation10 + $0x6e0] sm:$0xff] }
 0x2d8   : > { %6402 = vst [vmem:[%s9475_s23 + $0x198] sm:$0xff] %v9719_v2  ;;  %v2254_v22 = vadd.f32 %v9672_v5, %v2075_v32  ;;  %v2077_v63 = vpop.f32.mrb[33].mxu0  ;;  %7260 = vmatprep.subr.bf16.mxu1 %v7259_v54  ;;  %v2645_v54 = vld [vmem:[#allocation10 + $0x630] sm:$0xff] }
 0x2d9   : > { %6414 = vst [vmem:[%s9475_s23 + $0x1f8] sm:$0xff] %v9723_v50  ;;  %v2255_v29 = vadd.f32 %v9677_v26, %v2077_v63  ;;  %v7269_v58 = vpack.c.bf16 %v2648_v62, %v2645_v54  ;;  %v2670_v54 = vld [vmem:[#allocation10 + $0x6f8] sm:$0xff]  ;;  %v2673_v62 = vld [vmem:[#allocation10 + $0x710] sm:$0xff] }
 0x2da   : > { %v9732_v8 = vmax.f32 %v2254_v22, 0.0  ;;  %3351 = vmatmul.mubr.f32.gmra.mrb[78].mxu0 %v2318_v31  ;;  %v2652_v31 = vld [vmem:[#allocation10 + $0x668] sm:$0xff]  ;;  %v2661_v22 = vld [vmem:[#allocation10 + $0x6b0] sm:$0xff]  ;;  %v7283_v17 = vpack.c.bf16 %v2673_v62, %v2670_v54 }
 0x2db   : > { %v9736_v6 = vmax.f32 %v2255_v29, 0.0  ;;  %7262 = vmatpush1.bf16.msra.mxu1 %v7261_v42  ;;  %v2081_v23 = vpop.f32.mrb[34].mxu0  ;;  %3355 = vmatprep.mubr.f32.mxu0 %v2325_v49  ;;  %v2658_v42 = vld [vmem:[#allocation10 + $0x698] sm:$0xff]  ;;  %v2664_v29 = vld [vmem:[#allocation10 + $0x6c8] sm:$0xff] }
 0x2dc   : > { %6403 = vst [vmem:[%s9475_s23 + $0x1a0] sm:$0xff] %v9732_v8  ;;  %v2260_v39 = vadd.f32 %v9672_v5, %v2081_v23  ;;  %v2083_v7 = vpop.f32.mrb[35].mxu0  ;;  %7264 = vmatprep.subr.bf16.mxu1 %v7263_v12  ;;  %v8548_v23 = vld [vmem:[%s9475_s23 + $0xd0] sm:$0xff]  ;;  %v7279_v48 = vpack.c.bf16 %v2667_v36, %v2664_v29  ;;  %v8553_v36 = vld [vmem:[%s9475_s23 + $0xe8] sm:$0xff] }
 0x2dd   : > { %6415 = vst [vmem:[%s9475_s23 + $0x200] sm:$0xff] %v9736_v6  ;;  %v2261_v37 = vadd.f32 %v9677_v26, %v2083_v7  ;;  %v2684_v54 = vld [vmem:[#allocation10 + $0x768] sm:$0xff] }
 0x2de   : > { %v9746_v0 = vmax.f32 %v2260_v39, 0.0  ;;  %2937 = vmatmul.mubr.f32.vlgmr.msra.gmra.mrb[24].mxu1 %v9478_v18  ;;  %3356 = vmatmul.mubr.f32.gmra.mrb[80].mxu0 %v2324_v34  ;;  %v7271_v18 = vpack.c.bf16 %v2655_v4, %v2652_v31  ;;  %v2654_v34 = vld [vmem:[#allocation10 + $0x678] sm:$0xff]  ;;  %v8549_v31 = vld [vmem:[%s9475_s23 + $0xd8] sm:$0xff] }
 0x2df   : > { %v9751_v46 = vmax.f32 %v2261_v37, 0.0  ;;  %2942 = vmatprep.mubr.f32.mxu1 %v9490_v30  ;;  %7266 = vmatpush1.bf16.msra.mxu1 %v7265_v15  ;;  %v2087_v49 = vpop.f32.mrb[36].mxu0  ;;  %v7273_v12 = vpack.c.bf16 %v2654_v34, %v2651_v44  ;;  %v2676_v44 = vld [vmem:[#allocation10 + $0x728] sm:$0xff]  ;;  %v2679_v34 = vld [vmem:[#allocation10 + $0x740] sm:$0xff] }
 0x2e0   : > { %6404 = vst [vmem:[%s9475_s23 + $0x1a8] sm:$0xff] %v9746_v0  ;;  %v2266_v25 = vadd.f32 %v9672_v5, %v2087_v49  ;;  %3360 = vmatprep.mubr.f32.mxu0 %v2331_v19  ;;  %v2089_v32 = vpop.f32.mrb[37].mxu0  ;;  %7268 = vmatprep.subr.bf16.mxu1 %v7267_v24  ;;  %v2666_v24 = vld [vmem:[#allocation10 + $0x6d8] sm:$0xff] }
 0x2e1   : > { %6416 = vst [vmem:[%s9475_s23 + $0x208] sm:$0xff] %v9751_v46  ;;  %v2267_v30 = vadd.f32 %v9677_v26, %v2089_v32  ;;  %v2672_v32 = vld [vmem:[#allocation10 + $0x708] sm:$0xff] }
 0x2e2   : > { %v9762_v63 = vmax.f32 %v2266_v25, 0.0  ;;  %2943 = vmatmul.mubr.f32.gmra.mrb[26].mxu1 %v9488_v28  ;;  %3361 = vmatmul.mubr.f32.gmra.mrb[82].mxu0 %v2330_v53  ;;  %v7275_v28 = vpack.c.bf16 %v2661_v22, %v2658_v42  ;;  %v2660_v53 = vld [vmem:[#allocation10 + $0x6a8] sm:$0xff]  ;;  %v8551_v42 = vld [vmem:[%s9475_s23 + $0xe0] sm:$0xff] }
 0x2e3   : > { %v9767_v52 = vmax.f32 %v2267_v30, 0.0  ;;  %2948 = vmatprep.mubr.f32.mxu1 %v9501_v9  ;;  %7270 = vmatpush1.bf16.msra.mxu1 %v7269_v58  ;;  %v2093_v19 = vpop.f32.mrb[38].mxu0  ;;  %v7277_v15 = vpack.c.bf16 %v2660_v53, %v2657_v51  ;;  %v2682_v53 = vld [vmem:[#allocation10 + $0x758] sm:$0xff] }
 0x2e4   : > { %6405 = vst [vmem:[%s9475_s23 + $0x1b0] sm:$0xff] %v9762_v63  ;;  %v2272_v20 = vadd.f32 %v9672_v5, %v2093_v19  ;;  %3365 = vmatprep.mubr.f32.mxu0 %v2337_v59  ;;  %v2095_v21 = vpop.f32.mrb[39].mxu0  ;;  %7272 = vmatprep.subr.bf16.mxu1 %v7271_v18 }
 0x2e5   : > { %6417 = vst [vmem:[%s9475_s23 + $0x210] sm:$0xff] %v9767_v52  ;;  %v2273_v9 = vadd.f32 %v9677_v26, %v2095_v21  ;;  %v2675_v21 = vld [vmem:[#allocation10 + $0x720] sm:$0xff] }
 0x2e6   : > { %v9778_v45 = vmax.f32 %v2272_v20, 0.0  ;;  %2949 = vmatmul.mubr.f32.gmra.mrb[28].mxu1 %v8548_v23  ;;  %3366 = vmatmul.mubr.f32.gmra.mrb[84].mxu0 %v2336_v60  ;;  %v2663_v60 = vld [vmem:[#allocation10 + $0x6c0] sm:$0xff]  ;;  %v10389_v20 = vmax.f32 %v9592_v14, 0.0 }
 0x2e7   : > { %v9783_v57 = vmax.f32 %v2273_v9, 0.0  ;;  %2954 = vmatprep.mubr.f32.mxu1 %v9513_v43  ;;  %7274 = vmatpush1.bf16.msra.mxu1 %v7273_v12  ;;  %v2099_v59 = vpop.f32.mrb[40].mxu0  ;;  %v7281_v49 = vpack.c.bf16 %v2666_v24, %v2663_v60  ;;  %v2685_v9 = vld [vmem:[#allocation10 + $0x770] sm:$0xff]  ;;  %v9830_v14 = vld [vmem:[%s9475_s23 + $0x108] sm:$0xff] }
 0x2e8   : > { %6406 = vst [vmem:[%s9475_s23 + $0x1b8] sm:$0xff] %v9778_v45  ;;  %v2278_v39 = vadd.f32 %v9672_v5, %v2099_v59  ;;  %3370 = vmatprep.mubr.f32.mxu0 %v2343_v1  ;;  %v2101_v7 = vpop.f32.mrb[41].mxu0  ;;  %7276 = vmatprep.subr.bf16.mxu1 %v7275_v28  ;;  %v8550_v1 = vld [vmem:[%s9475_s23 + $0x140] sm:$0xff]  ;;  %v8555_v59 = vld [vmem:[%s9475_s23 + $0x150] sm:$0xff]  ;;  %v7291_v24 = vpack.c.bf16 %v2685_v9, %v2682_v53 }
 0x2e9   : > { %6418 = vst [vmem:[%s9475_s23 + $0x218] sm:$0xff] %v9783_v57  ;;  %v2279_v43 = vadd.f32 %v9677_v26, %v2101_v7  ;;  %v2678_v28 = vld [vmem:[#allocation10 + $0x738] sm:$0xff]  ;;  %v2699_v9 = vld [vmem:[#allocation10 + $0x7e0] sm:$0xff] }
 0x2ea   : > { %v9794_v37 = vmax.f32 %v2278_v39, 0.0  ;;  %2955 = vmatmul.mubr.f32.gmra.mrb[30].mxu1 %v8549_v31  ;;  %3371 = vmatmul.mubr.f32.gmra.mrb[86].mxu0 %v2342_v61  ;;  %v2669_v61 = vld [vmem:[#allocation10 + $0x6f0] sm:$0xff]  ;;  %v7289_v39 = vpack.c.bf16 %v2678_v28, %v2675_v21  ;;  %v2688_v31 = vld [vmem:[#allocation10 + $0x788] sm:$0xff]  ;;  %v8563_v28 = vld [vmem:[%s9475_s23 + $0x168] sm:$0xff] }
 0x2eb   : > { %v9799_v38 = vmax.f32 %v2279_v43, 0.0  ;;  %2960 = vmatprep.mubr.f32.mxu1 %v8550_v1  ;;  %7278 = vmatpush1.bf16.msra.mxu1 %v7277_v15  ;;  %v2105_v4 = vpop.f32.mrb[42].mxu0  ;;  %v7285_v19 = vpack.c.bf16 %v2672_v32, %v2669_v61  ;;  %v2681_v43 = vld [vmem:[#allocation10 + $0x750] sm:$0xff]  ;;  %v2691_v1 = vld [vmem:[#allocation10 + $0x7a0] sm:$0xff]  ;;  %v2690_v32 = vld [vmem:[#allocation10 + $0x798] sm:$0xff] }
 0x2ec   : > { %6407 = vst [vmem:[%s9475_s23 + $0x1c0] sm:$0xff] %v9794_v37  ;;  %v2284_v58 = vadd.f32 %v9672_v5, %v2105_v4  ;;  %3375 = vmatprep.mubr.f32.mxu0 %v2349_v55  ;;  %v2107_v25 = vpop.f32.mrb[43].mxu0  ;;  %7280 = vmatprep.subr.bf16.mxu1 %v7279_v48  ;;  %v8552_v55 = vld [vmem:[%s9475_s23 + $0x148] sm:$0xff]  ;;  %v8556_v48 = vld [vmem:[%s9475_s23 + $0x170] sm:$0xff]  ;;  %v8562_v21 = vld [vmem:[%s9475_s23 + $0x100] sm:$0xff] }
 0x2ed   : > { %6419 = vst [vmem:[%s9475_s23 + $0x220] sm:$0xff] %v9799_v38  ;;  %v2285_v18 = vadd.f32 %v9677_v26, %v2107_v25  ;;  %v8559_v25 = vld [vmem:[%s9475_s23 + $0x158] sm:$0xff]  ;;  %v2687_v61 = vld [vmem:[#allocation10 + $0x780] sm:$0xff] }
 0x2ee   : > { %v9810_v30 = vmax.f32 %v2284_v58, 0.0  ;;  %2961 = vmatmul.mubr.f32.gmra.mrb[32].mxu1 %v8551_v42  ;;  %3376 = vmatmul.mubr.f32.gmra.mrb[88].mxu0 %v2348_v3  ;;  %v7287_v3 = vpack.c.bf16 %v2679_v34, %v2676_v44  ;;  %v2697_v44 = vld [vmem:[#allocation10 + $0x7d0] sm:$0xff] }
 0x2ef   : > { %v9815_v41 = vmax.f32 %v2285_v18, 0.0  ;;  %2966 = vmatprep.mubr.f32.mxu1 %v8552_v55  ;;  %7282 = vmatpush1.bf16.msra.mxu1 %v7281_v49  ;;  %v2111_v22 = vpop.f32.mrb[44].mxu0  ;;  %v8557_v49 = vld [vmem:[%s9475_s23 + $0xf0] sm:$0xff]  ;;  %v2694_v18 = vld [vmem:[#allocation10 + $0x7b8] sm:$0xff]  ;;  %v8560_v34 = vld [vmem:[%s9475_s23 + $0xf8] sm:$0xff]  ;;  %v7297_v55 = vpack.c.bf16 %v2690_v32, %v2687_v61 }
 0x2f0   : > { %6408 = vst [vmem:[%s9475_s23 + $0x1c8] sm:$0xff] %v9810_v30  ;;  %v2290_v12 = vadd.f32 %v9672_v5, %v2111_v22  ;;  %3380 = vmatprep.mubr.f32.mxu0 %v10389_v20  ;;  %v2113_v56 = vpop.f32.mrb[45].mxu0  ;;  %7284 = vmatprep.subr.bf16.mxu1 %v7283_v17  ;;  %v7293_v17 = vpack.c.bf16 %v2684_v54, %v2681_v43  ;;  %v8561_v42 = vld [vmem:[%s9475_s23 + $0x160] sm:$0xff]  ;;  %v10390_v20 = vmov 0.0   ;;  %v2712_v43 = vld [vmem:[#allocation10 + $0x848] sm:$0xff]  ;;  %v2715_v54 = vld [vmem:[#allocation10 + $0x860] sm:$0xff] }
 0x2f1   : > { %6420 = vst [vmem:[%s9475_s23 + $0x228] sm:$0xff] %v9815_v41  ;;  %v2291_v51 = vadd.f32 %v9677_v26, %v2113_v56  ;;  %v7299_v22 = vpack.c.bf16 %v2697_v44, %v2694_v18  ;;  %v2700_v56 = vld [vmem:[#allocation10 + $0x7e8] sm:$0xff]  ;;  %v2723_v44 = vld [vmem:[#allocation10 + $0x8a0] sm:$0xff] }
 0x2f2   : > { %v9826_v29 = vmax.f32 %v2290_v12, 0.0  ;;  %2967 = vmatmul.mubr.f32.gmra.mrb[34].mxu1 %v8553_v36  ;;  %3381 = vmatmul.mubr.f32.gmra.mrb[90].mxu0 %v9830_v14  ;;  %v2696_v12 = vld [vmem:[#allocation10 + $0x7c8] sm:$0xff]  ;;  %v2702_v36 = vld [vmem:[#allocation10 + $0x7f8] sm:$0xff] }
 0x2f3   : > { %v9833_v23 = vmax.f32 %v2291_v51, 0.0  ;;  %2972 = vmatprep.mubr.f32.mxu1 %v8555_v59  ;;  %7286 = vmatpush1.bf16.msra.mxu1 %v7285_v19  ;;  %v2117_v15 = vpop.f32.mrb[46].mxu0  ;;  %v2693_v19 = vld [vmem:[#allocation10 + $0x7b0] sm:$0xff]  ;;  %v2706_v59 = vld [vmem:[#allocation10 + $0x818] sm:$0xff]  ;;  %v2724_v61 = vld [vmem:[#allocation10 + $0x8a8] sm:$0xff] }
 0x2f4   : > { %6409 = vst [vmem:[%s9475_s23 + $0x1d0] sm:$0xff] %v9826_v29  ;;  %v2296_v7 = vadd.f32 %v9672_v5, %v2117_v15  ;;  %3385 = vmatprep.mubr.f32.mxu0 %v8556_v48  ;;  %v2119_v60 = vpop.f32.mrb[47].mxu0  ;;  %7288 = vmatprep.subr.bf16.mxu1 %v7287_v3  ;;  %v8558_v5 = vld [vmem:[%s9475_s23 + $0x110] sm:$0xff]  ;;  %v7301_v51 = vpack.c.bf16 %v2696_v12, %v2693_v19  ;;  %v2709_v15 = vld [vmem:[#allocation10 + $0x830] sm:$0xff] }
 0x2f5   : > { %6421 = vst [vmem:[%s9475_s23 + $0x230] sm:$0xff] %v9833_v23  ;;  %v2297_v62 = vadd.f32 %v9677_v26, %v2119_v60  ;;  %v7295_v26 = vpack.c.bf16 %v2691_v1, %v2688_v31  ;;  %v2703_v3 = vld [vmem:[#allocation10 + $0x800] sm:$0xff]  ;;  %v2705_v60 = vld [vmem:[#allocation10 + $0x810] sm:$0xff]  ;;  %v7311_v31 = vpack.c.bf16 %v2715_v54, %v2712_v43  ;;  %v2732_v12 = vld [vmem:[#allocation10 + $0x8e8] sm:$0xff] }
 0x2f6   : > { %v9843_v4 = vmax.f32 %v2296_v7, 0.0  ;;  %2973 = vmatmul.mubr.f32.gmra.mrb[36].mxu1 %v8557_v49  ;;  %3386 = vmatmul.mubr.f32.gmra.mrb[92].mxu0 %v8558_v5  ;;  %v7303_v53 = vpack.c.bf16 %v2703_v3, %v2700_v56  ;;  %v7307_v7 = vpack.c.bf16 %v2709_v15, %v2706_v59  ;;  %v2711_v1 = vld [vmem:[#allocation10 + $0x840] sm:$0xff]  ;;  %v2714_v49 = vld [vmem:[#allocation10 + $0x858] sm:$0xff]  ;;  %v2729_v19 = vld [vmem:[#allocation10 + $0x8d0] sm:$0xff] }
 0x2f7   : > { %v9847_v58 = vmax.f32 %v2297_v62, 0.0  ;;  %2978 = vmatprep.mubr.f32.mxu1 %v8559_v25  ;;  %7290 = vmatpush1.bf16.msra.mxu1 %v7289_v39  ;;  %v7305_v39 = vpack.c.bf16 %v2702_v36, %v2699_v9  ;;  %v2718_v25 = vld [vmem:[#allocation10 + $0x878] sm:$0xff]  ;;  %v2689_v56 = vld [vmem:[#allocation10 + $0x790] sm:$0xff]  ;;  %v2692_v3 = vld [vmem:[#allocation10 + $0x7a8] sm:$0xff] }
 0x2f8   : > { %6410 = vst [vmem:[%s9475_s23 + $0x1d8] sm:$0x7] %v9843_v4  ;;  %3390 = vmatprep.mubr.f32.mxu0 %v9607_v16  ;;  %7292 = vmatprep.subr.bf16.mxu1 %v7291_v24  ;;  %v2708_v24 = vld [vmem:[#allocation10 + $0x828] sm:$0xff]  ;;  %v2695_v9 = vld [vmem:[#allocation10 + $0x7c0] sm:$0xff]  ;;  %v2698_v36 = vld [vmem:[#allocation10 + $0x7d8] sm:$0xff] }
 0x2f9   : > { %6422 = vst [vmem:[%s9475_s23 + $0x238] sm:$0x7] %v9847_v58  ;;  %v7309_v62 = vpack.c.bf16 %v2708_v24, %v2705_v60  ;;  %v7395_v15 = vpack.c.bf16 %v2698_v36, %v2695_v9  ;;  %v2701_v60 = vld [vmem:[#allocation10 + $0x7f0] sm:$0xff]  ;;  %v2704_v24 = vld [vmem:[#allocation10 + $0x808] sm:$0xff] }
 0x2fa   : > { %2979 = vmatmul.mubr.f32.gmra.mrb[38].mxu1 %v8560_v34  ;;  %3391 = vmatmul.mubr.f32.gmra.mrb[94].mxu0 %v9605_v40  ;;  %v2726_v34 = vld [vmem:[#allocation10 + $0x8b8] sm:$0xff]  ;;  %v7399_v54 = vpack.c.bf16 %v2704_v24, %v2701_v60 }
 0x2fb   : > { %2984 = vmatprep.mubr.f32.mxu1 %v8561_v42  ;;  %7294 = vmatpush1.bf16.msra.mxu1 %v7293_v17  ;;  %v2730_v42 = vld [vmem:[#allocation10 + $0x8d8] sm:$0xff] }
 0x2fc   : > { %7296 = vmatprep.subr.bf16.mxu1 %v7295_v26  ;;  %3619 = vmatprep.mubr.f32.mxu0 %v10390_v20  ;;  %v2717_v26 = vld [vmem:[#allocation10 + $0x870] sm:$0xff] }
 0x2fe   : > { %2985 = vmatmul.mubr.f32.gmra.mrb[40].mxu1 %v8562_v21  ;;  %v7325_v21 = vpack.c.bf16 %v2732_v12, %v2729_v19  ;;  %v2725_v19 = vld [vmem:[#allocation10 + $0x8b0] sm:$0xff]  ;;  %v2728_v12 = vld [vmem:[#allocation10 + $0x8c8] sm:$0xff] }
 0x2ff   : > { %2990 = vmatprep.mubr.f32.mxu1 %v8563_v28  ;;  %7298 = vmatpush1.bf16.msra.mxu1 %v7297_v55  ;;  %v2733_v55 = vld [vmem:[#allocation10 + $0x8f0] sm:$0xff]  ;;  %v7391_v28 = vpack.c.bf16 %v2692_v3, %v2689_v56  ;;  %v7415_v3 = vpack.c.bf16 %v2728_v12, %v2725_v19  ;;  %v9918_v19 = vld [vmem:[#allocation11] sm:$0xff] }
 0x300   : > { %7300 = vmatprep.subr.bf16.mxu1 %v7299_v22  ;;  %v7323_v22 = vpack.c.bf16 %v2733_v55, %v2730_v42 }
 0x302   : > { %2991 = vmatmul.mubr.f32.gmra.mrb[42].mxu1 %v9830_v14  ;;  %v2721_v14 = vld [vmem:[#allocation10 + $0x890] sm:$0xff] }
 0x303   : > { %2996 = vmatprep.mubr.f32.mxu1 %v8556_v48  ;;  %7302 = vmatpush1.bf16.msra.mxu1 %v7301_v51  ;;  %v7313_v48 = vpack.c.bf16 %v2714_v49, %v2711_v1  ;;  %v7315_v17 = vpack.c.bf16 %v2721_v14, %v2718_v25  ;;  %v2641_v51 = vld [vmem:[#allocation10 + $0x610] sm:$0xff]  ;;  %v2707_v1 = vld [vmem:[#allocation10 + $0x820] sm:$0xff]  ;;  %v2710_v49 = vld [vmem:[#allocation10 + $0x838] sm:$0xff] }
 0x304   : > { %7304 = vmatprep.subr.bf16.mxu1 %v7303_v53  ;;  %v2644_v53 = vld [vmem:[#allocation10 + $0x628] sm:$0xff]  ;;  %v7403_v14 = vpack.c.bf16 %v2710_v49, %v2707_v1 }
 0x305   : > { %v7393_v59 = vpack.c.bf16 %v2644_v53, %v2641_v51  ;;  %v2731_v51 = vld [vmem:[#allocation10 + $0x8e0] sm:$0xff]  ;;  %v2734_v53 = vld [vmem:[#allocation10 + $0x8f8] sm:$0xff] }
 0x306   : > { %2997 = vmatmul.mubr.f32.gmra.mrb[44].mxu1 %v8558_v5  ;;  %v2720_v5 = vld [vmem:[#allocation10 + $0x888] sm:$0xff]  ;;  %v7419_v36 = vpack.c.bf16 %v2734_v53, %v2731_v51 }
 0x307   : > { %3002 = vmatprep.mubr.f32.mxu1 %v9607_v16  ;;  %7306 = vmatpush1.bf16.msra.mxu1 %v7305_v39  ;;  %v2727_v16 = vld [vmem:[#allocation10 + $0x8c0] sm:$0xff]  ;;  %v7317_v32 = vpack.c.bf16 %v2720_v5, %v2717_v26  ;;  %v2713_v26 = vld [vmem:[#allocation10 + $0x850] sm:$0xff]  ;;  %v2716_v5 = vld [vmem:[#allocation10 + $0x868] sm:$0xff] }
 0x308   : > { %7308 = vmatprep.subr.bf16.mxu1 %v7307_v7  ;;  %v7319_v18 = vpack.c.bf16 %v2727_v16, %v2724_v61  ;;  %v2647_v39 = vld [vmem:[#allocation10 + $0x640] sm:$0xff]  ;;  %v2650_v7 = vld [vmem:[#allocation10 + $0x658] sm:$0xff]  ;;  %v7407_v16 = vpack.c.bf16 %v2716_v5, %v2713_v26 }
 0x309   : > { %v7397_v43 = vpack.c.bf16 %v2650_v7, %v2647_v39 }
 0x30a   : > { %3003 = vmatmul.mubr.f32.gmra.mrb[46].mxu1 %v9605_v40  ;;  %v7321_v40 = vpack.c.bf16 %v2726_v34, %v2723_v44  ;;  %v2719_v44 = vld [vmem:[#allocation10 + $0x880] sm:$0xff]  ;;  %v2722_v34 = vld [vmem:[#allocation10 + $0x898] sm:$0xff] }
 0x30b   : > { %7310 = vmatpush1.bf16.msra.mxu1 %v7309_v62  ;;  %3073 = vmatprep.mubr.f32.mxu1 %v9685_v47  ;;  %v2653_v62 = vld [vmem:[#allocation10 + $0x670] sm:$0xff]  ;;  %v7411_v55 = vpack.c.bf16 %v2722_v34, %v2719_v44 }
 0x30c   : > { %7312 = vmatprep.subr.bf16.mxu1 %v7311_v31  ;;  %v2656_v31 = vld [vmem:[#allocation10 + $0x688] sm:$0xff] }
 0x30d   : > { %v7401_v25 = vpack.c.bf16 %v2656_v31, %v2653_v62 }
 0x30f   : > { %7314 = vmatpush1.bf16.msra.mxu1 %v7313_v48  ;;  %v2659_v48 = vld [vmem:[#allocation10 + $0x6a0] sm:$0xff] }
 0x310   : > { %7316 = vmatprep.subr.bf16.mxu1 %v7315_v17  ;;  %v2662_v17 = vld [vmem:[#allocation10 + $0x6b8] sm:$0xff] }
 0x311   : > { %v7405_v61 = vpack.c.bf16 %v2662_v17, %v2659_v48 }
 0x313   : > { %7318 = vmatpush1.bf16.msra.mxu1 %v7317_v32  ;;  %v2665_v32 = vld [vmem:[#allocation10 + $0x6d0] sm:$0xff] }
 0x314   : > { %7320 = vmatprep.subr.bf16.mxu1 %v7319_v18  ;;  %v2668_v18 = vld [vmem:[#allocation10 + $0x6e8] sm:$0xff] }
 0x315   : > { %v7409_v42 = vpack.c.bf16 %v2668_v18, %v2665_v32 }
 0x317   : > { %7322 = vmatpush1.bf16.msra.mxu1 %v7321_v40  ;;  %v2671_v40 = vld [vmem:[#allocation10 + $0x700] sm:$0xff] }
 0x318   : > { %7324 = vmatprep.subr.bf16.mxu1 %v7323_v22  ;;  %v2674_v22 = vld [vmem:[#allocation10 + $0x718] sm:$0xff] }
 0x319   : > { %v7413_v56 = vpack.c.bf16 %v2674_v22, %v2671_v40 }
 0x31b   : > { %7326 = vmatpush1.bf16.msra.mxu1 %v7325_v21  ;;  %v2677_v21 = vld [vmem:[#allocation10 + $0x730] sm:$0xff] }
 0x31c   : > { %7392 = vmatprep.subr.bf16.mxu1 %v7391_v28  ;;  %v2680_v28 = vld [vmem:[#allocation10 + $0x748] sm:$0xff] }
 0x31d   : > { %v7417_v9 = vpack.c.bf16 %v2680_v28, %v2677_v21 }
 0x31e   : > { %3074 = vmatmul.mubr.f32.vlgmr.msra.gmra.mrb[24].mxu1 %v9683_v27 }
 0x31f   : > { %3079 = vmatprep.mubr.f32.mxu1 %v9698_v11  ;;  %7394 = vmatpush3.bf16.msra.mxu1 %v7393_v59  ;;  %v2683_v59 = vld [vmem:[#allocation10 + $0x760] sm:$0xff] }
 0x320   : > { %7396 = vmatprep.subr.bf16.mxu1 %v7395_v15  ;;  %v2686_v15 = vld [vmem:[#allocation10 + $0x778] sm:$0xff] }
 0x321   : > { %v7421_v39 = vpack.c.bf16 %v2686_v15, %v2683_v59 }
 0x322   : > { %3080 = vmatmul.mubr.f32.gmra.mrb[26].mxu1 %v9695_v35 }
 0x323   : > { %3085 = vmatprep.mubr.f32.mxu1 %v9710_v10  ;;  %7398 = vmatpush3.bf16.msra.mxu1 %v7397_v43 }
 0x324   : > { %7400 = vmatprep.subr.bf16.mxu1 %v7399_v54 }
 0x326   : > { %3086 = vmatmul.mubr.f32.gmra.mrb[28].mxu1 %v9707_v33 }
 0x327   : > { %3091 = vmatprep.mubr.f32.mxu1 %v9723_v50  ;;  %7402 = vmatpush3.bf16.msra.mxu1 %v7401_v25 }
 0x328   : > { %7404 = vmatprep.subr.bf16.mxu1 %v7403_v14 }
 0x32a   : > { %3092 = vmatmul.mubr.f32.gmra.mrb[30].mxu1 %v9719_v2 }
 0x32b   : > { %3097 = vmatprep.mubr.f32.mxu1 %v9736_v6  ;;  %7406 = vmatpush3.bf16.msra.mxu1 %v7405_v61 }
 0x32c   : > { %7408 = vmatprep.subr.bf16.mxu1 %v7407_v16 }
 0x32e   : > { %3098 = vmatmul.mubr.f32.gmra.mrb[32].mxu1 %v9732_v8 }
 0x32f   : > { %3103 = vmatprep.mubr.f32.mxu1 %v9751_v46  ;;  %7410 = vmatpush3.bf16.msra.mxu1 %v7409_v42 }
 0x330   : > { %7412 = vmatprep.subr.bf16.mxu1 %v7411_v55 }
 0x332   : > { %3104 = vmatmul.mubr.f32.gmra.mrb[34].mxu1 %v9746_v0 }
 0x333   : > { %3109 = vmatprep.mubr.f32.mxu1 %v9767_v52  ;;  %7414 = vmatpush3.bf16.msra.mxu1 %v7413_v56 }
 0x334   : > { %7416 = vmatprep.subr.bf16.mxu1 %v7415_v3 }
 0x336   : > { %3110 = vmatmul.mubr.f32.gmra.mrb[36].mxu1 %v9762_v63 }
 0x337   : > { %3115 = vmatprep.mubr.f32.mxu1 %v9783_v57  ;;  %7418 = vmatpush3.bf16.msra.mxu1 %v7417_v9 }
 0x338   : > { %7420 = vmatprep.subr.bf16.mxu1 %v7419_v36 }
 0x33a   : > { %3116 = vmatmul.mubr.f32.gmra.mrb[38].mxu1 %v9778_v45 }
 0x33b   : > { %3121 = vmatprep.mubr.f32.mxu1 %v9799_v38  ;;  %7422 = vmatpush3.bf16.msra.mxu1 %v7421_v39 }
 0x33e   : > { %3122 = vmatmul.mubr.f32.gmra.mrb[40].mxu1 %v9794_v37 }
 0x33f   : > { %3127 = vmatprep.mubr.f32.mxu1 %v9815_v41 }
 0x342   : > { %3128 = vmatmul.mubr.f32.gmra.mrb[42].mxu1 %v9810_v30 }
 0x343   : > { %3133 = vmatprep.mubr.f32.mxu1 %v9833_v23 }
 0x346   : > { %3134 = vmatmul.mubr.f32.gmra.mrb[44].mxu1 %v9826_v29 }
 0x347   : > { %3139 = vmatprep.mubr.f32.mxu1 %v9847_v58 }
 0x34a   : > { %3140 = vmatmul.mubr.f32.gmra.mrb[46].mxu1 %v9843_v4 }
 0x34b   : > { %3460 = vmatprep.mubr.f32.mxu1 %v9685_v47 }
 0x34e   : > { %3461 = vmatmul.mubr.f32.vlgmr.msra.gmra.mrb[48].mxu1 %v9683_v27 }
 0x34f   : > { %3465 = vmatprep.mubr.f32.mxu1 %v9698_v11 }
 0x352   : > { %3466 = vmatmul.mubr.f32.gmra.mrb[50].mxu1 %v9695_v35 }
 0x353   : > { %3470 = vmatprep.mubr.f32.mxu1 %v9710_v10 }
 0x356   : > { %3471 = vmatmul.mubr.f32.gmra.mrb[52].mxu1 %v9707_v33 }
 0x357   : > { %3475 = vmatprep.mubr.f32.mxu1 %v9723_v50 }
 0x35a   : > { %3476 = vmatmul.mubr.f32.gmra.mrb[54].mxu1 %v9719_v2 }
 0x35b   : > { %3480 = vmatprep.mubr.f32.mxu1 %v9736_v6 }
 0x35e   : > { %3481 = vmatmul.mubr.f32.gmra.mrb[56].mxu1 %v9732_v8 }
 0x35f   : > { %3485 = vmatprep.mubr.f32.mxu1 %v9751_v46 }
 0x362   : > { %3486 = vmatmul.mubr.f32.gmra.mrb[58].mxu1 %v9746_v0 }
 0x363   : > { %3490 = vmatprep.mubr.f32.mxu1 %v9767_v52 }
 0x366   : > { %3491 = vmatmul.mubr.f32.gmra.mrb[60].mxu1 %v9762_v63 }
 0x367   : > { %3495 = vmatprep.mubr.f32.mxu1 %v9783_v57 }
 0x36a   : > { %3496 = vmatmul.mubr.f32.gmra.mrb[62].mxu1 %v9778_v45 }
 0x36b   : > { %3500 = vmatprep.mubr.f32.mxu1 %v9799_v38 }
 0x36e   : > { %3501 = vmatmul.mubr.f32.gmra.mrb[64].mxu1 %v9794_v37 }
 0x36f   : > { %3505 = vmatprep.mubr.f32.mxu1 %v9815_v41 }
 0x371   : > { %v6494_v27 = vpop.f32.mrb[48].mxu0 }
 0x372   : > { %3506 = vmatmul.mubr.f32.gmra.mrb[66].mxu1 %v9810_v30  ;;  %v6495_v47 = vpop.f32.mrb[49].mxu0 }
 0x373   : > { %v6496_v35 = vadd.f32 %v6495_v47, %v6494_v27  ;;  %3510 = vmatprep.mubr.f32.mxu1 %v9833_v23 }
 0x375   : > { %v6497_v11 = vpop.f32.mrb[50].mxu0 }
 0x376   : > { %3511 = vmatmul.mubr.f32.gmra.mrb[68].mxu1 %v9826_v29  ;;  %v6498_v33 = vpop.f32.mrb[51].mxu0 }
 0x377   : > { %v6499_v10 = vadd.f32 %v6498_v33, %v6497_v11  ;;  %3515 = vmatprep.mubr.f32.mxu1 %v9847_v58 }
 0x379   : > { %v6500_v2 = vpop.f32.mrb[52].mxu0 }
 0x37a   : > { %3516 = vmatmul.mubr.f32.gmra.mrb[70].mxu1 %v9843_v4  ;;  %v6501_v50 = vpop.f32.mrb[53].mxu0 }
 0x37b   : > { %v6502_v8 = vadd.f32 %v6501_v50, %v6500_v2  ;;  %6817 = vmatprep.mubr.msk.f32.mxu1 %vm549_vm0, %v9918_v19 }
 0x37d   : > { %v6503_v6 = vpop.f32.mrb[54].mxu0 }
 0x37e   : > { %v6504_v0 = vpop.f32.mrb[55].mxu0 }
 0x37f   : > { %v6505_v46 = vadd.f32 %v6504_v0, %v6503_v6 }
 0x381   : > { %v6506_v63 = vpop.f32.mrb[56].mxu0 }
 0x382   : > { %v6507_v52 = vpop.f32.mrb[57].mxu0 }
 0x383   : > { %v6508_v45 = vadd.f32 %v6507_v52, %v6506_v63 }
 0x385   : > { %v6509_v57 = vpop.f32.mrb[58].mxu0 }
 0x386   : > { %v6510_v37 = vpop.f32.mrb[59].mxu0 }
 0x387   : > { %v6511_v38 = vadd.f32 %v6510_v37, %v6509_v57 }
 0x389   : > { %v6512_v30 = vpop.f32.mrb[60].mxu0 }
 0x38a   : > { %v6513_v41 = vpop.f32.mrb[61].mxu0 }
 0x38b   : > { %v6514_v29 = vadd.f32 %v6513_v41, %v6512_v30 }
 0x38d   : > { %v6515_v23 = vpop.f32.mrb[62].mxu0 }
 0x38e   : > { %v6516_v7 = vpop.f32.mrb[63].mxu0 }
 0x38f   : > { %v6517_v58 = vadd.f32 %v6516_v7, %v6515_v23 }
 0x391   : > { %v6518_v60 = vpop.f32.mrb[64].mxu0 }
 0x392   : > { %v6519_v24 = vpop.f32.mrb[65].mxu0 }
 0x393   : > { %v6520_v4 = vadd.f32 %v6519_v24, %v6518_v60 }
 0x395   : > { %v6521_v43 = vpop.f32.mrb[66].mxu0 }
 0x396   : > { %v6522_v54 = vpop.f32.mrb[67].mxu0 }
 0x397   : > { %v6523_v62 = vadd.f32 %v6522_v54, %v6521_v43 }
 0x399   : > { %v6524_v31 = vpop.f32.mrb[68].mxu0 }
 0x39a   : > { %v6525_v1 = vpop.f32.mrb[69].mxu0 }
 0x39b   : > { %v6526_v49 = vadd.f32 %v6525_v1, %v6524_v31 }
 0x39d   : > { %v6527_v25 = vpop.f32.mrb[70].mxu0 }
 0x39e   : > { %v6528_v14 = vpop.f32.mrb[71].mxu0 }
 0x39f   : > { %v6529_v48 = vadd.f32 %v6528_v14, %v6527_v25 }
 0x3a1   : > { %v6562_v17 = vpop.f32.mrb[72].mxu0 }
 0x3a2   : > { %v6563_v26 = vpop.f32.mrb[73].mxu0 }
 0x3a3   : > { %v6564_v5 = vadd.f32 %v6563_v26, %v6562_v17 }
 0x3a5   : > { %v9912_v61 = vadd.f32 %v6564_v5, %v6496_v35  ;;  %v6565_v16 = vpop.f32.mrb[74].mxu0 }
 0x3a6   : > { %v6566_v32 = vpop.f32.mrb[75].mxu0 }
 0x3a7   : > { %v6567_v18 = vadd.f32 %v6566_v32, %v6565_v16 }
 0x3a9   : > { %v9914_v44 = vadd.f32 %v6567_v18, %v6499_v10  ;;  %v6568_v34 = vpop.f32.mrb[76].mxu0 }
 0x3aa   : > { %v6569_v42 = vpop.f32.mrb[77].mxu0 }
 0x3ab   : > { %v6570_v55 = vadd.f32 %v6569_v42, %v6568_v34 }
 0x3ad   : > { %v9916_v40 = vadd.f32 %v6570_v55, %v6502_v8  ;;  %v6571_v22 = vpop.f32.mrb[78].mxu0 }
 0x3ae   : > { %v6572_v12 = vpop.f32.mrb[79].mxu0 }
 0x3af   : > { %v6573_v56 = vadd.f32 %v6572_v12, %v6571_v22 }
 0x3b1   : > { %v9922_v3 = vadd.f32 %v6573_v56, %v6505_v46  ;;  %v6574_v21 = vpop.f32.mrb[80].mxu0 }
 0x3b2   : > { %v6575_v28 = vpop.f32.mrb[81].mxu0 }
 0x3b3   : > { %v6576_v51 = vadd.f32 %v6575_v28, %v6574_v21 }
 0x3b5   : > { %v9924_v53 = vadd.f32 %v6576_v51, %v6508_v45  ;;  %v6577_v9 = vpop.f32.mrb[82].mxu0 }
 0x3b6   : > { %v6578_v36 = vpop.f32.mrb[83].mxu0 }
 0x3b7   : > { %v6579_v59 = vadd.f32 %v6578_v36, %v6577_v9 }
 0x3b9   : > { %v9926_v15 = vadd.f32 %v6579_v59, %v6511_v38  ;;  %v6580_v39 = vpop.f32.mrb[84].mxu0 }
 0x3ba   : > { %v6581_v27 = vpop.f32.mrb[85].mxu0 }
 0x3bb   : > { %v6582_v47 = vadd.f32 %v6581_v27, %v6580_v39  ;;  %v3945_v27 = vld [vmem:[#allocation5 + $0x608] sm:$0xff] }
 0x3bd   : > { %v9928_v35 = vadd.f32 %v6582_v47, %v6514_v29  ;;  %v6583_v11 = vpop.f32.mrb[86].mxu0  ;;  %v3949_v47 = vld [vmem:[#allocation5 + $0x628] sm:$0xff] }
 0x3be   : > { %v6584_v33 = vpop.f32.mrb[87].mxu0 }
 0x3bf   : > { %v6585_v10 = vadd.f32 %v6584_v33, %v6583_v11 }
 0x3c1   : > { %v9930_v2 = vadd.f32 %v6585_v10, %v6517_v58  ;;  %v6586_v50 = vpop.f32.mrb[88].mxu0 }
 0x3c2   : > { %v6587_v8 = vpop.f32.mrb[89].mxu0 }
 0x3c3   : > { %v6588_v6 = vadd.f32 %v6587_v8, %v6586_v50 }
 0x3c5   : > { %v9932_v0 = vadd.f32 %v6588_v6, %v6520_v4  ;;  %v6589_v46 = vpop.f32.mrb[90].mxu0  ;;  %v7475_v6 = vpack.c.bf16 %v3949_v47, %v3945_v27 }
 0x3c6   : > { %v6590_v63 = vpop.f32.mrb[91].mxu0 }
 0x3c7   : > { %v6591_v52 = vadd.f32 %v6590_v63, %v6589_v46  ;;  %v3944_v46 = vld [vmem:[#allocation5 + $0x600] sm:$0xff] }
 0x3c8   : > { %v3948_v63 = vld [vmem:[#allocation5 + $0x620] sm:$0xff] }
 0x3c9   : > { %v9934_v45 = vadd.f32 %v6591_v52, %v6523_v62  ;;  %v6592_v57 = vpop.f32.mrb[92].mxu0  ;;  %v3953_v52 = vld [vmem:[#allocation5 + $0x648] sm:$0xff] }
 0x3ca   : > { %v6593_v37 = vpop.f32.mrb[93].mxu0 }
 0x3cb   : > { %v6594_v38 = vadd.f32 %v6593_v37, %v6592_v57  ;;  %v3957_v57 = vld [vmem:[#allocation5 + $0x668] sm:$0xff] }
 0x3cd   : > { %v9936_v30 = vadd.f32 %v6594_v38, %v6526_v49  ;;  %v6595_v41 = vpop.f32.mrb[94].mxu0 }
 0x3ce   : > { %v6596_v29 = vpop.f32.mrb[95].mxu0 }
 0x3cf   : > { %v6597_v23 = vadd.f32 %v6596_v29, %v6595_v41  ;;  %v7477_v41 = vpack.c.bf16 %v3948_v63, %v3944_v46 }
 0x3d1   : > { %v9938_v7 = vadd.f32 %v6597_v23, %v6529_v48  ;;  %v7479_v23 = vpack.c.bf16 %v3957_v57, %v3953_v52  ;;  %v3984_v57 = vld [vmem:[#allocation5 + $0x740] sm:$0xff] }
 0x3f1   : > { %v3075_v58 = vpop.f32.mrb[24].mxu1 }
 0x3f2   : > { %v3077_v60 = vpop.f32.mrb[25].mxu1 }
 0x3f5   : > { %v3081_v24 = vpop.f32.mrb[26].mxu1 }
 0x3f6   : > { %v7425_v4 = vpack.c.bf16 %v3081_v24, %v3075_v58  ;;  %v3083_v43 = vpop.f32.mrb[27].mxu1  ;;  %v3952_v58 = vld [vmem:[#allocation5 + $0x640] sm:$0xff]  ;;  %v3961_v24 = vld [vmem:[#allocation5 + $0x688] sm:$0xff] }
 0x3f7   : > { %v7423_v54 = vpack.c.bf16 %v3083_v43, %v3077_v60  ;;  %v3956_v60 = vld [vmem:[#allocation5 + $0x660] sm:$0xff] }
 0x3f9   : > { %v3087_v31 = vpop.f32.mrb[28].mxu1  ;;  %7424 = vmatprep.subr.bf16.mxu0 %v7423_v54 }
 0x3fa   : > { %v3089_v62 = vpop.f32.mrb[29].mxu1  ;;  %7426 = vmatpush1.bf16.msra.mxu0 %v7425_v4  ;;  %v3965_v4 = vld [vmem:[#allocation5 + $0x6a8] sm:$0xff] }
 0x3fd   : > { %v3093_v1 = vpop.f32.mrb[30].mxu1 }
 0x3fe   : > { %v7429_v25 = vpack.c.bf16 %v3093_v1, %v3087_v31  ;;  %v3095_v14 = vpop.f32.mrb[31].mxu1  ;;  %v7481_v1 = vpack.c.bf16 %v3956_v60, %v3952_v58  ;;  %v9977_v58 = vld [vmem:[#allocation11 + $0x28] sm:$0xff] }
 0x3ff   : > { %v7427_v49 = vpack.c.bf16 %v3095_v14, %v3089_v62  ;;  %v9953_v62 = vld [vmem:[#allocation11 + $0x8] sm:$0xff]  ;;  %v7483_v14 = vpack.c.bf16 %v3965_v4, %v3961_v24 }
 0x401   : > { %v3099_v17 = vpop.f32.mrb[32].mxu1  ;;  %7428 = vmatprep.subr.bf16.mxu0 %v7427_v49  ;;  %v3960_v49 = vld [vmem:[#allocation5 + $0x680] sm:$0xff] }
 0x402   : > { %v3101_v26 = vpop.f32.mrb[33].mxu1  ;;  %7430 = vmatpush1.bf16.msra.mxu0 %v7429_v25 }
 0x405   : > { %v3105_v48 = vpop.f32.mrb[34].mxu1 }
 0x406   : > { %v7433_v5 = vpack.c.bf16 %v3105_v48, %v3099_v17  ;;  %v3107_v16 = vpop.f32.mrb[35].mxu1  ;;  %v3964_v17 = vld [vmem:[#allocation5 + $0x6a0] sm:$0xff] }
 0x407   : > { %v7431_v32 = vpack.c.bf16 %v3107_v16, %v3101_v26  ;;  %v9959_v16 = vld [vmem:[#allocation11 + $0x10] sm:$0xff] }
 0x409   : > { %v3111_v18 = vpop.f32.mrb[36].mxu1  ;;  %7432 = vmatprep.subr.bf16.mxu0 %v7431_v32 }
 0x40a   : > { %v3113_v34 = vpop.f32.mrb[37].mxu1  ;;  %7434 = vmatpush1.bf16.msra.mxu0 %v7433_v5 }
 0x40d   : > { %v3117_v42 = vpop.f32.mrb[38].mxu1 }
 0x40e   : > { %v7437_v55 = vpack.c.bf16 %v3117_v42, %v3111_v18  ;;  %v3119_v22 = vpop.f32.mrb[39].mxu1 }
 0x40f   : > { %v7435_v12 = vpack.c.bf16 %v3119_v22, %v3113_v34  ;;  %v7485_v34 = vpack.c.bf16 %v3964_v17, %v3960_v49  ;;  %v3972_v22 = vld [vmem:[#allocation5 + $0x6e0] sm:$0xff] }
 0x411   : > { %v3123_v56 = vpop.f32.mrb[40].mxu1  ;;  %7436 = vmatprep.subr.bf16.mxu0 %v7435_v12 }
 0x412   : > { %v3125_v21 = vpop.f32.mrb[41].mxu1  ;;  %7438 = vmatpush1.bf16.msra.mxu0 %v7437_v55  ;;  %v3968_v55 = vld [vmem:[#allocation5 + $0x6c0] sm:$0xff] }
 0x415   : > { %v3129_v28 = vpop.f32.mrb[42].mxu1 }
 0x416   : > { %v7441_v51 = vpack.c.bf16 %v3129_v28, %v3123_v56  ;;  %v3131_v9 = vpop.f32.mrb[43].mxu1  ;;  %v3977_v56 = vld [vmem:[#allocation5 + $0x708] sm:$0xff] }
 0x417   : > { %v7439_v36 = vpack.c.bf16 %v3131_v9, %v3125_v21  ;;  %v3981_v21 = vld [vmem:[#allocation5 + $0x728] sm:$0xff] }
 0x419   : > { %v3135_v59 = vpop.f32.mrb[44].mxu1  ;;  %7440 = vmatprep.subr.bf16.mxu0 %v7439_v36  ;;  %v7489_v36 = vpack.c.bf16 %v3972_v22, %v3968_v55 }
 0x41a   : > { %v3137_v39 = vpop.f32.mrb[45].mxu1  ;;  %7442 = vmatpush1.bf16.msra.mxu0 %v7441_v51  ;;  %v9965_v51 = vld [vmem:[#allocation11 + $0x18] sm:$0xff] }
 0x41d   : > { %v3141_v11 = vpop.f32.mrb[46].mxu1 }
 0x41e   : > { %v7446_v33 = vpack.c.bf16 %v3141_v11, %v3135_v59  ;;  %v3143_v10 = vpop.f32.mrb[47].mxu1  ;;  %v7491_v59 = vpack.c.bf16 %v3981_v21, %v3977_v56  ;;  %v3985_v11 = vld [vmem:[#allocation5 + $0x748] sm:$0xff] }
 0x41f   : > { %v7443_v8 = vpack.c.bf16 %v3143_v10, %v3137_v39  ;;  %v3976_v39 = vld [vmem:[#allocation5 + $0x700] sm:$0xff] }
 0x421   : > { %v6630_v37 = vpop.f32.mrb[48].mxu1  ;;  %7445 = vmatprep.subr.msk.bf16.mxu0 %vm9941_vm4, %v7443_v8  ;;  %v9971_v8 = vld [vmem:[#allocation11 + $0x20] sm:$0xff] }
 0x422   : > { %v6631_v38 = vpop.f32.mrb[49].mxu1  ;;  %7448 = vmatpush1.bf16.msk.msra.mxu0 %vm9941_vm4, %v7446_v33  ;;  %v3989_v33 = vld [vmem:[#allocation5 + $0x768] sm:$0xff] }
 0x423   : > { %v6632_v29 = vadd.f32 %v6631_v38, %v6630_v37  ;;  %7476 = vmatprep.subr.bf16.mxu0 %v7475_v6  ;;  %v7495_v52 = vpack.c.bf16 %v3989_v33, %v3985_v11  ;;  %v3988_v37 = vld [vmem:[#allocation5 + $0x760] sm:$0xff] }
 0x424   : > { %v7497_v24 = vpack.c.bf16 %v3988_v37, %v3984_v57  ;;  %v4024_v57 = vld [vmem:[#allocation5 + $0x880] sm:$0xff] }
 0x425   : > { %v3463_v43 = vadd.f32 %v6632_v29, %v9912_v61  ;;  %v6633_v54 = vpop.f32.mrb[50].mxu1  ;;  %6425 = vmatmul.mubr.msk.f32.vlgmr.msra.gmra.mrb[96].mxu0 %vm549_vm0, %v9918_v19  ;;  %v3969_v61 = vld [vmem:[#allocation5 + $0x6c8] sm:$0xff]  ;;  %v4028_v37 = vld [vmem:[#allocation5 + $0x8a0] sm:$0xff] }
 0x426   : > { %v6634_v31 = vpop.f32.mrb[51].mxu1  ;;  %3625 = vmatprep.mubr.f32.mxu0 %v10390_v20  ;;  %7478 = vmatpush1.bf16.msra.mxu0 %v7477_v41  ;;  %v3973_v19 = vld [vmem:[#allocation5 + $0x6e8] sm:$0xff] }
 0x427   : > { %v6635_v25 = vadd.f32 %v6634_v31, %v6633_v54  ;;  %7480 = vmatprep.subr.bf16.mxu0 %v7479_v23  ;;  %v7487_v42 = vpack.c.bf16 %v3973_v19, %v3969_v61  ;;  %v3993_v41 = vld [vmem:[#allocation5 + $0x788] sm:$0xff]  ;;  %v4000_v61 = vld [vmem:[#allocation5 + $0x7c0] sm:$0xff] }
 0x428   : > { %v3997_v29 = vld [vmem:[#allocation5 + $0x7a8] sm:$0xff]  ;;  %v4004_v19 = vld [vmem:[#allocation5 + $0x7e0] sm:$0xff] }
 0x429   : > { %v3468_v26 = vadd.f32 %v6635_v25, %v9914_v44  ;;  %v6636_v48 = vpop.f32.mrb[52].mxu1  ;;  %6426 = vmatmul.mubr.msk.f32.gmra.mrb[98].mxu0 %vm549_vm0, %v9953_v62  ;;  %v7499_v4 = vpack.c.bf16 %v3997_v29, %v3993_v41  ;;  %v4005_v25 = vld [vmem:[#allocation5 + $0x7e8] sm:$0xff]  ;;  %v7505_v55 = vpack.c.bf16 %v4004_v19, %v4000_v61  ;;  %v4040_v61 = vld [vmem:[#allocation5 + $0x900] sm:$0xff] }
 0x42a   : > { %v6637_v5 = vpop.f32.mrb[53].mxu1  ;;  %3631 = vmatprep.mubr.f32.mxu0 %v10390_v20  ;;  %7482 = vmatpush1.bf16.msra.mxu0 %v7481_v1  ;;  %v4001_v1 = vld [vmem:[#allocation5 + $0x7c8] sm:$0xff]  ;;  %v4044_v19 = vld [vmem:[#allocation5 + $0x920] sm:$0xff] }
 0x42b   : > { %v6638_v32 = vadd.f32 %v6637_v5, %v6636_v48  ;;  %v7449_v18 = vpack.c.bf16 %v3468_v26, %v3463_v43  ;;  %7484 = vmatprep.subr.bf16.mxu0 %v7483_v14  ;;  %v3992_v43 = vld [vmem:[#allocation5 + $0x780] sm:$0xff]  ;;  %v7503_v48 = vpack.c.bf16 %v4005_v25, %v4001_v1  ;;  %v4033_v41 = vld [vmem:[#allocation5 + $0x8c8] sm:$0xff] }
 0x42c   : > { %v4037_v29 = vld [vmem:[#allocation5 + $0x8e8] sm:$0xff] }
 0x42d   : > { %v3473_v44 = vadd.f32 %v6638_v32, %v9916_v40  ;;  %v6639_v12 = vpop.f32.mrb[54].mxu1  ;;  %7450 = vmatprep.subr.bf16.mxu1 %v7449_v18  ;;  %6427 = vmatmul.mubr.msk.f32.gmra.mrb[100].mxu0 %vm549_vm0, %v9959_v16  ;;  %v3980_v40 = vld [vmem:[#allocation5 + $0x720] sm:$0xff]  ;;  %v4041_v1 = vld [vmem:[#allocation5 + $0x908] sm:$0xff] }
 0x42e   : > { %v6640_v28 = vpop.f32.mrb[55].mxu1  ;;  %7452 = vmatpush3.bf16.msra.mxu1 %v7449_v18  ;;  %3637 = vmatprep.mubr.f32.mxu0 %v10390_v20  ;;  %v7493_v63 = vpack.c.bf16 %v3980_v40, %v3976_v39  ;;  %v4013_v18 = vld [vmem:[#allocation5 + $0x828] sm:$0xff] }
 0x42f   : > { %v6641_v9 = vadd.f32 %v6640_v28, %v6639_v12  ;;  %7486 = vmatpush1.bf16.msra.mxu0 %v7485_v34  ;;  %v4012_v12 = vld [vmem:[#allocation5 + $0x820] sm:$0xff]  ;;  %v4017_v28 = vld [vmem:[#allocation5 + $0x848] sm:$0xff] }
 0x430   : > { %7488 = vmatprep.subr.bf16.mxu0 %v7487_v42  ;;  %v4045_v25 = vld [vmem:[#allocation5 + $0x928] sm:$0xff] }
 0x431   : > { %v3478_v27 = vadd.f32 %v6641_v9, %v9922_v3  ;;  %v6642_v47 = vpop.f32.mrb[56].mxu1  ;;  %6428 = vmatmul.mubr.msk.f32.gmra.mrb[102].mxu0 %vm549_vm0, %v9965_v51  ;;  %v4021_v9 = vld [vmem:[#allocation5 + $0x868] sm:$0xff] }
 0x432   : > { %v6643_v10 = vpop.f32.mrb[57].mxu1  ;;  %3643 = vmatprep.mubr.f32.mxu0 %v10390_v20  ;;  %v7511_v40 = vpack.c.bf16 %v4021_v9, %v4017_v28  ;;  %v3954_v9 = vld [vmem:[#allocation5 + $0x650] sm:$0xff] }
 0x433   : > { %v6644_v6 = vadd.f32 %v6643_v10, %v6642_v47  ;;  %v7453_v46 = vpack.c.bf16 %v3478_v27, %v3473_v44  ;;  %7490 = vmatpush1.bf16.msra.mxu0 %v7489_v36  ;;  %v4008_v44 = vld [vmem:[#allocation5 + $0x800] sm:$0xff]  ;;  %v4025_v10 = vld [vmem:[#allocation5 + $0x888] sm:$0xff] }
 0x434   : > { %7492 = vmatprep.subr.bf16.mxu0 %v7491_v59  ;;  %v7509_v39 = vpack.c.bf16 %v4012_v12, %v4008_v44  ;;  %v4016_v27 = vld [vmem:[#allocation5 + $0x840] sm:$0xff]  ;;  %v3959_v44 = vld [vmem:[#allocation5 + $0x678] sm:$0xff] }
 0x435   : > { %v3483_v3 = vadd.f32 %v6644_v6, %v9924_v53  ;;  %v6645_v38 = vpop.f32.mrb[58].mxu1  ;;  %7454 = vmatprep.subr.bf16.mxu1 %v7453_v46  ;;  %6429 = vmatmul.mubr.msk.f32.gmra.mrb[104].mxu0 %vm549_vm0, %v9971_v8  ;;  %v3996_v53 = vld [vmem:[#allocation5 + $0x7a0] sm:$0xff]  ;;  %v4029_v6 = vld [vmem:[#allocation5 + $0x8a8] sm:$0xff] }
 0x436   : > { %v6646_v23 = vpop.f32.mrb[59].mxu1  ;;  %7456 = vmatpush3.bf16.msra.mxu1 %v7453_v46  ;;  %3649 = vmatprep.mubr.f32.mxu0 %v10390_v20  ;;  %v7501_v26 = vpack.c.bf16 %v3996_v53, %v3992_v43  ;;  %v4020_v47 = vld [vmem:[#allocation5 + $0x860] sm:$0xff] }
 0x437   : > { %v6647_v60 = vadd.f32 %v6646_v23, %v6645_v38  ;;  %7494 = vmatpush1.bf16.msra.mxu0 %v7493_v63  ;;  %v7513_v63 = vpack.c.bf16 %v4020_v47, %v4016_v27  ;;  %v4032_v43 = vld [vmem:[#allocation5 + $0x8c0] sm:$0xff]  ;;  %v3962_v27 = vld [vmem:[#allocation5 + $0x690] sm:$0xff] }
 0x438   : > { %7496 = vmatprep.subr.bf16.mxu0 %v7495_v52  ;;  %v7515_v52 = vpack.c.bf16 %v4029_v6, %v4025_v10  ;;  %v4036_v53 = vld [vmem:[#allocation5 + $0x8e0] sm:$0xff]  ;;  %v3966_v47 = vld [vmem:[#allocation5 + $0x6b0] sm:$0xff] }
 0x439   : > { %v3488_v54 = vadd.f32 %v6647_v60, %v9926_v15  ;;  %v6648_v31 = vpop.f32.mrb[60].mxu1  ;;  %6430 = vmatmul.mubr.msk.f32.gmra.mrb[106].mxu0 %vm549_vm0, %v9977_v58  ;;  %v4009_v15 = vld [vmem:[#allocation5 + $0x808] sm:$0xff]  ;;  %v3974_v6 = vld [vmem:[#allocation5 + $0x6f0] sm:$0xff] }
 0x43a   : > { %v6649_v14 = vpop.f32.mrb[61].mxu1  ;;  %v7507_v22 = vpack.c.bf16 %v4013_v18, %v4009_v15  ;;  %v4053_v15 = vld [vmem:[#allocation5 + $0x968] sm:$0xff] }
 0x43b   : > { %v6650_v49 = vadd.f32 %v6649_v14, %v6648_v31  ;;  %v7457_v17 = vpack.c.bf16 %v3488_v54, %v3483_v3  ;;  %7498 = vmatpush1.bf16.msra.mxu0 %v7497_v24  ;;  %v7517_v24 = vpack.c.bf16 %v4028_v37, %v4024_v57  ;;  %v3978_v57 = vld [vmem:[#allocation5 + $0x710] sm:$0xff]  ;;  %v3987_v37 = vld [vmem:[#allocation5 + $0x758] sm:$0xff] }
 0x43c   : > { %7500 = vmatprep.subr.bf16.mxu0 %v7499_v4  ;;  %v7519_v4 = vpack.c.bf16 %v4037_v29, %v4033_v41  ;;  %v3986_v41 = vld [vmem:[#allocation5 + $0x750] sm:$0xff] }
 0x43d   : > { %v3493_v5 = vadd.f32 %v6650_v49, %v9928_v35  ;;  %v6651_v32 = vpop.f32.mrb[62].mxu1  ;;  %7458 = vmatprep.subr.bf16.mxu1 %v7457_v17  ;;  %v3947_v49 = vld [vmem:[#allocation5 + $0x618] sm:$0xff]  ;;  %v3990_v29 = vld [vmem:[#allocation5 + $0x770] sm:$0xff] }
 0x43e   : > { %v6652_v34 = vpop.f32.mrb[63].mxu1  ;;  %7460 = vmatpush3.bf16.msra.mxu1 %v7457_v17  ;;  %v7521_v17 = vpack.c.bf16 %v4036_v53, %v4032_v43  ;;  %v4003_v43 = vld [vmem:[#allocation5 + $0x7d8] sm:$0xff] }
 0x43f   : > { %v6653_v42 = vadd.f32 %v6652_v34, %v6651_v32  ;;  %7502 = vmatpush1.bf16.msra.mxu0 %v7501_v26  ;;  %v3951_v26 = vld [vmem:[#allocation5 + $0x638] sm:$0xff]  ;;  %v4049_v32 = vld [vmem:[#allocation5 + $0x948] sm:$0xff]  ;;  %v3946_v34 = vld [vmem:[#allocation5 + $0x610] sm:$0xff] }
 0x440   : > { %7504 = vmatprep.subr.bf16.mxu0 %v7503_v48  ;;  %v7523_v48 = vpack.c.bf16 %v4045_v25, %v4041_v1  ;;  %v7571_v18 = vpack.c.bf16 %v3951_v26, %v3947_v49  ;;  %v7527_v12 = vpack.c.bf16 %v4053_v15, %v4049_v32  ;;  %v4007_v53 = vld [vmem:[#allocation5 + $0x7f8] sm:$0xff]  ;;  %v4002_v1 = vld [vmem:[#allocation5 + $0x7d0] sm:$0xff] }
 0x441   : > { %v3498_v56 = vadd.f32 %v6653_v42, %v9930_v2  ;;  %v6654_v21 = vpop.f32.mrb[64].mxu1  ;;  %v3950_v42 = vld [vmem:[#allocation5 + $0x630] sm:$0xff] }
 0x442   : > { %v6655_v36 = vpop.f32.mrb[65].mxu1  ;;  %v4006_v25 = vld [vmem:[#allocation5 + $0x7f0] sm:$0xff] }
 0x443   : > { %v6656_v35 = vadd.f32 %v6655_v36, %v6654_v21  ;;  %v7461_v59 = vpack.c.bf16 %v3498_v56, %v3493_v5  ;;  %7506 = vmatpush1.bf16.msra.mxu0 %v7505_v55  ;;  %v3955_v55 = vld [vmem:[#allocation5 + $0x658] sm:$0xff]  ;;  %v4048_v56 = vld [vmem:[#allocation5 + $0x940] sm:$0xff]  ;;  %v3958_v36 = vld [vmem:[#allocation5 + $0x670] sm:$0xff]  ;;  %v7601_v49 = vpack.c.bf16 %v4006_v25, %v4002_v1 }
 0x444   : > { %7508 = vmatprep.subr.bf16.mxu0 %v7507_v22  ;;  %v7525_v22 = vpack.c.bf16 %v4044_v19, %v4040_v61  ;;  %v4052_v21 = vld [vmem:[#allocation5 + $0x960] sm:$0xff]  ;;  %v7575_v28 = vpack.c.bf16 %v3959_v44, %v3955_v55  ;;  %v4010_v26 = vld [vmem:[#allocation5 + $0x810] sm:$0xff]  ;;  %v4019_v61 = vld [vmem:[#allocation5 + $0x858] sm:$0xff] }
 0x445   : > { %v3503_v11 = vadd.f32 %v6656_v35, %v9932_v0  ;;  %v6657_v33 = vpop.f32.mrb[66].mxu1  ;;  %7462 = vmatprep.subr.bf16.mxu1 %v7461_v59  ;;  %v7529_v35 = vpack.c.bf16 %v4052_v21, %v4048_v56  ;;  %v4023_v19 = vld [vmem:[#allocation5 + $0x878] sm:$0xff]  ;;  %v4018_v15 = vld [vmem:[#allocation5 + $0x850] sm:$0xff]  ;;  %v4061_v55 = vld [vmem:[#allocation5 + $0x9a8] sm:$0xff] }
 0x446   : > { %v6658_v46 = vpop.f32.mrb[67].mxu1  ;;  %7464 = vmatpush3.bf16.msra.mxu1 %v7461_v59  ;;  %v3963_v59 = vld [vmem:[#allocation5 + $0x698] sm:$0xff]  ;;  %v7607_v32 = vpack.c.bf16 %v4023_v19, %v4019_v61  ;;  %v4060_v56 = vld [vmem:[#allocation5 + $0x9a0] sm:$0xff]  ;;  %v4066_v25 = vld [vmem:[#allocation5 + $0x9d0] sm:$0xff] }
 0x447   : > { %v6659_v2 = vadd.f32 %v6658_v46, %v6657_v33  ;;  %7510 = vmatpush1.bf16.msra.mxu0 %v7509_v39  ;;  %v3967_v39 = vld [vmem:[#allocation5 + $0x6b8] sm:$0xff] }
 0x448   : > { %7512 = vmatprep.subr.bf16.mxu0 %v7511_v40  ;;  %v7577_v40 = vpack.c.bf16 %v3958_v36, %v3954_v9  ;;  %v7579_v50 = vpack.c.bf16 %v3967_v39, %v3963_v59  ;;  %v3975_v33 = vld [vmem:[#allocation5 + $0x6f8] sm:$0xff]  ;;  %v4034_v39 = vld [vmem:[#allocation5 + $0x8d0] sm:$0xff] }
 0x449   : > { %v3508_v3 = vadd.f32 %v6659_v2, %v9934_v45  ;;  %v6660_v38 = vpop.f32.mrb[68].mxu1  ;;  %v3979_v46 = vld [vmem:[#allocation5 + $0x718] sm:$0xff] }
 0x44a   : > { %v6661_v23 = vpop.f32.mrb[69].mxu1  ;;  %v3983_v2 = vld [vmem:[#allocation5 + $0x738] sm:$0xff] }
 0x44b   : > { %v6662_v0 = vadd.f32 %v6661_v23, %v6660_v38  ;;  %v7465_v60 = vpack.c.bf16 %v3508_v3, %v3503_v11  ;;  %7514 = vmatpush1.bf16.msra.mxu0 %v7513_v63  ;;  %v3971_v11 = vld [vmem:[#allocation5 + $0x6d8] sm:$0xff] }
 0x44c   : > { %7516 = vmatprep.subr.bf16.mxu0 %v7515_v52  ;;  %v7583_v10 = vpack.c.bf16 %v3975_v33, %v3971_v11  ;;  %v7587_v52 = vpack.c.bf16 %v3983_v2, %v3979_v46  ;;  %v3991_v3 = vld [vmem:[#allocation5 + $0x778] sm:$0xff]  ;;  %v4064_v33 = vld [vmem:[#allocation5 + $0x9c0] sm:$0xff] }
 0x44d   : > { %v3513_v54 = vadd.f32 %v6662_v0, %v9936_v30  ;;  %v6663_v31 = vpop.f32.mrb[70].mxu1  ;;  %7466 = vmatprep.subr.bf16.mxu1 %v7465_v60  ;;  %v7591_v38 = vpack.c.bf16 %v3991_v3, %v3987_v37  ;;  %v3995_v23 = vld [vmem:[#allocation5 + $0x798] sm:$0xff]  ;;  %v4073_v3 = vld [vmem:[#allocation5 + $0xa08] sm:$0xff] }
 0x44e   : > { %v6664_v14 = vpop.f32.mrb[71].mxu1  ;;  %7468 = vmatpush3.bf16.msra.mxu1 %v7465_v60  ;;  %v3999_v0 = vld [vmem:[#allocation5 + $0x7b8] sm:$0xff]  ;;  %v7593_v60 = vpack.c.bf16 %v3990_v29, %v3986_v41  ;;  %v4050_v41 = vld [vmem:[#allocation5 + $0x950] sm:$0xff] }
 0x44f   : > { %v6665_v45 = vadd.f32 %v6664_v14, %v6663_v31  ;;  %7518 = vmatpush1.bf16.msra.mxu0 %v7517_v24  ;;  %v3994_v24 = vld [vmem:[#allocation5 + $0x790] sm:$0xff]  ;;  %v7599_v31 = vpack.c.bf16 %v4007_v53, %v4003_v43  ;;  %v4011_v14 = vld [vmem:[#allocation5 + $0x818] sm:$0xff] }
 0x450   : > { %7520 = vmatprep.subr.bf16.mxu0 %v7519_v4  ;;  %v3998_v4 = vld [vmem:[#allocation5 + $0x7b0] sm:$0xff]  ;;  %v4035_v36 = vld [vmem:[#allocation5 + $0x8d8] sm:$0xff] }
 0x451   : > { %v3518_v5 = vadd.f32 %v6665_v45, %v9938_v7  ;;  %v7573_v7 = vpack.c.bf16 %v3950_v42, %v3946_v34  ;;  %v4015_v45 = vld [vmem:[#allocation5 + $0x838] sm:$0xff]  ;;  %v4057_v42 = vld [vmem:[#allocation5 + $0x988] sm:$0xff]  ;;  %v4054_v29 = vld [vmem:[#allocation5 + $0x970] sm:$0xff] }
 0x452   : > { %v4031_v34 = vld [vmem:[#allocation5 + $0x8b8] sm:$0xff]  ;;  %v7531_v44 = vpack.c.bf16 %v4061_v55, %v4057_v42  ;;  %v4062_v43 = vld [vmem:[#allocation5 + $0x9b0] sm:$0xff] }
 0x453   : > { %v7469_v30 = vpack.c.bf16 %v3518_v5, %v3513_v54  ;;  %7522 = vmatpush1.bf16.msra.mxu0 %v7521_v17  ;;  %v7597_v54 = vpack.c.bf16 %v3998_v4, %v3994_v24  ;;  %v7603_v17 = vpack.c.bf16 %v4015_v45, %v4011_v14  ;;  %v4058_v4 = vld [vmem:[#allocation5 + $0x990] sm:$0xff]  ;;  %v4067_v53 = vld [vmem:[#allocation5 + $0x9d8] sm:$0xff] }
 0x454   : > { %7524 = vmatprep.subr.bf16.mxu0 %v7523_v48  ;;  %v4014_v48 = vld [vmem:[#allocation5 + $0x830] sm:$0xff]  ;;  %v4075_v45 = vld [vmem:[#allocation5 + $0xa18] sm:$0xff] }
 0x455   : > { %7471 = vmatprep.subr.msk.bf16.mxu1 %vm9941_vm4, %v7469_v30  ;;  %v7605_v5 = vpack.c.bf16 %v4014_v48, %v4010_v26  ;;  %v4070_v14 = vld [vmem:[#allocation5 + $0x9f0] sm:$0xff] }
 0x456   : > { %7474 = vmatpush3.bf16.msk.msra.mxu1 %vm9941_vm4, %v7469_v30  ;;  %v4022_v30 = vld [vmem:[#allocation5 + $0x870] sm:$0xff] }
 0x457   : > { %7572 = vmatprep.subr.bf16.mxu1 %v7571_v18  ;;  %7526 = vmatpush1.bf16.msra.mxu0 %v7525_v22  ;;  %v4027_v18 = vld [vmem:[#allocation5 + $0x898] sm:$0xff]  ;;  %v7609_v22 = vpack.c.bf16 %v4022_v30, %v4018_v15  ;;  %v4076_v15 = vld [vmem:[#allocation5 + $0xa20] sm:$0xff]  ;;  %v4074_v30 = vld [vmem:[#allocation5 + $0xa10] sm:$0xff] }
 0x458   : > { %7528 = vmatprep.subr.bf16.mxu0 %v7527_v12  ;;  %v4056_v12 = vld [vmem:[#allocation5 + $0x980] sm:$0xff]  ;;  %v7611_v21 = vpack.c.bf16 %v4031_v34, %v4027_v18  ;;  %v4078_v55 = vld [vmem:[#allocation5 + $0xa30] sm:$0xff] }
 0x459   : > { %6818 = vmatmul.mubr.msk.f32.vlgmr.msra.gmra.mrb[72].mxu1 %vm549_vm0, %v9953_v62  ;;  %v7581_v62 = vpack.c.bf16 %v3966_v47, %v3962_v27  ;;  %v7533_v9 = vpack.c.bf16 %v4060_v56, %v4056_v12  ;;  %v4038_v47 = vld [vmem:[#allocation5 + $0x8f0] sm:$0xff] }
 0x45a   : > { %6820 = vmatprep.mubr.msk.f32.mxu1 %vm549_vm0, %v9959_v16  ;;  %7574 = vmatpush1.bf16.msra.mxu1 %v7573_v7  ;;  %v3970_v16 = vld [vmem:[#allocation5 + $0x6d0] sm:$0xff]  ;;  %v7617_v46 = vpack.c.bf16 %v4038_v47, %v4034_v39 }
 0x45b   : > { %7576 = vmatprep.subr.bf16.mxu1 %v7575_v28  ;;  %7530 = vmatpush1.bf16.msra.mxu0 %v7529_v35  ;;  %v7585_v63 = vpack.c.bf16 %v3974_v6, %v3970_v16  ;;  %v4026_v7 = vld [vmem:[#allocation5 + $0x890] sm:$0xff]  ;;  %v4039_v35 = vld [vmem:[#allocation5 + $0x8f8] sm:$0xff] }
 0x45c   : > { %v4030_v28 = vld [vmem:[#allocation5 + $0x8b0] sm:$0xff]  ;;  %7532 = vmatprep.subr.bf16.mxu0 %v7531_v44  ;;  %v7615_v27 = vpack.c.bf16 %v4039_v35, %v4035_v36  ;;  %v4047_v16 = vld [vmem:[#allocation5 + $0x938] sm:$0xff]  ;;  %v4080_v35 = vld [vmem:[#allocation5 + $0xa40] sm:$0xff] }
 0x45d   : > { %6821 = vmatmul.mubr.msk.f32.gmra.mrb[74].mxu1 %vm549_vm0, %v9965_v51  ;;  %v3982_v51 = vld [vmem:[#allocation5 + $0x730] sm:$0xff]  ;;  %v7613_v59 = vpack.c.bf16 %v4030_v28, %v4026_v7  ;;  %v4083_v7 = vld [vmem:[#allocation5 + $0xa58] sm:$0xff] }
 0x45e   : > { %6823 = vmatprep.mubr.msk.f32.mxu1 %vm549_vm0, %v9971_v8  ;;  %7578 = vmatpush1.bf16.msra.mxu1 %v7577_v40  ;;  %v7589_v8 = vpack.c.bf16 %v3982_v51, %v3978_v57  ;;  %v4065_v40 = vld [vmem:[#allocation5 + $0x9c8] sm:$0xff]  ;;  %v4051_v57 = vld [vmem:[#allocation5 + $0x958] sm:$0xff]  ;;  %v4086_v47 = vld [vmem:[#allocation5 + $0xa70] sm:$0xff] }
 0x45f   : > { %7580 = vmatprep.subr.bf16.mxu1 %v7579_v50  ;;  %7534 = vmatpush1.bf16.msra.mxu0 %v7533_v9  ;;  %v4069_v50 = vld [vmem:[#allocation5 + $0x9e8] sm:$0xff]  ;;  %v4055_v51 = vld [vmem:[#allocation5 + $0x978] sm:$0xff] }
 0x460   : > { %v7535_v11 = vpack.c.bf16 %v4069_v50, %v4065_v40  ;;  %v4087_v28 = vld [vmem:[#allocation5 + $0xa78] sm:$0xff]  ;;  %v7637_v40 = vpack.c.bf16 %v4078_v55, %v4074_v30  ;;  %v4084_v50 = vld [vmem:[#allocation5 + $0xa60] sm:$0xff] }
 0x461   : > { %6824 = vmatmul.mubr.msk.f32.gmra.mrb[76].mxu1 %vm549_vm0, %v9977_v58  ;;  %v7595_v58 = vpack.c.bf16 %v3999_v0, %v3995_v23  ;;  %v4059_v0 = vld [vmem:[#allocation5 + $0x998] sm:$0xff]  ;;  %v4096_v30 = vld [vmem:[#allocation5 + $0xac0] sm:$0xff] }
 0x462   : > { %7582 = vmatpush1.bf16.msra.mxu1 %v7581_v62  ;;  %v4068_v62 = vld [vmem:[#allocation5 + $0x9e0] sm:$0xff]  ;;  %7536 = vmatprep.subr.bf16.mxu0 %v7535_v11 }
 0x463   : > { %7584 = vmatprep.subr.bf16.mxu1 %v7583_v10  ;;  %v4043_v10 = vld [vmem:[#allocation5 + $0x918] sm:$0xff]  ;;  %v7537_v6 = vpack.c.bf16 %v4068_v62, %v4064_v33  ;;  %v4100_v55 = vld [vmem:[#allocation5 + $0xae0] sm:$0xff] }
 0x464   : > { %v7619_v2 = vpack.c.bf16 %v4047_v16, %v4043_v10  ;;  %v7639_v16 = vpack.c.bf16 %v4087_v28, %v4083_v7 }
 0x465   : > { %7538 = vmatpush1.bf16.msra.mxu0 %v7537_v6  ;;  %v4089_v6 = vld [vmem:[#allocation5 + $0xa88] sm:$0xff] }
 0x466   : > { %7586 = vmatpush1.bf16.msra.mxu1 %v7585_v63  ;;  %v4042_v63 = vld [vmem:[#allocation5 + $0x910] sm:$0xff] }
 0x467   : > { %7588 = vmatprep.subr.bf16.mxu1 %v7587_v52  ;;  %v4046_v52 = vld [vmem:[#allocation5 + $0x930] sm:$0xff] }
 0x468   : > { %v7621_v37 = vpack.c.bf16 %v4046_v52, %v4042_v63 }
 0x46a   : > { %7590 = vmatpush1.bf16.msra.mxu1 %v7589_v8  ;;  %v4077_v8 = vld [vmem:[#allocation5 + $0xa28] sm:$0xff] }
 0x46b   : > { %7592 = vmatprep.subr.bf16.mxu1 %v7591_v38  ;;  %v7623_v38 = vpack.c.bf16 %v4055_v51, %v4051_v57  ;;  %v7539_v23 = vpack.c.bf16 %v4077_v8, %v4073_v3  ;;  %v4091_v51 = vld [vmem:[#allocation5 + $0xa98] sm:$0xff] }
 0x46d   : > { %7540 = vmatprep.subr.bf16.mxu0 %v7539_v23 }
 0x46e   : > { %7594 = vmatpush1.bf16.msra.mxu1 %v7593_v60  ;;  %v4063_v60 = vld [vmem:[#allocation5 + $0x9b8] sm:$0xff] }
 0x46f   : > { %7596 = vmatprep.subr.bf16.mxu1 %v7595_v58  ;;  %v7625_v58 = vpack.c.bf16 %v4054_v29, %v4050_v41  ;;  %v7627_v24 = vpack.c.bf16 %v4063_v60, %v4059_v0  ;;  %v4088_v29 = vld [vmem:[#allocation5 + $0xa80] sm:$0xff] }
 0x470   : > { %v4092_v60 = vld [vmem:[#allocation5 + $0xaa0] sm:$0xff] }
 0x472   : > { %7598 = vmatpush1.bf16.msra.mxu1 %v7597_v54  ;;  %v4071_v54 = vld [vmem:[#allocation5 + $0x9f8] sm:$0xff] }
 0x473   : > { %7600 = vmatprep.subr.bf16.mxu1 %v7599_v31  ;;  %v7629_v31 = vpack.c.bf16 %v4062_v43, %v4058_v4  ;;  %v7631_v1 = vpack.c.bf16 %v4071_v54, %v4067_v53 }
 0x476   : > { %7602 = vmatpush1.bf16.msra.mxu1 %v7601_v49  ;;  %v4079_v49 = vld [vmem:[#allocation5 + $0xa38] sm:$0xff] }
 0x477   : > { %7604 = vmatprep.subr.bf16.mxu1 %v7603_v17  ;;  %v7633_v17 = vpack.c.bf16 %v4070_v14, %v4066_v25  ;;  %v7635_v26 = vpack.c.bf16 %v4079_v49, %v4075_v45 }
 0x47a   : > { %7606 = vmatpush1.bf16.msra.mxu1 %v7605_v5 }
 0x47b   : > { %7608 = vmatprep.subr.bf16.mxu1 %v7607_v32  ;;  %v4072_v32 = vld [vmem:[#allocation5 + $0xa00] sm:$0xff] }
 0x47c   : > { %v7541_v39 = vpack.c.bf16 %v4076_v15, %v4072_v32  ;;  %v7549_v32 = vpack.c.bf16 %v4092_v60, %v4088_v29  ;;  %v4113_v29 = vld [vmem:[#allocation5 + $0xb48] sm:$0xff] }
 0x47e   : > { %7610 = vmatpush1.bf16.msra.mxu1 %v7609_v22  ;;  %v4081_v22 = vld [vmem:[#allocation5 + $0xa48] sm:$0xff] }
 0x47f   : > { %7612 = vmatprep.subr.bf16.mxu1 %v7611_v21  ;;  %v4085_v21 = vld [vmem:[#allocation5 + $0xa68] sm:$0xff] }
 0x480   : > { %v7543_v10 = vpack.c.bf16 %v4085_v21, %v4081_v22  ;;  %v4098_v22 = vld [vmem:[#allocation5 + $0xad0] sm:$0xff] }
 0x482   : > { %7614 = vmatpush1.bf16.msra.mxu1 %v7613_v59 }
 0x483   : > { %7616 = vmatprep.subr.bf16.mxu1 %v7615_v27  ;;  %v4082_v27 = vld [vmem:[#allocation5 + $0xa50] sm:$0xff] }
 0x484   : > { %v7641_v41 = vpack.c.bf16 %v4086_v47, %v4082_v27  ;;  %v4111_v27 = vld [vmem:[#allocation5 + $0xb38] sm:$0xff] }
 0x486   : > { %7618 = vmatpush1.bf16.msra.mxu1 %v7617_v46  ;;  %v4093_v46 = vld [vmem:[#allocation5 + $0xaa8] sm:$0xff] }
 0x487   : > { %7620 = vmatprep.subr.bf16.mxu1 %v7619_v2  ;;  %v7547_v0 = vpack.c.bf16 %v4093_v46, %v4089_v6  ;;  %v4104_v6 = vld [vmem:[#allocation5 + $0xb00] sm:$0xff] }
 0x48a   : > { %7622 = vmatpush1.bf16.msra.mxu1 %v7621_v37  ;;  %v4095_v37 = vld [vmem:[#allocation5 + $0xab8] sm:$0xff] }
 0x48b   : > { %7624 = vmatprep.subr.bf16.mxu1 %v7623_v38  ;;  %v7545_v38 = vpack.c.bf16 %v4084_v50, %v4080_v35  ;;  %v7643_v54 = vpack.c.bf16 %v4095_v37, %v4091_v51  ;;  %v4107_v50 = vld [vmem:[#allocation5 + $0xb18] sm:$0xff]  ;;  %v4106_v51 = vld [vmem:[#allocation5 + $0xb10] sm:$0xff] }
 0x48c   : > { %v4110_v37 = vld [vmem:[#allocation5 + $0xb30] sm:$0xff] }
 0x48e   : > { %7626 = vmatpush1.bf16.msra.mxu1 %v7625_v58  ;;  %v4090_v58 = vld [vmem:[#allocation5 + $0xa90] sm:$0xff] }
 0x48f   : > { %7628 = vmatprep.subr.bf16.mxu1 %v7627_v24  ;;  %v4094_v24 = vld [vmem:[#allocation5 + $0xab0] sm:$0xff] }
 0x490   : > { %v7645_v15 = vpack.c.bf16 %v4094_v24, %v4090_v58 }
 0x492   : > { %7630 = vmatpush1.bf16.msra.mxu1 %v7629_v31  ;;  %v4097_v31 = vld [vmem:[#allocation5 + $0xac8] sm:$0xff] }
 0x493   : > { %7632 = vmatprep.subr.bf16.mxu1 %v7631_v1  ;;  %v4101_v1 = vld [vmem:[#allocation5 + $0xae8] sm:$0xff] }
 0x496   : > { %7634 = vmatpush1.bf16.msra.mxu1 %v7633_v17  ;;  %v4099_v17 = vld [vmem:[#allocation5 + $0xad8] sm:$0xff] }
 0x497   : > { %7636 = vmatprep.subr.bf16.mxu1 %v7635_v26  ;;  %v4103_v26 = vld [vmem:[#allocation5 + $0xaf8] sm:$0xff] }
 0x498   : > { %v7647_v28 = vpack.c.bf16 %v4103_v26, %v4099_v17 }
 0x4f8   : > { %v10002_v48 = vpop.f32.mrb[96].mxu0 }
 0x4f9   : > { %v10004_v61 = vpop.f32.mrb[97].mxu0  ;;  %v4155_v19 = vrot.slane %v10002_v48, 1  ;;  %v5208_v5 = vrot.slane %v10002_v48, 2 }
 0x4fa   : > { %v4158_v18 = vrot.slane %v10004_v61, 1  ;;  %v5211_v34 = vrot.slane %v10004_v61, 2 }
 0x4fc   : > { %v10010_v42 = vpop.f32.mrb[98].mxu0 }
 0x4fd   : > { %v4156_v44 = vrot.slane %v10010_v42, 1  ;;  %v5209_v12 = vrot.slane %v10010_v42, 2  ;;  %v10014_v56 = vpop.f32.mrb[99].mxu0 }
 0x4fe   : > { %v4159_v9 = vrot.slane %v10014_v56, 1  ;;  %v5212_v36 = vrot.slane %v10014_v56, 2 }
 0x4ff   : > { %v4157_v59 = vsel %vm4154_vm5, %v4155_v19, %v4156_v44  ;;  %v10020_v11 = vsel %vm5207_vm6, %v5208_v5, %v5209_v12 }
 0x500   : > { %v10022_v33 = vpop.f32.mrb[100].mxu0  ;;  %v4160_v62 = vsel %vm4154_vm5, %v4158_v18, %v4159_v9  ;;  %v10026_v2 = vsel %vm5207_vm6, %v5211_v34, %v5212_v36  ;;  %v7551_v34 = vpack.c.bf16 %v4101_v1, %v4097_v31 }
 0x501   : > { %v4164_v63 = vrot.slane %v10022_v33, 1  ;;  %v5217_v52 = vrot.slane %v10022_v33, 2  ;;  %v10030_v57 = vpop.f32.mrb[101].mxu0  ;;  %4270 = vmatprep.mubr.f32.mxu0 %v4160_v62  ;;  %4472 = vmatprep.mubr.f32.mxu1 %v4160_v62 }
 0x502   : > { %v4166_v3 = vrot.slane %v10030_v57, 1  ;;  %v5219_v8 = vrot.slane %v10030_v57, 2  ;;  %4271 = vmatmul.mubr.f32.vlgmr.msra.gmra.mrb[108].mxu0 %v4157_v59  ;;  %4473 = vmatmul.mubr.f32.vlgmr.msra.gmra.mrb[78].mxu1 %v4157_v59 }
 0x503   : > { %v4165_v23 = vsel %vm4154_vm5, %v4156_v44, %v4164_v63  ;;  %7542 = vmatpush1.bf16.msra.mxu0 %v7541_v39  ;;  %7638 = vmatpush1.bf16.msra.mxu1 %v7637_v40  ;;  %v10036_v4 = vsel %vm5207_vm6, %v5209_v12, %v5217_v52  ;;  %v4102_v44 = vld [vmem:[#allocation5 + $0xaf0] sm:$0xff] }
 0x504   : > { %v4167_v43 = vsel %vm4154_vm5, %v4159_v9, %v4166_v3  ;;  %v10039_v53 = vpop.f32.mrb[102].mxu0  ;;  %7544 = vmatprep.subr.bf16.mxu0 %v7543_v10  ;;  %7640 = vmatprep.subr.bf16.mxu1 %v7639_v16  ;;  %v10042_v25 = vsel %vm5207_vm6, %v5212_v36, %v5219_v8  ;;  %v4105_v9 = vld [vmem:[#allocation5 + $0xb08] sm:$0xff]  ;;  %v7553_v10 = vpack.c.bf16 %v4100_v55, %v4096_v30 }
 0x505   : > { %4276 = vmatprep.mubr.f32.mxu0 %v4167_v43  ;;  %4478 = vmatprep.mubr.f32.mxu1 %v4167_v43  ;;  %v4170_v14 = vrot.slane %v10039_v53, 1  ;;  %v5223_v45 = vrot.slane %v10039_v53, 2  ;;  %v10046_v49 = vpop.f32.mrb[103].mxu0  ;;  %v4109_v36 = vld [vmem:[#allocation5 + $0xb28] sm:$0xff]  ;;  %v7649_v16 = vpack.c.bf16 %v4102_v44, %v4098_v22  ;;  %v4115_v43 = vld [vmem:[#allocation5 + $0xb58] sm:$0xff] }
 0x506   : > { %4277 = vmatmul.mubr.f32.gmra.mrb[110].mxu0 %v4165_v23  ;;  %4479 = vmatmul.mubr.f32.gmra.mrb[80].mxu1 %v4165_v23  ;;  %v4172_v19 = vrot.slane %v10046_v49, 1  ;;  %v5225_v5 = vrot.slane %v10046_v49, 2  ;;  %v4117_v23 = vld [vmem:[#allocation5 + $0xb68] sm:$0xff] }
 0x507   : > { %7546 = vmatpush1.bf16.msra.mxu0 %v7545_v38  ;;  %7642 = vmatpush1.bf16.msra.mxu1 %v7641_v41  ;;  %v4171_v18 = vsel %vm4154_vm5, %v4164_v63, %v4170_v14  ;;  %v10052_v12 = vsel %vm5207_vm6, %v5217_v52, %v5223_v45  ;;  %v7555_v63 = vpack.c.bf16 %v4109_v36, %v4105_v9  ;;  %v4108_v52 = vld [vmem:[#allocation5 + $0xb20] sm:$0xff]  ;;  %v4121_v55 = vld [vmem:[#allocation5 + $0xb88] sm:$0xff] }
 0x508   : > { %v10054_v21 = vpop.f32.mrb[104].mxu0  ;;  %7548 = vmatprep.subr.bf16.mxu0 %v7547_v0  ;;  %7644 = vmatprep.subr.bf16.mxu1 %v7643_v54  ;;  %v4173_v7 = vsel %vm4154_vm5, %v4166_v3, %v4172_v19  ;;  %v10058_v35 = vsel %vm5207_vm6, %v5219_v8, %v5225_v5  ;;  %v7651_v41 = vpack.c.bf16 %v4111_v27, %v4107_v50  ;;  %v4119_v54 = vld [vmem:[#allocation5 + $0xb78] sm:$0xff]  ;;  %v4125_v44 = vld [vmem:[#allocation5 + $0xba8] sm:$0xff] }
 0x509   : > { %v4176_v59 = vrot.slane %v10054_v21, 1  ;;  %v5229_v39 = vrot.slane %v10054_v21, 2  ;;  %v10062_v40 = vpop.f32.mrb[105].mxu0  ;;  %4282 = vmatprep.mubr.f32.mxu0 %v4173_v7  ;;  %4484 = vmatprep.mubr.f32.mxu1 %v4173_v7  ;;  %v7559_v26 = vpack.c.bf16 %v4117_v23, %v4113_v29  ;;  %v7655_v30 = vpack.c.bf16 %v4119_v54, %v4115_v43  ;;  %v4123_v7 = vld [vmem:[#allocation5 + $0xb98] sm:$0xff]  ;;  %v4130_v29 = vld [vmem:[#allocation5 + $0xbd0] sm:$0xff]  ;;  %v3752_v43 = vld [vmem:[#allocation5 + $0x8] sm:$0xff] }
 0x50a   : > { %v4178_v47 = vrot.slane %v10062_v40, 1  ;;  %v5231_v62 = vrot.slane %v10062_v40, 2  ;;  %4283 = vmatmul.mubr.f32.gmra.mrb[112].mxu0 %v4171_v18  ;;  %4485 = vmatmul.mubr.f32.gmra.mrb[82].mxu1 %v4171_v18  ;;  %v4114_v18 = vld [vmem:[#allocation5 + $0xb50] sm:$0xff]  ;;  %v7563_v50 = vpack.c.bf16 %v4125_v44, %v4121_v55  ;;  %v3756_v54 = vld [vmem:[#allocation5 + $0x28] sm:$0xff] }
 0x50b   : > { %7550 = vmatpush1.bf16.msra.mxu0 %v7549_v32  ;;  %7646 = vmatpush1.bf16.msra.mxu1 %v7645_v15  ;;  %v4177_v46 = vsel %vm4154_vm5, %v4170_v14, %v4176_v59  ;;  %v10068_v3 = vsel %vm5207_vm6, %v5223_v45, %v5229_v39  ;;  %v7557_v14 = vpack.c.bf16 %v4108_v52, %v4104_v6  ;;  %v4131_v6 = vld [vmem:[#allocation5 + $0xbd8] sm:$0xff]  ;;  %v4134_v23 = vld [vmem:[#allocation5 + $0xbf0] sm:$0xff] }
 0x50c   : > { %v10070_v8 = vpop.f32.mrb[106].mxu0  ;;  %7552 = vmatprep.subr.bf16.mxu0 %v7551_v34  ;;  %7648 = vmatprep.subr.bf16.mxu1 %v7647_v28  ;;  %v4179_v38 = vsel %vm4154_vm5, %v4172_v19, %v4178_v47  ;;  %v10074_v0 = vsel %vm5207_vm6, %v5225_v5, %v5231_v62  ;;  %v7653_v45 = vpack.c.bf16 %v4110_v37, %v4106_v51  ;;  %v4112_v19 = vld [vmem:[#allocation5 + $0xb40] sm:$0xff]  ;;  %v4118_v34 = vld [vmem:[#allocation5 + $0xb70] sm:$0xff]  ;;  %v4127_v28 = vld [vmem:[#allocation5 + $0xbb8] sm:$0xff] }
 0x50d   : > { %v4182_v60 = vrot.slane %v10070_v8, 1  ;;  %v10078_v58 = vrot.slane %v10070_v8, 2  ;;  %v10080_v24 = vpop.f32.mrb[107].mxu0  ;;  %4288 = vmatprep.mubr.f32.mxu0 %v4179_v38  ;;  %4490 = vmatprep.mubr.f32.mxu1 %v4179_v38  ;;  %v4116_v5 = vld [vmem:[#allocation5 + $0xb60] sm:$0xff]  ;;  %v7657_v36 = vpack.c.bf16 %v4118_v34, %v4114_v18  ;;  %v7659_v27 = vpack.c.bf16 %v4127_v28, %v4123_v7  ;;  %v3760_v34 = vld [vmem:[#allocation5 + $0x48] sm:$0xff] }
 0x50e   : > { %v4184_v31 = vrot.slane %v10080_v24, 1  ;;  %v10084_v1 = vrot.slane %v10080_v24, 2  ;;  %4289 = vmatmul.mubr.f32.gmra.mrb[114].mxu0 %v4177_v46  ;;  %4491 = vmatmul.mubr.f32.gmra.mrb[84].mxu1 %v4177_v46  ;;  %v7561_v9 = vpack.c.bf16 %v4116_v5, %v4112_v19  ;;  %v4135_v46 = vld [vmem:[#allocation5 + $0xbf8] sm:$0xff]  ;;  %v4128_v51 = vld [vmem:[#allocation5 + $0xbc0] sm:$0xff]  ;;  %v3764_v28 = vld [vmem:[#allocation5 + $0x68] sm:$0xff] }
 0x50f   : > { %7554 = vmatpush1.bf16.msra.mxu0 %v7553_v10  ;;  %7650 = vmatpush1.bf16.msra.mxu1 %v7649_v16  ;;  %v4183_v17 = vsel %vm4154_vm5, %v4176_v59, %v4182_v60  ;;  %v10089_v32 = vsel %vm5207_vm6, %v5229_v39, %v10078_v58  ;;  %v4120_v59 = vld [vmem:[#allocation5 + $0xb80] sm:$0xff]  ;;  %v4129_v10 = vld [vmem:[#allocation5 + $0xbc8] sm:$0xff] }
 0x510   : > { %7556 = vmatprep.subr.bf16.mxu0 %v7555_v63  ;;  %7652 = vmatprep.subr.bf16.mxu1 %v7651_v41  ;;  %v4185_v15 = vsel %vm4154_vm5, %v4178_v47, %v4184_v31  ;;  %v10094_v22 = vsel %vm5207_vm6, %v5231_v62, %v10084_v1  ;;  %v4124_v39 = vld [vmem:[#allocation5 + $0xba0] sm:$0xff]  ;;  %v4122_v47 = vld [vmem:[#allocation5 + $0xb90] sm:$0xff]  ;;  %v4133_v16 = vld [vmem:[#allocation5 + $0xbe8] sm:$0xff]  ;;  %v7663_v41 = vpack.c.bf16 %v4135_v46, %v4131_v6 }
 0x511   : > { %4294 = vmatprep.mubr.f32.mxu0 %v4185_v15  ;;  %4496 = vmatprep.mubr.f32.mxu1 %v4185_v15  ;;  %v4126_v62 = vld [vmem:[#allocation5 + $0xbb0] sm:$0xff]  ;;  %v7565_v63 = vpack.c.bf16 %v4124_v39, %v4120_v59  ;;  %v4132_v37 = vld [vmem:[#allocation5 + $0xbe0] sm:$0xff]  ;;  %v7567_v38 = vpack.c.bf16 %v4133_v16, %v4129_v10 }
 0x512   : > { %4295 = vmatmul.mubr.f32.gmra.mrb[116].mxu0 %v4183_v17  ;;  %4497 = vmatmul.mubr.f32.gmra.mrb[86].mxu1 %v4183_v17  ;;  %v7661_v52 = vpack.c.bf16 %v4126_v62, %v4122_v47  ;;  %v7667_v17 = vpack.c.bf16 %v3756_v54, %v3752_v43  ;;  %v3751_v19 = vld [vmem:[#allocation5] sm:$0xff]  ;;  %v3753_v15 = vld [vmem:[#allocation5 + $0x10] sm:$0xff]  ;;  %v3774_v43 = vld [vmem:[#allocation5 + $0xb8] sm:$0xff] }
 0x513   : > { %7558 = vmatpush1.bf16.msra.mxu0 %v7557_v14  ;;  %7654 = vmatpush1.bf16.msra.mxu1 %v7653_v45  ;;  %v7569_v14 = vpack.c.bf16 %v4132_v37, %v4128_v51  ;;  %v7665_v45 = vpack.c.bf16 %v4134_v23, %v4130_v29  ;;  %v3755_v5 = vld [vmem:[#allocation5 + $0x20] sm:$0xff]  ;;  %v3761_v10 = vld [vmem:[#allocation5 + $0x50] sm:$0xff]  ;;  %v3768_v51 = vld [vmem:[#allocation5 + $0x88] sm:$0xff] }
 0x514   : > { %7560 = vmatprep.subr.bf16.mxu0 %v7559_v26  ;;  %7656 = vmatprep.subr.bf16.mxu1 %v7655_v30  ;;  %v3757_v30 = vld [vmem:[#allocation5 + $0x30] sm:$0xff]  ;;  %v3759_v47 = vld [vmem:[#allocation5 + $0x40] sm:$0xff]  ;;  %v3772_v37 = vld [vmem:[#allocation5 + $0xa8] sm:$0xff] }
 0x515   : > { %4300 = vmatprep.mubr.f32.mxu0 %v4184_v31  ;;  %4502 = vmatprep.mubr.f32.mxu1 %v4184_v31  ;;  %v3754_v31 = vld [vmem:[#allocation5 + $0x18] sm:$0xff]  ;;  %v3763_v62 = vld [vmem:[#allocation5 + $0x60] sm:$0xff]  ;;  %v3765_v16 = vld [vmem:[#allocation5 + $0x70] sm:$0xff] }
 0x516   : > { %4301 = vmatmul.mubr.f32.gmra.mrb[118].mxu0 %v4182_v60  ;;  %4503 = vmatmul.mubr.f32.gmra.mrb[88].mxu1 %v4182_v60  ;;  %v3758_v60 = vld [vmem:[#allocation5 + $0x38] sm:$0xff]  ;;  %v3767_v54 = vld [vmem:[#allocation5 + $0x80] sm:$0xff] }
 0x517   : > { %7562 = vmatpush1.bf16.msra.mxu0 %v7561_v9  ;;  %7658 = vmatpush1.bf16.msra.mxu1 %v7657_v36  ;;  %v7763_v26 = vpack.c.bf16 %v3758_v60, %v3754_v31  ;;  %v3762_v9 = vld [vmem:[#allocation5 + $0x58] sm:$0xff] }
 0x518   : > { %7564 = vmatprep.subr.bf16.mxu0 %v7563_v50  ;;  %7660 = vmatprep.subr.bf16.mxu1 %v7659_v27  ;;  %v3766_v36 = vld [vmem:[#allocation5 + $0x78] sm:$0xff]  ;;  %v7669_v50 = vpack.c.bf16 %v3755_v5, %v3751_v19  ;;  %v7765_v27 = vpack.c.bf16 %v3757_v30, %v3753_v15  ;;  %v3773_v19 = vld [vmem:[#allocation5 + $0xb0] sm:$0xff]  ;;  %v7675_v15 = vpack.c.bf16 %v3772_v37, %v3768_v51  ;;  %v3779_v37 = vld [vmem:[#allocation5 + $0xe0] sm:$0xff] }
 0x519   : > { %4371 = vmatprep.mubr.f32.mxu0 %v10390_v20  ;;  %4573 = vmatprep.mubr.f32.mxu1 %v10390_v20  ;;  %v3770_v23 = vld [vmem:[#allocation5 + $0x98] sm:$0xff] }
 0x51b   : > { %7566 = vmatpush1.bf16.msra.mxu0 %v7565_v63  ;;  %7662 = vmatpush1.bf16.msra.mxu1 %v7661_v52  ;;  %v7671_v63 = vpack.c.bf16 %v3764_v28, %v3760_v34  ;;  %v7767_v52 = vpack.c.bf16 %v3766_v36, %v3762_v9  ;;  %v7771_v28 = vpack.c.bf16 %v3774_v43, %v3770_v23  ;;  %v3776_v36 = vld [vmem:[#allocation5 + $0xc8] sm:$0xff]  ;;  %v3777_v23 = vld [vmem:[#allocation5 + $0xd0] sm:$0xff] }
 0x51c   : > { %7568 = vmatprep.subr.bf16.mxu0 %v7567_v38  ;;  %7664 = vmatprep.subr.bf16.mxu1 %v7663_v41  ;;  %v3781_v43 = vld [vmem:[#allocation5 + $0xf0] sm:$0xff] }
 0x51f   : > { %7570 = vmatpush1.bf16.msra.mxu0 %v7569_v14  ;;  %7666 = vmatpush1.bf16.msra.mxu1 %v7665_v45  ;;  %v7673_v14 = vpack.c.bf16 %v3763_v62, %v3759_v47  ;;  %v7769_v45 = vpack.c.bf16 %v3765_v16, %v3761_v10  ;;  %v3778_v62 = vld [vmem:[#allocation5 + $0xd8] sm:$0xff] }
 0x520   : > { %7668 = vmatprep.subr.bf16.mxu0 %v7667_v17  ;;  %7764 = vmatprep.subr.bf16.mxu1 %v7763_v26  ;;  %v3771_v17 = vld [vmem:[#allocation5 + $0xa0] sm:$0xff]  ;;  %v3769_v26 = vld [vmem:[#allocation5 + $0x90] sm:$0xff]  ;;  %v3782_v10 = vld [vmem:[#allocation5 + $0xf8] sm:$0xff] }
 0x521   : > { %v7773_v47 = vpack.c.bf16 %v3773_v19, %v3769_v26  ;;  %v3786_v26 = vld [vmem:[#allocation5 + $0x118] sm:$0xff] }
 0x522   : > { %v3790_v19 = vld [vmem:[#allocation5 + $0x138] sm:$0xff] }
 0x52c   : > { %v10098_v18 = vpop.f32.mrb[72].mxu1 }
 0x52d   : > { %v4162_v55 = vrot.slane %v10098_v18, 1  ;;  %v5215_v44 = vrot.slane %v10098_v18, 2  ;;  %v10102_v7 = vpop.f32.mrb[73].mxu1 }
 0x52e   : > { %v4161_v59 = vrot.slane %v10102_v7, 1  ;;  %v5214_v39 = vrot.slane %v10102_v7, 2 }
 0x530   : > { %v10106_v6 = vpop.f32.mrb[74].mxu1  ;;  %v4163_v46 = vsel %vm4154_vm5, %v4161_v59, %v4162_v55  ;;  %v10112_v38 = vsel %vm5207_vm6, %v5214_v39, %v5215_v44  ;;  %v3780_v59 = vld [vmem:[#allocation5 + $0xe8] sm:$0xff] }
 0x531   : > { %v4174_v41 = vrot.slane %v10106_v6, 1  ;;  %v10115_v29 = vpop.f32.mrb[75].mxu1  ;;  %4372 = vmatmul.mubr.f32.vlgmr.msra.gmra.mrb[108].mxu0 %v4163_v46  ;;  %4574 = vmatmul.mubr.f32.vlgmr.msra.gmra.mrb[78].mxu1 %v4163_v46  ;;  %v5227_v5 = vrot.slane %v10106_v6, 2  ;;  %v7679_v51 = vpack.c.bf16 %v3780_v59, %v3776_v36  ;;  %v3785_v36 = vld [vmem:[#allocation5 + $0x110] sm:$0xff] }
 0x532   : > { %v4168_v31 = vrot.slane %v10115_v29, 1  ;;  %v5221_v60 = vrot.slane %v10115_v29, 2  ;;  %7670 = vmatpush1.bf16.msra.mxu0 %v7669_v50  ;;  %7766 = vmatpush1.bf16.msra.mxu1 %v7765_v27  ;;  %v7677_v27 = vpack.c.bf16 %v3771_v17, %v3767_v54  ;;  %v3788_v17 = vld [vmem:[#allocation5 + $0x128] sm:$0xff]  ;;  %v3789_v59 = vld [vmem:[#allocation5 + $0x130] sm:$0xff] }
 0x533   : > { %4377 = vmatprep.mubr.f32.mxu0 %v10390_v20  ;;  %4579 = vmatprep.mubr.f32.mxu1 %v10390_v20 }
 0x534   : > { %7672 = vmatprep.subr.bf16.mxu0 %v7671_v63  ;;  %7768 = vmatprep.subr.bf16.mxu1 %v7767_v52  ;;  %v4169_v30 = vsel %vm4154_vm5, %v4162_v55, %v4168_v31  ;;  %v10123_v34 = vpop.f32.mrb[76].mxu1  ;;  %v4175_v9 = vsel %vm4154_vm5, %v4168_v31, %v4174_v41  ;;  %v3775_v63 = vld [vmem:[#allocation5 + $0xc0] sm:$0xff]  ;;  %v10139_v52 = vsel %vm5207_vm6, %v5215_v44, %v5221_v60 }
 0x535   : > { %4378 = vmatmul.mubr.f32.gmra.mrb[110].mxu0 %v4169_v30  ;;  %4580 = vmatmul.mubr.f32.gmra.mrb[80].mxu1 %v4169_v30  ;;  %v10127_v39 = vrot.slane %v10123_v34, 1  ;;  %v10129_v50 = vpop.f32.mrb[77].mxu1  ;;  %v10132_v55 = vrot.slane %v10123_v34, 2  ;;  %v10144_v54 = vsel %vm5207_vm6, %v5221_v60, %v5227_v5  ;;  %v7775_v31 = vpack.c.bf16 %v3782_v10, %v3778_v62  ;;  %v3794_v10 = vld [vmem:[#allocation5 + $0x158] sm:$0xff] }
 0x536   : > { %7674 = vmatpush1.bf16.msra.mxu0 %v7673_v14  ;;  %7770 = vmatpush1.bf16.msra.mxu1 %v7769_v45  ;;  %v4180_v16 = vrot.slane %v10129_v50, 1  ;;  %v5233_v46 = vrot.slane %v10129_v50, 2  ;;  %v3784_v45 = vld [vmem:[#allocation5 + $0x108] sm:$0xff]  ;;  %v7681_v60 = vpack.c.bf16 %v3779_v37, %v3775_v63  ;;  %v7779_v62 = vpack.c.bf16 %v3790_v19, %v3786_v26  ;;  %v3791_v37 = vld [vmem:[#allocation5 + $0x140] sm:$0xff]  ;;  %v3802_v26 = vld [vmem:[#allocation5 + $0x198] sm:$0xff] }
 0x537   : > { %4383 = vmatprep.mubr.f32.mxu0 %v10390_v20  ;;  %4585 = vmatprep.mubr.f32.mxu1 %v10390_v20  ;;  %v7781_v63 = vpack.c.bf16 %v3789_v59, %v3785_v36  ;;  %v3806_v19 = vld [vmem:[#allocation5 + $0x1b8] sm:$0xff]  ;;  %v3801_v36 = vld [vmem:[#allocation5 + $0x190] sm:$0xff] }
 0x538   : > { %7676 = vmatprep.subr.bf16.mxu0 %v7675_v15  ;;  %7772 = vmatprep.subr.bf16.mxu1 %v7771_v28  ;;  %v4181_v14 = vsel %vm4154_vm5, %v4174_v41, %v4180_v16  ;;  %v4187_v44 = vsel %vm4154_vm5, %v4180_v16, %v10127_v39  ;;  %v10150_v30 = vsel %vm5207_vm6, %v5227_v5, %v5233_v46  ;;  %v3783_v28 = vld [vmem:[#allocation5 + $0x100] sm:$0xff]  ;;  %v3798_v16 = vld [vmem:[#allocation5 + $0x178] sm:$0xff]  ;;  %v3805_v59 = vld [vmem:[#allocation5 + $0x1b0] sm:$0xff] }
 0x539   : > { %4384 = vmatmul.mubr.f32.gmra.mrb[112].mxu0 %v4175_v9  ;;  %4586 = vmatmul.mubr.f32.gmra.mrb[82].mxu1 %v4175_v9  ;;  %v7777_v15 = vpack.c.bf16 %v3781_v43, %v3777_v23  ;;  %v10154_v41 = vsel %vm5207_vm6, %v5233_v46, %v10132_v55  ;;  %v3787_v9 = vld [vmem:[#allocation5 + $0x120] sm:$0xff]  ;;  %v7683_v5 = vpack.c.bf16 %v3788_v17, %v3784_v45  ;;  %v3797_v43 = vld [vmem:[#allocation5 + $0x170] sm:$0xff]  ;;  %v3804_v17 = vld [vmem:[#allocation5 + $0x1a8] sm:$0xff] }
 0x53a   : > { %7678 = vmatpush1.bf16.msra.mxu0 %v7677_v27  ;;  %7774 = vmatpush1.bf16.msra.mxu1 %v7773_v47  ;;  %v3792_v27 = vld [vmem:[#allocation5 + $0x148] sm:$0xff]  ;;  %v7685_v46 = vpack.c.bf16 %v3787_v9, %v3783_v28  ;;  %v3795_v23 = vld [vmem:[#allocation5 + $0x160] sm:$0xff]  ;;  %v7783_v45 = vpack.c.bf16 %v3798_v16, %v3794_v10  ;;  %v3814_v10 = vld [vmem:[#allocation5 + $0x1f8] sm:$0xff] }
 0x53b   : > { %4389 = vmatprep.mubr.f32.mxu0 %v10390_v20  ;;  %4591 = vmatprep.mubr.f32.mxu1 %v10390_v20  ;;  %v3796_v47 = vld [vmem:[#allocation5 + $0x168] sm:$0xff]  ;;  %v3799_v28 = vld [vmem:[#allocation5 + $0x180] sm:$0xff] }
 0x53c   : > { %7680 = vmatprep.subr.bf16.mxu0 %v7679_v51  ;;  %7776 = vmatprep.subr.bf16.mxu1 %v7775_v31  ;;  %v3793_v51 = vld [vmem:[#allocation5 + $0x150] sm:$0xff]  ;;  %v7687_v31 = vpack.c.bf16 %v3796_v47, %v3792_v27  ;;  %v3803_v9 = vld [vmem:[#allocation5 + $0x1a0] sm:$0xff]  ;;  %v3812_v27 = vld [vmem:[#allocation5 + $0x1e8] sm:$0xff] }
 0x53d   : > { %4390 = vmatmul.mubr.f32.gmra.mrb[114].mxu0 %v4181_v14  ;;  %4592 = vmatmul.mubr.f32.gmra.mrb[84].mxu1 %v4181_v14  ;;  %v3800_v14 = vld [vmem:[#allocation5 + $0x188] sm:$0xff]  ;;  %v3810_v47 = vld [vmem:[#allocation5 + $0x1d8] sm:$0xff]  ;;  %v7693_v16 = vpack.c.bf16 %v3803_v9, %v3799_v28  ;;  %v3817_v9 = vld [vmem:[#allocation5 + $0x210] sm:$0xff] }
 0x53e   : > { %7682 = vmatpush1.bf16.msra.mxu0 %v7681_v60  ;;  %7778 = vmatpush1.bf16.msra.mxu1 %v7777_v15  ;;  %v7689_v60 = vpack.c.bf16 %v3795_v23, %v3791_v37  ;;  %v7785_v15 = vpack.c.bf16 %v3797_v43, %v3793_v51  ;;  %v3811_v37 = vld [vmem:[#allocation5 + $0x1e0] sm:$0xff]  ;;  %v7791_v51 = vpack.c.bf16 %v3814_v10, %v3810_v47  ;;  %v3809_v43 = vld [vmem:[#allocation5 + $0x1d0] sm:$0xff] }
 0x53f   : > { %4395 = vmatprep.mubr.f32.mxu0 %v10390_v20  ;;  %4597 = vmatprep.mubr.f32.mxu1 %v10390_v20  ;;  %v3823_v10 = vld [vmem:[#allocation5 + $0x240] sm:$0xff] }
 0x540   : > { %7684 = vmatprep.subr.bf16.mxu0 %v7683_v5  ;;  %7780 = vmatprep.subr.bf16.mxu1 %v7779_v62  ;;  %v3808_v5 = vld [vmem:[#allocation5 + $0x1c8] sm:$0xff]  ;;  %v7691_v62 = vpack.c.bf16 %v3804_v17, %v3800_v14  ;;  %v3818_v17 = vld [vmem:[#allocation5 + $0x218] sm:$0xff] }
 0x541   : > { %4396 = vmatmul.mubr.f32.gmra.mrb[116].mxu0 %v4187_v44  ;;  %4598 = vmatmul.mubr.f32.gmra.mrb[86].mxu1 %v4187_v44  ;;  %v7787_v44 = vpack.c.bf16 %v3806_v19, %v3802_v26  ;;  %v7695_v23 = vpack.c.bf16 %v3812_v27, %v3808_v5  ;;  %v3820_v14 = vld [vmem:[#allocation5 + $0x228] sm:$0xff]  ;;  %v3826_v27 = vld [vmem:[#allocation5 + $0x258] sm:$0xff] }
 0x542   : > { %7686 = vmatpush1.bf16.msra.mxu0 %v7685_v46  ;;  %7782 = vmatpush1.bf16.msra.mxu1 %v7781_v63  ;;  %v7789_v46 = vpack.c.bf16 %v3805_v59, %v3801_v36  ;;  %v3807_v63 = vld [vmem:[#allocation5 + $0x1c0] sm:$0xff]  ;;  %v3821_v36 = vld [vmem:[#allocation5 + $0x230] sm:$0xff]  ;;  %v3824_v59 = vld [vmem:[#allocation5 + $0x248] sm:$0xff] }
 0x543   : > { %4401 = vmatprep.mubr.f32.mxu0 %v10390_v20  ;;  %4603 = vmatprep.mubr.f32.mxu1 %v10390_v20  ;;  %v7697_v26 = vpack.c.bf16 %v3811_v37, %v3807_v63  ;;  %v3828_v5 = vld [vmem:[#allocation5 + $0x268] sm:$0xff]  ;;  %v7797_v47 = vpack.c.bf16 %v3821_v36, %v3817_v9  ;;  %v3825_v37 = vld [vmem:[#allocation5 + $0x250] sm:$0xff]  ;;  %v3842_v36 = vld [vmem:[#allocation5 + $0x2d8] sm:$0xff] }
 0x544   : > { %7688 = vmatprep.subr.bf16.mxu0 %v7687_v31  ;;  %7784 = vmatprep.subr.bf16.mxu1 %v7783_v45  ;;  %v3813_v31 = vld [vmem:[#allocation5 + $0x1f0] sm:$0xff]  ;;  %v3816_v45 = vld [vmem:[#allocation5 + $0x208] sm:$0xff] }
 0x545   : > { %4402 = vmatmul.mubr.f32.gmra.mrb[118].mxu0 %v10127_v39  ;;  %4604 = vmatmul.mubr.f32.gmra.mrb[88].mxu1 %v10127_v39  ;;  %v3822_v39 = vld [vmem:[#allocation5 + $0x238] sm:$0xff]  ;;  %v7793_v19 = vpack.c.bf16 %v3813_v31, %v3809_v43  ;;  %v7699_v28 = vpack.c.bf16 %v3820_v14, %v3816_v45  ;;  %v3836_v43 = vld [vmem:[#allocation5 + $0x2a8] sm:$0xff] }
 0x546   : > { %7690 = vmatpush1.bf16.msra.mxu0 %v7689_v60  ;;  %7786 = vmatpush1.bf16.msra.mxu1 %v7785_v15  ;;  %v3815_v60 = vld [vmem:[#allocation5 + $0x200] sm:$0xff]  ;;  %v3834_v31 = vld [vmem:[#allocation5 + $0x298] sm:$0xff]  ;;  %v3844_v9 = vld [vmem:[#allocation5 + $0x2e8] sm:$0xff] }
 0x547   : > { %4674 = vmatprep.mubr.f32.mxu0 %v10004_v61  ;;  %4876 = vmatprep.mubr.f32.mxu1 %v10004_v61  ;;  %v3819_v15 = vld [vmem:[#allocation5 + $0x220] sm:$0xff]  ;;  %v7795_v61 = vpack.c.bf16 %v3822_v39, %v3818_v17  ;;  %v3838_v45 = vld [vmem:[#allocation5 + $0x2b8] sm:$0xff] }
 0x548   : > { %7692 = vmatprep.subr.bf16.mxu0 %v7691_v62  ;;  %7788 = vmatprep.subr.bf16.mxu1 %v7787_v44  ;;  %v3830_v62 = vld [vmem:[#allocation5 + $0x278] sm:$0xff]  ;;  %v7701_v44 = vpack.c.bf16 %v3819_v15, %v3815_v60  ;;  %v3831_v39 = vld [vmem:[#allocation5 + $0x280] sm:$0xff]  ;;  %v7803_v60 = vpack.c.bf16 %v3838_v45, %v3834_v31  ;;  %v3833_v15 = vld [vmem:[#allocation5 + $0x290] sm:$0xff] }
 0x549   : > { %v7799_v63 = vpack.c.bf16 %v3830_v62, %v3826_v27  ;;  %v3839_v62 = vld [vmem:[#allocation5 + $0x2c0] sm:$0xff] }
 0x54a   : > { %7694 = vmatpush1.bf16.msra.mxu0 %v7693_v16  ;;  %7790 = vmatpush1.bf16.msra.mxu1 %v7789_v46  ;;  %v3827_v16 = vld [vmem:[#allocation5 + $0x260] sm:$0xff]  ;;  %v7703_v46 = vpack.c.bf16 %v3828_v5, %v3824_v59  ;;  %v3846_v59 = vld [vmem:[#allocation5 + $0x2f8] sm:$0xff] }
 0x54b   : > { %7696 = vmatprep.subr.bf16.mxu0 %v7695_v23  ;;  %7792 = vmatprep.subr.bf16.mxu1 %v7791_v51  ;;  %v3829_v23 = vld [vmem:[#allocation5 + $0x270] sm:$0xff]  ;;  %v3832_v51 = vld [vmem:[#allocation5 + $0x288] sm:$0xff]  ;;  %v7705_v14 = vpack.c.bf16 %v3827_v16, %v3823_v10  ;;  %v7807_v10 = vpack.c.bf16 %v3846_v59, %v3842_v36  ;;  %v3847_v45 = vld [vmem:[#allocation5 + $0x300] sm:$0xff] }
 0x54c   : > { %v7801_v17 = vpack.c.bf16 %v3829_v23, %v3825_v37  ;;  %v3841_v16 = vld [vmem:[#allocation5 + $0x2d0] sm:$0xff]  ;;  %v3852_v37 = vld [vmem:[#allocation5 + $0x328] sm:$0xff]  ;;  %v3850_v23 = vld [vmem:[#allocation5 + $0x318] sm:$0xff] }
 0x54d   : > { %v3855_v59 = vld [vmem:[#allocation5 + $0x340] sm:$0xff] }
 0x54e   : > { %7698 = vmatpush1.bf16.msra.mxu0 %v7697_v26  ;;  %7794 = vmatpush1.bf16.msra.mxu1 %v7793_v19  ;;  %v3835_v26 = vld [vmem:[#allocation5 + $0x2a0] sm:$0xff]  ;;  %v7707_v19 = vpack.c.bf16 %v3836_v43, %v3832_v51  ;;  %v3854_v51 = vld [vmem:[#allocation5 + $0x338] sm:$0xff] }
 0x54f   : > { %7700 = vmatprep.subr.bf16.mxu0 %v7699_v28  ;;  %7796 = vmatprep.subr.bf16.mxu1 %v7795_v61  ;;  %v3837_v28 = vld [vmem:[#allocation5 + $0x2b0] sm:$0xff]  ;;  %v3840_v61 = vld [vmem:[#allocation5 + $0x2c8] sm:$0xff]  ;;  %v7709_v5 = vpack.c.bf16 %v3835_v26, %v3831_v39  ;;  %v7811_v39 = vpack.c.bf16 %v3854_v51, %v3850_v23  ;;  %v3863_v51 = vld [vmem:[#allocation5 + $0x380] sm:$0xff] }
 0x550   : > { %v7805_v27 = vpack.c.bf16 %v3837_v28, %v3833_v15  ;;  %v3849_v26 = vld [vmem:[#allocation5 + $0x310] sm:$0xff]  ;;  %v3860_v15 = vld [vmem:[#allocation5 + $0x368] sm:$0xff]  ;;  %v3858_v28 = vld [vmem:[#allocation5 + $0x358] sm:$0xff] }
 0x552   : > { %7702 = vmatpush1.bf16.msra.mxu0 %v7701_v44  ;;  %7798 = vmatpush1.bf16.msra.mxu1 %v7797_v47  ;;  %v3843_v44 = vld [vmem:[#allocation5 + $0x2e0] sm:$0xff]  ;;  %v7711_v47 = vpack.c.bf16 %v3844_v9, %v3840_v61  ;;  %v3862_v61 = vld [vmem:[#allocation5 + $0x378] sm:$0xff] }
 0x553   : > { %7704 = vmatprep.subr.bf16.mxu0 %v7703_v46  ;;  %7800 = vmatprep.subr.bf16.mxu1 %v7799_v63  ;;  %v3845_v46 = vld [vmem:[#allocation5 + $0x2f0] sm:$0xff]  ;;  %v3848_v63 = vld [vmem:[#allocation5 + $0x308] sm:$0xff]  ;;  %v7713_v43 = vpack.c.bf16 %v3843_v44, %v3839_v62  ;;  %v7815_v62 = vpack.c.bf16 %v3862_v61, %v3858_v28  ;;  %v3871_v61 = vld [vmem:[#allocation5 + $0x3c0] sm:$0xff] }
 0x554   : > { %v7809_v31 = vpack.c.bf16 %v3845_v46, %v3841_v16  ;;  %v3857_v44 = vld [vmem:[#allocation5 + $0x350] sm:$0xff]  ;;  %v3868_v16 = vld [vmem:[#allocation5 + $0x3a8] sm:$0xff]  ;;  %v3866_v46 = vld [vmem:[#allocation5 + $0x398] sm:$0xff] }
 0x556   : > { %7706 = vmatpush1.bf16.msra.mxu0 %v7705_v14  ;;  %7802 = vmatpush1.bf16.msra.mxu1 %v7801_v17  ;;  %v3851_v14 = vld [vmem:[#allocation5 + $0x320] sm:$0xff]  ;;  %v7715_v17 = vpack.c.bf16 %v3852_v37, %v3848_v63  ;;  %v3870_v63 = vld [vmem:[#allocation5 + $0x3b8] sm:$0xff] }
 0x557   : > { %7708 = vmatprep.subr.bf16.mxu0 %v7707_v19  ;;  %7804 = vmatprep.subr.bf16.mxu1 %v7803_v60  ;;  %v3853_v19 = vld [vmem:[#allocation5 + $0x330] sm:$0xff]  ;;  %v3856_v60 = vld [vmem:[#allocation5 + $0x348] sm:$0xff]  ;;  %v7717_v9 = vpack.c.bf16 %v3851_v14, %v3847_v45  ;;  %v7819_v45 = vpack.c.bf16 %v3870_v63, %v3866_v46 }
 0x558   : > { %v7813_v36 = vpack.c.bf16 %v3853_v19, %v3849_v26  ;;  %v3865_v14 = vld [vmem:[#allocation5 + $0x390] sm:$0xff]  ;;  %v3876_v26 = vld [vmem:[#allocation5 + $0x3e8] sm:$0xff]  ;;  %v3874_v19 = vld [vmem:[#allocation5 + $0x3d8] sm:$0xff] }
 0x55a   : > { %7710 = vmatpush1.bf16.msra.mxu0 %v7709_v5  ;;  %7806 = vmatpush1.bf16.msra.mxu1 %v7805_v27  ;;  %v3859_v5 = vld [vmem:[#allocation5 + $0x360] sm:$0xff]  ;;  %v7719_v27 = vpack.c.bf16 %v3860_v15, %v3856_v60  ;;  %v3878_v60 = vld [vmem:[#allocation5 + $0x3f8] sm:$0xff] }
 0x55b   : > { %7712 = vmatprep.subr.bf16.mxu0 %v7711_v47  ;;  %7808 = vmatprep.subr.bf16.mxu1 %v7807_v10  ;;  %v3861_v47 = vld [vmem:[#allocation5 + $0x370] sm:$0xff]  ;;  %v3864_v10 = vld [vmem:[#allocation5 + $0x388] sm:$0xff]  ;;  %v7721_v37 = vpack.c.bf16 %v3859_v5, %v3855_v59  ;;  %v7823_v59 = vpack.c.bf16 %v3878_v60, %v3874_v19  ;;  %v3887_v60 = vld [vmem:[#allocation5 + $0x440] sm:$0xff] }
 0x55c   : > { %v7817_v23 = vpack.c.bf16 %v3861_v47, %v3857_v44  ;;  %v3873_v5 = vld [vmem:[#allocation5 + $0x3d0] sm:$0xff]  ;;  %v3884_v44 = vld [vmem:[#allocation5 + $0x428] sm:$0xff]  ;;  %v3882_v47 = vld [vmem:[#allocation5 + $0x418] sm:$0xff] }
 0x55e   : > { %7714 = vmatpush1.bf16.msra.mxu0 %v7713_v43  ;;  %7810 = vmatpush1.bf16.msra.mxu1 %v7809_v31  ;;  %v3867_v43 = vld [vmem:[#allocation5 + $0x3a0] sm:$0xff]  ;;  %v7723_v31 = vpack.c.bf16 %v3868_v16, %v3864_v10  ;;  %v3886_v10 = vld [vmem:[#allocation5 + $0x438] sm:$0xff] }
 0x55f   : > { %7716 = vmatprep.subr.bf16.mxu0 %v7715_v17  ;;  %7812 = vmatprep.subr.bf16.mxu1 %v7811_v39  ;;  %v3869_v17 = vld [vmem:[#allocation5 + $0x3b0] sm:$0xff]  ;;  %v3872_v39 = vld [vmem:[#allocation5 + $0x3c8] sm:$0xff]  ;;  %v7725_v15 = vpack.c.bf16 %v3867_v43, %v3863_v51  ;;  %v3883_v51 = vld [vmem:[#allocation5 + $0x420] sm:$0xff] }
 0x560   : > { %v7821_v28 = vpack.c.bf16 %v3869_v17, %v3865_v14  ;;  %v3881_v43 = vld [vmem:[#allocation5 + $0x410] sm:$0xff]  ;;  %v3892_v14 = vld [vmem:[#allocation5 + $0x468] sm:$0xff]  ;;  %v3890_v17 = vld [vmem:[#allocation5 + $0x458] sm:$0xff] }
 0x562   : > { %7718 = vmatpush1.bf16.msra.mxu0 %v7717_v9  ;;  %7814 = vmatpush1.bf16.msra.mxu1 %v7813_v36  ;;  %v3875_v9 = vld [vmem:[#allocation5 + $0x3e0] sm:$0xff]  ;;  %v7727_v36 = vpack.c.bf16 %v3876_v26, %v3872_v39  ;;  %v3894_v39 = vld [vmem:[#allocation5 + $0x478] sm:$0xff] }
 0x563   : > { %7720 = vmatprep.subr.bf16.mxu0 %v7719_v27  ;;  %7816 = vmatprep.subr.bf16.mxu1 %v7815_v62  ;;  %v3877_v27 = vld [vmem:[#allocation5 + $0x3f0] sm:$0xff]  ;;  %v3880_v62 = vld [vmem:[#allocation5 + $0x408] sm:$0xff]  ;;  %v7729_v16 = vpack.c.bf16 %v3875_v9, %v3871_v61  ;;  %v7831_v61 = vpack.c.bf16 %v3894_v39, %v3890_v17  ;;  %v3907_v17 = vld [vmem:[#allocation5 + $0x4e0] sm:$0xff] }
 0x564   : > { %v7825_v46 = vpack.c.bf16 %v3877_v27, %v3873_v5  ;;  %v7731_v63 = vpack.c.bf16 %v3884_v44, %v3880_v62  ;;  %v3889_v9 = vld [vmem:[#allocation5 + $0x450] sm:$0xff]  ;;  %v3900_v5 = vld [vmem:[#allocation5 + $0x4a8] sm:$0xff]  ;;  %v3898_v27 = vld [vmem:[#allocation5 + $0x498] sm:$0xff] }
 0x565   : > { %v3902_v62 = vld [vmem:[#allocation5 + $0x4b8] sm:$0xff] }
 0x566   : > { %7722 = vmatpush1.bf16.msra.mxu0 %v7721_v37  ;;  %7818 = vmatpush1.bf16.msra.mxu1 %v7817_v23  ;;  %v7827_v37 = vpack.c.bf16 %v3886_v10, %v3882_v47  ;;  %v3879_v23 = vld [vmem:[#allocation5 + $0x400] sm:$0xff] }
 0x567   : > { %7724 = vmatprep.subr.bf16.mxu0 %v7723_v31  ;;  %7820 = vmatprep.subr.bf16.mxu1 %v7819_v45  ;;  %v3885_v31 = vld [vmem:[#allocation5 + $0x430] sm:$0xff]  ;;  %v3888_v45 = vld [vmem:[#allocation5 + $0x448] sm:$0xff]  ;;  %v7733_v26 = vpack.c.bf16 %v3883_v51, %v3879_v23  ;;  %v3895_v10 = vld [vmem:[#allocation5 + $0x480] sm:$0xff] }
 0x568   : > { %v7829_v19 = vpack.c.bf16 %v3885_v31, %v3881_v43  ;;  %v3901_v23 = vld [vmem:[#allocation5 + $0x4b0] sm:$0xff]  ;;  %v3908_v51 = vld [vmem:[#allocation5 + $0x4e8] sm:$0xff]  ;;  %v3906_v43 = vld [vmem:[#allocation5 + $0x4d8] sm:$0xff] }
 0x569   : > { %v3910_v31 = vld [vmem:[#allocation5 + $0x4f8] sm:$0xff] }
 0x56a   : > { %7726 = vmatpush1.bf16.msra.mxu0 %v7725_v15  ;;  %7822 = vmatpush1.bf16.msra.mxu1 %v7821_v28  ;;  %v3891_v15 = vld [vmem:[#allocation5 + $0x460] sm:$0xff]  ;;  %v7735_v28 = vpack.c.bf16 %v3892_v14, %v3888_v45 }
 0x56b   : > { %7728 = vmatprep.subr.bf16.mxu0 %v7727_v36  ;;  %7824 = vmatprep.subr.bf16.mxu1 %v7823_v59  ;;  %v3893_v36 = vld [vmem:[#allocation5 + $0x470] sm:$0xff]  ;;  %v3896_v59 = vld [vmem:[#allocation5 + $0x488] sm:$0xff]  ;;  %v7737_v44 = vpack.c.bf16 %v3891_v15, %v3887_v60  ;;  %v3903_v14 = vld [vmem:[#allocation5 + $0x4c0] sm:$0xff] }
 0x56c   : > { %v7833_v47 = vpack.c.bf16 %v3893_v36, %v3889_v9  ;;  %v3909_v60 = vld [vmem:[#allocation5 + $0x4f0] sm:$0xff]  ;;  %v3916_v15 = vld [vmem:[#allocation5 + $0x528] sm:$0xff]  ;;  %v3911_v36 = vld [vmem:[#allocation5 + $0x500] sm:$0xff] }
 0x56e   : > { %7730 = vmatpush1.bf16.msra.mxu0 %v7729_v16  ;;  %7826 = vmatpush1.bf16.msra.mxu1 %v7825_v46  ;;  %v3899_v16 = vld [vmem:[#allocation5 + $0x4a0] sm:$0xff]  ;;  %v7739_v46 = vpack.c.bf16 %v3900_v5, %v3896_v59 }
 0x56f   : > { %7732 = vmatprep.subr.bf16.mxu0 %v7731_v63  ;;  %7828 = vmatprep.subr.bf16.mxu1 %v7827_v37  ;;  %v7835_v63 = vpack.c.bf16 %v3902_v62, %v3898_v27  ;;  %v3897_v37 = vld [vmem:[#allocation5 + $0x490] sm:$0xff]  ;;  %v3915_v59 = vld [vmem:[#allocation5 + $0x520] sm:$0xff] }
 0x570   : > { %v7837_v45 = vpack.c.bf16 %v3901_v23, %v3897_v37  ;;  %v3913_v62 = vld [vmem:[#allocation5 + $0x510] sm:$0xff]  ;;  %v3923_v37 = vld [vmem:[#allocation5 + $0x560] sm:$0xff] }
 0x571   : > { %4675 = vmatmul.mubr.f32.vlgmr.msra.gmra.mrb[108].mxu0 %v10002_v48  ;;  %4877 = vmatmul.mubr.f32.vlgmr.msra.gmra.mrb[78].mxu1 %v10002_v48  ;;  %v3904_v48 = vld [vmem:[#allocation5 + $0x4c8] sm:$0xff]  ;;  %v3921_v23 = vld [vmem:[#allocation5 + $0x550] sm:$0xff] }
 0x572   : > { %4680 = vmatprep.mubr.f32.mxu0 %v10014_v56  ;;  %7734 = vmatpush1.bf16.msra.mxu0 %v7733_v26  ;;  %v7743_v39 = vpack.c.bf16 %v3908_v51, %v3904_v48  ;;  %v7839_v26 = vpack.c.bf16 %v3910_v31, %v3906_v43  ;;  %v3925_v43 = vld [vmem:[#allocation5 + $0x570] sm:$0xff]  ;;  %v3932_v31 = vld [vmem:[#allocation5 + $0x5a8] sm:$0xff] }
 0x573   : > { %4882 = vmatprep.mubr.f32.mxu1 %v10014_v56  ;;  %7830 = vmatpush1.bf16.msra.mxu1 %v7829_v19  ;;  %v7741_v56 = vpack.c.bf16 %v3899_v16, %v3895_v10  ;;  %v3905_v19 = vld [vmem:[#allocation5 + $0x4d0] sm:$0xff]  ;;  %v3922_v10 = vld [vmem:[#allocation5 + $0x558] sm:$0xff] }
 0x574   : > { %7736 = vmatprep.subr.bf16.mxu0 %v7735_v28  ;;  %7832 = vmatprep.subr.bf16.mxu1 %v7831_v61  ;;  %v3914_v28 = vld [vmem:[#allocation5 + $0x518] sm:$0xff]  ;;  %v7841_v9 = vpack.c.bf16 %v3909_v60, %v3905_v19  ;;  %v3929_v19 = vld [vmem:[#allocation5 + $0x590] sm:$0xff] }
 0x575   : > { %4681 = vmatmul.mubr.f32.gmra.mrb[110].mxu0 %v10010_v42  ;;  %4883 = vmatmul.mubr.f32.gmra.mrb[80].mxu1 %v10010_v42  ;;  %v3912_v42 = vld [vmem:[#allocation5 + $0x508] sm:$0xff]  ;;  %v3918_v61 = vld [vmem:[#allocation5 + $0x538] sm:$0xff] }
 0x576   : > { %4686 = vmatprep.mubr.f32.mxu0 %v10030_v57  ;;  %7738 = vmatpush1.bf16.msra.mxu0 %v7737_v44  ;;  %v7747_v5 = vpack.c.bf16 %v3916_v15, %v3912_v42  ;;  %v7843_v27 = vpack.c.bf16 %v3918_v61, %v3914_v28  ;;  %v3917_v44 = vld [vmem:[#allocation5 + $0x530] sm:$0xff]  ;;  %v3926_v16 = vld [vmem:[#allocation5 + $0x578] sm:$0xff]  ;;  %v3936_v15 = vld [vmem:[#allocation5 + $0x5c8] sm:$0xff] }
 0x577   : > { %4888 = vmatprep.mubr.f32.mxu1 %v10030_v57  ;;  %7834 = vmatpush1.bf16.msra.mxu1 %v7833_v47  ;;  %v7745_v57 = vpack.c.bf16 %v3907_v17, %v3903_v14  ;;  %v3924_v47 = vld [vmem:[#allocation5 + $0x568] sm:$0xff]  ;;  %v7847_v51 = vpack.c.bf16 %v3926_v16, %v3922_v10  ;;  %v7849_v14 = vpack.c.bf16 %v3925_v43, %v3921_v23  ;;  %v3933_v42 = vld [vmem:[#allocation5 + $0x5b0] sm:$0xff]  ;;  %v3938_v28 = vld [vmem:[#allocation5 + $0x5d8] sm:$0xff] }
 0x578   : > { %7740 = vmatprep.subr.bf16.mxu0 %v7739_v46  ;;  %7836 = vmatprep.subr.bf16.mxu1 %v7835_v63  ;;  %v7845_v46 = vpack.c.bf16 %v3917_v44, %v3913_v62  ;;  %v3919_v63 = vld [vmem:[#allocation5 + $0x540] sm:$0xff]  ;;  %v3942_v61 = vld [vmem:[#allocation5 + $0x5f8] sm:$0xff]  ;;  %v3941_v62 = vld [vmem:[#allocation5 + $0x5f0] sm:$0xff] }
 0x579   : > { %4687 = vmatmul.mubr.f32.gmra.mrb[112].mxu0 %v10022_v33  ;;  %4889 = vmatmul.mubr.f32.gmra.mrb[82].mxu1 %v10022_v33  ;;  %v3920_v33 = vld [vmem:[#allocation5 + $0x548] sm:$0xff]  ;;  %v5017_v23 = vld [vmem:[#allocation5 + $0xc10] sm:$0xff] }
 0x57a   : > { %4692 = vmatprep.mubr.f32.mxu0 %v10046_v49  ;;  %7742 = vmatpush1.bf16.msra.mxu0 %v7741_v56  ;;  %v7751_v48 = vpack.c.bf16 %v3924_v47, %v3920_v33  ;;  %v3930_v56 = vld [vmem:[#allocation5 + $0x598] sm:$0xff]  ;;  %v5016_v44 = vld [vmem:[#allocation5 + $0xc08] sm:$0xff] }
 0x57b   : > { %4894 = vmatprep.mubr.f32.mxu1 %v10046_v49  ;;  %7838 = vmatpush1.bf16.msra.mxu1 %v7837_v45  ;;  %v7749_v49 = vpack.c.bf16 %v3915_v59, %v3911_v36  ;;  %v3934_v45 = vld [vmem:[#allocation5 + $0x5b8] sm:$0xff]  ;;  %v3935_v36 = vld [vmem:[#allocation5 + $0x5c0] sm:$0xff]  ;;  %v5028_v43 = vld [vmem:[#allocation5 + $0xc68] sm:$0xff] }
 0x57c   : > { %7744 = vmatprep.subr.bf16.mxu0 %v7743_v39  ;;  %7840 = vmatprep.subr.bf16.mxu1 %v7839_v26  ;;  %v3927_v39 = vld [vmem:[#allocation5 + $0x580] sm:$0xff]  ;;  %v7851_v60 = vpack.c.bf16 %v3934_v45, %v3930_v56  ;;  %v5018_v33 = vld [vmem:[#allocation5 + $0xc18] sm:$0xff] }
 0x57d   : > { %4693 = vmatmul.mubr.f32.gmra.mrb[114].mxu0 %v10039_v53  ;;  %4895 = vmatmul.mubr.f32.gmra.mrb[84].mxu1 %v10039_v53  ;;  %v3928_v53 = vld [vmem:[#allocation5 + $0x588] sm:$0xff]  ;;  %v3931_v26 = vld [vmem:[#allocation5 + $0x5a0] sm:$0xff]  ;;  %v5022_v47 = vld [vmem:[#allocation5 + $0xc38] sm:$0xff] }
 0x57e   : > { %4698 = vmatprep.mubr.f32.mxu0 %v10062_v40  ;;  %7746 = vmatpush1.bf16.msra.mxu0 %v7745_v57  ;;  %v7755_v17 = vpack.c.bf16 %v3932_v31, %v3928_v53  ;;  %v7853_v57 = vpack.c.bf16 %v3933_v42, %v3929_v19  ;;  %v3939_v59 = vld [vmem:[#allocation5 + $0x5e0] sm:$0xff]  ;;  %v5026_v31 = vld [vmem:[#allocation5 + $0xc58] sm:$0xff]  ;;  %v5036_v42 = vld [vmem:[#allocation5 + $0xca8] sm:$0xff] }
 0x57f   : > { %4900 = vmatprep.mubr.f32.mxu1 %v10062_v40  ;;  %7842 = vmatpush1.bf16.msra.mxu1 %v7841_v9  ;;  %v7753_v40 = vpack.c.bf16 %v3923_v37, %v3919_v63  ;;  %v7761_v10 = vpack.c.bf16 %v3939_v59, %v3935_v36  ;;  %v5019_v63 = vld [vmem:[#allocation5 + $0xc20] sm:$0xff]  ;;  %v7955_v37 = vpack.c.bf16 %v5022_v47, %v5018_v33  ;;  %v5030_v56 = vld [vmem:[#allocation5 + $0xc78] sm:$0xff]  ;;  %v5033_v36 = vld [vmem:[#allocation5 + $0xc90] sm:$0xff] }
 0x580   : > { %7748 = vmatprep.subr.bf16.mxu0 %v7747_v5  ;;  %7844 = vmatprep.subr.bf16.mxu1 %v7843_v27  ;;  %v3937_v5 = vld [vmem:[#allocation5 + $0x5d0] sm:$0xff]  ;;  %v7855_v27 = vpack.c.bf16 %v3942_v61, %v3938_v28  ;;  %v7959_v19 = vpack.c.bf16 %v5030_v56, %v5026_v31  ;;  %v5038_v28 = vld [vmem:[#allocation5 + $0xcb8] sm:$0xff]  ;;  %v5039_v47 = vld [vmem:[#allocation5 + $0xcc0] sm:$0xff] }
 0x581   : > { %4699 = vmatmul.mubr.f32.gmra.mrb[116].mxu0 %v10054_v21  ;;  %4901 = vmatmul.mubr.f32.gmra.mrb[86].mxu1 %v10054_v21  ;;  %v3940_v21 = vld [vmem:[#allocation5 + $0x5e8] sm:$0xff]  ;;  %v7857_v16 = vpack.c.bf16 %v3941_v62, %v3937_v5  ;;  %v5037_v59 = vld [vmem:[#allocation5 + $0xcb0] sm:$0xff]  ;;  %v5051_v31 = vld [vmem:[#allocation5 + $0xd20] sm:$0xff] }
 0x582   : > { %4704 = vmatprep.mubr.f32.mxu0 %v10080_v24  ;;  %7750 = vmatpush1.bf16.msra.mxu0 %v7749_v49  ;;  %v7759_v9 = vpack.c.bf16 %v3940_v21, %v3936_v15  ;;  %v5034_v21 = vld [vmem:[#allocation5 + $0xc98] sm:$0xff]  ;;  %v5040_v5 = vld [vmem:[#allocation5 + $0xcc8] sm:$0xff]  ;;  %v7965_v33 = vpack.c.bf16 %v5037_v59, %v5033_v36 }
 0x583   : > { %4906 = vmatprep.mubr.f32.mxu1 %v10080_v24  ;;  %7846 = vmatpush1.bf16.msra.mxu1 %v7845_v46  ;;  %v7757_v24 = vpack.c.bf16 %v3931_v26, %v3927_v39  ;;  %v5015_v46 = vld [vmem:[#allocation5 + $0xc00] sm:$0xff]  ;;  %v5025_v39 = vld [vmem:[#allocation5 + $0xc50] sm:$0xff]  ;;  %v5066_v36 = vld [vmem:[#allocation5 + $0xd98] sm:$0xff] }
 0x584   : > { %7752 = vmatprep.subr.bf16.mxu0 %v7751_v48  ;;  %7848 = vmatprep.subr.bf16.mxu1 %v7847_v51  ;;  %v5021_v48 = vld [vmem:[#allocation5 + $0xc30] sm:$0xff]  ;;  %v5024_v51 = vld [vmem:[#allocation5 + $0xc48] sm:$0xff]  ;;  %v7861_v53 = vpack.c.bf16 %v5019_v63, %v5015_v46  ;;  %v5070_v59 = vld [vmem:[#allocation5 + $0xdb8] sm:$0xff] }
 0x585   : > { %4705 = vmatmul.mubr.f32.gmra.mrb[118].mxu0 %v10070_v8  ;;  %4907 = vmatmul.mubr.f32.gmra.mrb[88].mxu1 %v10070_v8  ;;  %v5020_v8 = vld [vmem:[#allocation5 + $0xc28] sm:$0xff]  ;;  %v7957_v45 = vpack.c.bf16 %v5021_v48, %v5017_v23  ;;  %v5029_v26 = vld [vmem:[#allocation5 + $0xc70] sm:$0xff]  ;;  %v5050_v48 = vld [vmem:[#allocation5 + $0xd18] sm:$0xff] }
 0x586   : > { %7754 = vmatpush1.bf16.msra.mxu0 %v7753_v40  ;;  %4775 = vmatprep.mubr.f32.mxu0 %v10390_v20  ;;  %v7859_v49 = vpack.c.bf16 %v5020_v8, %v5016_v44  ;;  %v5023_v40 = vld [vmem:[#allocation5 + $0xc40] sm:$0xff]  ;;  %v7961_v61 = vpack.c.bf16 %v5029_v26, %v5025_v39  ;;  %v5042_v44 = vld [vmem:[#allocation5 + $0xcd8] sm:$0xff]  ;;  %v5045_v46 = vld [vmem:[#allocation5 + $0xcf0] sm:$0xff] }
 0x587   : > { %7850 = vmatpush1.bf16.msra.mxu1 %v7849_v14  ;;  %7756 = vmatprep.subr.bf16.mxu0 %v7755_v17  ;;  %v5027_v14 = vld [vmem:[#allocation5 + $0xc60] sm:$0xff]  ;;  %v7863_v17 = vpack.c.bf16 %v5028_v43, %v5024_v51  ;;  %v5046_v8 = vld [vmem:[#allocation5 + $0xcf8] sm:$0xff]  ;;  %v5048_v63 = vld [vmem:[#allocation5 + $0xd08] sm:$0xff] }
 0x588   : > { %7852 = vmatprep.subr.bf16.mxu1 %v7851_v60  ;;  %4977 = vmatprep.mubr.f32.mxu1 %v10390_v20  ;;  %v5032_v60 = vld [vmem:[#allocation5 + $0xc88] sm:$0xff]  ;;  %v7865_v15 = vpack.c.bf16 %v5027_v14, %v5023_v40  ;;  %v5054_v51 = vld [vmem:[#allocation5 + $0xd38] sm:$0xff]  ;;  %v5053_v40 = vld [vmem:[#allocation5 + $0xd30] sm:$0xff] }
 0x589   : > { %v5056_v14 = vld [vmem:[#allocation5 + $0xd48] sm:$0xff]  ;;  %v5058_v26 = vld [vmem:[#allocation5 + $0xd58] sm:$0xff] }
 0x58a   : > { %7758 = vmatpush1.bf16.msra.mxu0 %v7757_v24  ;;  %v5031_v24 = vld [vmem:[#allocation5 + $0xc80] sm:$0xff] }
 0x58b   : > { %7854 = vmatpush1.bf16.msra.mxu1 %v7853_v57  ;;  %7760 = vmatprep.subr.bf16.mxu0 %v7759_v9  ;;  %v5035_v57 = vld [vmem:[#allocation5 + $0xca0] sm:$0xff]  ;;  %v7867_v9 = vpack.c.bf16 %v5036_v42, %v5032_v60 }
 0x58c   : > { %7856 = vmatprep.subr.bf16.mxu1 %v7855_v27  ;;  %v5044_v27 = vld [vmem:[#allocation5 + $0xce8] sm:$0xff]  ;;  %v7869_v62 = vpack.c.bf16 %v5035_v57, %v5031_v24  ;;  %v5055_v42 = vld [vmem:[#allocation5 + $0xd40] sm:$0xff] }
 0x58d   : > { %v5064_v24 = vld [vmem:[#allocation5 + $0xd88] sm:$0xff] }
 0x58e   : > { %7762 = vmatpush1.bf16.msra.mxu0 %v7761_v10  ;;  %v5043_v10 = vld [vmem:[#allocation5 + $0xce0] sm:$0xff]  ;;  %v5068_v57 = vld [vmem:[#allocation5 + $0xda8] sm:$0xff] }
 0x58f   : > { %7858 = vmatpush1.bf16.msra.mxu1 %v7857_v16  ;;  %7860 = vmatprep.subr.bf16.mxu0 %v7859_v49  ;;  %v7871_v16 = vpack.c.bf16 %v5044_v27, %v5040_v5  ;;  %v5041_v49 = vld [vmem:[#allocation5 + $0xcd0] sm:$0xff]  ;;  %v7873_v23 = vpack.c.bf16 %v5043_v10, %v5039_v47  ;;  %v5063_v5 = vld [vmem:[#allocation5 + $0xd80] sm:$0xff]  ;;  %v5076_v47 = vld [vmem:[#allocation5 + $0xde8] sm:$0xff] }
 0x590   : > { %7956 = vmatprep.subr.bf16.mxu1 %v7955_v37  ;;  %v5052_v37 = vld [vmem:[#allocation5 + $0xd28] sm:$0xff]  ;;  %v7969_v43 = vpack.c.bf16 %v5045_v46, %v5041_v49  ;;  %v5067_v27 = vld [vmem:[#allocation5 + $0xda0] sm:$0xff]  ;;  %v5074_v10 = vld [vmem:[#allocation5 + $0xdd8] sm:$0xff] }
 0x591   : > { %4776 = vmatmul.mubr.f32.vlgmr.msra.gmra.mrb[108].mxu0 %v10102_v7  ;;  %v7875_v56 = vpack.c.bf16 %v5052_v37, %v5048_v63  ;;  %v7885_v49 = vpack.c.bf16 %v5067_v27, %v5063_v5  ;;  %v5071_v63 = vld [vmem:[#allocation5 + $0xdc0] sm:$0xff]  ;;  %v5102_v5 = vld [vmem:[#allocation5 + $0xeb8] sm:$0xff] }
 0x592   : > { %4978 = vmatmul.mubr.f32.vlgmr.msra.gmra.mrb[78].mxu1 %v10102_v7  ;;  %7862 = vmatpush1.bf16.msra.mxu0 %v7861_v53  ;;  %v7963_v7 = vpack.c.bf16 %v5038_v28, %v5034_v21  ;;  %v5047_v53 = vld [vmem:[#allocation5 + $0xd00] sm:$0xff]  ;;  %v5057_v28 = vld [vmem:[#allocation5 + $0xd50] sm:$0xff] }
 0x593   : > { %7958 = vmatpush1.bf16.msra.mxu1 %v7957_v45  ;;  %4781 = vmatprep.mubr.f32.mxu0 %v10390_v20  ;;  %v5049_v45 = vld [vmem:[#allocation5 + $0xd10] sm:$0xff]  ;;  %v7877_v39 = vpack.c.bf16 %v5051_v31, %v5047_v53  ;;  %v5075_v37 = vld [vmem:[#allocation5 + $0xde0] sm:$0xff]  ;;  %v5084_v53 = vld [vmem:[#allocation5 + $0xe28] sm:$0xff] }
 0x594   : > { %4983 = vmatprep.mubr.f32.mxu1 %v10390_v20  ;;  %7864 = vmatprep.subr.bf16.mxu0 %v7863_v17  ;;  %v5060_v17 = vld [vmem:[#allocation5 + $0xd68] sm:$0xff]  ;;  %v7973_v60 = vpack.c.bf16 %v5053_v40, %v5049_v45  ;;  %v5082_v31 = vld [vmem:[#allocation5 + $0xe18] sm:$0xff] }
 0x595   : > { %4782 = vmatmul.mubr.f32.gmra.mrb[110].mxu0 %v10098_v18  ;;  %7960 = vmatprep.subr.bf16.mxu1 %v7959_v19  ;;  %v5062_v19 = vld [vmem:[#allocation5 + $0xd78] sm:$0xff]  ;;  %v7879_v21 = vpack.c.bf16 %v5060_v17, %v5056_v14  ;;  %v5083_v14 = vld [vmem:[#allocation5 + $0xe20] sm:$0xff]  ;;  %v5081_v17 = vld [vmem:[#allocation5 + $0xe10] sm:$0xff] }
 0x596   : > { %4984 = vmatmul.mubr.f32.gmra.mrb[80].mxu1 %v10098_v18  ;;  %7866 = vmatpush1.bf16.msra.mxu0 %v7865_v15  ;;  %v7967_v18 = vpack.c.bf16 %v5046_v8, %v5042_v44  ;;  %v5059_v15 = vld [vmem:[#allocation5 + $0xd60] sm:$0xff]  ;;  %v7883_v44 = vpack.c.bf16 %v5068_v57, %v5064_v24  ;;  %v5069_v8 = vld [vmem:[#allocation5 + $0xdb0] sm:$0xff] }
 0x597   : > { %7962 = vmatpush1.bf16.msra.mxu1 %v7961_v61  ;;  %4787 = vmatprep.mubr.f32.mxu0 %v10390_v20  ;;  %v5061_v61 = vld [vmem:[#allocation5 + $0xd70] sm:$0xff] }
 0x598   : > { %4989 = vmatprep.mubr.f32.mxu1 %v10390_v20  ;;  %7868 = vmatprep.subr.bf16.mxu0 %v7867_v9  ;;  %v7881_v9 = vpack.c.bf16 %v5059_v15, %v5055_v42  ;;  %v5094_v42 = vld [vmem:[#allocation5 + $0xe78] sm:$0xff]  ;;  %v5089_v24 = vld [vmem:[#allocation5 + $0xe50] sm:$0xff] }
 0x599   : > { %4788 = vmatmul.mubr.f32.gmra.mrb[112].mxu0 %v10115_v29  ;;  %7964 = vmatprep.subr.bf16.mxu1 %v7963_v7  ;;  %v7977_v7 = vpack.c.bf16 %v5061_v61, %v5057_v28  ;;  %v5087_v61 = vld [vmem:[#allocation5 + $0xe40] sm:$0xff] }
 0x59a   : > { %4990 = vmatmul.mubr.f32.gmra.mrb[82].mxu1 %v10115_v29  ;;  %7870 = vmatpush1.bf16.msra.mxu0 %v7869_v62  ;;  %v7971_v29 = vpack.c.bf16 %v5054_v51, %v5050_v48  ;;  %v5065_v62 = vld [vmem:[#allocation5 + $0xd90] sm:$0xff] }
 0x59b   : > { %7966 = vmatpush1.bf16.msra.mxu1 %v7965_v33  ;;  %4793 = vmatprep.mubr.f32.mxu0 %v10390_v20  ;;  %v5072_v33 = vld [vmem:[#allocation5 + $0xdc8] sm:$0xff]  ;;  %v7981_v46 = vpack.c.bf16 %v5069_v8, %v5065_v62  ;;  %v5077_v51 = vld [vmem:[#allocation5 + $0xdf0] sm:$0xff]  ;;  %v5095_v8 = vld [vmem:[#allocation5 + $0xe80] sm:$0xff] }
 0x59c   : > { %4995 = vmatprep.mubr.f32.mxu1 %v10390_v20  ;;  %7872 = vmatprep.subr.bf16.mxu0 %v7871_v16  ;;  %v5078_v16 = vld [vmem:[#allocation5 + $0xdf8] sm:$0xff] }
 0x59d   : > { %4794 = vmatmul.mubr.f32.gmra.mrb[114].mxu0 %v10106_v6  ;;  %7968 = vmatprep.subr.bf16.mxu1 %v7967_v18  ;;  %v7887_v18 = vpack.c.bf16 %v5076_v47, %v5072_v33  ;;  %v7983_v48 = vpack.c.bf16 %v5078_v16, %v5074_v10  ;;  %v5099_v33 = vld [vmem:[#allocation5 + $0xea0] sm:$0xff]  ;;  %v5097_v47 = vld [vmem:[#allocation5 + $0xe90] sm:$0xff]  ;;  %v5104_v16 = vld [vmem:[#allocation5 + $0xec8] sm:$0xff] }
 0x59e   : > { %4996 = vmatmul.mubr.f32.gmra.mrb[84].mxu1 %v10106_v6  ;;  %7874 = vmatpush1.bf16.msra.mxu0 %v7873_v23  ;;  %v7975_v6 = vpack.c.bf16 %v5062_v19, %v5058_v26  ;;  %v5073_v23 = vld [vmem:[#allocation5 + $0xdd0] sm:$0xff]  ;;  %v5088_v26 = vld [vmem:[#allocation5 + $0xe48] sm:$0xff] }
 0x59f   : > { %7970 = vmatpush1.bf16.msra.mxu1 %v7969_v43  ;;  %4799 = vmatprep.mubr.f32.mxu0 %v10390_v20  ;;  %v5080_v43 = vld [vmem:[#allocation5 + $0xe08] sm:$0xff]  ;;  %v7985_v45 = vpack.c.bf16 %v5077_v51, %v5073_v23  ;;  %v5101_v10 = vld [vmem:[#allocation5 + $0xeb0] sm:$0xff]  ;;  %v5107_v51 = vld [vmem:[#allocation5 + $0xee0] sm:$0xff] }
 0x5a0   : > { %5001 = vmatprep.mubr.f32.mxu1 %v10390_v20  ;;  %7876 = vmatprep.subr.bf16.mxu0 %v7875_v56  ;;  %v7889_v56 = vpack.c.bf16 %v5075_v37, %v5071_v63  ;;  %v7891_v40 = vpack.c.bf16 %v5084_v53, %v5080_v43  ;;  %v5092_v19 = vld [vmem:[#allocation5 + $0xe68] sm:$0xff]  ;;  %v7901_v63 = vpack.c.bf16 %v5099_v33, %v5095_v8  ;;  %v5105_v43 = vld [vmem:[#allocation5 + $0xed0] sm:$0xff] }
 0x5a1   : > { %4800 = vmatmul.mubr.f32.gmra.mrb[116].mxu0 %v10129_v50  ;;  %7972 = vmatprep.subr.bf16.mxu1 %v7971_v29  ;;  %v5079_v29 = vld [vmem:[#allocation5 + $0xe00] sm:$0xff]  ;;  %v7895_v28 = vpack.c.bf16 %v5092_v19, %v5088_v26  ;;  %v7997_v37 = vpack.c.bf16 %v5101_v10, %v5097_v47  ;;  %v5113_v26 = vld [vmem:[#allocation5 + $0xf10] sm:$0xff] }
 0x5a2   : > { %5002 = vmatmul.mubr.f32.gmra.mrb[86].mxu1 %v10129_v50  ;;  %7878 = vmatpush1.bf16.msra.mxu0 %v7877_v39  ;;  %v7979_v50 = vpack.c.bf16 %v5070_v59, %v5066_v36  ;;  %v7893_v15 = vpack.c.bf16 %v5083_v14, %v5079_v29  ;;  %v5096_v36 = vld [vmem:[#allocation5 + $0xe88] sm:$0xff]  ;;  %v5131_v10 = vld [vmem:[#allocation5 + $0xfa0] sm:$0xff] }
 0x5a3   : > { %7974 = vmatpush1.bf16.msra.mxu1 %v7973_v60  ;;  %4805 = vmatprep.mubr.f32.mxu0 %v10390_v20  ;;  %v5090_v60 = vld [vmem:[#allocation5 + $0xe58] sm:$0xff]  ;;  %v5100_v59 = vld [vmem:[#allocation5 + $0xea8] sm:$0xff] }
 0x5a4   : > { %5007 = vmatprep.mubr.f32.mxu1 %v10390_v20  ;;  %7880 = vmatprep.subr.bf16.mxu0 %v7879_v21  ;;  %v7991_v57 = vpack.c.bf16 %v5094_v42, %v5090_v60  ;;  %v5117_v60 = vld [vmem:[#allocation5 + $0xf30] sm:$0xff]  ;;  %v5120_v42 = vld [vmem:[#allocation5 + $0xf48] sm:$0xff] }
 0x5a5   : > { %4806 = vmatmul.mubr.f32.gmra.mrb[118].mxu0 %v10123_v34  ;;  %7976 = vmatprep.subr.bf16.mxu1 %v7975_v6  ;;  %v5091_v6 = vld [vmem:[#allocation5 + $0xe60] sm:$0xff] }
 0x5a6   : > { %5008 = vmatmul.mubr.f32.gmra.mrb[88].mxu1 %v10123_v34  ;;  %7882 = vmatpush1.bf16.msra.mxu0 %v7881_v9  ;;  %v5086_v34 = vld [vmem:[#allocation5 + $0xe38] sm:$0xff]  ;;  %v5093_v9 = vld [vmem:[#allocation5 + $0xe70] sm:$0xff]  ;;  %v7897_v27 = vpack.c.bf16 %v5091_v6, %v5087_v61  ;;  %v8005_v6 = vpack.c.bf16 %v5117_v60, %v5113_v26  ;;  %v5143_v60 = vld [vmem:[#allocation5 + $0x1000] sm:$0xff] }
 0x5a7   : > { %5323 = vmatprep.mubr.f32.mxu0 %v10026_v2  ;;  %7978 = vmatpush1.bf16.msra.mxu1 %v7977_v7  ;;  %v7987_v39 = vpack.c.bf16 %v5086_v34, %v5082_v31  ;;  %v5098_v7 = vld [vmem:[#allocation5 + $0xe98] sm:$0xff]  ;;  %v7993_v62 = vpack.c.bf16 %v5093_v9, %v5089_v24  ;;  %v5109_v31 = vld [vmem:[#allocation5 + $0xef0] sm:$0xff]  ;;  %v5112_v34 = vld [vmem:[#allocation5 + $0xf08] sm:$0xff] }
 0x5a8   : > { %5525 = vmatprep.mubr.f32.mxu1 %v10026_v2  ;;  %7884 = vmatprep.subr.bf16.mxu0 %v7883_v44  ;;  %v5085_v2 = vld [vmem:[#allocation5 + $0xe30] sm:$0xff]  ;;  %v7899_v44 = vpack.c.bf16 %v5100_v59, %v5096_v36  ;;  %v8001_v14 = vpack.c.bf16 %v5109_v31, %v5105_v43  ;;  %v5123_v9 = vld [vmem:[#allocation5 + $0xf60] sm:$0xff] }
 0x5a9   : > { %7980 = vmatprep.subr.bf16.mxu1 %v7979_v50  ;;  %v7989_v21 = vpack.c.bf16 %v5085_v2, %v5081_v17  ;;  %v7995_v50 = vpack.c.bf16 %v5102_v5, %v5098_v7  ;;  %v5115_v2 = vld [vmem:[#allocation5 + $0xf20] sm:$0xff]  ;;  %v5121_v36 = vld [vmem:[#allocation5 + $0xf50] sm:$0xff]  ;;  %v5128_v5 = vld [vmem:[#allocation5 + $0xf88] sm:$0xff] }
 0x5aa   : > { %7886 = vmatpush1.bf16.msra.mxu0 %v7885_v49  ;;  %v5108_v49 = vld [vmem:[#allocation5 + $0xee8] sm:$0xff]  ;;  %v5125_v7 = vld [vmem:[#allocation5 + $0xf70] sm:$0xff]  ;;  %v5139_v31 = vld [vmem:[#allocation5 + $0xfe0] sm:$0xff] }
 0x5ab   : > { %7982 = vmatpush1.bf16.msra.mxu1 %v7981_v46  ;;  %7888 = vmatprep.subr.bf16.mxu0 %v7887_v18  ;;  %v5106_v46 = vld [vmem:[#allocation5 + $0xed8] sm:$0xff]  ;;  %v7903_v23 = vpack.c.bf16 %v5108_v49, %v5104_v16  ;;  %v8009_v33 = vpack.c.bf16 %v5125_v7, %v5121_v36  ;;  %v5129_v16 = vld [vmem:[#allocation5 + $0xf90] sm:$0xff]  ;;  %v5155_v7 = vld [vmem:[#allocation5 + $0x1060] sm:$0xff] }
 0x5ac   : > { %7984 = vmatprep.subr.bf16.mxu1 %v7983_v48  ;;  %v5110_v18 = vld [vmem:[#allocation5 + $0xef8] sm:$0xff]  ;;  %v5103_v48 = vld [vmem:[#allocation5 + $0xec0] sm:$0xff] }
 0x5ad   : > { %v7999_v53 = vpack.c.bf16 %v5110_v18, %v5106_v46  ;;  %v7905_v29 = vpack.c.bf16 %v5107_v51, %v5103_v48  ;;  %v5133_v46 = vld [vmem:[#allocation5 + $0xfb0] sm:$0xff]  ;;  %v5136_v18 = vld [vmem:[#allocation5 + $0xfc8] sm:$0xff] }
 0x5ae   : > { %7890 = vmatpush1.bf16.msra.mxu0 %v7889_v56  ;;  %v5116_v56 = vld [vmem:[#allocation5 + $0xf28] sm:$0xff]  ;;  %v8013_v51 = vpack.c.bf16 %v5133_v46, %v5129_v16  ;;  %v5163_v46 = vld [vmem:[#allocation5 + $0x10a0] sm:$0xff] }
 0x5af   : > { %7986 = vmatpush1.bf16.msra.mxu1 %v7985_v45  ;;  %7892 = vmatprep.subr.bf16.mxu0 %v7891_v40  ;;  %v5114_v45 = vld [vmem:[#allocation5 + $0xf18] sm:$0xff]  ;;  %v7907_v17 = vpack.c.bf16 %v5116_v56, %v5112_v34  ;;  %v5137_v34 = vld [vmem:[#allocation5 + $0xfd0] sm:$0xff] }
 0x5b0   : > { %7988 = vmatprep.subr.bf16.mxu1 %v7987_v39  ;;  %v5118_v40 = vld [vmem:[#allocation5 + $0xf38] sm:$0xff]  ;;  %v5111_v39 = vld [vmem:[#allocation5 + $0xf00] sm:$0xff] }
 0x5b1   : > { %v8003_v19 = vpack.c.bf16 %v5118_v40, %v5114_v45  ;;  %v7909_v61 = vpack.c.bf16 %v5115_v2, %v5111_v39  ;;  %v5141_v45 = vld [vmem:[#allocation5 + $0xff0] sm:$0xff]  ;;  %v5144_v40 = vld [vmem:[#allocation5 + $0x1008] sm:$0xff] }
 0x5b2   : > { %7894 = vmatpush1.bf16.msra.mxu0 %v7893_v15  ;;  %v5124_v15 = vld [vmem:[#allocation5 + $0xf68] sm:$0xff]  ;;  %v8017_v2 = vpack.c.bf16 %v5141_v45, %v5137_v34  ;;  %v5171_v34 = vld [vmem:[#allocation5 + $0x10e0] sm:$0xff] }
 0x5b3   : > { %7990 = vmatpush1.bf16.msra.mxu1 %v7989_v21  ;;  %7896 = vmatprep.subr.bf16.mxu0 %v7895_v28  ;;  %v5122_v21 = vld [vmem:[#allocation5 + $0xf58] sm:$0xff]  ;;  %v7911_v24 = vpack.c.bf16 %v5124_v15, %v5120_v42  ;;  %v5147_v42 = vld [vmem:[#allocation5 + $0x1020] sm:$0xff]  ;;  %v5145_v15 = vld [vmem:[#allocation5 + $0x1010] sm:$0xff] }
 0x5b4   : > { %7992 = vmatprep.subr.bf16.mxu1 %v7991_v57  ;;  %v5126_v28 = vld [vmem:[#allocation5 + $0xf78] sm:$0xff]  ;;  %v5119_v57 = vld [vmem:[#allocation5 + $0xf40] sm:$0xff] }
 0x5b5   : > { %v8007_v59 = vpack.c.bf16 %v5126_v28, %v5122_v21  ;;  %v7913_v8 = vpack.c.bf16 %v5123_v9, %v5119_v57  ;;  %v5149_v21 = vld [vmem:[#allocation5 + $0x1030] sm:$0xff]  ;;  %v5152_v28 = vld [vmem:[#allocation5 + $0x1048] sm:$0xff]  ;;  %v7925_v57 = vpack.c.bf16 %v5147_v42, %v5143_v60 }
 0x5b6   : > { %7898 = vmatpush1.bf16.msra.mxu0 %v7897_v27  ;;  %v5132_v27 = vld [vmem:[#allocation5 + $0xfa8] sm:$0xff]  ;;  %v8021_v9 = vpack.c.bf16 %v5149_v21, %v5145_v15  ;;  %v5177_v60 = vld [vmem:[#allocation5 + $0x1110] sm:$0xff] }
 0x5b7   : > { %7994 = vmatpush1.bf16.msra.mxu1 %v7993_v62  ;;  %7900 = vmatprep.subr.bf16.mxu0 %v7899_v44  ;;  %v5130_v62 = vld [vmem:[#allocation5 + $0xf98] sm:$0xff]  ;;  %v7915_v47 = vpack.c.bf16 %v5132_v27, %v5128_v5  ;;  %v5153_v5 = vld [vmem:[#allocation5 + $0x1050] sm:$0xff]  ;;  %v5184_v15 = vld [vmem:[#allocation5 + $0x1148] sm:$0xff] }
 0x5b8   : > { %7996 = vmatprep.subr.bf16.mxu1 %v7995_v50  ;;  %v5134_v44 = vld [vmem:[#allocation5 + $0xfb8] sm:$0xff]  ;;  %v5127_v50 = vld [vmem:[#allocation5 + $0xf80] sm:$0xff]  ;;  %v5188_v21 = vld [vmem:[#allocation5 + $0x1168] sm:$0xff] }
 0x5b9   : > { %v8011_v49 = vpack.c.bf16 %v5134_v44, %v5130_v62  ;;  %v7917_v48 = vpack.c.bf16 %v5131_v10, %v5127_v50  ;;  %v5157_v62 = vld [vmem:[#allocation5 + $0x1070] sm:$0xff]  ;;  %v5160_v44 = vld [vmem:[#allocation5 + $0x1088] sm:$0xff] }
 0x5ba   : > { %7902 = vmatpush1.bf16.msra.mxu0 %v7901_v63  ;;  %v5140_v63 = vld [vmem:[#allocation5 + $0xfe8] sm:$0xff]  ;;  %v8025_v10 = vpack.c.bf16 %v5157_v62, %v5153_v5 }
 0x5bb   : > { %7998 = vmatpush1.bf16.msra.mxu1 %v7997_v37  ;;  %7904 = vmatprep.subr.bf16.mxu0 %v7903_v23  ;;  %v5138_v37 = vld [vmem:[#allocation5 + $0xfd8] sm:$0xff]  ;;  %v7919_v43 = vpack.c.bf16 %v5140_v63, %v5136_v18  ;;  %v5161_v18 = vld [vmem:[#allocation5 + $0x1090] sm:$0xff]  ;;  %v5196_v5 = vld [vmem:[#allocation5 + $0x11a8] sm:$0xff] }
 0x5bc   : > { %8000 = vmatprep.subr.bf16.mxu1 %v7999_v53  ;;  %v5142_v23 = vld [vmem:[#allocation5 + $0xff8] sm:$0xff]  ;;  %v5135_v53 = vld [vmem:[#allocation5 + $0xfc0] sm:$0xff] }
 0x5bd   : > { %v8015_v56 = vpack.c.bf16 %v5142_v23, %v5138_v37  ;;  %v7921_v39 = vpack.c.bf16 %v5139_v31, %v5135_v53  ;;  %v5168_v37 = vld [vmem:[#allocation5 + $0x10c8] sm:$0xff]  ;;  %v5167_v31 = vld [vmem:[#allocation5 + $0x10c0] sm:$0xff] }
 0x5be   : > { %7906 = vmatpush1.bf16.msra.mxu0 %v7905_v29  ;;  %v5148_v29 = vld [vmem:[#allocation5 + $0x1028] sm:$0xff] }
 0x5bf   : > { %8002 = vmatpush1.bf16.msra.mxu1 %v8001_v14  ;;  %7908 = vmatprep.subr.bf16.mxu0 %v7907_v17  ;;  %v5146_v14 = vld [vmem:[#allocation5 + $0x1018] sm:$0xff]  ;;  %v7923_v26 = vpack.c.bf16 %v5148_v29, %v5144_v40  ;;  %v5172_v23 = vld [vmem:[#allocation5 + $0x10e8] sm:$0xff] }
 0x5c0   : > { %8004 = vmatprep.subr.bf16.mxu1 %v8003_v19  ;;  %v5150_v17 = vld [vmem:[#allocation5 + $0x1038] sm:$0xff]  ;;  %v7935_v53 = vpack.c.bf16 %v5172_v23, %v5168_v37  ;;  %v5176_v40 = vld [vmem:[#allocation5 + $0x1108] sm:$0xff]  ;;  %v5199_v37 = vld [vmem:[#allocation5 + $0x11c0] sm:$0xff] }
 0x5c1   : > { %v8019_v19 = vpack.c.bf16 %v5150_v17, %v5146_v14  ;;  %v5180_v29 = vld [vmem:[#allocation5 + $0x1128] sm:$0xff]  ;;  %v5182_v14 = vld [vmem:[#allocation5 + $0x1138] sm:$0xff]  ;;  %v7937_v17 = vpack.c.bf16 %v5171_v34, %v5167_v31  ;;  %v5203_v23 = vld [vmem:[#allocation5 + $0x11e0] sm:$0xff] }
 0x5c2   : > { %7910 = vmatpush1.bf16.msra.mxu0 %v7909_v61  ;;  %v5156_v61 = vld [vmem:[#allocation5 + $0x1068] sm:$0xff]  ;;  %v7953_v34 = vpack.c.bf16 %v5203_v23, %v5199_v37 }
 0x5c3   : > { %8006 = vmatpush1.bf16.msra.mxu1 %v8005_v6  ;;  %7912 = vmatprep.subr.bf16.mxu0 %v7911_v24  ;;  %v5154_v6 = vld [vmem:[#allocation5 + $0x1058] sm:$0xff]  ;;  %v7927_v36 = vpack.c.bf16 %v5156_v61, %v5152_v28  ;;  %v5833_v31 = vld [vmem:[#allocation13 + $0x188] sm:$0xff] }
 0x5c4   : > { %8008 = vmatprep.subr.bf16.mxu1 %v8007_v59  ;;  %v5158_v24 = vld [vmem:[#allocation5 + $0x1078] sm:$0xff]  ;;  %v5151_v59 = vld [vmem:[#allocation5 + $0x1040] sm:$0xff] }
 0x5c5   : > { %v8023_v27 = vpack.c.bf16 %v5158_v24, %v5154_v6  ;;  %v7929_v50 = vpack.c.bf16 %v5155_v7, %v5151_v59  ;;  %v5190_v28 = vld [vmem:[#allocation5 + $0x1178] sm:$0xff]  ;;  %v7943_v24 = vpack.c.bf16 %v5188_v21, %v5184_v15  ;;  %v5192_v7 = vld [vmem:[#allocation5 + $0x1188] sm:$0xff] }
 0x5c6   : > { %7914 = vmatpush1.bf16.msra.mxu0 %v7913_v8  ;;  %v5164_v8 = vld [vmem:[#allocation5 + $0x10a8] sm:$0xff]  ;;  %v5787_v15 = vld [vmem:[#allocation13 + $0x18] sm:$0xff] }
 0x5c7   : > { %8010 = vmatpush1.bf16.msra.mxu1 %v8009_v33  ;;  %7916 = vmatprep.subr.bf16.mxu0 %v7915_v47  ;;  %v5162_v33 = vld [vmem:[#allocation5 + $0x1098] sm:$0xff]  ;;  %v7931_v16 = vpack.c.bf16 %v5164_v8, %v5160_v44  ;;  %v7947_v8 = vpack.c.bf16 %v5196_v5, %v5192_v7  ;;  %v5818_v21 = vld [vmem:[#allocation13 + $0x110] sm:$0xff]  ;;  %v5789_v7 = vld [vmem:[#allocation13 + $0x28] sm:$0xff] }
 0x5c8   : > { %8012 = vmatprep.subr.bf16.mxu1 %v8011_v49  ;;  %v5166_v47 = vld [vmem:[#allocation5 + $0x10b8] sm:$0xff]  ;;  %v5159_v49 = vld [vmem:[#allocation5 + $0x1080] sm:$0xff] }
 0x5c9   : > { %v8027_v63 = vpack.c.bf16 %v5166_v47, %v5162_v33  ;;  %v5191_v33 = vld [vmem:[#allocation5 + $0x1180] sm:$0xff] }
 0x5ca   : > { %7918 = vmatpush1.bf16.msra.mxu0 %v7917_v48  ;;  %v5174_v48 = vld [vmem:[#allocation5 + $0x10f8] sm:$0xff]  ;;  %v5195_v47 = vld [vmem:[#allocation5 + $0x11a0] sm:$0xff] }
 0x5cb   : > { %8014 = vmatpush1.bf16.msra.mxu1 %v8013_v51  ;;  %7920 = vmatprep.subr.bf16.mxu0 %v7919_v43  ;;  %v7933_v51 = vpack.c.bf16 %v5163_v46, %v5159_v49  ;;  %v5204_v49 = vld [vmem:[#allocation5 + $0x11e8] sm:$0xff]  ;;  %v5202_v46 = vld [vmem:[#allocation5 + $0x11d8] sm:$0xff] }
 0x5cc   : > { %8016 = vmatprep.subr.bf16.mxu1 %v8015_v56  ;;  %v5169_v56 = vld [vmem:[#allocation5 + $0x10d0] sm:$0xff]  ;;  %v5820_v5 = vld [vmem:[#allocation13 + $0x120] sm:$0xff] }
 0x5ce   : > { %7922 = vmatpush1.bf16.msra.mxu0 %v7921_v39 }
 0x5cf   : > { %8018 = vmatpush1.bf16.msra.mxu1 %v8017_v2  ;;  %7924 = vmatprep.subr.bf16.mxu0 %v7923_v26  ;;  %v7939_v2 = vpack.c.bf16 %v5180_v29, %v5176_v40  ;;  %v5175_v26 = vld [vmem:[#allocation5 + $0x1100] sm:$0xff] }
 0x5d0   : > { %8020 = vmatprep.subr.bf16.mxu1 %v8019_v19  ;;  %v5179_v19 = vld [vmem:[#allocation5 + $0x1120] sm:$0xff] }
 0x5d1   : > { %5324 = vmatmul.mubr.f32.vlgmr.msra.gmra.mrb[108].mxu0 %v10020_v11  ;;  %v7941_v61 = vpack.c.bf16 %v5179_v19, %v5175_v26  ;;  %v5784_v40 = vld [vmem:[#allocation13] sm:$0xff]  ;;  %v5785_v29 = vld [vmem:[#allocation13 + $0x8] sm:$0xff]  ;;  %v5835_v26 = vld [vmem:[#allocation13 + $0x198] sm:$0xff] }
 0x5d2   : > { %5526 = vmatmul.mubr.f32.vlgmr.msra.gmra.mrb[78].mxu1 %v10020_v11  ;;  %5329 = vmatprep.mubr.f32.mxu0 %v10042_v25  ;;  %v5165_v11 = vld [vmem:[#allocation5 + $0x10b0] sm:$0xff]  ;;  %v8053_v19 = vpack.c.bf16 %v5785_v29, %v5784_v40 }
 0x5d3   : > { %7926 = vmatpush1.bf16.msra.mxu0 %v7925_v57  ;;  %5531 = vmatprep.mubr.f32.mxu1 %v10042_v25  ;;  %v5170_v25 = vld [vmem:[#allocation5 + $0x10d8] sm:$0xff]  ;;  %v8029_v43 = vpack.c.bf16 %v5165_v11, %v5161_v18  ;;  %v5183_v57 = vld [vmem:[#allocation5 + $0x1140] sm:$0xff]  ;;  %v5794_v40 = vld [vmem:[#allocation13 + $0x50] sm:$0xff] }
 0x5d4   : > { %8022 = vmatpush1.bf16.msra.mxu1 %v8021_v9  ;;  %7928 = vmatprep.subr.bf16.mxu0 %v7927_v36  ;;  %v8031_v45 = vpack.c.bf16 %v5174_v48, %v5170_v25  ;;  %v5187_v9 = vld [vmem:[#allocation5 + $0x1160] sm:$0xff]  ;;  %v5185_v36 = vld [vmem:[#allocation5 + $0x1150] sm:$0xff]  ;;  %v5206_v18 = vld [vmem:[#allocation5 + $0x11f8] sm:$0xff] }
 0x5d5   : > { %5330 = vmatmul.mubr.f32.gmra.mrb[110].mxu0 %v10036_v4  ;;  %8024 = vmatprep.subr.bf16.mxu1 %v8023_v27  ;;  %v5198_v27 = vld [vmem:[#allocation5 + $0x11b8] sm:$0xff]  ;;  %v7945_v62 = vpack.c.bf16 %v5187_v9, %v5183_v57  ;;  %v5201_v25 = vld [vmem:[#allocation5 + $0x11d0] sm:$0xff]  ;;  %v8047_v48 = vpack.c.bf16 %v5206_v18, %v5202_v46  ;;  %v5837_v57 = vld [vmem:[#allocation13 + $0x1a8] sm:$0xff] }
 0x5d6   : > { %5532 = vmatmul.mubr.f32.gmra.mrb[80].mxu1 %v10036_v4  ;;  %5335 = vmatprep.mubr.f32.mxu0 %v10058_v35  ;;  %v5173_v4 = vld [vmem:[#allocation5 + $0x10f0] sm:$0xff]  ;;  %v5808_v46 = vld [vmem:[#allocation13 + $0xc0] sm:$0xff]  ;;  %v5809_v18 = vld [vmem:[#allocation13 + $0xc8] sm:$0xff] }
 0x5d7   : > { %7930 = vmatpush1.bf16.msra.mxu0 %v7929_v50  ;;  %5537 = vmatprep.mubr.f32.mxu1 %v10058_v35  ;;  %v5178_v35 = vld [vmem:[#allocation5 + $0x1118] sm:$0xff]  ;;  %v8033_v39 = vpack.c.bf16 %v5173_v4, %v5169_v56  ;;  %v5193_v50 = vld [vmem:[#allocation5 + $0x1190] sm:$0xff]  ;;  %v8067_v23 = vpack.c.bf16 %v5809_v18, %v5808_v46 }
 0x5d8   : > { %8026 = vmatpush1.bf16.msra.mxu1 %v8025_v10  ;;  %7932 = vmatprep.subr.bf16.mxu0 %v7931_v16  ;;  %v8035_v42 = vpack.c.bf16 %v5182_v14, %v5178_v35  ;;  %v5200_v16 = vld [vmem:[#allocation5 + $0x11c8] sm:$0xff]  ;;  %v5816_v35 = vld [vmem:[#allocation13 + $0x100] sm:$0xff]  ;;  %v5795_v29 = vld [vmem:[#allocation13 + $0x58] sm:$0xff] }
 0x5d9   : > { %5336 = vmatmul.mubr.f32.gmra.mrb[112].mxu0 %v10052_v12  ;;  %8028 = vmatprep.subr.bf16.mxu1 %v8027_v63  ;;  %v7951_v11 = vpack.c.bf16 %v5204_v49, %v5200_v16  ;;  %v5817_v14 = vld [vmem:[#allocation13 + $0x108] sm:$0xff]  ;;  %v5822_v16 = vld [vmem:[#allocation13 + $0x130] sm:$0xff] }
 0x5da   : > { %5538 = vmatmul.mubr.f32.gmra.mrb[82].mxu1 %v10052_v12  ;;  %5341 = vmatprep.mubr.f32.mxu0 %v10074_v0  ;;  %v5181_v12 = vld [vmem:[#allocation5 + $0x1130] sm:$0xff] }
 0x5db   : > { %7934 = vmatpush1.bf16.msra.mxu0 %v7933_v51  ;;  %5543 = vmatprep.mubr.f32.mxu1 %v10074_v0  ;;  %v5186_v0 = vld [vmem:[#allocation5 + $0x1158] sm:$0xff]  ;;  %v8037_v6 = vpack.c.bf16 %v5181_v12, %v5177_v60  ;;  %v5205_v51 = vld [vmem:[#allocation5 + $0x11f0] sm:$0xff]  ;;  %v8085_v60 = vpack.c.bf16 %v5817_v14, %v5816_v35 }
 0x5dc   : > { %8030 = vmatpush1.bf16.msra.mxu1 %v8029_v43  ;;  %7936 = vmatprep.subr.bf16.mxu0 %v7935_v53  ;;  %v8039_v59 = vpack.c.bf16 %v5190_v28, %v5186_v0  ;;  %v5800_v43 = vld [vmem:[#allocation13 + $0x80] sm:$0xff]  ;;  %v8049_v56 = vpack.c.bf16 %v5205_v51, %v5201_v25  ;;  %v5786_v12 = vld [vmem:[#allocation13 + $0x10] sm:$0xff]  ;;  %v5819_v28 = vld [vmem:[#allocation13 + $0x118] sm:$0xff] }
 0x5dd   : > { %5342 = vmatmul.mubr.f32.gmra.mrb[114].mxu0 %v10068_v3  ;;  %8032 = vmatprep.subr.bf16.mxu1 %v8031_v45  ;;  %v5832_v53 = vld [vmem:[#allocation13 + $0x180] sm:$0xff]  ;;  %v8057_v9 = vpack.c.bf16 %v5787_v15, %v5786_v12  ;;  %v5826_v35 = vld [vmem:[#allocation13 + $0x150] sm:$0xff]  ;;  %v5797_v15 = vld [vmem:[#allocation13 + $0x68] sm:$0xff] }
 0x5de   : > { %5544 = vmatmul.mubr.f32.gmra.mrb[84].mxu1 %v10068_v3  ;;  %5347 = vmatprep.mubr.f32.mxu0 %v10094_v22  ;;  %v5189_v3 = vld [vmem:[#allocation5 + $0x1170] sm:$0xff]  ;;  %v8083_v4 = vpack.c.bf16 %v5833_v31, %v5832_v53  ;;  %v5792_v25 = vld [vmem:[#allocation13 + $0x40] sm:$0xff] }
 0x5df   : > { %7938 = vmatpush1.bf16.msra.mxu0 %v7937_v17  ;;  %5549 = vmatprep.mubr.f32.mxu1 %v10094_v22  ;;  %v5194_v22 = vld [vmem:[#allocation5 + $0x1198] sm:$0xff]  ;;  %v8041_v44 = vpack.c.bf16 %v5189_v3, %v5185_v36  ;;  %v5802_v17 = vld [vmem:[#allocation13 + $0x90] sm:$0xff]  ;;  %v8089_v36 = vpack.c.bf16 %v5819_v28, %v5818_v21  ;;  %v5829_v28 = vld [vmem:[#allocation13 + $0x168] sm:$0xff] }
 0x5e0   : > { %8034 = vmatpush1.bf16.msra.mxu1 %v8033_v39  ;;  %7940 = vmatprep.subr.bf16.mxu0 %v7939_v2  ;;  %v8043_v10 = vpack.c.bf16 %v5198_v27, %v5194_v22  ;;  %v5803_v39 = vld [vmem:[#allocation13 + $0x98] sm:$0xff]  ;;  %v5834_v2 = vld [vmem:[#allocation13 + $0x190] sm:$0xff]  ;;  %v5788_v3 = vld [vmem:[#allocation13 + $0x20] sm:$0xff] }
 0x5e1   : > { %5348 = vmatmul.mubr.f32.gmra.mrb[116].mxu0 %v10089_v32  ;;  %8036 = vmatprep.subr.bf16.mxu1 %v8035_v42  ;;  %v8055_v42 = vpack.c.bf16 %v5803_v39, %v5802_v17  ;;  %v8087_v0 = vpack.c.bf16 %v5835_v26, %v5834_v2  ;;  %v5806_v27 = vld [vmem:[#allocation13 + $0xb0] sm:$0xff]  ;;  %v5824_v51 = vld [vmem:[#allocation13 + $0x140] sm:$0xff]  ;;  %v5811_v53 = vld [vmem:[#allocation13 + $0xd8] sm:$0xff] }
 0x5e2   : > { %5550 = vmatmul.mubr.f32.gmra.mrb[86].mxu1 %v10089_v32  ;;  %5353 = vmatprep.mubr.f32.mxu0 %v10084_v1  ;;  %v5197_v32 = vld [vmem:[#allocation5 + $0x11b0] sm:$0xff]  ;;  %v5812_v17 = vld [vmem:[#allocation13 + $0xe0] sm:$0xff]  ;;  %v5813_v39 = vld [vmem:[#allocation13 + $0xe8] sm:$0xff] }
 0x5e3   : > { %7942 = vmatpush1.bf16.msra.mxu0 %v7941_v61  ;;  %5555 = vmatprep.mubr.f32.mxu1 %v10084_v1  ;;  %v7949_v1 = vpack.c.bf16 %v5195_v47, %v5191_v33  ;;  %v8045_v63 = vpack.c.bf16 %v5197_v32, %v5193_v50  ;;  %v5804_v61 = vld [vmem:[#allocation13 + $0xa0] sm:$0xff]  ;;  %v8061_v33 = vpack.c.bf16 %v5789_v7, %v5788_v3  ;;  %v5791_v32 = vld [vmem:[#allocation13 + $0x38] sm:$0xff]  ;;  %v5842_v31 = vld [vmem:[#allocation13 + $0x1d0] sm:$0xff] }
 0x5e4   : > { %8038 = vmatpush1.bf16.msra.mxu1 %v8037_v6  ;;  %7944 = vmatprep.subr.bf16.mxu0 %v7943_v24  ;;  %v5805_v6 = vld [vmem:[#allocation13 + $0xa8] sm:$0xff]  ;;  %v5836_v24 = vld [vmem:[#allocation13 + $0x1a0] sm:$0xff] }
 0x5e5   : > { %5354 = vmatmul.mubr.f32.gmra.mrb[118].mxu0 %v10078_v58  ;;  %8040 = vmatprep.subr.bf16.mxu1 %v8039_v59  ;;  %v8059_v59 = vpack.c.bf16 %v5805_v6, %v5804_v61  ;;  %v8091_v22 = vpack.c.bf16 %v5837_v57, %v5836_v24  ;;  %v5844_v2 = vld [vmem:[#allocation13 + $0x1e0] sm:$0xff]  ;;  %v5845_v26 = vld [vmem:[#allocation13 + $0x1e8] sm:$0xff]  ;;  %v5814_v6 = vld [vmem:[#allocation13 + $0xf0] sm:$0xff] }
 0x5e6   : > { %5556 = vmatmul.mubr.f32.gmra.mrb[88].mxu1 %v10078_v58  ;;  %5424 = vmatprep.mubr.f32.mxu0 %v10390_v20  ;;  %v5801_v58 = vld [vmem:[#allocation13 + $0x88] sm:$0xff]  ;;  %v8107_v12 = vpack.c.bf16 %v5845_v26, %v5844_v2  ;;  %v5828_v21 = vld [vmem:[#allocation13 + $0x160] sm:$0xff]  ;;  %v5815_v24 = vld [vmem:[#allocation13 + $0xf8] sm:$0xff] }
 0x5e7   : > { %7946 = vmatpush1.bf16.msra.mxu0 %v7945_v62  ;;  %5626 = vmatprep.mubr.f32.mxu1 %v10390_v20  ;;  %v8051_v45 = vpack.c.bf16 %v5801_v58, %v5800_v43  ;;  %v5807_v62 = vld [vmem:[#allocation13 + $0xb8] sm:$0xff]  ;;  %v5810_v58 = vld [vmem:[#allocation13 + $0xd0] sm:$0xff]  ;;  %v8109_v61 = vpack.c.bf16 %v5829_v28, %v5828_v21 }
 0x5e8   : > { %8042 = vmatpush1.bf16.msra.mxu1 %v8041_v44  ;;  %7948 = vmatprep.subr.bf16.mxu0 %v7947_v8  ;;  %v5838_v44 = vld [vmem:[#allocation13 + $0x1b0] sm:$0xff]  ;;  %v5839_v8 = vld [vmem:[#allocation13 + $0x1b8] sm:$0xff]  ;;  %v8063_v50 = vpack.c.bf16 %v5807_v62, %v5806_v27  ;;  %v5687_v27 = vld [vmem:[#allocation8] sm:$0xf]  ;;  %v10393_v62 = vsub.s32 0, %v9454_v13 }
 0x5e9   : > { %8044 = vmatprep.subr.bf16.mxu1 %v8043_v10  ;;  %v5790_v10 = vld [vmem:[#allocation13 + $0x30] sm:$0xff]  ;;  %v8095_v49 = vpack.c.bf16 %v5839_v8, %v5838_v44  ;;  %v10394_v8 = vsub.s32 2, %v9454_v13 }
 0x5ea   : > { %v5846_v57 = vld [vmem:[#allocation13 + $0x1f0] sm:$0xff]  ;;  %v10262_v44 = vrot.slane %v5687_v27, %v10393_v62 }
 0x5eb   : > { %7950 = vmatpush1.bf16.msra.mxu0 %v7949_v1  ;;  %v5840_v1 = vld [vmem:[#allocation13 + $0x1c0] sm:$0xff] }
 0x5ec   : > { %8046 = vmatpush1.bf16.msra.mxu1 %v8045_v63  ;;  %7952 = vmatprep.subr.bf16.mxu0 %v7951_v11  ;;  %v5841_v63 = vld [vmem:[#allocation13 + $0x1c8] sm:$0xff]  ;;  %v8065_v11 = vpack.c.bf16 %v5791_v32, %v5790_v10  ;;  %v10396_v10 = vsub.s32 3, %v9454_v13 }
 0x5ed   : > { %8048 = vmatprep.subr.bf16.mxu1 %v8047_v48  ;;  %v5793_v48 = vld [vmem:[#allocation13 + $0x48] sm:$0xff]  ;;  %v8099_v43 = vpack.c.bf16 %v5841_v63, %v5840_v1 }
 0x5ee   : > { %v10275_v32 = vrot.slane %v5687_v27, %v10396_v10 }
 0x5ef   : > { %7954 = vmatpush1.bf16.msra.mxu0 %v7953_v34  ;;  %v5843_v34 = vld [vmem:[#allocation13 + $0x1d8] sm:$0xff] }
 0x5f0   : > { %8050 = vmatpush1.bf16.msra.mxu1 %v8049_v56  ;;  %8052 = vmatprep.subr.bf16.mxu0 %v8051_v45  ;;  %v8069_v56 = vpack.c.bf16 %v5793_v48, %v5792_v25  ;;  %v8103_v14 = vpack.c.bf16 %v5843_v34, %v5842_v31 }
 0x5f1   : > { %8084 = vmatprep.subr.bf16.mxu1 %v8083_v4  ;;  %v8071_v4 = vpack.c.bf16 %v5811_v53, %v5810_v58 }
 0x5f2   : > { %5425 = vmatmul.mubr.f32.vlgmr.msra.gmra.mrb[108].mxu0 %v10112_v38 }
 0x5f3   : > { %5627 = vmatmul.mubr.f32.vlgmr.msra.gmra.mrb[78].mxu1 %v10112_v38  ;;  %5430 = vmatprep.mubr.f32.mxu0 %v10390_v20  ;;  %v5821_v38 = vld [vmem:[#allocation13 + $0x128] sm:$0xff] }
 0x5f4   : > { %5632 = vmatprep.mubr.f32.mxu1 %v10390_v20  ;;  %8054 = vmatpush3.bf16.msra.mxu0 %v8053_v19  ;;  %v8093_v47 = vpack.c.bf16 %v5821_v38, %v5820_v5  ;;  %v8073_v19 = vpack.c.bf16 %v5795_v29, %v5794_v40  ;;  %v5830_v5 = vld [vmem:[#allocation13 + $0x170] sm:$0xff] }
 0x5f5   : > { %8086 = vmatpush3.bf16.msra.mxu1 %v8085_v60  ;;  %8056 = vmatprep.subr.bf16.mxu0 %v8055_v42  ;;  %v8075_v42 = vpack.c.bf16 %v5813_v39, %v5812_v17 }
 0x5f6   : > { %5431 = vmatmul.mubr.f32.gmra.mrb[110].mxu0 %v10139_v52  ;;  %8088 = vmatprep.subr.bf16.mxu1 %v8087_v0 }
 0x5f7   : > { %5633 = vmatmul.mubr.f32.gmra.mrb[80].mxu1 %v10139_v52  ;;  %5436 = vmatprep.mubr.f32.mxu0 %v10390_v20  ;;  %v5823_v52 = vld [vmem:[#allocation13 + $0x138] sm:$0xff] }
 0x5f8   : > { %5638 = vmatprep.mubr.f32.mxu1 %v10390_v20  ;;  %8058 = vmatpush3.bf16.msra.mxu0 %v8057_v9  ;;  %v8097_v37 = vpack.c.bf16 %v5823_v52, %v5822_v16  ;;  %v8079_v9 = vpack.c.bf16 %v5815_v24, %v5814_v6 }
 0x5f9   : > { %8090 = vmatpush3.bf16.msra.mxu1 %v8089_v36  ;;  %8060 = vmatprep.subr.bf16.mxu0 %v8059_v59  ;;  %v5847_v36 = vld [vmem:[#allocation13 + $0x1f8] sm:$0xff]  ;;  %v5798_v59 = vld [vmem:[#allocation13 + $0x70] sm:$0xff] }
 0x5fa   : > { %5437 = vmatmul.mubr.f32.gmra.mrb[112].mxu0 %v10144_v54  ;;  %8092 = vmatprep.subr.bf16.mxu1 %v8091_v22  ;;  %v8111_v3 = vpack.c.bf16 %v5847_v36, %v5846_v57  ;;  %v5831_v22 = vld [vmem:[#allocation13 + $0x178] sm:$0xff] }
 0x5fb   : > { %5639 = vmatmul.mubr.f32.gmra.mrb[82].mxu1 %v10144_v54  ;;  %5442 = vmatprep.mubr.f32.mxu0 %v10390_v20  ;;  %v5825_v54 = vld [vmem:[#allocation13 + $0x148] sm:$0xff]  ;;  %v8113_v38 = vpack.c.bf16 %v5831_v22, %v5830_v5 }
 0x5fc   : > { %5644 = vmatprep.mubr.f32.mxu1 %v10390_v20  ;;  %8062 = vmatpush3.bf16.msra.mxu0 %v8061_v33  ;;  %v8101_v45 = vpack.c.bf16 %v5825_v54, %v5824_v51  ;;  %v10267_v33 = vrot.slane %v5687_v27, %v10394_v8 }
 0x5fd   : > { %8094 = vmatpush3.bf16.msra.mxu1 %v8093_v47  ;;  %8064 = vmatprep.subr.bf16.mxu0 %v8063_v50  ;;  %v10395_v47 = vsub.s32 1, %v9454_v13 }
 0x5fe   : > { %5443 = vmatmul.mubr.f32.gmra.mrb[114].mxu0 %v10150_v30  ;;  %8096 = vmatprep.subr.bf16.mxu1 %v8095_v49 }
 0x5ff   : > { %5645 = vmatmul.mubr.f32.gmra.mrb[84].mxu1 %v10150_v30  ;;  %5448 = vmatprep.mubr.f32.mxu0 %v10390_v20  ;;  %v5827_v30 = vld [vmem:[#allocation13 + $0x158] sm:$0xff]  ;;  %v10271_v50 = vrot.slane %v5687_v27, %v10395_v47 }
 0x600   : > { %5650 = vmatprep.mubr.f32.mxu1 %v10390_v20  ;;  %8066 = vmatpush3.bf16.msra.mxu0 %v8065_v11  ;;  %v8105_v60 = vpack.c.bf16 %v5827_v30, %v5826_v35 }
 0x601   : > { %8098 = vmatpush3.bf16.msra.mxu1 %v8097_v37  ;;  %8068 = vmatprep.subr.bf16.mxu0 %v8067_v23 }
 0x602   : > { %5449 = vmatmul.mubr.f32.gmra.mrb[116].mxu0 %v10154_v41  ;;  %8100 = vmatprep.subr.bf16.mxu1 %v8099_v43 }
 0x603   : > { %5651 = vmatmul.mubr.f32.gmra.mrb[86].mxu1 %v10154_v41  ;;  %5454 = vmatprep.mubr.f32.mxu0 %v10390_v20  ;;  %v5796_v41 = vld [vmem:[#allocation13 + $0x60] sm:$0xff] }
 0x604   : > { %5656 = vmatprep.mubr.f32.mxu1 %v10390_v20  ;;  %8070 = vmatpush3.bf16.msra.mxu0 %v8069_v56  ;;  %v8077_v0 = vpack.c.bf16 %v5797_v15, %v5796_v41 }
 0x605   : > { %8102 = vmatpush3.bf16.msra.mxu1 %v8101_v45  ;;  %8072 = vmatprep.subr.bf16.mxu0 %v8071_v4 }
 0x606   : > { %5455 = vmatmul.mubr.f32.gmra.mrb[118].mxu0 %v10132_v55  ;;  %8104 = vmatprep.subr.bf16.mxu1 %v8103_v14 }
 0x607   : > { %5657 = vmatmul.mubr.f32.gmra.mrb[88].mxu1 %v10132_v55  ;;  %v5799_v55 = vld [vmem:[#allocation13 + $0x78] sm:$0xff] }
 0x608   : > { %8074 = vmatpush3.bf16.msra.mxu0 %v8073_v19  ;;  %v8081_v7 = vpack.c.bf16 %v5799_v55, %v5798_v59 }
 0x609   : > { %8106 = vmatpush3.bf16.msra.mxu1 %v8105_v60  ;;  %8076 = vmatprep.subr.bf16.mxu0 %v8075_v42 }
 0x60a   : > { %8108 = vmatprep.subr.bf16.mxu1 %v8107_v12 }
 0x60c   : > { %8078 = vmatpush3.bf16.msra.mxu0 %v8077_v0 }
 0x60d   : > { %8110 = vmatpush3.bf16.msra.mxu1 %v8109_v61  ;;  %8080 = vmatprep.subr.bf16.mxu0 %v8079_v9 }
 0x60e   : > { %8112 = vmatprep.subr.bf16.mxu1 %v8111_v3 }
 0x610   : > { %8082 = vmatpush3.bf16.msra.mxu0 %v8081_v7 }
 0x611   : > { %8114 = vmatpush3.bf16.msra.mxu1 %v8113_v38 }
 0x6c5   : > { %v5426_v16 = vpop.f32.mrb[108].mxu0 }
 0x6c6   : > { %v5709_v49 = vadd.f32 %v10262_v44, %v5426_v16  ;;  %v5628_v52 = vpop.f32.mrb[78].mxu1  ;;  %v5428_v46 = vpop.f32.mrb[109].mxu0 }
 0x6c7   : > { %v5711_v18 = vadd.f32 %v10267_v33, %v5628_v52  ;;  %v5710_v1 = vadd.f32 %v10271_v50, %v5428_v46  ;;  %v5630_v13 = vpop.f32.mrb[79].mxu1 }
 0x6c8   : > { %v5733_v63 = vmax.f32 %v5709_v49, 0.0  ;;  %v5712_v11 = vadd.f32 %v10275_v32, %v5630_v13 }
 0x6c9   : > { %v5735_v37 = vmax.f32 %v5711_v18, 0.0  ;;  %v5734_v23 = vmax.f32 %v5710_v1, 0.0  ;;  %v5432_v25 = vpop.f32.mrb[110].mxu0 }
 0x6ca   : > { %5757 = vst [vmem:[%s10281_s3] sm:$0xff] %v5733_v63  ;;  %v5736_v48 = vmax.f32 %v5712_v11, 0.0  ;;  %v5713_v51 = vadd.f32 %v10262_v44, %v5432_v25  ;;  %v5634_v43 = vpop.f32.mrb[80].mxu1  ;;  %v5434_v54 = vpop.f32.mrb[111].mxu0 }
 0x6cb   : > { %6444 = vst [vmem:[%s10281_s3 + $0x60] sm:$0xff] %v5735_v37  ;;  %6438 = vst [vmem:[%s10281_s3 + $0x30] sm:$0xff] %v5734_v23  ;;  %v5715_v58 = vadd.f32 %v10267_v33, %v5634_v43  ;;  %v5714_v53 = vadd.f32 %v10271_v50, %v5434_v54  ;;  %v5636_v31 = vpop.f32.mrb[81].mxu1  ;;  %5912 = vmatprep.mubr.f32.mxu0 %v5734_v23 }
 0x6cc   : > { %6450 = vst [vmem:[%s10281_s3 + $0x90] sm:$0xff] %v5736_v48  ;;  %v5737_v34 = vmax.f32 %v5713_v51, 0.0  ;;  %v5716_v56 = vadd.f32 %v10275_v32, %v5636_v31  ;;  %6007 = vmatprep.mubr.f32.mxu1 %v5736_v48  ;;  %5913 = vmatmul.mubr.f32.vlgmr.msra.gmra.mrb[120].mxu0 %v5733_v63 }
 0x6cd   : > { %v5739_v45 = vmax.f32 %v5715_v58, 0.0  ;;  %v5738_v4 = vmax.f32 %v5714_v53, 0.0  ;;  %6008 = vmatmul.mubr.f32.vlgmr.msra.gmra.mrb[90].mxu1 %v5735_v37  ;;  %v5438_v40 = vpop.f32.mrb[112].mxu0 }
 0x6ce   : > { %5758 = vst [vmem:[%s10281_s3 + $0x8] sm:$0xff] %v5737_v34  ;;  %v5740_v29 = vmax.f32 %v5716_v56, 0.0  ;;  %v5717_v35 = vadd.f32 %v10262_v44, %v5438_v40  ;;  %v5640_v14 = vpop.f32.mrb[82].mxu1  ;;  %v5440_v30 = vpop.f32.mrb[113].mxu0 }
 0x6cf   : > { %6445 = vst [vmem:[%s10281_s3 + $0x68] sm:$0xff] %v5739_v45  ;;  %6439 = vst [vmem:[%s10281_s3 + $0x38] sm:$0xff] %v5738_v4  ;;  %v5719_v17 = vadd.f32 %v10267_v33, %v5640_v14  ;;  %v5718_v39 = vadd.f32 %v10271_v50, %v5440_v30  ;;  %v5642_v2 = vpop.f32.mrb[83].mxu1  ;;  %5917 = vmatprep.mubr.f32.mxu0 %v5738_v4 }
 0x6d0   : > { %6451 = vst [vmem:[%s10281_s3 + $0x98] sm:$0xff] %v5740_v29  ;;  %v5741_v26 = vmax.f32 %v5717_v35, 0.0  ;;  %v5720_v19 = vadd.f32 %v10275_v32, %v5642_v2  ;;  %6012 = vmatprep.mubr.f32.mxu1 %v5740_v29  ;;  %5918 = vmatmul.mubr.f32.gmra.mrb[122].mxu0 %v5737_v34 }
 0x6d1   : > { %v5743_v60 = vmax.f32 %v5719_v17, 0.0  ;;  %v5742_v42 = vmax.f32 %v5718_v39, 0.0  ;;  %6013 = vmatmul.mubr.f32.gmra.mrb[92].mxu1 %v5739_v45  ;;  %v5444_v12 = vpop.f32.mrb[114].mxu0 }
 0x6d2   : > { %5759 = vst [vmem:[%s10281_s3 + $0x10] sm:$0xff] %v5741_v26  ;;  %v5744_v41 = vmax.f32 %v5720_v19, 0.0  ;;  %v5721_v15 = vadd.f32 %v10262_v44, %v5444_v12  ;;  %v5646_v21 = vpop.f32.mrb[84].mxu1  ;;  %v5446_v0 = vpop.f32.mrb[115].mxu0 }
 0x6d3   : > { %6446 = vst [vmem:[%s10281_s3 + $0x70] sm:$0xff] %v5743_v60  ;;  %6440 = vst [vmem:[%s10281_s3 + $0x40] sm:$0xff] %v5742_v42  ;;  %v5723_v28 = vadd.f32 %v10267_v33, %v5646_v21  ;;  %v5722_v61 = vadd.f32 %v10271_v50, %v5446_v0  ;;  %v5648_v6 = vpop.f32.mrb[85].mxu1  ;;  %5922 = vmatprep.mubr.f32.mxu0 %v5742_v42 }
 0x6d4   : > { %6452 = vst [vmem:[%s10281_s3 + $0xa0] sm:$0xff] %v5744_v41  ;;  %v5745_v24 = vmax.f32 %v5721_v15, 0.0  ;;  %v5724_v57 = vadd.f32 %v10275_v32, %v5648_v6  ;;  %6017 = vmatprep.mubr.f32.mxu1 %v5744_v41  ;;  %5923 = vmatmul.mubr.f32.gmra.mrb[124].mxu0 %v5741_v26 }
 0x6d5   : > { %v5747_v9 = vmax.f32 %v5723_v28, 0.0  ;;  %v5746_v36 = vmax.f32 %v5722_v61, 0.0  ;;  %6018 = vmatmul.mubr.f32.gmra.mrb[94].mxu1 %v5743_v60  ;;  %v5450_v59 = vpop.f32.mrb[116].mxu0 }
 0x6d6   : > { %5760 = vst [vmem:[%s10281_s3 + $0x18] sm:$0xff] %v5745_v24  ;;  %v5748_v55 = vmax.f32 %v5724_v57, 0.0  ;;  %v5725_v3 = vadd.f32 %v10262_v44, %v5450_v59  ;;  %v5652_v7 = vpop.f32.mrb[86].mxu1  ;;  %v5452_v5 = vpop.f32.mrb[117].mxu0 }
 0x6d7   : > { %6447 = vst [vmem:[%s10281_s3 + $0x78] sm:$0xff] %v5747_v9  ;;  %6441 = vst [vmem:[%s10281_s3 + $0x48] sm:$0xff] %v5746_v36  ;;  %v5727_v22 = vadd.f32 %v10267_v33, %v5652_v7  ;;  %v5726_v38 = vadd.f32 %v10271_v50, %v5452_v5  ;;  %v5654_v27 = vpop.f32.mrb[87].mxu1  ;;  %5927 = vmatprep.mubr.f32.mxu0 %v5746_v36 }
 0x6d8   : > { %6453 = vst [vmem:[%s10281_s3 + $0xa8] sm:$0xff] %v5748_v55  ;;  %v5749_v62 = vmax.f32 %v5725_v3, 0.0  ;;  %v5728_v8 = vadd.f32 %v10275_v32, %v5654_v27  ;;  %6022 = vmatprep.mubr.f32.mxu1 %v5748_v55  ;;  %5928 = vmatmul.mubr.f32.gmra.mrb[126].mxu0 %v5745_v24 }
 0x6d9   : > { %v5751_v47 = vmax.f32 %v5727_v22, 0.0  ;;  %v5750_v10 = vmax.f32 %v5726_v38, 0.0  ;;  %6023 = vmatmul.mubr.f32.gmra.mrb[96].mxu1 %v5747_v9  ;;  %v5456_v16 = vpop.f32.mrb[118].mxu0 }
 0x6da   : > { %5761 = vst [vmem:[%s10281_s3 + $0x20] sm:$0xff] %v5749_v62  ;;  %v5752_v49 = vmax.f32 %v5728_v8, 0.0  ;;  %v5729_v52 = vadd.f32 %v10262_v44, %v5456_v16  ;;  %v5658_v46 = vpop.f32.mrb[88].mxu1  ;;  %v5458_v18 = vpop.f32.mrb[119].mxu0  ;;  %v6038_v8 = vld [vmem:[#allocation14] sm:$0xff] }
 0x6db   : > { %6448 = vst [vmem:[%s10281_s3 + $0x80] sm:$0xff] %v5751_v47  ;;  %6442 = vst [vmem:[%s10281_s3 + $0x50] sm:$0xff] %v5750_v10  ;;  %v5731_v1 = vadd.f32 %v10267_v33, %v5658_v46  ;;  %v5730_v13 = vadd.f32 %v10271_v50, %v5458_v18  ;;  %v5660_v63 = vpop.f32.mrb[89].mxu1  ;;  %5932 = vmatprep.mubr.f32.mxu0 %v5750_v10  ;;  %v8834_v33 = vmov 0.0|0.0  }
 0x6dc   : > { %6454 = vst [vmem:[%s10281_s3 + $0xb0] sm:$0xff] %v5752_v49  ;;  %v5753_v11 = vmax.f32 %v5729_v52, 0.0  ;;  %v5732_v37 = vadd.f32 %v10275_v32, %v5660_v63  ;;  %6027 = vmatprep.mubr.f32.mxu1 %v5752_v49  ;;  %5933 = vmatmul.mubr.f32.gmra.mrb[128].mxu0 %v5749_v62  ;;  %v6039_v62 = vld [vmem:[#allocation14 + $0x8] sm:$0xff] }
 0x6dd   : > { %v5755_v44 = vmax.f32 %v5731_v1, 0.0  ;;  %v5754_v23 = vmax.f32 %v5730_v13, 0.0  ;;  %6028 = vmatmul.mubr.f32.gmra.mrb[98].mxu1 %v5751_v47  ;;  %8115 = vmatprep.subr.bf16.mxu0 %v8834_v33  ;;  %v6040_v47 = vld [vmem:[#allocation14 + $0x10] sm:$0xff] }
 0x6de   : > { %5762 = vst [vmem:[%s10281_s3 + $0x28] sm:$0x1f] %v5753_v11  ;;  %v5756_v25 = vmax.f32 %v5732_v37, 0.0  ;;  %8125 = vmatprep.subr.bf16.mxu1 %v8834_v33 }
 0x6df   : > { %6449 = vst [vmem:[%s10281_s3 + $0x88] sm:$0x1f] %v5755_v44  ;;  %6443 = vst [vmem:[%s10281_s3 + $0x58] sm:$0x1f] %v5754_v23  ;;  %5937 = vmatprep.mubr.f32.mxu0 %v5754_v23 }
 0x6e0   : > { %6455 = vst [vmem:[%s10281_s3 + $0xb8] sm:$0x1f] %v5756_v25  ;;  %6032 = vmatprep.mubr.f32.mxu1 %v5756_v25  ;;  %5938 = vmatmul.mubr.f32.gmra.mrb[130].mxu0 %v5753_v11 }
 0x6e1   : > { %6033 = vmatmul.mubr.f32.gmra.mrb[100].mxu1 %v5755_v44  ;;  %6838 = vmatprep.mubr.msk.f32.mxu0 %vm8835_vm7, %v10390_v20 }
 0x6e2   : > { %6841 = vmatprep.mubr.msk.f32.mxu1 %vm8835_vm7, %v10390_v20 }
 0x79f   : > { %v6716_v50 = vpop.f32.mrb[120].mxu0 }
 0x7a0   : > { %v6766_v32 = vpop.f32.mrb[90].mxu1  ;;  %v6717_v48 = vpop.f32.mrb[121].mxu0 }
 0x7a1   : > { %v6718_v51 = vadd.f32 %v6717_v48, %v6716_v50  ;;  %v6767_v43 = vpop.f32.mrb[91].mxu1 }
 0x7a2   : > { %v6768_v54 = vadd.f32 %v6767_v43, %v6766_v32 }
 0x7a3   : > { %v6719_v58 = vpop.f32.mrb[122].mxu0 }
 0x7a4   : > { %v6010_v53 = vadd.f32 %v6768_v54, %v6718_v51  ;;  %v6769_v31 = vpop.f32.mrb[92].mxu1  ;;  %v6720_v34 = vpop.f32.mrb[123].mxu0 }
 0x7a5   : > { %v6721_v56 = vadd.f32 %v6720_v34, %v6719_v58  ;;  %v6770_v45 = vpop.f32.mrb[93].mxu1 }
 0x7a6   : > { %v6771_v4 = vadd.f32 %v6770_v45, %v6769_v31 }
 0x7a7   : > { %v6722_v40 = vpop.f32.mrb[124].mxu0 }
 0x7a8   : > { %v6015_v29 = vadd.f32 %v6771_v4, %v6721_v56  ;;  %v6772_v35 = vpop.f32.mrb[94].mxu1  ;;  %v6723_v14 = vpop.f32.mrb[125].mxu0 }
 0x7a9   : > { %v6724_v30 = vadd.f32 %v6723_v14, %v6722_v40  ;;  %v6773_v17 = vpop.f32.mrb[95].mxu1 }
 0x7aa   : > { %v8116_v39 = vpack.c.bf16 %v6015_v29, %v6010_v53  ;;  %v6774_v2 = vadd.f32 %v6773_v17, %v6772_v35 }
 0x7ab   : > { %v6725_v26 = vpop.f32.mrb[126].mxu0 }
 0x7ac   : > { %v6020_v19 = vadd.f32 %v6774_v2, %v6724_v30  ;;  %v6775_v60 = vpop.f32.mrb[96].mxu1  ;;  %8117 = vmatpush3.bf16.msra.mxu0 %v8116_v39  ;;  %8128 = vmatpush3.bf16.msra.mxu1 %v8116_v39  ;;  %v6726_v42 = vpop.f32.mrb[127].mxu0 }
 0x7ad   : > { %v6727_v12 = vadd.f32 %v6726_v42, %v6725_v26  ;;  %v6776_v41 = vpop.f32.mrb[97].mxu1  ;;  %8118 = vmatprep.subr.bf16.mxu0 %v8834_v33  ;;  %8126 = vmatprep.subr.bf16.mxu1 %v8834_v33 }
 0x7ae   : > { %v6777_v15 = vadd.f32 %v6776_v41, %v6775_v60 }
 0x7af   : > { %v6728_v21 = vpop.f32.mrb[128].mxu0 }
 0x7b0   : > { %v6025_v0 = vadd.f32 %v6777_v15, %v6727_v12  ;;  %v6778_v28 = vpop.f32.mrb[98].mxu1  ;;  %v6729_v61 = vpop.f32.mrb[129].mxu0 }
 0x7b1   : > { %v6730_v6 = vadd.f32 %v6729_v61, %v6728_v21  ;;  %v6779_v24 = vpop.f32.mrb[99].mxu1 }
 0x7b2   : > { %v8119_v57 = vpack.c.bf16 %v6025_v0, %v6020_v19  ;;  %v6780_v9 = vadd.f32 %v6779_v24, %v6778_v28 }
 0x7b3   : > { %v6731_v36 = vpop.f32.mrb[130].mxu0 }
 0x7b4   : > { %v6030_v59 = vadd.f32 %v6780_v9, %v6730_v6  ;;  %v6781_v55 = vpop.f32.mrb[100].mxu1  ;;  %8120 = vmatpush3.bf16.msra.mxu0 %v8119_v57  ;;  %8129 = vmatpush3.bf16.msra.mxu1 %v8119_v57  ;;  %v6732_v3 = vpop.f32.mrb[131].mxu0 }
 0x7b5   : > { %v6733_v7 = vadd.f32 %v6732_v3, %v6731_v36  ;;  %v6782_v5 = vpop.f32.mrb[101].mxu1  ;;  %8121 = vmatprep.subr.bf16.mxu0 %v8834_v33  ;;  %8127 = vmatprep.subr.bf16.mxu1 %v8834_v33 }
 0x7b6   : > { %v6783_v22 = vadd.f32 %v6782_v5, %v6781_v55 }
 0x7b8   : > { %v6035_v38 = vadd.f32 %v6783_v22, %v6733_v7 }
 0x7ba   : > { %v8122_v27 = vpack.c.bf16 %v6035_v38, %v6030_v59 }
 0x7bc   : > { %8124 = vmatpush3.bf16.msk.msra.mxu0 %vm8123_vm9, %v8122_v27  ;;  %8130 = vmatpush3.bf16.msk.msra.mxu1 %vm8123_vm9, %v8122_v27 }
 0x7bf   : > { %6842 = vmatmul.mubr.msk.f32.vlgmr.msra.gmra.mrb[102].mxu1 %vm6041_vm10, %v6039_v62  ;;  %6839 = vmatmul.mubr.msk.f32.vlgmr.msra.gmra.mrb[132].mxu0 %vm6041_vm10, %v6038_v8 }
 0x7c0   : > { %6844 = vmatprep.mubr.msk.f32.mxu1 %vm8835_vm7, %v10390_v20 }
 0x7c3   : > { %6845 = vmatmul.mubr.msk.f32.gmra.mrb[104].mxu1 %vm6041_vm10, %v6040_v47 }
 0x892   : > { %v6126_v10 = vpop.f32.mrb[102].mxu1  ;;  %v6121_v16 = vpop.f32.mrb[132].mxu0 }
 0x893   : > { %6136 = vst [vmem:[%s524_s27 + $0x8] sm:$0xff] %v6126_v10  ;;  %v6843_v49 = vpop.f32.mrb[103].mxu1  ;;  %6135 = vst [vmem:[%s524_s27] sm:$0xff] %v6121_v16  ;;  %v6840_v52 = vpop.f32.mrb[133].mxu0 }
 0x896   : > { %v6131_v46 = vpop.f32.mrb[104].mxu1 }
 0x897   : > { %6137 = vst [vmem:[%s524_s27 + $0x10] sm:$0xff] %v6131_v46  ;;  %v6846_v18 = vpop.f32.mrb[105].mxu1 }
 0x898 PF: > { %s27_s17 = sadd.s32 1, %s8814_s17  }
 0x899   : > { %p24_p11 = scmp.ge.s32.totalorder %s27_s17, 4  }
 0x89b   :  { %26 = sbr.rel (!%p24_p11) target bundleno = 8 (0x8), region = 155 }
 0x8a2   :  { %6191 = vsyncpa [#allocation4], 1 }
 0x8a3   :  { %6193 = vsyncpa [#allocation4 + $0x1], 1 }
 0x8a4   :  { %6194 = vsyncpa [#allocation6], 1 }
 0x8a5   :  { %6195 = vsyncpa [#allocation9], 1 }
 0x8a6   :  { %6196 = vsyncpa [#allocation12], 1 }
 0x8a7   :  { %6197 = vsyncpa [#allocation15], 1 }

</bundles_post_ra>
